<compile_context>
chip_gen: v5e
topology: v5e:2x2
jax: 0.10.0
libtpu: 0.0.40
codegen_flags: <defaults>
</compile_context>

<pallas_src>
import functools

import jax
import jax.numpy as jnp
from jax.experimental import pallas as pl
from jax.experimental.pallas import tpu as pltpu

# ----------------------------- model dims ----------------------------------
FDIM = 32      # feature-encoder output channels
HDIM = 32      # GRU hidden dim
CDIM = 32      # context dim
NUM_ITERS = 4  # TODO(synk): torchvision raft_large uses 12 recurrent updates.


# ----------------------------- Pallas kernels ------------------------------
def _conv_tap_kernel(x_ref, w_ref, b_ref, *rest, taps, mg, act, split):
    """Tap-accumulating 3x3 conv for one batch element.

    x_ref : (1, P, Lg, Cin)  flattened (phase, padded-grid) input, bf16
    w_ref : (9, Cin, Cout)   per-tap weights, bf16 (resident)
    b_ref : (1, Cout)        bias, f32 (resident)
    rest  : (o_ref,)  or  (z_ref, h_ref, o_ref) when act == "gru"

    Output rows live on the padded grid (width Wg); the junk right-hand
    columns are sliced off by the wrapper.  f32 accumulation over the 9 taps,
    fused bias + activation (+ GRU state update) epilogue.
    """
    if act == "gru":
        z_ref, h_ref, o_ref = rest
    else:
        (o_ref,) = rest

    acc = None
    for t, (ph, off) in enumerate(taps):                      # 9 static taps
        a = x_ref[0, ph, pl.ds(off, mg), :]                   # (Mg, Cin) bf16
        c = jnp.dot(a, w_ref[t], preferred_element_type=jnp.float32)
        acc = c if acc is None else acc + c
    acc = acc + b_ref[...]

    if act == "relu":
        out = jnp.maximum(acc, 0.0)
    elif act == "tanh":
        out = jnp.tanh(acc)
    elif act == "sigmoid":
        out = 1.0 / (1.0 + jnp.exp(-acc))
    elif act == "split_tanh_relu":
        # tanh on cols < split (hidden half), relu on cols >= split (context)
        col = jax.lax.broadcasted_iota(jnp.int32, acc.shape, 1)
        out = jnp.where(col < split, jnp.tanh(acc), jnp.maximum(acc, 0.0))
    elif act == "gru":
        # fused ConvGRU state update: h_new = (1-z)*h + z*tanh(conv)
        q = jnp.tanh(acc)
        z = z_ref[0].astype(jnp.float32)
        h = h_ref[0].astype(jnp.float32)
        out = (1.0 - z) * h + z * q
    else:
        out = acc
    o_ref[0] = out.astype(o_ref.dtype)


def conv2d(x, w_taps, b_row, stride, act="none", split=0, extras=None,
           out_dtype=jnp.bfloat16):
    """3x3 conv (pad=1, stride 1 or 2) via in-kernel tap accumulation.

    x      : (N, H, W, Cin) NHWC (cast to bf16)
    w_taps : (9, Cin, Cout) bf16 per-tap weights
    b_row  : (1, Cout) f32 bias
    extras : (z, hidden) valid-grid tensors for the fused GRU epilogue.
    """
    k, p = 3, 1
    n, h, w, cin = x.shape
    t, cin_w, cout = w_taps.shape
    assert t == k * k and cin_w == cin
    assert stride in (1, 2)

    x = x.astype(jnp.bfloat16)
    # extra (k-1) zero bottom rows keep every in-kernel tap slice in bounds
    xpad = jnp.pad(x, ((0, 0), (p, p + k - 1), (p, p), (0, 0)))
    hp, wp = h + 2 * p + k - 1, w + 2 * p

    if stride == 1:
        xs = xpad.reshape(n, 1, hp * wp, cin)
        wg, hout, wout = wp, h, w
        taps = tuple((0, di * wp + dj) for di in range(k) for dj in range(k))
    else:
        assert h % 2 == 0 and w % 2 == 0
        hh, wh = hp // 2, wp // 2
        # space-to-depth into 4 phases -> every tap is a stride-1 slice
        xs = xpad.reshape(n, hh, 2, wh, 2, cin).transpose(0, 2, 4, 1, 3, 5)
        xs = xs.reshape(n, 4, hh * wh, cin)
        wg, hout, wout = wh, h // 2, w // 2
        taps = tuple(((di % 2) * 2 + (dj % 2), (di // 2) * wg + (dj // 2))
                     for di in range(k) for dj in range(k))

    mg = hout * wg                      # output rows on the padded grid
    nphase, lg = xs.shape[1], xs.shape[2]

    in_specs = [
        pl.BlockSpec((1, nphase, lg, cin), lambda i: (i, 0, 0, 0)),
        pl.BlockSpec((t, cin, cout), lambda i: (0, 0, 0)),       # resident
        pl.BlockSpec((1, cout), lambda i: (0, 0)),                # resident
    ]
    args = [xs, w_taps, b_row]

    if act == "gru":
        z, hid = extras
        def to_grid(a):  # valid grid -> padded output grid (N, Mg, C)
            a = a.reshape(n, hout, wout, -1).astype(jnp.bfloat16)
            a = jnp.pad(a, ((0, 0), (0, 0), (0, wg - wout), (0, 0)))
            return a.reshape(n, mg, a.shape[-1])
        zg, hg = to_grid(z), to_grid(hid)
        in_specs += [pl.BlockSpec((1, mg, zg.shape[-1]), lambda i: (i, 0, 0)),
                     pl.BlockSpec((1, mg, hg.shape[-1]), lambda i: (i, 0, 0))]
        args += [zg, hg]

    out = pl.pallas_call(
        functools.partial(_conv_tap_kernel, taps=taps, mg=mg, act=act,
                          split=split),
        out_shape=jax.ShapeDtypeStruct((n, mg, cout), out_dtype),
        grid=(n,),
        in_specs=in_specs,
        out_specs=pl.BlockSpec((1, mg, cout), lambda i: (i, 0, 0)),
        compiler_params=pltpu.CompilerParams(
            dimension_semantics=("parallel",)),
    )(*args)
    # drop the junk right-hand columns of the padded output grid
    return out.reshape(n, hout, wg, cout)[:, :, :wout, :]


def _corr_mc_kernel(f1_ref, f2t_ref, wmc_ref, b_ref, o_ref, acc_ref, *, scale):
    """Fused all-pairs correlation + 1x1 "mc1" conv: the correlation volume is
    reduced over the key axis on the fly and never materialized in HBM."""
    j = pl.program_id(2)

    @pl.when(j == 0)
    def _():
        acc_ref[...] = jnp.zeros_like(acc_ref)

    c = jnp.dot(f1_ref[0], f2t_ref[0],
                preferred_element_type=jnp.float32) * scale      # (tq, tk)
    acc_ref[...] += jnp.dot(c.astype(jnp.bfloat16), wmc_ref[...],
                            preferred_element_type=jnp.float32)  # (tq, 32)

    @pl.when(j == pl.num_programs(2) - 1)
    def _():
        o_ref[0] = jnp.maximum(acc_ref[...] + b_ref[...], 0.0).astype(o_ref.dtype)


def correlation_mc(f1, f2, wmc, bmc, tq=256, tk=256):
    """mc[b,i,:] = relu(sum_j (<f1[b,i],f2[b,j]>/sqrt(F)) * Wmc[j,:] + bmc)."""
    nb, hw, fdim = f1.shape
    mcout = wmc.shape[-1]
    scale = 1.0 / (fdim ** 0.5)
    f2t = jnp.transpose(f2, (0, 2, 1))                  # (N, F, HW) pre-transposed

    tq_eff = hw if hw <= tq else tq
    tk_eff = hw if hw <= tk else tk
    hwk = pl.cdiv(hw, tk_eff) * tk_eff
    if hwk != hw:   # zero-pad key axis so partial tiles contribute exactly 0
        f2t = jnp.pad(f2t, ((0, 0), (0, 0), (0, hwk - hw)))
        wmc = jnp.pad(wmc, ((0, hwk - hw), (0, 0)))

    grid = (nb, pl.cdiv(hw, tq_eff), hwk // tk_eff)
    out = pl.pallas_call(
        functools.partial(_corr_mc_kernel, scale=scale),
        out_shape=jax.ShapeDtypeStruct((nb, hw, mcout), jnp.bfloat16),
        grid=grid,
        in_specs=[
            pl.BlockSpec((1, tq_eff, fdim), lambda b, i, j: (b, i, 0)),
            pl.BlockSpec((1, fdim, tk_eff), lambda b, i, j: (b, 0, j)),
            pl.BlockSpec((tk_eff, mcout), lambda b, i, j: (j, 0)),
            pl.BlockSpec((1, mcout), lambda b, i, j: (0, 0)),
        ],
        out_specs=pl.BlockSpec((1, tq_eff, mcout), lambda b, i, j: (b, i, 0)),
        scratch_shapes=[pltpu.VMEM((tq_eff, mcout), jnp.float32)],
        compiler_params=pltpu.CompilerParams(
            dimension_semantics=("parallel", "parallel", "arbitrary")),
    )(f1.astype(jnp.bfloat16), f2t.astype(jnp.bfloat16),
      wmc.astype(jnp.bfloat16), bmc.astype(jnp.float32))
    return out


# ----------------------------- parameters -----------------------------------
def _init_conv(key, kh, kw, cin, cout):
    k1, k2 = jax.random.split(key)
    w = jax.random.normal(k1, (kh, kw, cin, cout), jnp.float32)
    w = w * (1.0 / (kh * kw * cin) ** 0.5)
    b = 0.01 * jax.random.normal(k2, (cout,), jnp.float32)
    return w, b


def make_params(key, corr_dim=16):
    names_shapes = [
        ("f1", (3, 3, 3, 16)), ("f2", (3, 3, 16, 24)), ("f3", (3, 3, 24, FDIM)),
        ("c1", (3, 3, 3, 16)), ("c2", (3, 3, 16, 24)), ("c3", (3, 3, 24, HDIM + CDIM)),
        ("mc1", (1, 1, corr_dim, 32)),  # corr features -> 32 (corr_dim = H/8*W/8)
        ("mf1", (3, 3, 2, 16)),         # flow -> 16
        ("m", (3, 3, 48, 30)),          # concat -> 30 (motion = 30 + flow 2 = 32)
        ("gz", (3, 3, HDIM + 64, HDIM)),
        ("gr", (3, 3, HDIM + 64, HDIM)),
        ("gq", (3, 3, HDIM + 64, HDIM)),
        ("fh1", (3, 3, HDIM, 32)), ("fh2", (3, 3, 32, 2)),
    ]
    keys = jax.random.split(key, len(names_shapes))
    params = {}
    for k, (name, (kh, kw, cin, cout)) in zip(keys, names_shapes):
        w, b = _init_conv(k, kh, kw, cin, cout)
        params[name + "_w"] = w
        params[name + "_b"] = b
    return params


# ----------------------------- forward ---------------------------------------
def raft_forward(params, i1, i2, num_iters=NUM_ITERS):
    nb, _, h, w = i1.shape
    x1 = jnp.transpose(i1, (0, 2, 3, 1)).astype(jnp.bfloat16)   # NCHW -> NHWC
    x2 = jnp.transpose(i2, (0, 2, 3, 1)).astype(jnp.bfloat16)

    # ---- prepare weights once (bf16 taps, (1, Cout) f32 biases) ----
    def P(name):
        wt, bb = params[name + "_w"], params[name + "_b"]
        kh, kw, cin, cout = wt.shape
        return (wt.reshape(kh * kw, cin, cout).astype(jnp.bfloat16),
                bb.reshape(1, cout).astype(jnp.float32))

    f1p, f2p, f3p = P("f1"), P("f2"), P("f3")
    c1p, c2p, c3p = P("c1"), P("c2"), P("c3")
    mf1p, mp, gqp = P("mf1"), P("m"), P("gq")
    fh1p, fh2p = P("fh1"), P("fh2")
    # fused z/r gate conv (Cout = 2*HDIM), concatenated once outside the loop
    gzr_w = jnp.concatenate([params["gz_w"], params["gr_w"]], axis=-1)
    gzr_b = jnp.concatenate([params["gz_b"], params["gr_b"]], axis=-1)
    gzrp = (gzr_w.reshape(9, HDIM + 64, 2 * HDIM).astype(jnp.bfloat16),
            gzr_b.reshape(1, 2 * HDIM).astype(jnp.float32))
    wmc = params["mc1_w"].reshape(-1, 32).astype(jnp.bfloat16)
    bmc = params["mc1_b"].reshape(1, 32).astype(jnp.float32)

    def feature_encoder(x):
        x = conv2d(x, *f1p, stride=2, act="relu")
        x = conv2d(x, *f2p, stride=2, act="relu")
        x = conv2d(x, *f3p, stride=2, act="relu")
        return x

    fmap1 = feature_encoder(x1)                 # (N, H/8, W/8, F) bf16
    fmap2 = feature_encoder(x2)

    # context encoder (on i1 only): fused conv with per-half tanh/relu epilogue
    c = conv2d(x1, *c1p, stride=2, act="relu")
    c = conv2d(c, *c2p, stride=2, act="relu")
    hc = conv2d(c, *c3p, stride=2, act="split_tanh_relu", split=HDIM)
    hidden = hc[..., :HDIM]                     # tanh half
    ctx = hc[..., HDIM:]                        # relu half

    h8, w8 = fmap1.shape[1], fmap1.shape[2]
    hw8 = h8 * w8
    # fused all-pairs correlation + mc1 (loop-invariant corr features);
    # the (N, HW8, HW8) correlation volume never hits HBM.
    # TODO(synk): real RAFT builds a 4-level correlation pyramid and does
    # flow-dependent bilinear lookups (radius 4); here the full correlation
    # row per pixel is reduced by the mc1 1x1 conv.
    mc = correlation_mc(fmap1.reshape(nb, hw8, FDIM),
                        fmap2.reshape(nb, hw8, FDIM), wmc, bmc)
    mc = mc.reshape(nb, h8, w8, 32)

    flow = jnp.zeros((nb, h8, w8, 2), jnp.float32)

    for _ in range(num_iters):
        # motion encoder (mc is loop-invariant, computed above)
        mf = conv2d(flow.astype(jnp.bfloat16), *mf1p, stride=1, act="relu")
        m = conv2d(jnp.concatenate([mc, mf], -1), *mp, stride=1, act="relu")
        motion = jnp.concatenate([m, flow.astype(jnp.bfloat16)], -1)  # 32 ch
        x_in = jnp.concatenate([motion, ctx], -1)                     # 64 ch

        # ConvGRU: fused z/r conv (sigmoid epilogue), q conv with fused
        # tanh + state-update epilogue (no separate gru_update kernel).
        hx = jnp.concatenate([hidden, x_in], -1)                      # HDIM+64
        zr = conv2d(hx, *gzrp, stride=1, act="sigmoid")
        z = zr[..., :HDIM]
        r = zr[..., HDIM:]
        rh = r * hidden
        hidden = conv2d(jnp.concatenate([rh, x_in], -1), *gqp, stride=1,
                        act="gru", extras=(z, hidden))

        # flow head
        df = conv2d(hidden, *fh1p, stride=1, act="relu")
        df = conv2d(df, *fh2p, stride=1, act="none")
        flow = flow + df.astype(jnp.float32)

    # TODO(synk): real RAFT uses a learned convex-upsampling mask; bilinear x8.
    flow_up = 8.0 * jax.image.resize(flow, (nb, h, w, 2), method="bilinear")
    return jnp.transpose(flow_up, (0, 3, 1, 2))              # (N, 2, H, W)


# ----------------------------- main ------------------------------------------
if __name__ == "__main__":
    key = jax.random.PRNGKey(0)
    pkey, k1, k2 = jax.random.split(key, 3)

    # small shapes consistent with RAFT's /8 feature resolution
    i1 = jax.random.uniform(k1, (2, 3, 32, 32), jnp.float32)
    i2 = jax.random.uniform(k2, (2, 3, 32, 32), jnp.float32)
    params = make_params(pkey, corr_dim=(32 // 8) * (32 // 8))

    fwd = jax.jit(functools.partial(raft_forward, num_iters=NUM_ITERS))
    flow = fwd(params, i1, i2)
    jax.block_until_ready(flow)

    assert flow.shape == (2, 2, 32, 32) and flow.dtype == jnp.float32
    print("KERNEL_OK")
</pallas_src>

<mosaic_0001>
module attributes {stable_mosaic.version = 11 : i64} {
  func.func @_conv_tap_kernel(%arg0: i32, %arg1: memref<1x4x306x3xbf16, #tpu.memory_space<vmem>>, %arg2: memref<9x3x16xbf16, #tpu.memory_space<vmem>>, %arg3: memref<1x16xf32, #tpu.memory_space<vmem>>, %arg4: memref<1x272x16xbf16, #tpu.memory_space<vmem>>) attributes {dimension_semantics = [#tpu.dimension_semantics<parallel>], iteration_bounds = array<i64: 2>, scalar_prefetch = 0 : i64, scratch_operands = 0 : i64, tpu.core_type = #tpu.core_type<tc>, window_params = [{transform_indices = @transform_0, window_bounds = array<i64: 1, 4, 306, 3>}, {pipeline_mode = #tpu.pipeline_mode<synchronous>, transform_indices = @transform_1, window_bounds = array<i64: 9, 3, 16>}, {pipeline_mode = #tpu.pipeline_mode<synchronous>, transform_indices = @transform_2, window_bounds = array<i64: 1, 16>}, {transform_indices = @transform_3, window_bounds = array<i64: 1, 272, 16>}]} {
    %c0 = arith.constant 0 : index
    %c0_0 = arith.constant 0 : index
    %c0_1 = arith.constant 0 : index
    %c0_2 = arith.constant 0 : index
    %0 = vector.load %arg1[%c0, %c0_0, %c0_1, %c0_2] : memref<1x4x306x3xbf16, #tpu.memory_space<vmem>>, vector<1x1x272x3xbf16>
    %1 = vector.shape_cast %0 : vector<1x1x272x3xbf16> to vector<272x3xbf16>
    %c0_3 = arith.constant 0 : index
    %c0_4 = arith.constant 0 : index
    %c0_5 = arith.constant 0 : index
    %2 = vector.load %arg2[%c0_3, %c0_4, %c0_5] : memref<9x3x16xbf16, #tpu.memory_space<vmem>>, vector<1x3x16xbf16>
    %3 = vector.shape_cast %2 : vector<1x3x16xbf16> to vector<3x16xbf16>
    %cst = arith.constant dense<0.000000e+00> : vector<272x16xf32>
    %4 = tpu.matmul %1, %3, %cst {dimension_numbers = #tpu.dot_dimension_numbers<[1], [0], [0], [1], [0, 0, 1, 1], [], []>} : vector<272x3xbf16>, vector<3x16xbf16>, vector<272x16xf32> -> vector<272x16xf32>
    %c0_6 = arith.constant 0 : index
    %c1 = arith.constant 1 : index
    %c0_7 = arith.constant 0 : index
    %c0_8 = arith.constant 0 : index
    %5 = vector.load %arg1[%c0_6, %c1, %c0_7, %c0_8] : memref<1x4x306x3xbf16, #tpu.memory_space<vmem>>, vector<1x1x272x3xbf16>
    %6 = vector.shape_cast %5 : vector<1x1x272x3xbf16> to vector<272x3xbf16>
    %c1_9 = arith.constant 1 : index
    %c0_10 = arith.constant 0 : index
    %c0_11 = arith.constant 0 : index
    %7 = vector.load %arg2[%c1_9, %c0_10, %c0_11] : memref<9x3x16xbf16, #tpu.memory_space<vmem>>, vector<1x3x16xbf16>
    %8 = vector.shape_cast %7 : vector<1x3x16xbf16> to vector<3x16xbf16>
    %cst_12 = arith.constant dense<0.000000e+00> : vector<272x16xf32>
    %9 = tpu.matmul %6, %8, %cst_12 {dimension_numbers = #tpu.dot_dimension_numbers<[1], [0], [0], [1], [0, 0, 1, 1], [], []>} : vector<272x3xbf16>, vector<3x16xbf16>, vector<272x16xf32> -> vector<272x16xf32>
    %10 = arith.addf %4, %9 : vector<272x16xf32>
    %c0_13 = arith.constant 0 : index
    %c0_14 = arith.constant 0 : index
    %c1_15 = arith.constant 1 : index
    %c0_16 = arith.constant 0 : index
    %11 = vector.load %arg1[%c0_13, %c0_14, %c1_15, %c0_16] : memref<1x4x306x3xbf16, #tpu.memory_space<vmem>>, vector<1x1x272x3xbf16>
    %12 = vector.shape_cast %11 : vector<1x1x272x3xbf16> to vector<272x3xbf16>
    %c2 = arith.constant 2 : index
    %c0_17 = arith.constant 0 : index
    %c0_18 = arith.constant 0 : index
    %13 = vector.load %arg2[%c2, %c0_17, %c0_18] : memref<9x3x16xbf16, #tpu.memory_space<vmem>>, vector<1x3x16xbf16>
    %14 = vector.shape_cast %13 : vector<1x3x16xbf16> to vector<3x16xbf16>
    %cst_19 = arith.constant dense<0.000000e+00> : vector<272x16xf32>
    %15 = tpu.matmul %12, %14, %cst_19 {dimension_numbers = #tpu.dot_dimension_numbers<[1], [0], [0], [1], [0, 0, 1, 1], [], []>} : vector<272x3xbf16>, vector<3x16xbf16>, vector<272x16xf32> -> vector<272x16xf32>
    %16 = arith.addf %10, %15 : vector<272x16xf32>
    %c0_20 = arith.constant 0 : index
    %c2_21 = arith.constant 2 : index
    %c0_22 = arith.constant 0 : index
    %c0_23 = arith.constant 0 : index
    %17 = vector.load %arg1[%c0_20, %c2_21, %c0_22, %c0_23] : memref<1x4x306x3xbf16, #tpu.memory_space<vmem>>, vector<1x1x272x3xbf16>
    %18 = vector.shape_cast %17 : vector<1x1x272x3xbf16> to vector<272x3xbf16>
    %c3 = arith.constant 3 : index
    %c0_24 = arith.constant 0 : index
    %c0_25 = arith.constant 0 : index
    %19 = vector.load %arg2[%c3, %c0_24, %c0_25] : memref<9x3x16xbf16, #tpu.memory_space<vmem>>, vector<1x3x16xbf16>
    %20 = vector.shape_cast %19 : vector<1x3x16xbf16> to vector<3x16xbf16>
    %cst_26 = arith.constant dense<0.000000e+00> : vector<272x16xf32>
    %21 = tpu.matmul %18, %20, %cst_26 {dimension_numbers = #tpu.dot_dimension_numbers<[1], [0], [0], [1], [0, 0, 1, 1], [], []>} : vector<272x3xbf16>, vector<3x16xbf16>, vector<272x16xf32> -> vector<272x16xf32>
    %22 = arith.addf %16, %21 : vector<272x16xf32>
    %c0_27 = arith.constant 0 : index
    %c3_28 = arith.constant 3 : index
    %c0_29 = arith.constant 0 : index
    %c0_30 = arith.constant 0 : index
    %23 = vector.load %arg1[%c0_27, %c3_28, %c0_29, %c0_30] : memref<1x4x306x3xbf16, #tpu.memory_space<vmem>>, vector<1x1x272x3xbf16>
    %24 = vector.shape_cast %23 : vector<1x1x272x3xbf16> to vector<272x3xbf16>
    %c4 = arith.constant 4 : index
    %c0_31 = arith.constant 0 : index
    %c0_32 = arith.constant 0 : index
    %25 = vector.load %arg2[%c4, %c0_31, %c0_32] : memref<9x3x16xbf16, #tpu.memory_space<vmem>>, vector<1x3x16xbf16>
    %26 = vector.shape_cast %25 : vector<1x3x16xbf16> to vector<3x16xbf16>
    %cst_33 = arith.constant dense<0.000000e+00> : vector<272x16xf32>
    %27 = tpu.matmul %24, %26, %cst_33 {dimension_numbers = #tpu.dot_dimension_numbers<[1], [0], [0], [1], [0, 0, 1, 1], [], []>} : vector<272x3xbf16>, vector<3x16xbf16>, vector<272x16xf32> -> vector<272x16xf32>
    %28 = arith.addf %22, %27 : vector<272x16xf32>
    %c0_34 = arith.constant 0 : index
    %c2_35 = arith.constant 2 : index
    %c1_36 = arith.constant 1 : index
    %c0_37 = arith.constant 0 : index
    %29 = vector.load %arg1[%c0_34, %c2_35, %c1_36, %c0_37] : memref<1x4x306x3xbf16, #tpu.memory_space<vmem>>, vector<1x1x272x3xbf16>
    %30 = vector.shape_cast %29 : vector<1x1x272x3xbf16> to vector<272x3xbf16>
    %c5 = arith.constant 5 : index
    %c0_38 = arith.constant 0 : index
    %c0_39 = arith.constant 0 : index
    %31 = vector.load %arg2[%c5, %c0_38, %c0_39] : memref<9x3x16xbf16, #tpu.memory_space<vmem>>, vector<1x3x16xbf16>
    %32 = vector.shape_cast %31 : vector<1x3x16xbf16> to vector<3x16xbf16>
    %cst_40 = arith.constant dense<0.000000e+00> : vector<272x16xf32>
    %33 = tpu.matmul %30, %32, %cst_40 {dimension_numbers = #tpu.dot_dimension_numbers<[1], [0], [0], [1], [0, 0, 1, 1], [], []>} : vector<272x3xbf16>, vector<3x16xbf16>, vector<272x16xf32> -> vector<272x16xf32>
    %34 = arith.addf %28, %33 : vector<272x16xf32>
    %c0_41 = arith.constant 0 : index
    %c0_42 = arith.constant 0 : index
    %c17 = arith.constant 17 : index
    %c0_43 = arith.constant 0 : index
    %35 = vector.load %arg1[%c0_41, %c0_42, %c17, %c0_43] : memref<1x4x306x3xbf16, #tpu.memory_space<vmem>>, vector<1x1x272x3xbf16>
    %36 = vector.shape_cast %35 : vector<1x1x272x3xbf16> to vector<272x3xbf16>
    %c6 = arith.constant 6 : index
    %c0_44 = arith.constant 0 : index
    %c0_45 = arith.constant 0 : index
    %37 = vector.load %arg2[%c6, %c0_44, %c0_45] : memref<9x3x16xbf16, #tpu.memory_space<vmem>>, vector<1x3x16xbf16>
    %38 = vector.shape_cast %37 : vector<1x3x16xbf16> to vector<3x16xbf16>
    %cst_46 = arith.constant dense<0.000000e+00> : vector<272x16xf32>
    %39 = tpu.matmul %36, %38, %cst_46 {dimension_numbers = #tpu.dot_dimension_numbers<[1], [0], [0], [1], [0, 0, 1, 1], [], []>} : vector<272x3xbf16>, vector<3x16xbf16>, vector<272x16xf32> -> vector<272x16xf32>
    %40 = arith.addf %34, %39 : vector<272x16xf32>
    %c0_47 = arith.constant 0 : index
    %c1_48 = arith.constant 1 : index
    %c17_49 = arith.constant 17 : index
    %c0_50 = arith.constant 0 : index
    %41 = vector.load %arg1[%c0_47, %c1_48, %c17_49, %c0_50] : memref<1x4x306x3xbf16, #tpu.memory_space<vmem>>, vector<1x1x272x3xbf16>
    %42 = vector.shape_cast %41 : vector<1x1x272x3xbf16> to vector<272x3xbf16>
    %c7 = arith.constant 7 : index
    %c0_51 = arith.constant 0 : index
    %c0_52 = arith.constant 0 : index
    %43 = vector.load %arg2[%c7, %c0_51, %c0_52] : memref<9x3x16xbf16, #tpu.memory_space<vmem>>, vector<1x3x16xbf16>
    %44 = vector.shape_cast %43 : vector<1x3x16xbf16> to vector<3x16xbf16>
    %cst_53 = arith.constant dense<0.000000e+00> : vector<272x16xf32>
    %45 = tpu.matmul %42, %44, %cst_53 {dimension_numbers = #tpu.dot_dimension_numbers<[1], [0], [0], [1], [0, 0, 1, 1], [], []>} : vector<272x3xbf16>, vector<3x16xbf16>, vector<272x16xf32> -> vector<272x16xf32>
    %46 = arith.addf %40, %45 : vector<272x16xf32>
    %c0_54 = arith.constant 0 : index
    %c0_55 = arith.constant 0 : index
    %c18 = arith.constant 18 : index
    %c0_56 = arith.constant 0 : index
    %47 = vector.load %arg1[%c0_54, %c0_55, %c18, %c0_56] : memref<1x4x306x3xbf16, #tpu.memory_space<vmem>>, vector<1x1x272x3xbf16>
    %48 = vector.shape_cast %47 : vector<1x1x272x3xbf16> to vector<272x3xbf16>
    %c8 = arith.constant 8 : index
    %c0_57 = arith.constant 0 : index
    %c0_58 = arith.constant 0 : index
    %49 = vector.load %arg2[%c8, %c0_57, %c0_58] : memref<9x3x16xbf16, #tpu.memory_space<vmem>>, vector<1x3x16xbf16>
    %50 = vector.shape_cast %49 : vector<1x3x16xbf16> to vector<3x16xbf16>
    %cst_59 = arith.constant dense<0.000000e+00> : vector<272x16xf32>
    %51 = tpu.matmul %48, %50, %cst_59 {dimension_numbers = #tpu.dot_dimension_numbers<[1], [0], [0], [1], [0, 0, 1, 1], [], []>} : vector<272x3xbf16>, vector<3x16xbf16>, vector<272x16xf32> -> vector<272x16xf32>
    %52 = arith.addf %46, %51 : vector<272x16xf32>
    %c0_60 = arith.constant 0 : index
    %c0_61 = arith.constant 0 : index
    %53 = vector.load %arg3[%c0_60, %c0_61] : memref<1x16xf32, #tpu.memory_space<vmem>>, vector<1x16xf32>
    %54 = vector.broadcast %53 : vector<1x16xf32> to vector<272x16xf32>
    %55 = arith.addf %52, %54 : vector<272x16xf32>
    %cst_62 = arith.constant 0.000000e+00 : f32
    %56 = vector.broadcast %cst_62 : f32 to vector<272x16xf32>
    %57 = arith.maximumf %55, %56 : vector<272x16xf32>
    %58 = arith.truncf %57 : vector<272x16xf32> to vector<272x16xbf16>
    %c0_63 = arith.constant 0 : index
    %c0_64 = arith.constant 0 : index
    %c0_65 = arith.constant 0 : index
    %59 = vector.load %arg4[%c0_63, %c0_64, %c0_65] : memref<1x272x16xbf16, #tpu.memory_space<vmem>>, vector<1x272x16xbf16>
    %60 = vector.shape_cast %59 : vector<1x272x16xbf16> to vector<272x16xbf16>
    %61 = vector.shape_cast %58 : vector<272x16xbf16> to vector<1x272x16xbf16>
    tpu.vector_store %arg4[%c0_63, %c0_64, %c0_65], %61 {strides = array<i32>} : memref<1x272x16xbf16, #tpu.memory_space<vmem>>, vector<1x272x16xbf16>,
    return
  }
  func.func @transform_0(%arg0: i32) -> (i32, i32, i32, i32) {
    %c0_i32 = arith.constant 0 : i32
    %c0_i32_0 = arith.constant 0 : i32
    %c0_i32_1 = arith.constant 0 : i32
    %c0_i32_2 = arith.constant 0 : i32
    return %arg0, %c0_i32, %c0_i32_0, %c0_i32_1 : i32, i32, i32, i32
  }
  func.func @transform_1(%arg0: i32) -> (i32, i32, i32) {
    %c0_i32 = arith.constant 0 : i32
    %c0_i32_0 = arith.constant 0 : i32
    %c0_i32_1 = arith.constant 0 : i32
    %c0_i32_2 = arith.constant 0 : i32
    return %c0_i32, %c0_i32_0, %c0_i32_1 : i32, i32, i32
  }
  func.func @transform_2(%arg0: i32) -> (i32, i32) {
    %c0_i32 = arith.constant 0 : i32
    %c0_i32_0 = arith.constant 0 : i32
    %c0_i32_1 = arith.constant 0 : i32
    return %c0_i32, %c0_i32_0 : i32, i32
  }
  func.func @transform_3(%arg0: i32) -> (i32, i32, i32) {
    %c0_i32 = arith.constant 0 : i32
    %c0_i32_0 = arith.constant 0 : i32
    %c0_i32_1 = arith.constant 0 : i32
    return %arg0, %c0_i32, %c0_i32_0 : i32, i32, i32
  }
}

module attributes {stable_mosaic.version = 11 : i64} {
  func.func @_conv_tap_kernel(%arg0: i32, %arg1: memref<1x4x90x16xbf16, #tpu.memory_space<vmem>>, %arg2: memref<9x16x24xbf16, #tpu.memory_space<vmem>>, %arg3: memref<1x24xf32, #tpu.memory_space<vmem>>, %arg4: memref<1x72x24xbf16, #tpu.memory_space<vmem>>) attributes {dimension_semantics = [#tpu.dimension_semantics<parallel>], iteration_bounds = array<i64: 2>, scalar_prefetch = 0 : i64, scratch_operands = 0 : i64, tpu.core_type = #tpu.core_type<tc>, window_params = [{transform_indices = @transform_0, window_bounds = array<i64: 1, 4, 90, 16>}, {pipeline_mode = #tpu.pipeline_mode<synchronous>, transform_indices = @transform_1, window_bounds = array<i64: 9, 16, 24>}, {pipeline_mode = #tpu.pipeline_mode<synchronous>, transform_indices = @transform_2, window_bounds = array<i64: 1, 24>}, {transform_indices = @transform_3, window_bounds = array<i64: 1, 72, 24>}]} {
    %c0 = arith.constant 0 : index
    %c0_0 = arith.constant 0 : index
    %c0_1 = arith.constant 0 : index
    %c0_2 = arith.constant 0 : index
    %0 = vector.load %arg1[%c0, %c0_0, %c0_1, %c0_2] : memref<1x4x90x16xbf16, #tpu.memory_space<vmem>>, vector<1x1x72x16xbf16>
    %1 = vector.shape_cast %0 : vector<1x1x72x16xbf16> to vector<72x16xbf16>
    %c0_3 = arith.constant 0 : index
    %c0_4 = arith.constant 0 : index
    %c0_5 = arith.constant 0 : index
    %2 = vector.load %arg2[%c0_3, %c0_4, %c0_5] : memref<9x16x24xbf16, #tpu.memory_space<vmem>>, vector<1x16x24xbf16>
    %3 = vector.shape_cast %2 : vector<1x16x24xbf16> to vector<16x24xbf16>
    %cst = arith.constant dense<0.000000e+00> : vector<72x24xf32>
    %4 = tpu.matmul %1, %3, %cst {dimension_numbers = #tpu.dot_dimension_numbers<[1], [0], [0], [1], [0, 0, 1, 1], [], []>} : vector<72x16xbf16>, vector<16x24xbf16>, vector<72x24xf32> -> vector<72x24xf32>
    %c0_6 = arith.constant 0 : index
    %c1 = arith.constant 1 : index
    %c0_7 = arith.constant 0 : index
    %c0_8 = arith.constant 0 : index
    %5 = vector.load %arg1[%c0_6, %c1, %c0_7, %c0_8] : memref<1x4x90x16xbf16, #tpu.memory_space<vmem>>, vector<1x1x72x16xbf16>
    %6 = vector.shape_cast %5 : vector<1x1x72x16xbf16> to vector<72x16xbf16>
    %c1_9 = arith.constant 1 : index
    %c0_10 = arith.constant 0 : index
    %c0_11 = arith.constant 0 : index
    %7 = vector.load %arg2[%c1_9, %c0_10, %c0_11] : memref<9x16x24xbf16, #tpu.memory_space<vmem>>, vector<1x16x24xbf16>
    %8 = vector.shape_cast %7 : vector<1x16x24xbf16> to vector<16x24xbf16>
    %cst_12 = arith.constant dense<0.000000e+00> : vector<72x24xf32>
    %9 = tpu.matmul %6, %8, %cst_12 {dimension_numbers = #tpu.dot_dimension_numbers<[1], [0], [0], [1], [0, 0, 1, 1], [], []>} : vector<72x16xbf16>, vector<16x24xbf16>, vector<72x24xf32> -> vector<72x24xf32>
    %10 = arith.addf %4, %9 : vector<72x24xf32>
    %c0_13 = arith.constant 0 : index
    %c0_14 = arith.constant 0 : index
    %c1_15 = arith.constant 1 : index
    %c0_16 = arith.constant 0 : index
    %11 = vector.load %arg1[%c0_13, %c0_14, %c1_15, %c0_16] : memref<1x4x90x16xbf16, #tpu.memory_space<vmem>>, vector<1x1x72x16xbf16>
    %12 = vector.shape_cast %11 : vector<1x1x72x16xbf16> to vector<72x16xbf16>
    %c2 = arith.constant 2 : index
    %c0_17 = arith.constant 0 : index
    %c0_18 = arith.constant 0 : index
    %13 = vector.load %arg2[%c2, %c0_17, %c0_18] : memref<9x16x24xbf16, #tpu.memory_space<vmem>>, vector<1x16x24xbf16>
    %14 = vector.shape_cast %13 : vector<1x16x24xbf16> to vector<16x24xbf16>
    %cst_19 = arith.constant dense<0.000000e+00> : vector<72x24xf32>
    %15 = tpu.matmul %12, %14, %cst_19 {dimension_numbers = #tpu.dot_dimension_numbers<[1], [0], [0], [1], [0, 0, 1, 1], [], []>} : vector<72x16xbf16>, vector<16x24xbf16>, vector<72x24xf32> -> vector<72x24xf32>
    %16 = arith.addf %10, %15 : vector<72x24xf32>
    %c0_20 = arith.constant 0 : index
    %c2_21 = arith.constant 2 : index
    %c0_22 = arith.constant 0 : index
    %c0_23 = arith.constant 0 : index
    %17 = vector.load %arg1[%c0_20, %c2_21, %c0_22, %c0_23] : memref<1x4x90x16xbf16, #tpu.memory_space<vmem>>, vector<1x1x72x16xbf16>
    %18 = vector.shape_cast %17 : vector<1x1x72x16xbf16> to vector<72x16xbf16>
    %c3 = arith.constant 3 : index
    %c0_24 = arith.constant 0 : index
    %c0_25 = arith.constant 0 : index
    %19 = vector.load %arg2[%c3, %c0_24, %c0_25] : memref<9x16x24xbf16, #tpu.memory_space<vmem>>, vector<1x16x24xbf16>
    %20 = vector.shape_cast %19 : vector<1x16x24xbf16> to vector<16x24xbf16>
    %cst_26 = arith.constant dense<0.000000e+00> : vector<72x24xf32>
    %21 = tpu.matmul %18, %20, %cst_26 {dimension_numbers = #tpu.dot_dimension_numbers<[1], [0], [0], [1], [0, 0, 1, 1], [], []>} : vector<72x16xbf16>, vector<16x24xbf16>, vector<72x24xf32> -> vector<72x24xf32>
    %22 = arith.addf %16, %21 : vector<72x24xf32>
    %c0_27 = arith.constant 0 : index
    %c3_28 = arith.constant 3 : index
    %c0_29 = arith.constant 0 : index
    %c0_30 = arith.constant 0 : index
    %23 = vector.load %arg1[%c0_27, %c3_28, %c0_29, %c0_30] : memref<1x4x90x16xbf16, #tpu.memory_space<vmem>>, vector<1x1x72x16xbf16>
    %24 = vector.shape_cast %23 : vector<1x1x72x16xbf16> to vector<72x16xbf16>
    %c4 = arith.constant 4 : index
    %c0_31 = arith.constant 0 : index
    %c0_32 = arith.constant 0 : index
    %25 = vector.load %arg2[%c4, %c0_31, %c0_32] : memref<9x16x24xbf16, #tpu.memory_space<vmem>>, vector<1x16x24xbf16>
    %26 = vector.shape_cast %25 : vector<1x16x24xbf16> to vector<16x24xbf16>
    %cst_33 = arith.constant dense<0.000000e+00> : vector<72x24xf32>
    %27 = tpu.matmul %24, %26, %cst_33 {dimension_numbers = #tpu.dot_dimension_numbers<[1], [0], [0], [1], [0, 0, 1, 1], [], []>} : vector<72x16xbf16>, vector<16x24xbf16>, vector<72x24xf32> -> vector<72x24xf32>
    %28 = arith.addf %22, %27 : vector<72x24xf32>
    %c0_34 = arith.constant 0 : index
    %c2_35 = arith.constant 2 : index
    %c1_36 = arith.constant 1 : index
    %c0_37 = arith.constant 0 : index
    %29 = vector.load %arg1[%c0_34, %c2_35, %c1_36, %c0_37] : memref<1x4x90x16xbf16, #tpu.memory_space<vmem>>, vector<1x1x72x16xbf16>
    %30 = vector.shape_cast %29 : vector<1x1x72x16xbf16> to vector<72x16xbf16>
    %c5 = arith.constant 5 : index
    %c0_38 = arith.constant 0 : index
    %c0_39 = arith.constant 0 : index
    %31 = vector.load %arg2[%c5, %c0_38, %c0_39] : memref<9x16x24xbf16, #tpu.memory_space<vmem>>, vector<1x16x24xbf16>
    %32 = vector.shape_cast %31 : vector<1x16x24xbf16> to vector<16x24xbf16>
    %cst_40 = arith.constant dense<0.000000e+00> : vector<72x24xf32>
    %33 = tpu.matmul %30, %32, %cst_40 {dimension_numbers = #tpu.dot_dimension_numbers<[1], [0], [0], [1], [0, 0, 1, 1], [], []>} : vector<72x16xbf16>, vector<16x24xbf16>, vector<72x24xf32> -> vector<72x24xf32>
    %34 = arith.addf %28, %33 : vector<72x24xf32>
    %c0_41 = arith.constant 0 : index
    %c0_42 = arith.constant 0 : index
    %c9 = arith.constant 9 : index
    %c0_43 = arith.constant 0 : index
    %35 = vector.load %arg1[%c0_41, %c0_42, %c9, %c0_43] : memref<1x4x90x16xbf16, #tpu.memory_space<vmem>>, vector<1x1x72x16xbf16>
    %36 = vector.shape_cast %35 : vector<1x1x72x16xbf16> to vector<72x16xbf16>
    %c6 = arith.constant 6 : index
    %c0_44 = arith.constant 0 : index
    %c0_45 = arith.constant 0 : index
    %37 = vector.load %arg2[%c6, %c0_44, %c0_45] : memref<9x16x24xbf16, #tpu.memory_space<vmem>>, vector<1x16x24xbf16>
    %38 = vector.shape_cast %37 : vector<1x16x24xbf16> to vector<16x24xbf16>
    %cst_46 = arith.constant dense<0.000000e+00> : vector<72x24xf32>
    %39 = tpu.matmul %36, %38, %cst_46 {dimension_numbers = #tpu.dot_dimension_numbers<[1], [0], [0], [1], [0, 0, 1, 1], [], []>} : vector<72x16xbf16>, vector<16x24xbf16>, vector<72x24xf32> -> vector<72x24xf32>
    %40 = arith.addf %34, %39 : vector<72x24xf32>
    %c0_47 = arith.constant 0 : index
    %c1_48 = arith.constant 1 : index
    %c9_49 = arith.constant 9 : index
    %c0_50 = arith.constant 0 : index
    %41 = vector.load %arg1[%c0_47, %c1_48, %c9_49, %c0_50] : memref<1x4x90x16xbf16, #tpu.memory_space<vmem>>, vector<1x1x72x16xbf16>
    %42 = vector.shape_cast %41 : vector<1x1x72x16xbf16> to vector<72x16xbf16>
    %c7 = arith.constant 7 : index
    %c0_51 = arith.constant 0 : index
    %c0_52 = arith.constant 0 : index
    %43 = vector.load %arg2[%c7, %c0_51, %c0_52] : memref<9x16x24xbf16, #tpu.memory_space<vmem>>, vector<1x16x24xbf16>
    %44 = vector.shape_cast %43 : vector<1x16x24xbf16> to vector<16x24xbf16>
    %cst_53 = arith.constant dense<0.000000e+00> : vector<72x24xf32>
    %45 = tpu.matmul %42, %44, %cst_53 {dimension_numbers = #tpu.dot_dimension_numbers<[1], [0], [0], [1], [0, 0, 1, 1], [], []>} : vector<72x16xbf16>, vector<16x24xbf16>, vector<72x24xf32> -> vector<72x24xf32>
    %46 = arith.addf %40, %45 : vector<72x24xf32>
    %c0_54 = arith.constant 0 : index
    %c0_55 = arith.constant 0 : index
    %c10 = arith.constant 10 : index
    %c0_56 = arith.constant 0 : index
    %47 = vector.load %arg1[%c0_54, %c0_55, %c10, %c0_56] : memref<1x4x90x16xbf16, #tpu.memory_space<vmem>>, vector<1x1x72x16xbf16>
    %48 = vector.shape_cast %47 : vector<1x1x72x16xbf16> to vector<72x16xbf16>
    %c8 = arith.constant 8 : index
    %c0_57 = arith.constant 0 : index
    %c0_58 = arith.constant 0 : index
    %49 = vector.load %arg2[%c8, %c0_57, %c0_58] : memref<9x16x24xbf16, #tpu.memory_space<vmem>>, vector<1x16x24xbf16>
    %50 = vector.shape_cast %49 : vector<1x16x24xbf16> to vector<16x24xbf16>
    %cst_59 = arith.constant dense<0.000000e+00> : vector<72x24xf32>
    %51 = tpu.matmul %48, %50, %cst_59 {dimension_numbers = #tpu.dot_dimension_numbers<[1], [0], [0], [1], [0, 0, 1, 1], [], []>} : vector<72x16xbf16>, vector<16x24xbf16>, vector<72x24xf32> -> vector<72x24xf32>
    %52 = arith.addf %46, %51 : vector<72x24xf32>
    %c0_60 = arith.constant 0 : index
    %c0_61 = arith.constant 0 : index
    %53 = vector.load %arg3[%c0_60, %c0_61] : memref<1x24xf32, #tpu.memory_space<vmem>>, vector<1x24xf32>
    %54 = vector.broadcast %53 : vector<1x24xf32> to vector<72x24xf32>
    %55 = arith.addf %52, %54 : vector<72x24xf32>
    %cst_62 = arith.constant 0.000000e+00 : f32
    %56 = vector.broadcast %cst_62 : f32 to vector<72x24xf32>
    %57 = arith.maximumf %55, %56 : vector<72x24xf32>
    %58 = arith.truncf %57 : vector<72x24xf32> to vector<72x24xbf16>
    %c0_63 = arith.constant 0 : index
    %c0_64 = arith.constant 0 : index
    %c0_65 = arith.constant 0 : index
    %59 = vector.load %arg4[%c0_63, %c0_64, %c0_65] : memref<1x72x24xbf16, #tpu.memory_space<vmem>>, vector<1x72x24xbf16>
    %60 = vector.shape_cast %59 : vector<1x72x24xbf16> to vector<72x24xbf16>
    %61 = vector.shape_cast %58 : vector<72x24xbf16> to vector<1x72x24xbf16>
    tpu.vector_store %arg4[%c0_63, %c0_64, %c0_65], %61 {strides = array<i32>} : memref<1x72x24xbf16, #tpu.memory_space<vmem>>, vector<1x72x24xbf16>,
    return
  }
  func.func @transform_0(%arg0: i32) -> (i32, i32, i32, i32) {
    %c0_i32 = arith.constant 0 : i32
    %c0_i32_0 = arith.constant 0 : i32
    %c0_i32_1 = arith.constant 0 : i32
    %c0_i32_2 = arith.constant 0 : i32
    return %arg0, %c0_i32, %c0_i32_0, %c0_i32_1 : i32, i32, i32, i32
  }
  func.func @transform_1(%arg0: i32) -> (i32, i32, i32) {
    %c0_i32 = arith.constant 0 : i32
    %c0_i32_0 = arith.constant 0 : i32
    %c0_i32_1 = arith.constant 0 : i32
    %c0_i32_2 = arith.constant 0 : i32
    return %c0_i32, %c0_i32_0, %c0_i32_1 : i32, i32, i32
  }
  func.func @transform_2(%arg0: i32) -> (i32, i32) {
    %c0_i32 = arith.constant 0 : i32
    %c0_i32_0 = arith.constant 0 : i32
    %c0_i32_1 = arith.constant 0 : i32
    return %c0_i32, %c0_i32_0 : i32, i32
  }
  func.func @transform_3(%arg0: i32) -> (i32, i32, i32) {
    %c0_i32 = arith.constant 0 : i32
    %c0_i32_0 = arith.constant 0 : i32
    %c0_i32_1 = arith.constant 0 : i32
    return %arg0, %c0_i32, %c0_i32_0 : i32, i32, i32
  }
}

module attributes {stable_mosaic.version = 11 : i64} {
  func.func @_conv_tap_kernel(%arg0: i32, %arg1: memref<1x1x48x2xbf16, #tpu.memory_space<vmem>>, %arg2: memref<9x2x16xbf16, #tpu.memory_space<vmem>>, %arg3: memref<1x16xf32, #tpu.memory_space<vmem>>, %arg4: memref<1x24x16xbf16, #tpu.memory_space<vmem>>) attributes {dimension_semantics = [#tpu.dimension_semantics<parallel>], iteration_bounds = array<i64: 2>, scalar_prefetch = 0 : i64, scratch_operands = 0 : i64, tpu.core_type = #tpu.core_type<tc>, window_params = [{transform_indices = @transform_0, window_bounds = array<i64: 1, 1, 48, 2>}, {pipeline_mode = #tpu.pipeline_mode<synchronous>, transform_indices = @transform_1, window_bounds = array<i64: 9, 2, 16>}, {pipeline_mode = #tpu.pipeline_mode<synchronous>, transform_indices = @transform_2, window_bounds = array<i64: 1, 16>}, {transform_indices = @transform_3, window_bounds = array<i64: 1, 24, 16>}]} {
    %c0 = arith.constant 0 : index
    %c0_0 = arith.constant 0 : index
    %c0_1 = arith.constant 0 : index
    %c0_2 = arith.constant 0 : index
    %0 = vector.load %arg1[%c0, %c0_0, %c0_1, %c0_2] : memref<1x1x48x2xbf16, #tpu.memory_space<vmem>>, vector<1x1x24x2xbf16>
    %1 = vector.shape_cast %0 : vector<1x1x24x2xbf16> to vector<24x2xbf16>
    %c0_3 = arith.constant 0 : index
    %c0_4 = arith.constant 0 : index
    %c0_5 = arith.constant 0 : index
    %2 = vector.load %arg2[%c0_3, %c0_4, %c0_5] : memref<9x2x16xbf16, #tpu.memory_space<vmem>>, vector<1x2x16xbf16>
    %3 = vector.shape_cast %2 : vector<1x2x16xbf16> to vector<2x16xbf16>
    %cst = arith.constant dense<0.000000e+00> : vector<24x16xf32>
    %4 = tpu.matmul %1, %3, %cst {dimension_numbers = #tpu.dot_dimension_numbers<[1], [0], [0], [1], [0, 0, 1, 1], [], []>} : vector<24x2xbf16>, vector<2x16xbf16>, vector<24x16xf32> -> vector<24x16xf32>
    %c0_6 = arith.constant 0 : index
    %c0_7 = arith.constant 0 : index
    %c1 = arith.constant 1 : index
    %c0_8 = arith.constant 0 : index
    %5 = vector.load %arg1[%c0_6, %c0_7, %c1, %c0_8] : memref<1x1x48x2xbf16, #tpu.memory_space<vmem>>, vector<1x1x24x2xbf16>
    %6 = vector.shape_cast %5 : vector<1x1x24x2xbf16> to vector<24x2xbf16>
    %c1_9 = arith.constant 1 : index
    %c0_10 = arith.constant 0 : index
    %c0_11 = arith.constant 0 : index
    %7 = vector.load %arg2[%c1_9, %c0_10, %c0_11] : memref<9x2x16xbf16, #tpu.memory_space<vmem>>, vector<1x2x16xbf16>
    %8 = vector.shape_cast %7 : vector<1x2x16xbf16> to vector<2x16xbf16>
    %cst_12 = arith.constant dense<0.000000e+00> : vector<24x16xf32>
    %9 = tpu.matmul %6, %8, %cst_12 {dimension_numbers = #tpu.dot_dimension_numbers<[1], [0], [0], [1], [0, 0, 1, 1], [], []>} : vector<24x2xbf16>, vector<2x16xbf16>, vector<24x16xf32> -> vector<24x16xf32>
    %10 = arith.addf %4, %9 : vector<24x16xf32>
    %c0_13 = arith.constant 0 : index
    %c0_14 = arith.constant 0 : index
    %c2 = arith.constant 2 : index
    %c0_15 = arith.constant 0 : index
    %11 = vector.load %arg1[%c0_13, %c0_14, %c2, %c0_15] : memref<1x1x48x2xbf16, #tpu.memory_space<vmem>>, vector<1x1x24x2xbf16>
    %12 = vector.shape_cast %11 : vector<1x1x24x2xbf16> to vector<24x2xbf16>
    %c2_16 = arith.constant 2 : index
    %c0_17 = arith.constant 0 : index
    %c0_18 = arith.constant 0 : index
    %13 = vector.load %arg2[%c2_16, %c0_17, %c0_18] : memref<9x2x16xbf16, #tpu.memory_space<vmem>>, vector<1x2x16xbf16>
    %14 = vector.shape_cast %13 : vector<1x2x16xbf16> to vector<2x16xbf16>
    %cst_19 = arith.constant dense<0.000000e+00> : vector<24x16xf32>
    %15 = tpu.matmul %12, %14, %cst_19 {dimension_numbers = #tpu.dot_dimension_numbers<[1], [0], [0], [1], [0, 0, 1, 1], [], []>} : vector<24x2xbf16>, vector<2x16xbf16>, vector<24x16xf32> -> vector<24x16xf32>
    %16 = arith.addf %10, %15 : vector<24x16xf32>
    %c0_20 = arith.constant 0 : index
    %c0_21 = arith.constant 0 : index
    %c6 = arith.constant 6 : index
    %c0_22 = arith.constant 0 : index
    %17 = vector.load %arg1[%c0_20, %c0_21, %c6, %c0_22] : memref<1x1x48x2xbf16, #tpu.memory_space<vmem>>, vector<1x1x24x2xbf16>
    %18 = vector.shape_cast %17 : vector<1x1x24x2xbf16> to vector<24x2xbf16>
    %c3 = arith.constant 3 : index
    %c0_23 = arith.constant 0 : index
    %c0_24 = arith.constant 0 : index
    %19 = vector.load %arg2[%c3, %c0_23, %c0_24] : memref<9x2x16xbf16, #tpu.memory_space<vmem>>, vector<1x2x16xbf16>
    %20 = vector.shape_cast %19 : vector<1x2x16xbf16> to vector<2x16xbf16>
    %cst_25 = arith.constant dense<0.000000e+00> : vector<24x16xf32>
    %21 = tpu.matmul %18, %20, %cst_25 {dimension_numbers = #tpu.dot_dimension_numbers<[1], [0], [0], [1], [0, 0, 1, 1], [], []>} : vector<24x2xbf16>, vector<2x16xbf16>, vector<24x16xf32> -> vector<24x16xf32>
    %22 = arith.addf %16, %21 : vector<24x16xf32>
    %c0_26 = arith.constant 0 : index
    %c0_27 = arith.constant 0 : index
    %c7 = arith.constant 7 : index
    %c0_28 = arith.constant 0 : index
    %23 = vector.load %arg1[%c0_26, %c0_27, %c7, %c0_28] : memref<1x1x48x2xbf16, #tpu.memory_space<vmem>>, vector<1x1x24x2xbf16>
    %24 = vector.shape_cast %23 : vector<1x1x24x2xbf16> to vector<24x2xbf16>
    %c4 = arith.constant 4 : index
    %c0_29 = arith.constant 0 : index
    %c0_30 = arith.constant 0 : index
    %25 = vector.load %arg2[%c4, %c0_29, %c0_30] : memref<9x2x16xbf16, #tpu.memory_space<vmem>>, vector<1x2x16xbf16>
    %26 = vector.shape_cast %25 : vector<1x2x16xbf16> to vector<2x16xbf16>
    %cst_31 = arith.constant dense<0.000000e+00> : vector<24x16xf32>
    %27 = tpu.matmul %24, %26, %cst_31 {dimension_numbers = #tpu.dot_dimension_numbers<[1], [0], [0], [1], [0, 0, 1, 1], [], []>} : vector<24x2xbf16>, vector<2x16xbf16>, vector<24x16xf32> -> vector<24x16xf32>
    %28 = arith.addf %22, %27 : vector<24x16xf32>
    %c0_32 = arith.constant 0 : index
    %c0_33 = arith.constant 0 : index
    %c8 = arith.constant 8 : index
    %c0_34 = arith.constant 0 : index
    %29 = vector.load %arg1[%c0_32, %c0_33, %c8, %c0_34] : memref<1x1x48x2xbf16, #tpu.memory_space<vmem>>, vector<1x1x24x2xbf16>
    %30 = vector.shape_cast %29 : vector<1x1x24x2xbf16> to vector<24x2xbf16>
    %c5 = arith.constant 5 : index
    %c0_35 = arith.constant 0 : index
    %c0_36 = arith.constant 0 : index
    %31 = vector.load %arg2[%c5, %c0_35, %c0_36] : memref<9x2x16xbf16, #tpu.memory_space<vmem>>, vector<1x2x16xbf16>
    %32 = vector.shape_cast %31 : vector<1x2x16xbf16> to vector<2x16xbf16>
    %cst_37 = arith.constant dense<0.000000e+00> : vector<24x16xf32>
    %33 = tpu.matmul %30, %32, %cst_37 {dimension_numbers = #tpu.dot_dimension_numbers<[1], [0], [0], [1], [0, 0, 1, 1], [], []>} : vector<24x2xbf16>, vector<2x16xbf16>, vector<24x16xf32> -> vector<24x16xf32>
    %34 = arith.addf %28, %33 : vector<24x16xf32>
    %c0_38 = arith.constant 0 : index
    %c0_39 = arith.constant 0 : index
    %c12 = arith.constant 12 : index
    %c0_40 = arith.constant 0 : index
    %35 = vector.load %arg1[%c0_38, %c0_39, %c12, %c0_40] : memref<1x1x48x2xbf16, #tpu.memory_space<vmem>>, vector<1x1x24x2xbf16>
    %36 = vector.shape_cast %35 : vector<1x1x24x2xbf16> to vector<24x2xbf16>
    %c6_41 = arith.constant 6 : index
    %c0_42 = arith.constant 0 : index
    %c0_43 = arith.constant 0 : index
    %37 = vector.load %arg2[%c6_41, %c0_42, %c0_43] : memref<9x2x16xbf16, #tpu.memory_space<vmem>>, vector<1x2x16xbf16>
    %38 = vector.shape_cast %37 : vector<1x2x16xbf16> to vector<2x16xbf16>
    %cst_44 = arith.constant dense<0.000000e+00> : vector<24x16xf32>
    %39 = tpu.matmul %36, %38, %cst_44 {dimension_numbers = #tpu.dot_dimension_numbers<[1], [0], [0], [1], [0, 0, 1, 1], [], []>} : vector<24x2xbf16>, vector<2x16xbf16>, vector<24x16xf32> -> vector<24x16xf32>
    %40 = arith.addf %34, %39 : vector<24x16xf32>
    %c0_45 = arith.constant 0 : index
    %c0_46 = arith.constant 0 : index
    %c13 = arith.constant 13 : index
    %c0_47 = arith.constant 0 : index
    %41 = vector.load %arg1[%c0_45, %c0_46, %c13, %c0_47] : memref<1x1x48x2xbf16, #tpu.memory_space<vmem>>, vector<1x1x24x2xbf16>
    %42 = vector.shape_cast %41 : vector<1x1x24x2xbf16> to vector<24x2xbf16>
    %c7_48 = arith.constant 7 : index
    %c0_49 = arith.constant 0 : index
    %c0_50 = arith.constant 0 : index
    %43 = vector.load %arg2[%c7_48, %c0_49, %c0_50] : memref<9x2x16xbf16, #tpu.memory_space<vmem>>, vector<1x2x16xbf16>
    %44 = vector.shape_cast %43 : vector<1x2x16xbf16> to vector<2x16xbf16>
    %cst_51 = arith.constant dense<0.000000e+00> : vector<24x16xf32>
    %45 = tpu.matmul %42, %44, %cst_51 {dimension_numbers = #tpu.dot_dimension_numbers<[1], [0], [0], [1], [0, 0, 1, 1], [], []>} : vector<24x2xbf16>, vector<2x16xbf16>, vector<24x16xf32> -> vector<24x16xf32>
    %46 = arith.addf %40, %45 : vector<24x16xf32>
    %c0_52 = arith.constant 0 : index
    %c0_53 = arith.constant 0 : index
    %c14 = arith.constant 14 : index
    %c0_54 = arith.constant 0 : index
    %47 = vector.load %arg1[%c0_52, %c0_53, %c14, %c0_54] : memref<1x1x48x2xbf16, #tpu.memory_space<vmem>>, vector<1x1x24x2xbf16>
    %48 = vector.shape_cast %47 : vector<1x1x24x2xbf16> to vector<24x2xbf16>
    %c8_55 = arith.constant 8 : index
    %c0_56 = arith.constant 0 : index
    %c0_57 = arith.constant 0 : index
    %49 = vector.load %arg2[%c8_55, %c0_56, %c0_57] : memref<9x2x16xbf16, #tpu.memory_space<vmem>>, vector<1x2x16xbf16>
    %50 = vector.shape_cast %49 : vector<1x2x16xbf16> to vector<2x16xbf16>
    %cst_58 = arith.constant dense<0.000000e+00> : vector<24x16xf32>
    %51 = tpu.matmul %48, %50, %cst_58 {dimension_numbers = #tpu.dot_dimension_numbers<[1], [0], [0], [1], [0, 0, 1, 1], [], []>} : vector<24x2xbf16>, vector<2x16xbf16>, vector<24x16xf32> -> vector<24x16xf32>
    %52 = arith.addf %46, %51 : vector<24x16xf32>
    %c0_59 = arith.constant 0 : index
    %c0_60 = arith.constant 0 : index
    %53 = vector.load %arg3[%c0_59, %c0_60] : memref<1x16xf32, #tpu.memory_space<vmem>>, vector<1x16xf32>
    %54 = vector.broadcast %53 : vector<1x16xf32> to vector<24x16xf32>
    %55 = arith.addf %52, %54 : vector<24x16xf32>
    %cst_61 = arith.constant 0.000000e+00 : f32
    %56 = vector.broadcast %cst_61 : f32 to vector<24x16xf32>
    %57 = arith.maximumf %55, %56 : vector<24x16xf32>
    %58 = arith.truncf %57 : vector<24x16xf32> to vector<24x16xbf16>
    %c0_62 = arith.constant 0 : index
    %c0_63 = arith.constant 0 : index
    %c0_64 = arith.constant 0 : index
    %59 = vector.load %arg4[%c0_62, %c0_63, %c0_64] : memref<1x24x16xbf16, #tpu.memory_space<vmem>>, vector<1x24x16xbf16>
    %60 = vector.shape_cast %59 : vector<1x24x16xbf16> to vector<24x16xbf16>
    %61 = vector.shape_cast %58 : vector<24x16xbf16> to vector<1x24x16xbf16>
    tpu.vector_store %arg4[%c0_62, %c0_63, %c0_64], %61 {strides = array<i32>} : memref<1x24x16xbf16, #tpu.memory_space<vmem>>, vector<1x24x16xbf16>,
    return
  }
  func.func @transform_0(%arg0: i32) -> (i32, i32, i32, i32) {
    %c0_i32 = arith.constant 0 : i32
    %c0_i32_0 = arith.constant 0 : i32
    %c0_i32_1 = arith.constant 0 : i32
    %c0_i32_2 = arith.constant 0 : i32
    return %arg0, %c0_i32, %c0_i32_0, %c0_i32_1 : i32, i32, i32, i32
  }
  func.func @transform_1(%arg0: i32) -> (i32, i32, i32) {
    %c0_i32 = arith.constant 0 : i32
    %c0_i32_0 = arith.constant 0 : i32
    %c0_i32_1 = arith.constant 0 : i32
    %c0_i32_2 = arith.constant 0 : i32
    return %c0_i32, %c0_i32_0, %c0_i32_1 : i32, i32, i32
  }
  func.func @transform_2(%arg0: i32) -> (i32, i32) {
    %c0_i32 = arith.constant 0 : i32
    %c0_i32_0 = arith.constant 0 : i32
    %c0_i32_1 = arith.constant 0 : i32
    return %c0_i32, %c0_i32_0 : i32, i32
  }
  func.func @transform_3(%arg0: i32) -> (i32, i32, i32) {
    %c0_i32 = arith.constant 0 : i32
    %c0_i32_0 = arith.constant 0 : i32
    %c0_i32_1 = arith.constant 0 : i32
    return %arg0, %c0_i32, %c0_i32_0 : i32, i32, i32
  }
}

module attributes {stable_mosaic.version = 11 : i64} {
  func.func @_conv_tap_kernel(%arg0: i32, %arg1: memref<1x4x30x24xbf16, #tpu.memory_space<vmem>>, %arg2: memref<9x24x64xbf16, #tpu.memory_space<vmem>>, %arg3: memref<1x64xf32, #tpu.memory_space<vmem>>, %arg4: memref<1x20x64xbf16, #tpu.memory_space<vmem>>) attributes {dimension_semantics = [#tpu.dimension_semantics<parallel>], iteration_bounds = array<i64: 2>, scalar_prefetch = 0 : i64, scratch_operands = 0 : i64, tpu.core_type = #tpu.core_type<tc>, window_params = [{transform_indices = @transform_0, window_bounds = array<i64: 1, 4, 30, 24>}, {pipeline_mode = #tpu.pipeline_mode<synchronous>, transform_indices = @transform_1, window_bounds = array<i64: 9, 24, 64>}, {pipeline_mode = #tpu.pipeline_mode<synchronous>, transform_indices = @transform_2, window_bounds = array<i64: 1, 64>}, {transform_indices = @transform_3, window_bounds = array<i64: 1, 20, 64>}]} {
    %c0 = arith.constant 0 : index
    %c0_0 = arith.constant 0 : index
    %c0_1 = arith.constant 0 : index
    %c0_2 = arith.constant 0 : index
    %0 = vector.load %arg1[%c0, %c0_0, %c0_1, %c0_2] : memref<1x4x30x24xbf16, #tpu.memory_space<vmem>>, vector<1x1x20x24xbf16>
    %1 = vector.shape_cast %0 : vector<1x1x20x24xbf16> to vector<20x24xbf16>
    %c0_3 = arith.constant 0 : index
    %c0_4 = arith.constant 0 : index
    %c0_5 = arith.constant 0 : index
    %2 = vector.load %arg2[%c0_3, %c0_4, %c0_5] : memref<9x24x64xbf16, #tpu.memory_space<vmem>>, vector<1x24x64xbf16>
    %3 = vector.shape_cast %2 : vector<1x24x64xbf16> to vector<24x64xbf16>
    %cst = arith.constant dense<0.000000e+00> : vector<20x64xf32>
    %4 = tpu.matmul %1, %3, %cst {dimension_numbers = #tpu.dot_dimension_numbers<[1], [0], [0], [1], [0, 0, 1, 1], [], []>} : vector<20x24xbf16>, vector<24x64xbf16>, vector<20x64xf32> -> vector<20x64xf32>
    %c0_6 = arith.constant 0 : index
    %c1 = arith.constant 1 : index
    %c0_7 = arith.constant 0 : index
    %c0_8 = arith.constant 0 : index
    %5 = vector.load %arg1[%c0_6, %c1, %c0_7, %c0_8] : memref<1x4x30x24xbf16, #tpu.memory_space<vmem>>, vector<1x1x20x24xbf16>
    %6 = vector.shape_cast %5 : vector<1x1x20x24xbf16> to vector<20x24xbf16>
    %c1_9 = arith.constant 1 : index
    %c0_10 = arith.constant 0 : index
    %c0_11 = arith.constant 0 : index
    %7 = vector.load %arg2[%c1_9, %c0_10, %c0_11] : memref<9x24x64xbf16, #tpu.memory_space<vmem>>, vector<1x24x64xbf16>
    %8 = vector.shape_cast %7 : vector<1x24x64xbf16> to vector<24x64xbf16>
    %cst_12 = arith.constant dense<0.000000e+00> : vector<20x64xf32>
    %9 = tpu.matmul %6, %8, %cst_12 {dimension_numbers = #tpu.dot_dimension_numbers<[1], [0], [0], [1], [0, 0, 1, 1], [], []>} : vector<20x24xbf16>, vector<24x64xbf16>, vector<20x64xf32> -> vector<20x64xf32>
    %10 = arith.addf %4, %9 : vector<20x64xf32>
    %c0_13 = arith.constant 0 : index
    %c0_14 = arith.constant 0 : index
    %c1_15 = arith.constant 1 : index
    %c0_16 = arith.constant 0 : index
    %11 = vector.load %arg1[%c0_13, %c0_14, %c1_15, %c0_16] : memref<1x4x30x24xbf16, #tpu.memory_space<vmem>>, vector<1x1x20x24xbf16>
    %12 = vector.shape_cast %11 : vector<1x1x20x24xbf16> to vector<20x24xbf16>
    %c2 = arith.constant 2 : index
    %c0_17 = arith.constant 0 : index
    %c0_18 = arith.constant 0 : index
    %13 = vector.load %arg2[%c2, %c0_17, %c0_18] : memref<9x24x64xbf16, #tpu.memory_space<vmem>>, vector<1x24x64xbf16>
    %14 = vector.shape_cast %13 : vector<1x24x64xbf16> to vector<24x64xbf16>
    %cst_19 = arith.constant dense<0.000000e+00> : vector<20x64xf32>
    %15 = tpu.matmul %12, %14, %cst_19 {dimension_numbers = #tpu.dot_dimension_numbers<[1], [0], [0], [1], [0, 0, 1, 1], [], []>} : vector<20x24xbf16>, vector<24x64xbf16>, vector<20x64xf32> -> vector<20x64xf32>
    %16 = arith.addf %10, %15 : vector<20x64xf32>
    %c0_20 = arith.constant 0 : index
    %c2_21 = arith.constant 2 : index
    %c0_22 = arith.constant 0 : index
    %c0_23 = arith.constant 0 : index
    %17 = vector.load %arg1[%c0_20, %c2_21, %c0_22, %c0_23] : memref<1x4x30x24xbf16, #tpu.memory_space<vmem>>, vector<1x1x20x24xbf16>
    %18 = vector.shape_cast %17 : vector<1x1x20x24xbf16> to vector<20x24xbf16>
    %c3 = arith.constant 3 : index
    %c0_24 = arith.constant 0 : index
    %c0_25 = arith.constant 0 : index
    %19 = vector.load %arg2[%c3, %c0_24, %c0_25] : memref<9x24x64xbf16, #tpu.memory_space<vmem>>, vector<1x24x64xbf16>
    %20 = vector.shape_cast %19 : vector<1x24x64xbf16> to vector<24x64xbf16>
    %cst_26 = arith.constant dense<0.000000e+00> : vector<20x64xf32>
    %21 = tpu.matmul %18, %20, %cst_26 {dimension_numbers = #tpu.dot_dimension_numbers<[1], [0], [0], [1], [0, 0, 1, 1], [], []>} : vector<20x24xbf16>, vector<24x64xbf16>, vector<20x64xf32> -> vector<20x64xf32>
    %22 = arith.addf %16, %21 : vector<20x64xf32>
    %c0_27 = arith.constant 0 : index
    %c3_28 = arith.constant 3 : index
    %c0_29 = arith.constant 0 : index
    %c0_30 = arith.constant 0 : index
    %23 = vector.load %arg1[%c0_27, %c3_28, %c0_29, %c0_30] : memref<1x4x30x24xbf16, #tpu.memory_space<vmem>>, vector<1x1x20x24xbf16>
    %24 = vector.shape_cast %23 : vector<1x1x20x24xbf16> to vector<20x24xbf16>
    %c4 = arith.constant 4 : index
    %c0_31 = arith.constant 0 : index
    %c0_32 = arith.constant 0 : index
    %25 = vector.load %arg2[%c4, %c0_31, %c0_32] : memref<9x24x64xbf16, #tpu.memory_space<vmem>>, vector<1x24x64xbf16>
    %26 = vector.shape_cast %25 : vector<1x24x64xbf16> to vector<24x64xbf16>
    %cst_33 = arith.constant dense<0.000000e+00> : vector<20x64xf32>
    %27 = tpu.matmul %24, %26, %cst_33 {dimension_numbers = #tpu.dot_dimension_numbers<[1], [0], [0], [1], [0, 0, 1, 1], [], []>} : vector<20x24xbf16>, vector<24x64xbf16>, vector<20x64xf32> -> vector<20x64xf32>
    %28 = arith.addf %22, %27 : vector<20x64xf32>
    %c0_34 = arith.constant 0 : index
    %c2_35 = arith.constant 2 : index
    %c1_36 = arith.constant 1 : index
    %c0_37 = arith.constant 0 : index
    %29 = vector.load %arg1[%c0_34, %c2_35, %c1_36, %c0_37] : memref<1x4x30x24xbf16, #tpu.memory_space<vmem>>, vector<1x1x20x24xbf16>
    %30 = vector.shape_cast %29 : vector<1x1x20x24xbf16> to vector<20x24xbf16>
    %c5 = arith.constant 5 : index
    %c0_38 = arith.constant 0 : index
    %c0_39 = arith.constant 0 : index
    %31 = vector.load %arg2[%c5, %c0_38, %c0_39] : memref<9x24x64xbf16, #tpu.memory_space<vmem>>, vector<1x24x64xbf16>
    %32 = vector.shape_cast %31 : vector<1x24x64xbf16> to vector<24x64xbf16>
    %cst_40 = arith.constant dense<0.000000e+00> : vector<20x64xf32>
    %33 = tpu.matmul %30, %32, %cst_40 {dimension_numbers = #tpu.dot_dimension_numbers<[1], [0], [0], [1], [0, 0, 1, 1], [], []>} : vector<20x24xbf16>, vector<24x64xbf16>, vector<20x64xf32> -> vector<20x64xf32>
    %34 = arith.addf %28, %33 : vector<20x64xf32>
    %c0_41 = arith.constant 0 : index
    %c0_42 = arith.constant 0 : index
    %c5_43 = arith.constant 5 : index
    %c0_44 = arith.constant 0 : index
    %35 = vector.load %arg1[%c0_41, %c0_42, %c5_43, %c0_44] : memref<1x4x30x24xbf16, #tpu.memory_space<vmem>>, vector<1x1x20x24xbf16>
    %36 = vector.shape_cast %35 : vector<1x1x20x24xbf16> to vector<20x24xbf16>
    %c6 = arith.constant 6 : index
    %c0_45 = arith.constant 0 : index
    %c0_46 = arith.constant 0 : index
    %37 = vector.load %arg2[%c6, %c0_45, %c0_46] : memref<9x24x64xbf16, #tpu.memory_space<vmem>>, vector<1x24x64xbf16>
    %38 = vector.shape_cast %37 : vector<1x24x64xbf16> to vector<24x64xbf16>
    %cst_47 = arith.constant dense<0.000000e+00> : vector<20x64xf32>
    %39 = tpu.matmul %36, %38, %cst_47 {dimension_numbers = #tpu.dot_dimension_numbers<[1], [0], [0], [1], [0, 0, 1, 1], [], []>} : vector<20x24xbf16>, vector<24x64xbf16>, vector<20x64xf32> -> vector<20x64xf32>
    %40 = arith.addf %34, %39 : vector<20x64xf32>
    %c0_48 = arith.constant 0 : index
    %c1_49 = arith.constant 1 : index
    %c5_50 = arith.constant 5 : index
    %c0_51 = arith.constant 0 : index
    %41 = vector.load %arg1[%c0_48, %c1_49, %c5_50, %c0_51] : memref<1x4x30x24xbf16, #tpu.memory_space<vmem>>, vector<1x1x20x24xbf16>
    %42 = vector.shape_cast %41 : vector<1x1x20x24xbf16> to vector<20x24xbf16>
    %c7 = arith.constant 7 : index
    %c0_52 = arith.constant 0 : index
    %c0_53 = arith.constant 0 : index
    %43 = vector.load %arg2[%c7, %c0_52, %c0_53] : memref<9x24x64xbf16, #tpu.memory_space<vmem>>, vector<1x24x64xbf16>
    %44 = vector.shape_cast %43 : vector<1x24x64xbf16> to vector<24x64xbf16>
    %cst_54 = arith.constant dense<0.000000e+00> : vector<20x64xf32>
    %45 = tpu.matmul %42, %44, %cst_54 {dimension_numbers = #tpu.dot_dimension_numbers<[1], [0], [0], [1], [0, 0, 1, 1], [], []>} : vector<20x24xbf16>, vector<24x64xbf16>, vector<20x64xf32> -> vector<20x64xf32>
    %46 = arith.addf %40, %45 : vector<20x64xf32>
    %c0_55 = arith.constant 0 : index
    %c0_56 = arith.constant 0 : index
    %c6_57 = arith.constant 6 : index
    %c0_58 = arith.constant 0 : index
    %47 = vector.load %arg1[%c0_55, %c0_56, %c6_57, %c0_58] : memref<1x4x30x24xbf16, #tpu.memory_space<vmem>>, vector<1x1x20x24xbf16>
    %48 = vector.shape_cast %47 : vector<1x1x20x24xbf16> to vector<20x24xbf16>
    %c8 = arith.constant 8 : index
    %c0_59 = arith.constant 0 : index
    %c0_60 = arith.constant 0 : index
    %49 = vector.load %arg2[%c8, %c0_59, %c0_60] : memref<9x24x64xbf16, #tpu.memory_space<vmem>>, vector<1x24x64xbf16>
    %50 = vector.shape_cast %49 : vector<1x24x64xbf16> to vector<24x64xbf16>
    %cst_61 = arith.constant dense<0.000000e+00> : vector<20x64xf32>
    %51 = tpu.matmul %48, %50, %cst_61 {dimension_numbers = #tpu.dot_dimension_numbers<[1], [0], [0], [1], [0, 0, 1, 1], [], []>} : vector<20x24xbf16>, vector<24x64xbf16>, vector<20x64xf32> -> vector<20x64xf32>
    %52 = arith.addf %46, %51 : vector<20x64xf32>
    %c0_62 = arith.constant 0 : index
    %c0_63 = arith.constant 0 : index
    %53 = vector.load %arg3[%c0_62, %c0_63] : memref<1x64xf32, #tpu.memory_space<vmem>>, vector<1x64xf32>
    %54 = vector.broadcast %53 : vector<1x64xf32> to vector<20x64xf32>
    %55 = arith.addf %52, %54 : vector<20x64xf32>
    %56 = tpu.iota {dimensions = array<i32: 1>} : vector<20x64xi32>
    %c32_i32 = arith.constant 32 : i32
    %57 = vector.broadcast %c32_i32 : i32 to vector<20x64xi32>
    %58 = arith.cmpi slt, %56, %57 : vector<20x64xi32>
    %59 = math.tanh %55 : vector<20x64xf32>
    %cst_64 = arith.constant 0.000000e+00 : f32
    %60 = vector.broadcast %cst_64 : f32 to vector<20x64xf32>
    %61 = arith.maximumf %55, %60 : vector<20x64xf32>
    %62 = arith.select %58, %59, %61 : vector<20x64xi1>, vector<20x64xf32>
    %63 = arith.truncf %62 : vector<20x64xf32> to vector<20x64xbf16>
    %c0_65 = arith.constant 0 : index
    %c0_66 = arith.constant 0 : index
    %c0_67 = arith.constant 0 : index
    %64 = vector.load %arg4[%c0_65, %c0_66, %c0_67] : memref<1x20x64xbf16, #tpu.memory_space<vmem>>, vector<1x20x64xbf16>
    %65 = vector.shape_cast %64 : vector<1x20x64xbf16> to vector<20x64xbf16>
    %66 = vector.shape_cast %63 : vector<20x64xbf16> to vector<1x20x64xbf16>
    tpu.vector_store %arg4[%c0_65, %c0_66, %c0_67], %66 {strides = array<i32>} : memref<1x20x64xbf16, #tpu.memory_space<vmem>>, vector<1x20x64xbf16>,
    return
  }
  func.func @transform_0(%arg0: i32) -> (i32, i32, i32, i32) {
    %c0_i32 = arith.constant 0 : i32
    %c0_i32_0 = arith.constant 0 : i32
    %c0_i32_1 = arith.constant 0 : i32
    %c0_i32_2 = arith.constant 0 : i32
    return %arg0, %c0_i32, %c0_i32_0, %c0_i32_1 : i32, i32, i32, i32
  }
  func.func @transform_1(%arg0: i32) -> (i32, i32, i32) {
    %c0_i32 = arith.constant 0 : i32
    %c0_i32_0 = arith.constant 0 : i32
    %c0_i32_1 = arith.constant 0 : i32
    %c0_i32_2 = arith.constant 0 : i32
    return %c0_i32, %c0_i32_0, %c0_i32_1 : i32, i32, i32
  }
  func.func @transform_2(%arg0: i32) -> (i32, i32) {
    %c0_i32 = arith.constant 0 : i32
    %c0_i32_0 = arith.constant 0 : i32
    %c0_i32_1 = arith.constant 0 : i32
    return %c0_i32, %c0_i32_0 : i32, i32
  }
  func.func @transform_3(%arg0: i32) -> (i32, i32, i32) {
    %c0_i32 = arith.constant 0 : i32
    %c0_i32_0 = arith.constant 0 : i32
    %c0_i32_1 = arith.constant 0 : i32
    return %arg0, %c0_i32, %c0_i32_0 : i32, i32, i32
  }
}

module attributes {stable_mosaic.version = 11 : i64} {
  func.func @_corr_mc_kernel(%arg0: i32, %arg1: i32, %arg2: i32, %arg3: memref<1x16x32xbf16, #tpu.memory_space<vmem>>, %arg4: memref<1x32x16xbf16, #tpu.memory_space<vmem>>, %arg5: memref<16x32xbf16, #tpu.memory_space<vmem>>, %arg6: memref<1x32xf32, #tpu.memory_space<vmem>>, %arg7: memref<1x16x32xbf16, #tpu.memory_space<vmem>>, %arg8: memref<16x32xf32, #tpu.memory_space<vmem>>) attributes {dimension_semantics = [#tpu.dimension_semantics<parallel>, #tpu.dimension_semantics<parallel>, #tpu.dimension_semantics<arbitrary>], iteration_bounds = array<i64: 2, 1, 1>, scalar_prefetch = 0 : i64, scratch_operands = 1 : i64, tpu.core_type = #tpu.core_type<tc>, window_params = [{transform_indices = @transform_0, window_bounds = array<i64: 1, 16, 32>}, {transform_indices = @transform_1, window_bounds = array<i64: 1, 32, 16>}, {transform_indices = @transform_2, window_bounds = array<i64: 16, 32>}, {pipeline_mode = #tpu.pipeline_mode<synchronous>, transform_indices = @transform_3, window_bounds = array<i64: 1, 32>}, {transform_indices = @transform_4, window_bounds = array<i64: 1, 16, 32>}]} {
    %c0_i32 = arith.constant 0 : i32
    %0 = arith.cmpi eq, %arg2, %c0_i32 : i32
    %1 = arith.extui %0 : i1 to i32
    %c0_i32_0 = arith.constant 0 : i32
    %2 = arith.cmpi ne, %1, %c0_i32_0 : i32
    scf.if %2 {
      %cst_16 = arith.constant 0.000000e+00 : f32
      %19 = vector.broadcast %cst_16 : f32 to vector<16x32xf32>
      %c0_17 = arith.constant 0 : index
      %c0_18 = arith.constant 0 : index
      %20 = vector.load %arg8[%c0_17, %c0_18] : memref<16x32xf32, #tpu.memory_space<vmem>>, vector<16x32xf32>
      tpu.vector_store %arg8[%c0_17, %c0_18], %19 {strides = array<i32>} : memref<16x32xf32, #tpu.memory_space<vmem>>, vector<16x32xf32>,
    } else {
    }
    %c0 = arith.constant 0 : index
    %c0_1 = arith.constant 0 : index
    %c0_2 = arith.constant 0 : index
    %3 = vector.load %arg3[%c0, %c0_1, %c0_2] : memref<1x16x32xbf16, #tpu.memory_space<vmem>>, vector<1x16x32xbf16>
    %4 = vector.shape_cast %3 : vector<1x16x32xbf16> to vector<16x32xbf16>
    %c0_3 = arith.constant 0 : index
    %c0_4 = arith.constant 0 : index
    %c0_5 = arith.constant 0 : index
    %5 = vector.load %arg4[%c0_3, %c0_4, %c0_5] : memref<1x32x16xbf16, #tpu.memory_space<vmem>>, vector<1x32x16xbf16>
    %6 = vector.shape_cast %5 : vector<1x32x16xbf16> to vector<32x16xbf16>
    %cst = arith.constant dense<0.000000e+00> : vector<16x16xf32>
    %7 = tpu.matmul %4, %6, %cst {dimension_numbers = #tpu.dot_dimension_numbers<[1], [0], [0], [1], [0, 0, 1, 1], [], []>} : vector<16x32xbf16>, vector<32x16xbf16>, vector<16x16xf32> -> vector<16x16xf32>
    %cst_6 = arith.constant 0.176776692 : f32
    %8 = vector.broadcast %cst_6 : f32 to vector<16x16xf32>
    %9 = arith.mulf %7, %8 : vector<16x16xf32>
    %c0_7 = arith.constant 0 : index
    %c0_8 = arith.constant 0 : index
    %10 = vector.load %arg8[%c0_7, %c0_8] : memref<16x32xf32, #tpu.memory_space<vmem>>, vector<16x32xf32>
    %11 = arith.truncf %9 : vector<16x16xf32> to vector<16x16xbf16>
    %c0_9 = arith.constant 0 : index
    %c0_10 = arith.constant 0 : index
    %12 = vector.load %arg5[%c0_9, %c0_10] : memref<16x32xbf16, #tpu.memory_space<vmem>>, vector<16x32xbf16>
    %cst_11 = arith.constant dense<0.000000e+00> : vector<16x32xf32>
    %13 = tpu.matmul %11, %12, %cst_11 {dimension_numbers = #tpu.dot_dimension_numbers<[1], [0], [0], [1], [0, 0, 1, 1], [], []>} : vector<16x16xbf16>, vector<16x32xbf16>, vector<16x32xf32> -> vector<16x32xf32>
    %14 = arith.addf %10, %13 : vector<16x32xf32>
    %c0_12 = arith.constant 0 : index
    %c0_13 = arith.constant 0 : index
    %15 = vector.load %arg8[%c0_12, %c0_13] : memref<16x32xf32, #tpu.memory_space<vmem>>, vector<16x32xf32>
    tpu.vector_store %arg8[%c0_12, %c0_13], %14 {strides = array<i32>} : memref<16x32xf32, #tpu.memory_space<vmem>>, vector<16x32xf32>,
    %c0_i32_14 = arith.constant 0 : i32
    %16 = arith.cmpi eq, %arg2, %c0_i32_14 : i32
    %17 = arith.extui %16 : i1 to i32
    %c0_i32_15 = arith.constant 0 : i32
    %18 = arith.cmpi ne, %17, %c0_i32_15 : i32
    scf.if %18 {
      %c0_16 = arith.constant 0 : index
      %c0_17 = arith.constant 0 : index
      %19 = vector.load %arg8[%c0_16, %c0_17] : memref<16x32xf32, #tpu.memory_space<vmem>>, vector<16x32xf32>
      %c0_18 = arith.constant 0 : index
      %c0_19 = arith.constant 0 : index
      %20 = vector.load %arg6[%c0_18, %c0_19] : memref<1x32xf32, #tpu.memory_space<vmem>>, vector<1x32xf32>
      %21 = vector.broadcast %20 : vector<1x32xf32> to vector<16x32xf32>
      %22 = arith.addf %19, %21 : vector<16x32xf32>
      %cst_20 = arith.constant 0.000000e+00 : f32
      %23 = vector.broadcast %cst_20 : f32 to vector<16x32xf32>
      %24 = arith.maximumf %22, %23 : vector<16x32xf32>
      %25 = arith.truncf %24 : vector<16x32xf32> to vector<16x32xbf16>
      %c0_21 = arith.constant 0 : index
      %c0_22 = arith.constant 0 : index
      %c0_23 = arith.constant 0 : index
      %26 = vector.load %arg7[%c0_21, %c0_22, %c0_23] : memref<1x16x32xbf16, #tpu.memory_space<vmem>>, vector<1x16x32xbf16>
      %27 = vector.shape_cast %26 : vector<1x16x32xbf16> to vector<16x32xbf16>
      %28 = vector.shape_cast %25 : vector<16x32xbf16> to vector<1x16x32xbf16>
      tpu.vector_store %arg7[%c0_21, %c0_22, %c0_23], %28 {strides = array<i32>} : memref<1x16x32xbf16, #tpu.memory_space<vmem>>, vector<1x16x32xbf16>,
    } else {
    }
    return
  }
  func.func @transform_0(%arg0: i32, %arg1: i32, %arg2: i32) -> (i32, i32, i32) {
    %c0_i32 = arith.constant 0 : i32
    %c0_i32_0 = arith.constant 0 : i32
    return %arg0, %arg1, %c0_i32 : i32, i32, i32
  }
  func.func @transform_1(%arg0: i32, %arg1: i32, %arg2: i32) -> (i32, i32, i32) {
    %c0_i32 = arith.constant 0 : i32
    %c0_i32_0 = arith.constant 0 : i32
    return %arg0, %c0_i32, %arg2 : i32, i32, i32
  }
  func.func @transform_2(%arg0: i32, %arg1: i32, %arg2: i32) -> (i32, i32) {
    %c0_i32 = arith.constant 0 : i32
    %c0_i32_0 = arith.constant 0 : i32
    return %arg2, %c0_i32 : i32, i32
  }
  func.func @transform_3(%arg0: i32, %arg1: i32, %arg2: i32) -> (i32, i32) {
    %c0_i32 = arith.constant 0 : i32
    %c0_i32_0 = arith.constant 0 : i32
    %c0_i32_1 = arith.constant 0 : i32
    return %c0_i32, %c0_i32_0 : i32, i32
  }
  func.func @transform_4(%arg0: i32, %arg1: i32, %arg2: i32) -> (i32, i32, i32) {
    %c0_i32 = arith.constant 0 : i32
    %c0_i32_0 = arith.constant 0 : i32
    return %arg0, %arg1, %c0_i32 : i32, i32, i32
  }
}

module attributes {stable_mosaic.version = 11 : i64} {
  func.func @_conv_tap_kernel(%arg0: i32, %arg1: memref<1x1x48x48xbf16, #tpu.memory_space<vmem>>, %arg2: memref<9x48x30xbf16, #tpu.memory_space<vmem>>, %arg3: memref<1x30xf32, #tpu.memory_space<vmem>>, %arg4: memref<1x24x30xbf16, #tpu.memory_space<vmem>>) attributes {dimension_semantics = [#tpu.dimension_semantics<parallel>], iteration_bounds = array<i64: 2>, scalar_prefetch = 0 : i64, scratch_operands = 0 : i64, tpu.core_type = #tpu.core_type<tc>, window_params = [{transform_indices = @transform_0, window_bounds = array<i64: 1, 1, 48, 48>}, {pipeline_mode = #tpu.pipeline_mode<synchronous>, transform_indices = @transform_1, window_bounds = array<i64: 9, 48, 30>}, {pipeline_mode = #tpu.pipeline_mode<synchronous>, transform_indices = @transform_2, window_bounds = array<i64: 1, 30>}, {transform_indices = @transform_3, window_bounds = array<i64: 1, 24, 30>}]} {
    %c0 = arith.constant 0 : index
    %c0_0 = arith.constant 0 : index
    %c0_1 = arith.constant 0 : index
    %c0_2 = arith.constant 0 : index
    %0 = vector.load %arg1[%c0, %c0_0, %c0_1, %c0_2] : memref<1x1x48x48xbf16, #tpu.memory_space<vmem>>, vector<1x1x24x48xbf16>
    %1 = vector.shape_cast %0 : vector<1x1x24x48xbf16> to vector<24x48xbf16>
    %c0_3 = arith.constant 0 : index
    %c0_4 = arith.constant 0 : index
    %c0_5 = arith.constant 0 : index
    %2 = vector.load %arg2[%c0_3, %c0_4, %c0_5] : memref<9x48x30xbf16, #tpu.memory_space<vmem>>, vector<1x48x30xbf16>
    %3 = vector.shape_cast %2 : vector<1x48x30xbf16> to vector<48x30xbf16>
    %cst = arith.constant dense<0.000000e+00> : vector<24x30xf32>
    %4 = tpu.matmul %1, %3, %cst {dimension_numbers = #tpu.dot_dimension_numbers<[1], [0], [0], [1], [0, 0, 1, 1], [], []>} : vector<24x48xbf16>, vector<48x30xbf16>, vector<24x30xf32> -> vector<24x30xf32>
    %c0_6 = arith.constant 0 : index
    %c0_7 = arith.constant 0 : index
    %c1 = arith.constant 1 : index
    %c0_8 = arith.constant 0 : index
    %5 = vector.load %arg1[%c0_6, %c0_7, %c1, %c0_8] : memref<1x1x48x48xbf16, #tpu.memory_space<vmem>>, vector<1x1x24x48xbf16>
    %6 = vector.shape_cast %5 : vector<1x1x24x48xbf16> to vector<24x48xbf16>
    %c1_9 = arith.constant 1 : index
    %c0_10 = arith.constant 0 : index
    %c0_11 = arith.constant 0 : index
    %7 = vector.load %arg2[%c1_9, %c0_10, %c0_11] : memref<9x48x30xbf16, #tpu.memory_space<vmem>>, vector<1x48x30xbf16>
    %8 = vector.shape_cast %7 : vector<1x48x30xbf16> to vector<48x30xbf16>
    %cst_12 = arith.constant dense<0.000000e+00> : vector<24x30xf32>
    %9 = tpu.matmul %6, %8, %cst_12 {dimension_numbers = #tpu.dot_dimension_numbers<[1], [0], [0], [1], [0, 0, 1, 1], [], []>} : vector<24x48xbf16>, vector<48x30xbf16>, vector<24x30xf32> -> vector<24x30xf32>
    %10 = arith.addf %4, %9 : vector<24x30xf32>
    %c0_13 = arith.constant 0 : index
    %c0_14 = arith.constant 0 : index
    %c2 = arith.constant 2 : index
    %c0_15 = arith.constant 0 : index
    %11 = vector.load %arg1[%c0_13, %c0_14, %c2, %c0_15] : memref<1x1x48x48xbf16, #tpu.memory_space<vmem>>, vector<1x1x24x48xbf16>
    %12 = vector.shape_cast %11 : vector<1x1x24x48xbf16> to vector<24x48xbf16>
    %c2_16 = arith.constant 2 : index
    %c0_17 = arith.constant 0 : index
    %c0_18 = arith.constant 0 : index
    %13 = vector.load %arg2[%c2_16, %c0_17, %c0_18] : memref<9x48x30xbf16, #tpu.memory_space<vmem>>, vector<1x48x30xbf16>
    %14 = vector.shape_cast %13 : vector<1x48x30xbf16> to vector<48x30xbf16>
    %cst_19 = arith.constant dense<0.000000e+00> : vector<24x30xf32>
    %15 = tpu.matmul %12, %14, %cst_19 {dimension_numbers = #tpu.dot_dimension_numbers<[1], [0], [0], [1], [0, 0, 1, 1], [], []>} : vector<24x48xbf16>, vector<48x30xbf16>, vector<24x30xf32> -> vector<24x30xf32>
    %16 = arith.addf %10, %15 : vector<24x30xf32>
    %c0_20 = arith.constant 0 : index
    %c0_21 = arith.constant 0 : index
    %c6 = arith.constant 6 : index
    %c0_22 = arith.constant 0 : index
    %17 = vector.load %arg1[%c0_20, %c0_21, %c6, %c0_22] : memref<1x1x48x48xbf16, #tpu.memory_space<vmem>>, vector<1x1x24x48xbf16>
    %18 = vector.shape_cast %17 : vector<1x1x24x48xbf16> to vector<24x48xbf16>
    %c3 = arith.constant 3 : index
    %c0_23 = arith.constant 0 : index
    %c0_24 = arith.constant 0 : index
    %19 = vector.load %arg2[%c3, %c0_23, %c0_24] : memref<9x48x30xbf16, #tpu.memory_space<vmem>>, vector<1x48x30xbf16>
    %20 = vector.shape_cast %19 : vector<1x48x30xbf16> to vector<48x30xbf16>
    %cst_25 = arith.constant dense<0.000000e+00> : vector<24x30xf32>
    %21 = tpu.matmul %18, %20, %cst_25 {dimension_numbers = #tpu.dot_dimension_numbers<[1], [0], [0], [1], [0, 0, 1, 1], [], []>} : vector<24x48xbf16>, vector<48x30xbf16>, vector<24x30xf32> -> vector<24x30xf32>
    %22 = arith.addf %16, %21 : vector<24x30xf32>
    %c0_26 = arith.constant 0 : index
    %c0_27 = arith.constant 0 : index
    %c7 = arith.constant 7 : index
    %c0_28 = arith.constant 0 : index
    %23 = vector.load %arg1[%c0_26, %c0_27, %c7, %c0_28] : memref<1x1x48x48xbf16, #tpu.memory_space<vmem>>, vector<1x1x24x48xbf16>
    %24 = vector.shape_cast %23 : vector<1x1x24x48xbf16> to vector<24x48xbf16>
    %c4 = arith.constant 4 : index
    %c0_29 = arith.constant 0 : index
    %c0_30 = arith.constant 0 : index
    %25 = vector.load %arg2[%c4, %c0_29, %c0_30] : memref<9x48x30xbf16, #tpu.memory_space<vmem>>, vector<1x48x30xbf16>
    %26 = vector.shape_cast %25 : vector<1x48x30xbf16> to vector<48x30xbf16>
    %cst_31 = arith.constant dense<0.000000e+00> : vector<24x30xf32>
    %27 = tpu.matmul %24, %26, %cst_31 {dimension_numbers = #tpu.dot_dimension_numbers<[1], [0], [0], [1], [0, 0, 1, 1], [], []>} : vector<24x48xbf16>, vector<48x30xbf16>, vector<24x30xf32> -> vector<24x30xf32>
    %28 = arith.addf %22, %27 : vector<24x30xf32>
    %c0_32 = arith.constant 0 : index
    %c0_33 = arith.constant 0 : index
    %c8 = arith.constant 8 : index
    %c0_34 = arith.constant 0 : index
    %29 = vector.load %arg1[%c0_32, %c0_33, %c8, %c0_34] : memref<1x1x48x48xbf16, #tpu.memory_space<vmem>>, vector<1x1x24x48xbf16>
    %30 = vector.shape_cast %29 : vector<1x1x24x48xbf16> to vector<24x48xbf16>
    %c5 = arith.constant 5 : index
    %c0_35 = arith.constant 0 : index
    %c0_36 = arith.constant 0 : index
    %31 = vector.load %arg2[%c5, %c0_35, %c0_36] : memref<9x48x30xbf16, #tpu.memory_space<vmem>>, vector<1x48x30xbf16>
    %32 = vector.shape_cast %31 : vector<1x48x30xbf16> to vector<48x30xbf16>
    %cst_37 = arith.constant dense<0.000000e+00> : vector<24x30xf32>
    %33 = tpu.matmul %30, %32, %cst_37 {dimension_numbers = #tpu.dot_dimension_numbers<[1], [0], [0], [1], [0, 0, 1, 1], [], []>} : vector<24x48xbf16>, vector<48x30xbf16>, vector<24x30xf32> -> vector<24x30xf32>
    %34 = arith.addf %28, %33 : vector<24x30xf32>
    %c0_38 = arith.constant 0 : index
    %c0_39 = arith.constant 0 : index
    %c12 = arith.constant 12 : index
    %c0_40 = arith.constant 0 : index
    %35 = vector.load %arg1[%c0_38, %c0_39, %c12, %c0_40] : memref<1x1x48x48xbf16, #tpu.memory_space<vmem>>, vector<1x1x24x48xbf16>
    %36 = vector.shape_cast %35 : vector<1x1x24x48xbf16> to vector<24x48xbf16>
    %c6_41 = arith.constant 6 : index
    %c0_42 = arith.constant 0 : index
    %c0_43 = arith.constant 0 : index
    %37 = vector.load %arg2[%c6_41, %c0_42, %c0_43] : memref<9x48x30xbf16, #tpu.memory_space<vmem>>, vector<1x48x30xbf16>
    %38 = vector.shape_cast %37 : vector<1x48x30xbf16> to vector<48x30xbf16>
    %cst_44 = arith.constant dense<0.000000e+00> : vector<24x30xf32>
    %39 = tpu.matmul %36, %38, %cst_44 {dimension_numbers = #tpu.dot_dimension_numbers<[1], [0], [0], [1], [0, 0, 1, 1], [], []>} : vector<24x48xbf16>, vector<48x30xbf16>, vector<24x30xf32> -> vector<24x30xf32>
    %40 = arith.addf %34, %39 : vector<24x30xf32>
    %c0_45 = arith.constant 0 : index
    %c0_46 = arith.constant 0 : index
    %c13 = arith.constant 13 : index
    %c0_47 = arith.constant 0 : index
    %41 = vector.load %arg1[%c0_45, %c0_46, %c13, %c0_47] : memref<1x1x48x48xbf16, #tpu.memory_space<vmem>>, vector<1x1x24x48xbf16>
    %42 = vector.shape_cast %41 : vector<1x1x24x48xbf16> to vector<24x48xbf16>
    %c7_48 = arith.constant 7 : index
    %c0_49 = arith.constant 0 : index
    %c0_50 = arith.constant 0 : index
    %43 = vector.load %arg2[%c7_48, %c0_49, %c0_50] : memref<9x48x30xbf16, #tpu.memory_space<vmem>>, vector<1x48x30xbf16>
    %44 = vector.shape_cast %43 : vector<1x48x30xbf16> to vector<48x30xbf16>
    %cst_51 = arith.constant dense<0.000000e+00> : vector<24x30xf32>
    %45 = tpu.matmul %42, %44, %cst_51 {dimension_numbers = #tpu.dot_dimension_numbers<[1], [0], [0], [1], [0, 0, 1, 1], [], []>} : vector<24x48xbf16>, vector<48x30xbf16>, vector<24x30xf32> -> vector<24x30xf32>
    %46 = arith.addf %40, %45 : vector<24x30xf32>
    %c0_52 = arith.constant 0 : index
    %c0_53 = arith.constant 0 : index
    %c14 = arith.constant 14 : index
    %c0_54 = arith.constant 0 : index
    %47 = vector.load %arg1[%c0_52, %c0_53, %c14, %c0_54] : memref<1x1x48x48xbf16, #tpu.memory_space<vmem>>, vector<1x1x24x48xbf16>
    %48 = vector.shape_cast %47 : vector<1x1x24x48xbf16> to vector<24x48xbf16>
    %c8_55 = arith.constant 8 : index
    %c0_56 = arith.constant 0 : index
    %c0_57 = arith.constant 0 : index
    %49 = vector.load %arg2[%c8_55, %c0_56, %c0_57] : memref<9x48x30xbf16, #tpu.memory_space<vmem>>, vector<1x48x30xbf16>
    %50 = vector.shape_cast %49 : vector<1x48x30xbf16> to vector<48x30xbf16>
    %cst_58 = arith.constant dense<0.000000e+00> : vector<24x30xf32>
    %51 = tpu.matmul %48, %50, %cst_58 {dimension_numbers = #tpu.dot_dimension_numbers<[1], [0], [0], [1], [0, 0, 1, 1], [], []>} : vector<24x48xbf16>, vector<48x30xbf16>, vector<24x30xf32> -> vector<24x30xf32>
    %52 = arith.addf %46, %51 : vector<24x30xf32>
    %c0_59 = arith.constant 0 : index
    %c0_60 = arith.constant 0 : index
    %53 = vector.load %arg3[%c0_59, %c0_60] : memref<1x30xf32, #tpu.memory_space<vmem>>, vector<1x30xf32>
    %54 = vector.broadcast %53 : vector<1x30xf32> to vector<24x30xf32>
    %55 = arith.addf %52, %54 : vector<24x30xf32>
    %cst_61 = arith.constant 0.000000e+00 : f32
    %56 = vector.broadcast %cst_61 : f32 to vector<24x30xf32>
    %57 = arith.maximumf %55, %56 : vector<24x30xf32>
    %58 = arith.truncf %57 : vector<24x30xf32> to vector<24x30xbf16>
    %c0_62 = arith.constant 0 : index
    %c0_63 = arith.constant 0 : index
    %c0_64 = arith.constant 0 : index
    %59 = vector.load %arg4[%c0_62, %c0_63, %c0_64] : memref<1x24x30xbf16, #tpu.memory_space<vmem>>, vector<1x24x30xbf16>
    %60 = vector.shape_cast %59 : vector<1x24x30xbf16> to vector<24x30xbf16>
    %61 = vector.shape_cast %58 : vector<24x30xbf16> to vector<1x24x30xbf16>
    tpu.vector_store %arg4[%c0_62, %c0_63, %c0_64], %61 {strides = array<i32>} : memref<1x24x30xbf16, #tpu.memory_space<vmem>>, vector<1x24x30xbf16>,
    return
  }
  func.func @transform_0(%arg0: i32) -> (i32, i32, i32, i32) {
    %c0_i32 = arith.constant 0 : i32
    %c0_i32_0 = arith.constant 0 : i32
    %c0_i32_1 = arith.constant 0 : i32
    %c0_i32_2 = arith.constant 0 : i32
    return %arg0, %c0_i32, %c0_i32_0, %c0_i32_1 : i32, i32, i32, i32
  }
  func.func @transform_1(%arg0: i32) -> (i32, i32, i32) {
    %c0_i32 = arith.constant 0 : i32
    %c0_i32_0 = arith.constant 0 : i32
    %c0_i32_1 = arith.constant 0 : i32
    %c0_i32_2 = arith.constant 0 : i32
    return %c0_i32, %c0_i32_0, %c0_i32_1 : i32, i32, i32
  }
  func.func @transform_2(%arg0: i32) -> (i32, i32) {
    %c0_i32 = arith.constant 0 : i32
    %c0_i32_0 = arith.constant 0 : i32
    %c0_i32_1 = arith.constant 0 : i32
    return %c0_i32, %c0_i32_0 : i32, i32
  }
  func.func @transform_3(%arg0: i32) -> (i32, i32, i32) {
    %c0_i32 = arith.constant 0 : i32
    %c0_i32_0 = arith.constant 0 : i32
    %c0_i32_1 = arith.constant 0 : i32
    return %arg0, %c0_i32, %c0_i32_0 : i32, i32, i32
  }
}

module attributes {stable_mosaic.version = 11 : i64} {
  func.func @_conv_tap_kernel(%arg0: i32, %arg1: memref<1x4x30x24xbf16, #tpu.memory_space<vmem>>, %arg2: memref<9x24x32xbf16, #tpu.memory_space<vmem>>, %arg3: memref<1x32xf32, #tpu.memory_space<vmem>>, %arg4: memref<1x20x32xbf16, #tpu.memory_space<vmem>>) attributes {dimension_semantics = [#tpu.dimension_semantics<parallel>], iteration_bounds = array<i64: 2>, scalar_prefetch = 0 : i64, scratch_operands = 0 : i64, tpu.core_type = #tpu.core_type<tc>, window_params = [{transform_indices = @transform_0, window_bounds = array<i64: 1, 4, 30, 24>}, {pipeline_mode = #tpu.pipeline_mode<synchronous>, transform_indices = @transform_1, window_bounds = array<i64: 9, 24, 32>}, {pipeline_mode = #tpu.pipeline_mode<synchronous>, transform_indices = @transform_2, window_bounds = array<i64: 1, 32>}, {transform_indices = @transform_3, window_bounds = array<i64: 1, 20, 32>}]} {
    %c0 = arith.constant 0 : index
    %c0_0 = arith.constant 0 : index
    %c0_1 = arith.constant 0 : index
    %c0_2 = arith.constant 0 : index
    %0 = vector.load %arg1[%c0, %c0_0, %c0_1, %c0_2] : memref<1x4x30x24xbf16, #tpu.memory_space<vmem>>, vector<1x1x20x24xbf16>
    %1 = vector.shape_cast %0 : vector<1x1x20x24xbf16> to vector<20x24xbf16>
    %c0_3 = arith.constant 0 : index
    %c0_4 = arith.constant 0 : index
    %c0_5 = arith.constant 0 : index
    %2 = vector.load %arg2[%c0_3, %c0_4, %c0_5] : memref<9x24x32xbf16, #tpu.memory_space<vmem>>, vector<1x24x32xbf16>
    %3 = vector.shape_cast %2 : vector<1x24x32xbf16> to vector<24x32xbf16>
    %cst = arith.constant dense<0.000000e+00> : vector<20x32xf32>
    %4 = tpu.matmul %1, %3, %cst {dimension_numbers = #tpu.dot_dimension_numbers<[1], [0], [0], [1], [0, 0, 1, 1], [], []>} : vector<20x24xbf16>, vector<24x32xbf16>, vector<20x32xf32> -> vector<20x32xf32>
    %c0_6 = arith.constant 0 : index
    %c1 = arith.constant 1 : index
    %c0_7 = arith.constant 0 : index
    %c0_8 = arith.constant 0 : index
    %5 = vector.load %arg1[%c0_6, %c1, %c0_7, %c0_8] : memref<1x4x30x24xbf16, #tpu.memory_space<vmem>>, vector<1x1x20x24xbf16>
    %6 = vector.shape_cast %5 : vector<1x1x20x24xbf16> to vector<20x24xbf16>
    %c1_9 = arith.constant 1 : index
    %c0_10 = arith.constant 0 : index
    %c0_11 = arith.constant 0 : index
    %7 = vector.load %arg2[%c1_9, %c0_10, %c0_11] : memref<9x24x32xbf16, #tpu.memory_space<vmem>>, vector<1x24x32xbf16>
    %8 = vector.shape_cast %7 : vector<1x24x32xbf16> to vector<24x32xbf16>
    %cst_12 = arith.constant dense<0.000000e+00> : vector<20x32xf32>
    %9 = tpu.matmul %6, %8, %cst_12 {dimension_numbers = #tpu.dot_dimension_numbers<[1], [0], [0], [1], [0, 0, 1, 1], [], []>} : vector<20x24xbf16>, vector<24x32xbf16>, vector<20x32xf32> -> vector<20x32xf32>
    %10 = arith.addf %4, %9 : vector<20x32xf32>
    %c0_13 = arith.constant 0 : index
    %c0_14 = arith.constant 0 : index
    %c1_15 = arith.constant 1 : index
    %c0_16 = arith.constant 0 : index
    %11 = vector.load %arg1[%c0_13, %c0_14, %c1_15, %c0_16] : memref<1x4x30x24xbf16, #tpu.memory_space<vmem>>, vector<1x1x20x24xbf16>
    %12 = vector.shape_cast %11 : vector<1x1x20x24xbf16> to vector<20x24xbf16>
    %c2 = arith.constant 2 : index
    %c0_17 = arith.constant 0 : index
    %c0_18 = arith.constant 0 : index
    %13 = vector.load %arg2[%c2, %c0_17, %c0_18] : memref<9x24x32xbf16, #tpu.memory_space<vmem>>, vector<1x24x32xbf16>
    %14 = vector.shape_cast %13 : vector<1x24x32xbf16> to vector<24x32xbf16>
    %cst_19 = arith.constant dense<0.000000e+00> : vector<20x32xf32>
    %15 = tpu.matmul %12, %14, %cst_19 {dimension_numbers = #tpu.dot_dimension_numbers<[1], [0], [0], [1], [0, 0, 1, 1], [], []>} : vector<20x24xbf16>, vector<24x32xbf16>, vector<20x32xf32> -> vector<20x32xf32>
    %16 = arith.addf %10, %15 : vector<20x32xf32>
    %c0_20 = arith.constant 0 : index
    %c2_21 = arith.constant 2 : index
    %c0_22 = arith.constant 0 : index
    %c0_23 = arith.constant 0 : index
    %17 = vector.load %arg1[%c0_20, %c2_21, %c0_22, %c0_23] : memref<1x4x30x24xbf16, #tpu.memory_space<vmem>>, vector<1x1x20x24xbf16>
    %18 = vector.shape_cast %17 : vector<1x1x20x24xbf16> to vector<20x24xbf16>
    %c3 = arith.constant 3 : index
    %c0_24 = arith.constant 0 : index
    %c0_25 = arith.constant 0 : index
    %19 = vector.load %arg2[%c3, %c0_24, %c0_25] : memref<9x24x32xbf16, #tpu.memory_space<vmem>>, vector<1x24x32xbf16>
    %20 = vector.shape_cast %19 : vector<1x24x32xbf16> to vector<24x32xbf16>
    %cst_26 = arith.constant dense<0.000000e+00> : vector<20x32xf32>
    %21 = tpu.matmul %18, %20, %cst_26 {dimension_numbers = #tpu.dot_dimension_numbers<[1], [0], [0], [1], [0, 0, 1, 1], [], []>} : vector<20x24xbf16>, vector<24x32xbf16>, vector<20x32xf32> -> vector<20x32xf32>
    %22 = arith.addf %16, %21 : vector<20x32xf32>
    %c0_27 = arith.constant 0 : index
    %c3_28 = arith.constant 3 : index
    %c0_29 = arith.constant 0 : index
    %c0_30 = arith.constant 0 : index
    %23 = vector.load %arg1[%c0_27, %c3_28, %c0_29, %c0_30] : memref<1x4x30x24xbf16, #tpu.memory_space<vmem>>, vector<1x1x20x24xbf16>
    %24 = vector.shape_cast %23 : vector<1x1x20x24xbf16> to vector<20x24xbf16>
    %c4 = arith.constant 4 : index
    %c0_31 = arith.constant 0 : index
    %c0_32 = arith.constant 0 : index
    %25 = vector.load %arg2[%c4, %c0_31, %c0_32] : memref<9x24x32xbf16, #tpu.memory_space<vmem>>, vector<1x24x32xbf16>
    %26 = vector.shape_cast %25 : vector<1x24x32xbf16> to vector<24x32xbf16>
    %cst_33 = arith.constant dense<0.000000e+00> : vector<20x32xf32>
    %27 = tpu.matmul %24, %26, %cst_33 {dimension_numbers = #tpu.dot_dimension_numbers<[1], [0], [0], [1], [0, 0, 1, 1], [], []>} : vector<20x24xbf16>, vector<24x32xbf16>, vector<20x32xf32> -> vector<20x32xf32>
    %28 = arith.addf %22, %27 : vector<20x32xf32>
    %c0_34 = arith.constant 0 : index
    %c2_35 = arith.constant 2 : index
    %c1_36 = arith.constant 1 : index
    %c0_37 = arith.constant 0 : index
    %29 = vector.load %arg1[%c0_34, %c2_35, %c1_36, %c0_37] : memref<1x4x30x24xbf16, #tpu.memory_space<vmem>>, vector<1x1x20x24xbf16>
    %30 = vector.shape_cast %29 : vector<1x1x20x24xbf16> to vector<20x24xbf16>
    %c5 = arith.constant 5 : index
    %c0_38 = arith.constant 0 : index
    %c0_39 = arith.constant 0 : index
    %31 = vector.load %arg2[%c5, %c0_38, %c0_39] : memref<9x24x32xbf16, #tpu.memory_space<vmem>>, vector<1x24x32xbf16>
    %32 = vector.shape_cast %31 : vector<1x24x32xbf16> to vector<24x32xbf16>
    %cst_40 = arith.constant dense<0.000000e+00> : vector<20x32xf32>
    %33 = tpu.matmul %30, %32, %cst_40 {dimension_numbers = #tpu.dot_dimension_numbers<[1], [0], [0], [1], [0, 0, 1, 1], [], []>} : vector<20x24xbf16>, vector<24x32xbf16>, vector<20x32xf32> -> vector<20x32xf32>
    %34 = arith.addf %28, %33 : vector<20x32xf32>
    %c0_41 = arith.constant 0 : index
    %c0_42 = arith.constant 0 : index
    %c5_43 = arith.constant 5 : index
    %c0_44 = arith.constant 0 : index
    %35 = vector.load %arg1[%c0_41, %c0_42, %c5_43, %c0_44] : memref<1x4x30x24xbf16, #tpu.memory_space<vmem>>, vector<1x1x20x24xbf16>
    %36 = vector.shape_cast %35 : vector<1x1x20x24xbf16> to vector<20x24xbf16>
    %c6 = arith.constant 6 : index
    %c0_45 = arith.constant 0 : index
    %c0_46 = arith.constant 0 : index
    %37 = vector.load %arg2[%c6, %c0_45, %c0_46] : memref<9x24x32xbf16, #tpu.memory_space<vmem>>, vector<1x24x32xbf16>
    %38 = vector.shape_cast %37 : vector<1x24x32xbf16> to vector<24x32xbf16>
    %cst_47 = arith.constant dense<0.000000e+00> : vector<20x32xf32>
    %39 = tpu.matmul %36, %38, %cst_47 {dimension_numbers = #tpu.dot_dimension_numbers<[1], [0], [0], [1], [0, 0, 1, 1], [], []>} : vector<20x24xbf16>, vector<24x32xbf16>, vector<20x32xf32> -> vector<20x32xf32>
    %40 = arith.addf %34, %39 : vector<20x32xf32>
    %c0_48 = arith.constant 0 : index
    %c1_49 = arith.constant 1 : index
    %c5_50 = arith.constant 5 : index
    %c0_51 = arith.constant 0 : index
    %41 = vector.load %arg1[%c0_48, %c1_49, %c5_50, %c0_51] : memref<1x4x30x24xbf16, #tpu.memory_space<vmem>>, vector<1x1x20x24xbf16>
    %42 = vector.shape_cast %41 : vector<1x1x20x24xbf16> to vector<20x24xbf16>
    %c7 = arith.constant 7 : index
    %c0_52 = arith.constant 0 : index
    %c0_53 = arith.constant 0 : index
    %43 = vector.load %arg2[%c7, %c0_52, %c0_53] : memref<9x24x32xbf16, #tpu.memory_space<vmem>>, vector<1x24x32xbf16>
    %44 = vector.shape_cast %43 : vector<1x24x32xbf16> to vector<24x32xbf16>
    %cst_54 = arith.constant dense<0.000000e+00> : vector<20x32xf32>
    %45 = tpu.matmul %42, %44, %cst_54 {dimension_numbers = #tpu.dot_dimension_numbers<[1], [0], [0], [1], [0, 0, 1, 1], [], []>} : vector<20x24xbf16>, vector<24x32xbf16>, vector<20x32xf32> -> vector<20x32xf32>
    %46 = arith.addf %40, %45 : vector<20x32xf32>
    %c0_55 = arith.constant 0 : index
    %c0_56 = arith.constant 0 : index
    %c6_57 = arith.constant 6 : index
    %c0_58 = arith.constant 0 : index
    %47 = vector.load %arg1[%c0_55, %c0_56, %c6_57, %c0_58] : memref<1x4x30x24xbf16, #tpu.memory_space<vmem>>, vector<1x1x20x24xbf16>
    %48 = vector.shape_cast %47 : vector<1x1x20x24xbf16> to vector<20x24xbf16>
    %c8 = arith.constant 8 : index
    %c0_59 = arith.constant 0 : index
    %c0_60 = arith.constant 0 : index
    %49 = vector.load %arg2[%c8, %c0_59, %c0_60] : memref<9x24x32xbf16, #tpu.memory_space<vmem>>, vector<1x24x32xbf16>
    %50 = vector.shape_cast %49 : vector<1x24x32xbf16> to vector<24x32xbf16>
    %cst_61 = arith.constant dense<0.000000e+00> : vector<20x32xf32>
    %51 = tpu.matmul %48, %50, %cst_61 {dimension_numbers = #tpu.dot_dimension_numbers<[1], [0], [0], [1], [0, 0, 1, 1], [], []>} : vector<20x24xbf16>, vector<24x32xbf16>, vector<20x32xf32> -> vector<20x32xf32>
    %52 = arith.addf %46, %51 : vector<20x32xf32>
    %c0_62 = arith.constant 0 : index
    %c0_63 = arith.constant 0 : index
    %53 = vector.load %arg3[%c0_62, %c0_63] : memref<1x32xf32, #tpu.memory_space<vmem>>, vector<1x32xf32>
    %54 = vector.broadcast %53 : vector<1x32xf32> to vector<20x32xf32>
    %55 = arith.addf %52, %54 : vector<20x32xf32>
    %cst_64 = arith.constant 0.000000e+00 : f32
    %56 = vector.broadcast %cst_64 : f32 to vector<20x32xf32>
    %57 = arith.maximumf %55, %56 : vector<20x32xf32>
    %58 = arith.truncf %57 : vector<20x32xf32> to vector<20x32xbf16>
    %c0_65 = arith.constant 0 : index
    %c0_66 = arith.constant 0 : index
    %c0_67 = arith.constant 0 : index
    %59 = vector.load %arg4[%c0_65, %c0_66, %c0_67] : memref<1x20x32xbf16, #tpu.memory_space<vmem>>, vector<1x20x32xbf16>
    %60 = vector.shape_cast %59 : vector<1x20x32xbf16> to vector<20x32xbf16>
    %61 = vector.shape_cast %58 : vector<20x32xbf16> to vector<1x20x32xbf16>
    tpu.vector_store %arg4[%c0_65, %c0_66, %c0_67], %61 {strides = array<i32>} : memref<1x20x32xbf16, #tpu.memory_space<vmem>>, vector<1x20x32xbf16>,
    return
  }
  func.func @transform_0(%arg0: i32) -> (i32, i32, i32, i32) {
    %c0_i32 = arith.constant 0 : i32
    %c0_i32_0 = arith.constant 0 : i32
    %c0_i32_1 = arith.constant 0 : i32
    %c0_i32_2 = arith.constant 0 : i32
    return %arg0, %c0_i32, %c0_i32_0, %c0_i32_1 : i32, i32, i32, i32
  }
  func.func @transform_1(%arg0: i32) -> (i32, i32, i32) {
    %c0_i32 = arith.constant 0 : i32
    %c0_i32_0 = arith.constant 0 : i32
    %c0_i32_1 = arith.constant 0 : i32
    %c0_i32_2 = arith.constant 0 : i32
    return %c0_i32, %c0_i32_0, %c0_i32_1 : i32, i32, i32
  }
  func.func @transform_2(%arg0: i32) -> (i32, i32) {
    %c0_i32 = arith.constant 0 : i32
    %c0_i32_0 = arith.constant 0 : i32
    %c0_i32_1 = arith.constant 0 : i32
    return %c0_i32, %c0_i32_0 : i32, i32
  }
  func.func @transform_3(%arg0: i32) -> (i32, i32, i32) {
    %c0_i32 = arith.constant 0 : i32
    %c0_i32_0 = arith.constant 0 : i32
    %c0_i32_1 = arith.constant 0 : i32
    return %arg0, %c0_i32, %c0_i32_0 : i32, i32, i32
  }
}

module attributes {stable_mosaic.version = 11 : i64} {
  func.func @_conv_tap_kernel(%arg0: i32, %arg1: memref<1x1x48x96xbf16, #tpu.memory_space<vmem>>, %arg2: memref<9x96x64xbf16, #tpu.memory_space<vmem>>, %arg3: memref<1x64xf32, #tpu.memory_space<vmem>>, %arg4: memref<1x24x64xbf16, #tpu.memory_space<vmem>>) attributes {dimension_semantics = [#tpu.dimension_semantics<parallel>], iteration_bounds = array<i64: 2>, scalar_prefetch = 0 : i64, scratch_operands = 0 : i64, tpu.core_type = #tpu.core_type<tc>, window_params = [{transform_indices = @transform_0, window_bounds = array<i64: 1, 1, 48, 96>}, {pipeline_mode = #tpu.pipeline_mode<synchronous>, transform_indices = @transform_1, window_bounds = array<i64: 9, 96, 64>}, {pipeline_mode = #tpu.pipeline_mode<synchronous>, transform_indices = @transform_2, window_bounds = array<i64: 1, 64>}, {transform_indices = @transform_3, window_bounds = array<i64: 1, 24, 64>}]} {
    %c0 = arith.constant 0 : index
    %c0_0 = arith.constant 0 : index
    %c0_1 = arith.constant 0 : index
    %c0_2 = arith.constant 0 : index
    %0 = vector.load %arg1[%c0, %c0_0, %c0_1, %c0_2] : memref<1x1x48x96xbf16, #tpu.memory_space<vmem>>, vector<1x1x24x96xbf16>
    %1 = vector.shape_cast %0 : vector<1x1x24x96xbf16> to vector<24x96xbf16>
    %c0_3 = arith.constant 0 : index
    %c0_4 = arith.constant 0 : index
    %c0_5 = arith.constant 0 : index
    %2 = vector.load %arg2[%c0_3, %c0_4, %c0_5] : memref<9x96x64xbf16, #tpu.memory_space<vmem>>, vector<1x96x64xbf16>
    %3 = vector.shape_cast %2 : vector<1x96x64xbf16> to vector<96x64xbf16>
    %cst = arith.constant dense<0.000000e+00> : vector<24x64xf32>
    %4 = tpu.matmul %1, %3, %cst {dimension_numbers = #tpu.dot_dimension_numbers<[1], [0], [0], [1], [0, 0, 1, 1], [], []>} : vector<24x96xbf16>, vector<96x64xbf16>, vector<24x64xf32> -> vector<24x64xf32>
    %c0_6 = arith.constant 0 : index
    %c0_7 = arith.constant 0 : index
    %c1 = arith.constant 1 : index
    %c0_8 = arith.constant 0 : index
    %5 = vector.load %arg1[%c0_6, %c0_7, %c1, %c0_8] : memref<1x1x48x96xbf16, #tpu.memory_space<vmem>>, vector<1x1x24x96xbf16>
    %6 = vector.shape_cast %5 : vector<1x1x24x96xbf16> to vector<24x96xbf16>
    %c1_9 = arith.constant 1 : index
    %c0_10 = arith.constant 0 : index
    %c0_11 = arith.constant 0 : index
    %7 = vector.load %arg2[%c1_9, %c0_10, %c0_11] : memref<9x96x64xbf16, #tpu.memory_space<vmem>>, vector<1x96x64xbf16>
    %8 = vector.shape_cast %7 : vector<1x96x64xbf16> to vector<96x64xbf16>
    %cst_12 = arith.constant dense<0.000000e+00> : vector<24x64xf32>
    %9 = tpu.matmul %6, %8, %cst_12 {dimension_numbers = #tpu.dot_dimension_numbers<[1], [0], [0], [1], [0, 0, 1, 1], [], []>} : vector<24x96xbf16>, vector<96x64xbf16>, vector<24x64xf32> -> vector<24x64xf32>
    %10 = arith.addf %4, %9 : vector<24x64xf32>
    %c0_13 = arith.constant 0 : index
    %c0_14 = arith.constant 0 : index
    %c2 = arith.constant 2 : index
    %c0_15 = arith.constant 0 : index
    %11 = vector.load %arg1[%c0_13, %c0_14, %c2, %c0_15] : memref<1x1x48x96xbf16, #tpu.memory_space<vmem>>, vector<1x1x24x96xbf16>
    %12 = vector.shape_cast %11 : vector<1x1x24x96xbf16> to vector<24x96xbf16>
    %c2_16 = arith.constant 2 : index
    %c0_17 = arith.constant 0 : index
    %c0_18 = arith.constant 0 : index
    %13 = vector.load %arg2[%c2_16, %c0_17, %c0_18] : memref<9x96x64xbf16, #tpu.memory_space<vmem>>, vector<1x96x64xbf16>
    %14 = vector.shape_cast %13 : vector<1x96x64xbf16> to vector<96x64xbf16>
    %cst_19 = arith.constant dense<0.000000e+00> : vector<24x64xf32>
    %15 = tpu.matmul %12, %14, %cst_19 {dimension_numbers = #tpu.dot_dimension_numbers<[1], [0], [0], [1], [0, 0, 1, 1], [], []>} : vector<24x96xbf16>, vector<96x64xbf16>, vector<24x64xf32> -> vector<24x64xf32>
    %16 = arith.addf %10, %15 : vector<24x64xf32>
    %c0_20 = arith.constant 0 : index
    %c0_21 = arith.constant 0 : index
    %c6 = arith.constant 6 : index
    %c0_22 = arith.constant 0 : index
    %17 = vector.load %arg1[%c0_20, %c0_21, %c6, %c0_22] : memref<1x1x48x96xbf16, #tpu.memory_space<vmem>>, vector<1x1x24x96xbf16>
    %18 = vector.shape_cast %17 : vector<1x1x24x96xbf16> to vector<24x96xbf16>
    %c3 = arith.constant 3 : index
    %c0_23 = arith.constant 0 : index
    %c0_24 = arith.constant 0 : index
    %19 = vector.load %arg2[%c3, %c0_23, %c0_24] : memref<9x96x64xbf16, #tpu.memory_space<vmem>>, vector<1x96x64xbf16>
    %20 = vector.shape_cast %19 : vector<1x96x64xbf16> to vector<96x64xbf16>
    %cst_25 = arith.constant dense<0.000000e+00> : vector<24x64xf32>
    %21 = tpu.matmul %18, %20, %cst_25 {dimension_numbers = #tpu.dot_dimension_numbers<[1], [0], [0], [1], [0, 0, 1, 1], [], []>} : vector<24x96xbf16>, vector<96x64xbf16>, vector<24x64xf32> -> vector<24x64xf32>
    %22 = arith.addf %16, %21 : vector<24x64xf32>
    %c0_26 = arith.constant 0 : index
    %c0_27 = arith.constant 0 : index
    %c7 = arith.constant 7 : index
    %c0_28 = arith.constant 0 : index
    %23 = vector.load %arg1[%c0_26, %c0_27, %c7, %c0_28] : memref<1x1x48x96xbf16, #tpu.memory_space<vmem>>, vector<1x1x24x96xbf16>
    %24 = vector.shape_cast %23 : vector<1x1x24x96xbf16> to vector<24x96xbf16>
    %c4 = arith.constant 4 : index
    %c0_29 = arith.constant 0 : index
    %c0_30 = arith.constant 0 : index
    %25 = vector.load %arg2[%c4, %c0_29, %c0_30] : memref<9x96x64xbf16, #tpu.memory_space<vmem>>, vector<1x96x64xbf16>
    %26 = vector.shape_cast %25 : vector<1x96x64xbf16> to vector<96x64xbf16>
    %cst_31 = arith.constant dense<0.000000e+00> : vector<24x64xf32>
    %27 = tpu.matmul %24, %26, %cst_31 {dimension_numbers = #tpu.dot_dimension_numbers<[1], [0], [0], [1], [0, 0, 1, 1], [], []>} : vector<24x96xbf16>, vector<96x64xbf16>, vector<24x64xf32> -> vector<24x64xf32>
    %28 = arith.addf %22, %27 : vector<24x64xf32>
    %c0_32 = arith.constant 0 : index
    %c0_33 = arith.constant 0 : index
    %c8 = arith.constant 8 : index
    %c0_34 = arith.constant 0 : index
    %29 = vector.load %arg1[%c0_32, %c0_33, %c8, %c0_34] : memref<1x1x48x96xbf16, #tpu.memory_space<vmem>>, vector<1x1x24x96xbf16>
    %30 = vector.shape_cast %29 : vector<1x1x24x96xbf16> to vector<24x96xbf16>
    %c5 = arith.constant 5 : index
    %c0_35 = arith.constant 0 : index
    %c0_36 = arith.constant 0 : index
    %31 = vector.load %arg2[%c5, %c0_35, %c0_36] : memref<9x96x64xbf16, #tpu.memory_space<vmem>>, vector<1x96x64xbf16>
    %32 = vector.shape_cast %31 : vector<1x96x64xbf16> to vector<96x64xbf16>
    %cst_37 = arith.constant dense<0.000000e+00> : vector<24x64xf32>
    %33 = tpu.matmul %30, %32, %cst_37 {dimension_numbers = #tpu.dot_dimension_numbers<[1], [0], [0], [1], [0, 0, 1, 1], [], []>} : vector<24x96xbf16>, vector<96x64xbf16>, vector<24x64xf32> -> vector<24x64xf32>
    %34 = arith.addf %28, %33 : vector<24x64xf32>
    %c0_38 = arith.constant 0 : index
    %c0_39 = arith.constant 0 : index
    %c12 = arith.constant 12 : index
    %c0_40 = arith.constant 0 : index
    %35 = vector.load %arg1[%c0_38, %c0_39, %c12, %c0_40] : memref<1x1x48x96xbf16, #tpu.memory_space<vmem>>, vector<1x1x24x96xbf16>
    %36 = vector.shape_cast %35 : vector<1x1x24x96xbf16> to vector<24x96xbf16>
    %c6_41 = arith.constant 6 : index
    %c0_42 = arith.constant 0 : index
    %c0_43 = arith.constant 0 : index
    %37 = vector.load %arg2[%c6_41, %c0_42, %c0_43] : memref<9x96x64xbf16, #tpu.memory_space<vmem>>, vector<1x96x64xbf16>
    %38 = vector.shape_cast %37 : vector<1x96x64xbf16> to vector<96x64xbf16>
    %cst_44 = arith.constant dense<0.000000e+00> : vector<24x64xf32>
    %39 = tpu.matmul %36, %38, %cst_44 {dimension_numbers = #tpu.dot_dimension_numbers<[1], [0], [0], [1], [0, 0, 1, 1], [], []>} : vector<24x96xbf16>, vector<96x64xbf16>, vector<24x64xf32> -> vector<24x64xf32>
    %40 = arith.addf %34, %39 : vector<24x64xf32>
    %c0_45 = arith.constant 0 : index
    %c0_46 = arith.constant 0 : index
    %c13 = arith.constant 13 : index
    %c0_47 = arith.constant 0 : index
    %41 = vector.load %arg1[%c0_45, %c0_46, %c13, %c0_47] : memref<1x1x48x96xbf16, #tpu.memory_space<vmem>>, vector<1x1x24x96xbf16>
    %42 = vector.shape_cast %41 : vector<1x1x24x96xbf16> to vector<24x96xbf16>
    %c7_48 = arith.constant 7 : index
    %c0_49 = arith.constant 0 : index
    %c0_50 = arith.constant 0 : index
    %43 = vector.load %arg2[%c7_48, %c0_49, %c0_50] : memref<9x96x64xbf16, #tpu.memory_space<vmem>>, vector<1x96x64xbf16>
    %44 = vector.shape_cast %43 : vector<1x96x64xbf16> to vector<96x64xbf16>
    %cst_51 = arith.constant dense<0.000000e+00> : vector<24x64xf32>
    %45 = tpu.matmul %42, %44, %cst_51 {dimension_numbers = #tpu.dot_dimension_numbers<[1], [0], [0], [1], [0, 0, 1, 1], [], []>} : vector<24x96xbf16>, vector<96x64xbf16>, vector<24x64xf32> -> vector<24x64xf32>
    %46 = arith.addf %40, %45 : vector<24x64xf32>
    %c0_52 = arith.constant 0 : index
    %c0_53 = arith.constant 0 : index
    %c14 = arith.constant 14 : index
    %c0_54 = arith.constant 0 : index
    %47 = vector.load %arg1[%c0_52, %c0_53, %c14, %c0_54] : memref<1x1x48x96xbf16, #tpu.memory_space<vmem>>, vector<1x1x24x96xbf16>
    %48 = vector.shape_cast %47 : vector<1x1x24x96xbf16> to vector<24x96xbf16>
    %c8_55 = arith.constant 8 : index
    %c0_56 = arith.constant 0 : index
    %c0_57 = arith.constant 0 : index
    %49 = vector.load %arg2[%c8_55, %c0_56, %c0_57] : memref<9x96x64xbf16, #tpu.memory_space<vmem>>, vector<1x96x64xbf16>
    %50 = vector.shape_cast %49 : vector<1x96x64xbf16> to vector<96x64xbf16>
    %cst_58 = arith.constant dense<0.000000e+00> : vector<24x64xf32>
    %51 = tpu.matmul %48, %50, %cst_58 {dimension_numbers = #tpu.dot_dimension_numbers<[1], [0], [0], [1], [0, 0, 1, 1], [], []>} : vector<24x96xbf16>, vector<96x64xbf16>, vector<24x64xf32> -> vector<24x64xf32>
    %52 = arith.addf %46, %51 : vector<24x64xf32>
    %c0_59 = arith.constant 0 : index
    %c0_60 = arith.constant 0 : index
    %53 = vector.load %arg3[%c0_59, %c0_60] : memref<1x64xf32, #tpu.memory_space<vmem>>, vector<1x64xf32>
    %54 = vector.broadcast %53 : vector<1x64xf32> to vector<24x64xf32>
    %55 = arith.addf %52, %54 : vector<24x64xf32>
    %cst_61 = arith.constant 0.000000e+00 : f32
    %56 = vector.broadcast %cst_61 : f32 to vector<24x64xf32>
    %57 = arith.subf %56, %55 : vector<24x64xf32>
    %58 = math.exp %57 : vector<24x64xf32>
    %cst_62 = arith.constant 1.000000e+00 : f32
    %59 = vector.broadcast %cst_62 : f32 to vector<24x64xf32>
    %60 = arith.addf %59, %58 : vector<24x64xf32>
    %cst_63 = arith.constant 1.000000e+00 : f32
    %61 = vector.broadcast %cst_63 : f32 to vector<24x64xf32>
    %62 = arith.divf %61, %60 : vector<24x64xf32>
    %63 = arith.truncf %62 : vector<24x64xf32> to vector<24x64xbf16>
    %c0_64 = arith.constant 0 : index
    %c0_65 = arith.constant 0 : index
    %c0_66 = arith.constant 0 : index
    %64 = vector.load %arg4[%c0_64, %c0_65, %c0_66] : memref<1x24x64xbf16, #tpu.memory_space<vmem>>, vector<1x24x64xbf16>
    %65 = vector.shape_cast %64 : vector<1x24x64xbf16> to vector<24x64xbf16>
    %66 = vector.shape_cast %63 : vector<24x64xbf16> to vector<1x24x64xbf16>
    tpu.vector_store %arg4[%c0_64, %c0_65, %c0_66], %66 {strides = array<i32>} : memref<1x24x64xbf16, #tpu.memory_space<vmem>>, vector<1x24x64xbf16>,
    return
  }
  func.func @transform_0(%arg0: i32) -> (i32, i32, i32, i32) {
    %c0_i32 = arith.constant 0 : i32
    %c0_i32_0 = arith.constant 0 : i32
    %c0_i32_1 = arith.constant 0 : i32
    %c0_i32_2 = arith.constant 0 : i32
    return %arg0, %c0_i32, %c0_i32_0, %c0_i32_1 : i32, i32, i32, i32
  }
  func.func @transform_1(%arg0: i32) -> (i32, i32, i32) {
    %c0_i32 = arith.constant 0 : i32
    %c0_i32_0 = arith.constant 0 : i32
    %c0_i32_1 = arith.constant 0 : i32
    %c0_i32_2 = arith.constant 0 : i32
    return %c0_i32, %c0_i32_0, %c0_i32_1 : i32, i32, i32
  }
  func.func @transform_2(%arg0: i32) -> (i32, i32) {
    %c0_i32 = arith.constant 0 : i32
    %c0_i32_0 = arith.constant 0 : i32
    %c0_i32_1 = arith.constant 0 : i32
    return %c0_i32, %c0_i32_0 : i32, i32
  }
  func.func @transform_3(%arg0: i32) -> (i32, i32, i32) {
    %c0_i32 = arith.constant 0 : i32
    %c0_i32_0 = arith.constant 0 : i32
    %c0_i32_1 = arith.constant 0 : i32
    return %arg0, %c0_i32, %c0_i32_0 : i32, i32, i32
  }
}

module attributes {stable_mosaic.version = 11 : i64} {
  func.func @_conv_tap_kernel(%arg0: i32, %arg1: memref<1x1x48x96xbf16, #tpu.memory_space<vmem>>, %arg2: memref<9x96x32xbf16, #tpu.memory_space<vmem>>, %arg3: memref<1x32xf32, #tpu.memory_space<vmem>>, %arg4: memref<1x24x32xbf16, #tpu.memory_space<vmem>>, %arg5: memref<1x24x32xbf16, #tpu.memory_space<vmem>>, %arg6: memref<1x24x32xbf16, #tpu.memory_space<vmem>>) attributes {dimension_semantics = [#tpu.dimension_semantics<parallel>], iteration_bounds = array<i64: 2>, scalar_prefetch = 0 : i64, scratch_operands = 0 : i64, tpu.core_type = #tpu.core_type<tc>, window_params = [{transform_indices = @transform_0, window_bounds = array<i64: 1, 1, 48, 96>}, {pipeline_mode = #tpu.pipeline_mode<synchronous>, transform_indices = @transform_1, window_bounds = array<i64: 9, 96, 32>}, {pipeline_mode = #tpu.pipeline_mode<synchronous>, transform_indices = @transform_2, window_bounds = array<i64: 1, 32>}, {transform_indices = @transform_3, window_bounds = array<i64: 1, 24, 32>}, {transform_indices = @transform_4, window_bounds = array<i64: 1, 24, 32>}, {transform_indices = @transform_5, window_bounds = array<i64: 1, 24, 32>}]} {
    %c0 = arith.constant 0 : index
    %c0_0 = arith.constant 0 : index
    %c0_1 = arith.constant 0 : index
    %c0_2 = arith.constant 0 : index
    %0 = vector.load %arg1[%c0, %c0_0, %c0_1, %c0_2] : memref<1x1x48x96xbf16, #tpu.memory_space<vmem>>, vector<1x1x24x96xbf16>
    %1 = vector.shape_cast %0 : vector<1x1x24x96xbf16> to vector<24x96xbf16>
    %c0_3 = arith.constant 0 : index
    %c0_4 = arith.constant 0 : index
    %c0_5 = arith.constant 0 : index
    %2 = vector.load %arg2[%c0_3, %c0_4, %c0_5] : memref<9x96x32xbf16, #tpu.memory_space<vmem>>, vector<1x96x32xbf16>
    %3 = vector.shape_cast %2 : vector<1x96x32xbf16> to vector<96x32xbf16>
    %cst = arith.constant dense<0.000000e+00> : vector<24x32xf32>
    %4 = tpu.matmul %1, %3, %cst {dimension_numbers = #tpu.dot_dimension_numbers<[1], [0], [0], [1], [0, 0, 1, 1], [], []>} : vector<24x96xbf16>, vector<96x32xbf16>, vector<24x32xf32> -> vector<24x32xf32>
    %c0_6 = arith.constant 0 : index
    %c0_7 = arith.constant 0 : index
    %c1 = arith.constant 1 : index
    %c0_8 = arith.constant 0 : index
    %5 = vector.load %arg1[%c0_6, %c0_7, %c1, %c0_8] : memref<1x1x48x96xbf16, #tpu.memory_space<vmem>>, vector<1x1x24x96xbf16>
    %6 = vector.shape_cast %5 : vector<1x1x24x96xbf16> to vector<24x96xbf16>
    %c1_9 = arith.constant 1 : index
    %c0_10 = arith.constant 0 : index
    %c0_11 = arith.constant 0 : index
    %7 = vector.load %arg2[%c1_9, %c0_10, %c0_11] : memref<9x96x32xbf16, #tpu.memory_space<vmem>>, vector<1x96x32xbf16>
    %8 = vector.shape_cast %7 : vector<1x96x32xbf16> to vector<96x32xbf16>
    %cst_12 = arith.constant dense<0.000000e+00> : vector<24x32xf32>
    %9 = tpu.matmul %6, %8, %cst_12 {dimension_numbers = #tpu.dot_dimension_numbers<[1], [0], [0], [1], [0, 0, 1, 1], [], []>} : vector<24x96xbf16>, vector<96x32xbf16>, vector<24x32xf32> -> vector<24x32xf32>
    %10 = arith.addf %4, %9 : vector<24x32xf32>
    %c0_13 = arith.constant 0 : index
    %c0_14 = arith.constant 0 : index
    %c2 = arith.constant 2 : index
    %c0_15 = arith.constant 0 : index
    %11 = vector.load %arg1[%c0_13, %c0_14, %c2, %c0_15] : memref<1x1x48x96xbf16, #tpu.memory_space<vmem>>, vector<1x1x24x96xbf16>
    %12 = vector.shape_cast %11 : vector<1x1x24x96xbf16> to vector<24x96xbf16>
    %c2_16 = arith.constant 2 : index
    %c0_17 = arith.constant 0 : index
    %c0_18 = arith.constant 0 : index
    %13 = vector.load %arg2[%c2_16, %c0_17, %c0_18] : memref<9x96x32xbf16, #tpu.memory_space<vmem>>, vector<1x96x32xbf16>
    %14 = vector.shape_cast %13 : vector<1x96x32xbf16> to vector<96x32xbf16>
    %cst_19 = arith.constant dense<0.000000e+00> : vector<24x32xf32>
    %15 = tpu.matmul %12, %14, %cst_19 {dimension_numbers = #tpu.dot_dimension_numbers<[1], [0], [0], [1], [0, 0, 1, 1], [], []>} : vector<24x96xbf16>, vector<96x32xbf16>, vector<24x32xf32> -> vector<24x32xf32>
    %16 = arith.addf %10, %15 : vector<24x32xf32>
    %c0_20 = arith.constant 0 : index
    %c0_21 = arith.constant 0 : index
    %c6 = arith.constant 6 : index
    %c0_22 = arith.constant 0 : index
    %17 = vector.load %arg1[%c0_20, %c0_21, %c6, %c0_22] : memref<1x1x48x96xbf16, #tpu.memory_space<vmem>>, vector<1x1x24x96xbf16>
    %18 = vector.shape_cast %17 : vector<1x1x24x96xbf16> to vector<24x96xbf16>
    %c3 = arith.constant 3 : index
    %c0_23 = arith.constant 0 : index
    %c0_24 = arith.constant 0 : index
    %19 = vector.load %arg2[%c3, %c0_23, %c0_24] : memref<9x96x32xbf16, #tpu.memory_space<vmem>>, vector<1x96x32xbf16>
    %20 = vector.shape_cast %19 : vector<1x96x32xbf16> to vector<96x32xbf16>
    %cst_25 = arith.constant dense<0.000000e+00> : vector<24x32xf32>
    %21 = tpu.matmul %18, %20, %cst_25 {dimension_numbers = #tpu.dot_dimension_numbers<[1], [0], [0], [1], [0, 0, 1, 1], [], []>} : vector<24x96xbf16>, vector<96x32xbf16>, vector<24x32xf32> -> vector<24x32xf32>
    %22 = arith.addf %16, %21 : vector<24x32xf32>
    %c0_26 = arith.constant 0 : index
    %c0_27 = arith.constant 0 : index
    %c7 = arith.constant 7 : index
    %c0_28 = arith.constant 0 : index
    %23 = vector.load %arg1[%c0_26, %c0_27, %c7, %c0_28] : memref<1x1x48x96xbf16, #tpu.memory_space<vmem>>, vector<1x1x24x96xbf16>
    %24 = vector.shape_cast %23 : vector<1x1x24x96xbf16> to vector<24x96xbf16>
    %c4 = arith.constant 4 : index
    %c0_29 = arith.constant 0 : index
    %c0_30 = arith.constant 0 : index
    %25 = vector.load %arg2[%c4, %c0_29, %c0_30] : memref<9x96x32xbf16, #tpu.memory_space<vmem>>, vector<1x96x32xbf16>
    %26 = vector.shape_cast %25 : vector<1x96x32xbf16> to vector<96x32xbf16>
    %cst_31 = arith.constant dense<0.000000e+00> : vector<24x32xf32>
    %27 = tpu.matmul %24, %26, %cst_31 {dimension_numbers = #tpu.dot_dimension_numbers<[1], [0], [0], [1], [0, 0, 1, 1], [], []>} : vector<24x96xbf16>, vector<96x32xbf16>, vector<24x32xf32> -> vector<24x32xf32>
    %28 = arith.addf %22, %27 : vector<24x32xf32>
    %c0_32 = arith.constant 0 : index
    %c0_33 = arith.constant 0 : index
    %c8 = arith.constant 8 : index
    %c0_34 = arith.constant 0 : index
    %29 = vector.load %arg1[%c0_32, %c0_33, %c8, %c0_34] : memref<1x1x48x96xbf16, #tpu.memory_space<vmem>>, vector<1x1x24x96xbf16>
    %30 = vector.shape_cast %29 : vector<1x1x24x96xbf16> to vector<24x96xbf16>
    %c5 = arith.constant 5 : index
    %c0_35 = arith.constant 0 : index
    %c0_36 = arith.constant 0 : index
    %31 = vector.load %arg2[%c5, %c0_35, %c0_36] : memref<9x96x32xbf16, #tpu.memory_space<vmem>>, vector<1x96x32xbf16>
    %32 = vector.shape_cast %31 : vector<1x96x32xbf16> to vector<96x32xbf16>
    %cst_37 = arith.constant dense<0.000000e+00> : vector<24x32xf32>
    %33 = tpu.matmul %30, %32, %cst_37 {dimension_numbers = #tpu.dot_dimension_numbers<[1], [0], [0], [1], [0, 0, 1, 1], [], []>} : vector<24x96xbf16>, vector<96x32xbf16>, vector<24x32xf32> -> vector<24x32xf32>
    %34 = arith.addf %28, %33 : vector<24x32xf32>
    %c0_38 = arith.constant 0 : index
    %c0_39 = arith.constant 0 : index
    %c12 = arith.constant 12 : index
    %c0_40 = arith.constant 0 : index
    %35 = vector.load %arg1[%c0_38, %c0_39, %c12, %c0_40] : memref<1x1x48x96xbf16, #tpu.memory_space<vmem>>, vector<1x1x24x96xbf16>
    %36 = vector.shape_cast %35 : vector<1x1x24x96xbf16> to vector<24x96xbf16>
    %c6_41 = arith.constant 6 : index
    %c0_42 = arith.constant 0 : index
    %c0_43 = arith.constant 0 : index
    %37 = vector.load %arg2[%c6_41, %c0_42, %c0_43] : memref<9x96x32xbf16, #tpu.memory_space<vmem>>, vector<1x96x32xbf16>
    %38 = vector.shape_cast %37 : vector<1x96x32xbf16> to vector<96x32xbf16>
    %cst_44 = arith.constant dense<0.000000e+00> : vector<24x32xf32>
    %39 = tpu.matmul %36, %38, %cst_44 {dimension_numbers = #tpu.dot_dimension_numbers<[1], [0], [0], [1], [0, 0, 1, 1], [], []>} : vector<24x96xbf16>, vector<96x32xbf16>, vector<24x32xf32> -> vector<24x32xf32>
    %40 = arith.addf %34, %39 : vector<24x32xf32>
    %c0_45 = arith.constant 0 : index
    %c0_46 = arith.constant 0 : index
    %c13 = arith.constant 13 : index
    %c0_47 = arith.constant 0 : index
    %41 = vector.load %arg1[%c0_45, %c0_46, %c13, %c0_47] : memref<1x1x48x96xbf16, #tpu.memory_space<vmem>>, vector<1x1x24x96xbf16>
    %42 = vector.shape_cast %41 : vector<1x1x24x96xbf16> to vector<24x96xbf16>
    %c7_48 = arith.constant 7 : index
    %c0_49 = arith.constant 0 : index
    %c0_50 = arith.constant 0 : index
    %43 = vector.load %arg2[%c7_48, %c0_49, %c0_50] : memref<9x96x32xbf16, #tpu.memory_space<vmem>>, vector<1x96x32xbf16>
    %44 = vector.shape_cast %43 : vector<1x96x32xbf16> to vector<96x32xbf16>
    %cst_51 = arith.constant dense<0.000000e+00> : vector<24x32xf32>
    %45 = tpu.matmul %42, %44, %cst_51 {dimension_numbers = #tpu.dot_dimension_numbers<[1], [0], [0], [1], [0, 0, 1, 1], [], []>} : vector<24x96xbf16>, vector<96x32xbf16>, vector<24x32xf32> -> vector<24x32xf32>
    %46 = arith.addf %40, %45 : vector<24x32xf32>
    %c0_52 = arith.constant 0 : index
    %c0_53 = arith.constant 0 : index
    %c14 = arith.constant 14 : index
    %c0_54 = arith.constant 0 : index
    %47 = vector.load %arg1[%c0_52, %c0_53, %c14, %c0_54] : memref<1x1x48x96xbf16, #tpu.memory_space<vmem>>, vector<1x1x24x96xbf16>
    %48 = vector.shape_cast %47 : vector<1x1x24x96xbf16> to vector<24x96xbf16>
    %c8_55 = arith.constant 8 : index
    %c0_56 = arith.constant 0 : index
    %c0_57 = arith.constant 0 : index
    %49 = vector.load %arg2[%c8_55, %c0_56, %c0_57] : memref<9x96x32xbf16, #tpu.memory_space<vmem>>, vector<1x96x32xbf16>
    %50 = vector.shape_cast %49 : vector<1x96x32xbf16> to vector<96x32xbf16>
    %cst_58 = arith.constant dense<0.000000e+00> : vector<24x32xf32>
    %51 = tpu.matmul %48, %50, %cst_58 {dimension_numbers = #tpu.dot_dimension_numbers<[1], [0], [0], [1], [0, 0, 1, 1], [], []>} : vector<24x96xbf16>, vector<96x32xbf16>, vector<24x32xf32> -> vector<24x32xf32>
    %52 = arith.addf %46, %51 : vector<24x32xf32>
    %c0_59 = arith.constant 0 : index
    %c0_60 = arith.constant 0 : index
    %53 = vector.load %arg3[%c0_59, %c0_60] : memref<1x32xf32, #tpu.memory_space<vmem>>, vector<1x32xf32>
    %54 = vector.broadcast %53 : vector<1x32xf32> to vector<24x32xf32>
    %55 = arith.addf %52, %54 : vector<24x32xf32>
    %56 = math.tanh %55 : vector<24x32xf32>
    %c0_61 = arith.constant 0 : index
    %c0_62 = arith.constant 0 : index
    %c0_63 = arith.constant 0 : index
    %57 = vector.load %arg4[%c0_61, %c0_62, %c0_63] : memref<1x24x32xbf16, #tpu.memory_space<vmem>>, vector<1x24x32xbf16>
    %58 = vector.shape_cast %57 : vector<1x24x32xbf16> to vector<24x32xbf16>
    %59 = arith.extf %58 : vector<24x32xbf16> to vector<24x32xf32>
    %c0_64 = arith.constant 0 : index
    %c0_65 = arith.constant 0 : index
    %c0_66 = arith.constant 0 : index
    %60 = vector.load %arg5[%c0_64, %c0_65, %c0_66] : memref<1x24x32xbf16, #tpu.memory_space<vmem>>, vector<1x24x32xbf16>
    %61 = vector.shape_cast %60 : vector<1x24x32xbf16> to vector<24x32xbf16>
    %62 = arith.extf %61 : vector<24x32xbf16> to vector<24x32xf32>
    %cst_67 = arith.constant 1.000000e+00 : f32
    %63 = vector.broadcast %cst_67 : f32 to vector<24x32xf32>
    %64 = arith.subf %63, %59 : vector<24x32xf32>
    %65 = arith.mulf %64, %62 : vector<24x32xf32>
    %66 = arith.mulf %59, %56 : vector<24x32xf32>
    %67 = arith.addf %65, %66 : vector<24x32xf32>
    %68 = arith.truncf %67 : vector<24x32xf32> to vector<24x32xbf16>
    %c0_68 = arith.constant 0 : index
    %c0_69 = arith.constant 0 : index
    %c0_70 = arith.constant 0 : index
    %69 = vector.load %arg6[%c0_68, %c0_69, %c0_70] : memref<1x24x32xbf16, #tpu.memory_space<vmem>>, vector<1x24x32xbf16>
    %70 = vector.shape_cast %69 : vector<1x24x32xbf16> to vector<24x32xbf16>
    %71 = vector.shape_cast %68 : vector<24x32xbf16> to vector<1x24x32xbf16>
    tpu.vector_store %arg6[%c0_68, %c0_69, %c0_70], %71 {strides = array<i32>} : memref<1x24x32xbf16, #tpu.memory_space<vmem>>, vector<1x24x32xbf16>,
    return
  }
  func.func @transform_0(%arg0: i32) -> (i32, i32, i32, i32) {
    %c0_i32 = arith.constant 0 : i32
    %c0_i32_0 = arith.constant 0 : i32
    %c0_i32_1 = arith.constant 0 : i32
    %c0_i32_2 = arith.constant 0 : i32
    return %arg0, %c0_i32, %c0_i32_0, %c0_i32_1 : i32, i32, i32, i32
  }
  func.func @transform_1(%arg0: i32) -> (i32, i32, i32) {
    %c0_i32 = arith.constant 0 : i32
    %c0_i32_0 = arith.constant 0 : i32
    %c0_i32_1 = arith.constant 0 : i32
    %c0_i32_2 = arith.constant 0 : i32
    return %c0_i32, %c0_i32_0, %c0_i32_1 : i32, i32, i32
  }
  func.func @transform_2(%arg0: i32) -> (i32, i32) {
    %c0_i32 = arith.constant 0 : i32
    %c0_i32_0 = arith.constant 0 : i32
    %c0_i32_1 = arith.constant 0 : i32
    return %c0_i32, %c0_i32_0 : i32, i32
  }
  func.func @transform_3(%arg0: i32) -> (i32, i32, i32) {
    %c0_i32 = arith.constant 0 : i32
    %c0_i32_0 = arith.constant 0 : i32
    %c0_i32_1 = arith.constant 0 : i32
    return %arg0, %c0_i32, %c0_i32_0 : i32, i32, i32
  }
  func.func @transform_4(%arg0: i32) -> (i32, i32, i32) {
    %c0_i32 = arith.constant 0 : i32
    %c0_i32_0 = arith.constant 0 : i32
    %c0_i32_1 = arith.constant 0 : i32
    return %arg0, %c0_i32, %c0_i32_0 : i32, i32, i32
  }
  func.func @transform_5(%arg0: i32) -> (i32, i32, i32) {
    %c0_i32 = arith.constant 0 : i32
    %c0_i32_0 = arith.constant 0 : i32
    %c0_i32_1 = arith.constant 0 : i32
    return %arg0, %c0_i32, %c0_i32_0 : i32, i32, i32
  }
}

module attributes {stable_mosaic.version = 11 : i64} {
  func.func @_conv_tap_kernel(%arg0: i32, %arg1: memref<1x1x48x32xbf16, #tpu.memory_space<vmem>>, %arg2: memref<9x32x32xbf16, #tpu.memory_space<vmem>>, %arg3: memref<1x32xf32, #tpu.memory_space<vmem>>, %arg4: memref<1x24x32xbf16, #tpu.memory_space<vmem>>) attributes {dimension_semantics = [#tpu.dimension_semantics<parallel>], iteration_bounds = array<i64: 2>, scalar_prefetch = 0 : i64, scratch_operands = 0 : i64, tpu.core_type = #tpu.core_type<tc>, window_params = [{transform_indices = @transform_0, window_bounds = array<i64: 1, 1, 48, 32>}, {pipeline_mode = #tpu.pipeline_mode<synchronous>, transform_indices = @transform_1, window_bounds = array<i64: 9, 32, 32>}, {pipeline_mode = #tpu.pipeline_mode<synchronous>, transform_indices = @transform_2, window_bounds = array<i64: 1, 32>}, {transform_indices = @transform_3, window_bounds = array<i64: 1, 24, 32>}]} {
    %c0 = arith.constant 0 : index
    %c0_0 = arith.constant 0 : index
    %c0_1 = arith.constant 0 : index
    %c0_2 = arith.constant 0 : index
    %0 = vector.load %arg1[%c0, %c0_0, %c0_1, %c0_2] : memref<1x1x48x32xbf16, #tpu.memory_space<vmem>>, vector<1x1x24x32xbf16>
    %1 = vector.shape_cast %0 : vector<1x1x24x32xbf16> to vector<24x32xbf16>
    %c0_3 = arith.constant 0 : index
    %c0_4 = arith.constant 0 : index
    %c0_5 = arith.constant 0 : index
    %2 = vector.load %arg2[%c0_3, %c0_4, %c0_5] : memref<9x32x32xbf16, #tpu.memory_space<vmem>>, vector<1x32x32xbf16>
    %3 = vector.shape_cast %2 : vector<1x32x32xbf16> to vector<32x32xbf16>
    %cst = arith.constant dense<0.000000e+00> : vector<24x32xf32>
    %4 = tpu.matmul %1, %3, %cst {dimension_numbers = #tpu.dot_dimension_numbers<[1], [0], [0], [1], [0, 0, 1, 1], [], []>} : vector<24x32xbf16>, vector<32x32xbf16>, vector<24x32xf32> -> vector<24x32xf32>
    %c0_6 = arith.constant 0 : index
    %c0_7 = arith.constant 0 : index
    %c1 = arith.constant 1 : index
    %c0_8 = arith.constant 0 : index
    %5 = vector.load %arg1[%c0_6, %c0_7, %c1, %c0_8] : memref<1x1x48x32xbf16, #tpu.memory_space<vmem>>, vector<1x1x24x32xbf16>
    %6 = vector.shape_cast %5 : vector<1x1x24x32xbf16> to vector<24x32xbf16>
    %c1_9 = arith.constant 1 : index
    %c0_10 = arith.constant 0 : index
    %c0_11 = arith.constant 0 : index
    %7 = vector.load %arg2[%c1_9, %c0_10, %c0_11] : memref<9x32x32xbf16, #tpu.memory_space<vmem>>, vector<1x32x32xbf16>
    %8 = vector.shape_cast %7 : vector<1x32x32xbf16> to vector<32x32xbf16>
    %cst_12 = arith.constant dense<0.000000e+00> : vector<24x32xf32>
    %9 = tpu.matmul %6, %8, %cst_12 {dimension_numbers = #tpu.dot_dimension_numbers<[1], [0], [0], [1], [0, 0, 1, 1], [], []>} : vector<24x32xbf16>, vector<32x32xbf16>, vector<24x32xf32> -> vector<24x32xf32>
    %10 = arith.addf %4, %9 : vector<24x32xf32>
    %c0_13 = arith.constant 0 : index
    %c0_14 = arith.constant 0 : index
    %c2 = arith.constant 2 : index
    %c0_15 = arith.constant 0 : index
    %11 = vector.load %arg1[%c0_13, %c0_14, %c2, %c0_15] : memref<1x1x48x32xbf16, #tpu.memory_space<vmem>>, vector<1x1x24x32xbf16>
    %12 = vector.shape_cast %11 : vector<1x1x24x32xbf16> to vector<24x32xbf16>
    %c2_16 = arith.constant 2 : index
    %c0_17 = arith.constant 0 : index
    %c0_18 = arith.constant 0 : index
    %13 = vector.load %arg2[%c2_16, %c0_17, %c0_18] : memref<9x32x32xbf16, #tpu.memory_space<vmem>>, vector<1x32x32xbf16>
    %14 = vector.shape_cast %13 : vector<1x32x32xbf16> to vector<32x32xbf16>
    %cst_19 = arith.constant dense<0.000000e+00> : vector<24x32xf32>
    %15 = tpu.matmul %12, %14, %cst_19 {dimension_numbers = #tpu.dot_dimension_numbers<[1], [0], [0], [1], [0, 0, 1, 1], [], []>} : vector<24x32xbf16>, vector<32x32xbf16>, vector<24x32xf32> -> vector<24x32xf32>
    %16 = arith.addf %10, %15 : vector<24x32xf32>
    %c0_20 = arith.constant 0 : index
    %c0_21 = arith.constant 0 : index
    %c6 = arith.constant 6 : index
    %c0_22 = arith.constant 0 : index
    %17 = vector.load %arg1[%c0_20, %c0_21, %c6, %c0_22] : memref<1x1x48x32xbf16, #tpu.memory_space<vmem>>, vector<1x1x24x32xbf16>
    %18 = vector.shape_cast %17 : vector<1x1x24x32xbf16> to vector<24x32xbf16>
    %c3 = arith.constant 3 : index
    %c0_23 = arith.constant 0 : index
    %c0_24 = arith.constant 0 : index
    %19 = vector.load %arg2[%c3, %c0_23, %c0_24] : memref<9x32x32xbf16, #tpu.memory_space<vmem>>, vector<1x32x32xbf16>
    %20 = vector.shape_cast %19 : vector<1x32x32xbf16> to vector<32x32xbf16>
    %cst_25 = arith.constant dense<0.000000e+00> : vector<24x32xf32>
    %21 = tpu.matmul %18, %20, %cst_25 {dimension_numbers = #tpu.dot_dimension_numbers<[1], [0], [0], [1], [0, 0, 1, 1], [], []>} : vector<24x32xbf16>, vector<32x32xbf16>, vector<24x32xf32> -> vector<24x32xf32>
    %22 = arith.addf %16, %21 : vector<24x32xf32>
    %c0_26 = arith.constant 0 : index
    %c0_27 = arith.constant 0 : index
    %c7 = arith.constant 7 : index
    %c0_28 = arith.constant 0 : index
    %23 = vector.load %arg1[%c0_26, %c0_27, %c7, %c0_28] : memref<1x1x48x32xbf16, #tpu.memory_space<vmem>>, vector<1x1x24x32xbf16>
    %24 = vector.shape_cast %23 : vector<1x1x24x32xbf16> to vector<24x32xbf16>
    %c4 = arith.constant 4 : index
    %c0_29 = arith.constant 0 : index
    %c0_30 = arith.constant 0 : index
    %25 = vector.load %arg2[%c4, %c0_29, %c0_30] : memref<9x32x32xbf16, #tpu.memory_space<vmem>>, vector<1x32x32xbf16>
    %26 = vector.shape_cast %25 : vector<1x32x32xbf16> to vector<32x32xbf16>
    %cst_31 = arith.constant dense<0.000000e+00> : vector<24x32xf32>
    %27 = tpu.matmul %24, %26, %cst_31 {dimension_numbers = #tpu.dot_dimension_numbers<[1], [0], [0], [1], [0, 0, 1, 1], [], []>} : vector<24x32xbf16>, vector<32x32xbf16>, vector<24x32xf32> -> vector<24x32xf32>
    %28 = arith.addf %22, %27 : vector<24x32xf32>
    %c0_32 = arith.constant 0 : index
    %c0_33 = arith.constant 0 : index
    %c8 = arith.constant 8 : index
    %c0_34 = arith.constant 0 : index
    %29 = vector.load %arg1[%c0_32, %c0_33, %c8, %c0_34] : memref<1x1x48x32xbf16, #tpu.memory_space<vmem>>, vector<1x1x24x32xbf16>
    %30 = vector.shape_cast %29 : vector<1x1x24x32xbf16> to vector<24x32xbf16>
    %c5 = arith.constant 5 : index
    %c0_35 = arith.constant 0 : index
    %c0_36 = arith.constant 0 : index
    %31 = vector.load %arg2[%c5, %c0_35, %c0_36] : memref<9x32x32xbf16, #tpu.memory_space<vmem>>, vector<1x32x32xbf16>
    %32 = vector.shape_cast %31 : vector<1x32x32xbf16> to vector<32x32xbf16>
    %cst_37 = arith.constant dense<0.000000e+00> : vector<24x32xf32>
    %33 = tpu.matmul %30, %32, %cst_37 {dimension_numbers = #tpu.dot_dimension_numbers<[1], [0], [0], [1], [0, 0, 1, 1], [], []>} : vector<24x32xbf16>, vector<32x32xbf16>, vector<24x32xf32> -> vector<24x32xf32>
    %34 = arith.addf %28, %33 : vector<24x32xf32>
    %c0_38 = arith.constant 0 : index
    %c0_39 = arith.constant 0 : index
    %c12 = arith.constant 12 : index
    %c0_40 = arith.constant 0 : index
    %35 = vector.load %arg1[%c0_38, %c0_39, %c12, %c0_40] : memref<1x1x48x32xbf16, #tpu.memory_space<vmem>>, vector<1x1x24x32xbf16>
    %36 = vector.shape_cast %35 : vector<1x1x24x32xbf16> to vector<24x32xbf16>
    %c6_41 = arith.constant 6 : index
    %c0_42 = arith.constant 0 : index
    %c0_43 = arith.constant 0 : index
    %37 = vector.load %arg2[%c6_41, %c0_42, %c0_43] : memref<9x32x32xbf16, #tpu.memory_space<vmem>>, vector<1x32x32xbf16>
    %38 = vector.shape_cast %37 : vector<1x32x32xbf16> to vector<32x32xbf16>
    %cst_44 = arith.constant dense<0.000000e+00> : vector<24x32xf32>
    %39 = tpu.matmul %36, %38, %cst_44 {dimension_numbers = #tpu.dot_dimension_numbers<[1], [0], [0], [1], [0, 0, 1, 1], [], []>} : vector<24x32xbf16>, vector<32x32xbf16>, vector<24x32xf32> -> vector<24x32xf32>
    %40 = arith.addf %34, %39 : vector<24x32xf32>
    %c0_45 = arith.constant 0 : index
    %c0_46 = arith.constant 0 : index
    %c13 = arith.constant 13 : index
    %c0_47 = arith.constant 0 : index
    %41 = vector.load %arg1[%c0_45, %c0_46, %c13, %c0_47] : memref<1x1x48x32xbf16, #tpu.memory_space<vmem>>, vector<1x1x24x32xbf16>
    %42 = vector.shape_cast %41 : vector<1x1x24x32xbf16> to vector<24x32xbf16>
    %c7_48 = arith.constant 7 : index
    %c0_49 = arith.constant 0 : index
    %c0_50 = arith.constant 0 : index
    %43 = vector.load %arg2[%c7_48, %c0_49, %c0_50] : memref<9x32x32xbf16, #tpu.memory_space<vmem>>, vector<1x32x32xbf16>
    %44 = vector.shape_cast %43 : vector<1x32x32xbf16> to vector<32x32xbf16>
    %cst_51 = arith.constant dense<0.000000e+00> : vector<24x32xf32>
    %45 = tpu.matmul %42, %44, %cst_51 {dimension_numbers = #tpu.dot_dimension_numbers<[1], [0], [0], [1], [0, 0, 1, 1], [], []>} : vector<24x32xbf16>, vector<32x32xbf16>, vector<24x32xf32> -> vector<24x32xf32>
    %46 = arith.addf %40, %45 : vector<24x32xf32>
    %c0_52 = arith.constant 0 : index
    %c0_53 = arith.constant 0 : index
    %c14 = arith.constant 14 : index
    %c0_54 = arith.constant 0 : index
    %47 = vector.load %arg1[%c0_52, %c0_53, %c14, %c0_54] : memref<1x1x48x32xbf16, #tpu.memory_space<vmem>>, vector<1x1x24x32xbf16>
    %48 = vector.shape_cast %47 : vector<1x1x24x32xbf16> to vector<24x32xbf16>
    %c8_55 = arith.constant 8 : index
    %c0_56 = arith.constant 0 : index
    %c0_57 = arith.constant 0 : index
    %49 = vector.load %arg2[%c8_55, %c0_56, %c0_57] : memref<9x32x32xbf16, #tpu.memory_space<vmem>>, vector<1x32x32xbf16>
    %50 = vector.shape_cast %49 : vector<1x32x32xbf16> to vector<32x32xbf16>
    %cst_58 = arith.constant dense<0.000000e+00> : vector<24x32xf32>
    %51 = tpu.matmul %48, %50, %cst_58 {dimension_numbers = #tpu.dot_dimension_numbers<[1], [0], [0], [1], [0, 0, 1, 1], [], []>} : vector<24x32xbf16>, vector<32x32xbf16>, vector<24x32xf32> -> vector<24x32xf32>
    %52 = arith.addf %46, %51 : vector<24x32xf32>
    %c0_59 = arith.constant 0 : index
    %c0_60 = arith.constant 0 : index
    %53 = vector.load %arg3[%c0_59, %c0_60] : memref<1x32xf32, #tpu.memory_space<vmem>>, vector<1x32xf32>
    %54 = vector.broadcast %53 : vector<1x32xf32> to vector<24x32xf32>
    %55 = arith.addf %52, %54 : vector<24x32xf32>
    %cst_61 = arith.constant 0.000000e+00 : f32
    %56 = vector.broadcast %cst_61 : f32 to vector<24x32xf32>
    %57 = arith.maximumf %55, %56 : vector<24x32xf32>
    %58 = arith.truncf %57 : vector<24x32xf32> to vector<24x32xbf16>
    %c0_62 = arith.constant 0 : index
    %c0_63 = arith.constant 0 : index
    %c0_64 = arith.constant 0 : index
    %59 = vector.load %arg4[%c0_62, %c0_63, %c0_64] : memref<1x24x32xbf16, #tpu.memory_space<vmem>>, vector<1x24x32xbf16>
    %60 = vector.shape_cast %59 : vector<1x24x32xbf16> to vector<24x32xbf16>
    %61 = vector.shape_cast %58 : vector<24x32xbf16> to vector<1x24x32xbf16>
    tpu.vector_store %arg4[%c0_62, %c0_63, %c0_64], %61 {strides = array<i32>} : memref<1x24x32xbf16, #tpu.memory_space<vmem>>, vector<1x24x32xbf16>,
    return
  }
  func.func @transform_0(%arg0: i32) -> (i32, i32, i32, i32) {
    %c0_i32 = arith.constant 0 : i32
    %c0_i32_0 = arith.constant 0 : i32
    %c0_i32_1 = arith.constant 0 : i32
    %c0_i32_2 = arith.constant 0 : i32
    return %arg0, %c0_i32, %c0_i32_0, %c0_i32_1 : i32, i32, i32, i32
  }
  func.func @transform_1(%arg0: i32) -> (i32, i32, i32) {
    %c0_i32 = arith.constant 0 : i32
    %c0_i32_0 = arith.constant 0 : i32
    %c0_i32_1 = arith.constant 0 : i32
    %c0_i32_2 = arith.constant 0 : i32
    return %c0_i32, %c0_i32_0, %c0_i32_1 : i32, i32, i32
  }
  func.func @transform_2(%arg0: i32) -> (i32, i32) {
    %c0_i32 = arith.constant 0 : i32
    %c0_i32_0 = arith.constant 0 : i32
    %c0_i32_1 = arith.constant 0 : i32
    return %c0_i32, %c0_i32_0 : i32, i32
  }
  func.func @transform_3(%arg0: i32) -> (i32, i32, i32) {
    %c0_i32 = arith.constant 0 : i32
    %c0_i32_0 = arith.constant 0 : i32
    %c0_i32_1 = arith.constant 0 : i32
    return %arg0, %c0_i32, %c0_i32_0 : i32, i32, i32
  }
}

module attributes {stable_mosaic.version = 11 : i64} {
  func.func @_conv_tap_kernel(%arg0: i32, %arg1: memref<1x1x48x32xbf16, #tpu.memory_space<vmem>>, %arg2: memref<9x32x2xbf16, #tpu.memory_space<vmem>>, %arg3: memref<1x2xf32, #tpu.memory_space<vmem>>, %arg4: memref<1x24x2xbf16, #tpu.memory_space<vmem>>) attributes {dimension_semantics = [#tpu.dimension_semantics<parallel>], iteration_bounds = array<i64: 2>, scalar_prefetch = 0 : i64, scratch_operands = 0 : i64, tpu.core_type = #tpu.core_type<tc>, window_params = [{transform_indices = @transform_0, window_bounds = array<i64: 1, 1, 48, 32>}, {pipeline_mode = #tpu.pipeline_mode<synchronous>, transform_indices = @transform_1, window_bounds = array<i64: 9, 32, 2>}, {pipeline_mode = #tpu.pipeline_mode<synchronous>, transform_indices = @transform_2, window_bounds = array<i64: 1, 2>}, {transform_indices = @transform_3, window_bounds = array<i64: 1, 24, 2>}]} {
    %c0 = arith.constant 0 : index
    %c0_0 = arith.constant 0 : index
    %c0_1 = arith.constant 0 : index
    %c0_2 = arith.constant 0 : index
    %0 = vector.load %arg1[%c0, %c0_0, %c0_1, %c0_2] : memref<1x1x48x32xbf16, #tpu.memory_space<vmem>>, vector<1x1x24x32xbf16>
    %1 = vector.shape_cast %0 : vector<1x1x24x32xbf16> to vector<24x32xbf16>
    %c0_3 = arith.constant 0 : index
    %c0_4 = arith.constant 0 : index
    %c0_5 = arith.constant 0 : index
    %2 = vector.load %arg2[%c0_3, %c0_4, %c0_5] : memref<9x32x2xbf16, #tpu.memory_space<vmem>>, vector<1x32x2xbf16>
    %3 = vector.shape_cast %2 : vector<1x32x2xbf16> to vector<32x2xbf16>
    %cst = arith.constant dense<0.000000e+00> : vector<24x2xf32>
    %4 = tpu.matmul %1, %3, %cst {dimension_numbers = #tpu.dot_dimension_numbers<[1], [0], [0], [1], [0, 0, 1, 1], [], []>} : vector<24x32xbf16>, vector<32x2xbf16>, vector<24x2xf32> -> vector<24x2xf32>
    %c0_6 = arith.constant 0 : index
    %c0_7 = arith.constant 0 : index
    %c1 = arith.constant 1 : index
    %c0_8 = arith.constant 0 : index
    %5 = vector.load %arg1[%c0_6, %c0_7, %c1, %c0_8] : memref<1x1x48x32xbf16, #tpu.memory_space<vmem>>, vector<1x1x24x32xbf16>
    %6 = vector.shape_cast %5 : vector<1x1x24x32xbf16> to vector<24x32xbf16>
    %c1_9 = arith.constant 1 : index
    %c0_10 = arith.constant 0 : index
    %c0_11 = arith.constant 0 : index
    %7 = vector.load %arg2[%c1_9, %c0_10, %c0_11] : memref<9x32x2xbf16, #tpu.memory_space<vmem>>, vector<1x32x2xbf16>
    %8 = vector.shape_cast %7 : vector<1x32x2xbf16> to vector<32x2xbf16>
    %cst_12 = arith.constant dense<0.000000e+00> : vector<24x2xf32>
    %9 = tpu.matmul %6, %8, %cst_12 {dimension_numbers = #tpu.dot_dimension_numbers<[1], [0], [0], [1], [0, 0, 1, 1], [], []>} : vector<24x32xbf16>, vector<32x2xbf16>, vector<24x2xf32> -> vector<24x2xf32>
    %10 = arith.addf %4, %9 : vector<24x2xf32>
    %c0_13 = arith.constant 0 : index
    %c0_14 = arith.constant 0 : index
    %c2 = arith.constant 2 : index
    %c0_15 = arith.constant 0 : index
    %11 = vector.load %arg1[%c0_13, %c0_14, %c2, %c0_15] : memref<1x1x48x32xbf16, #tpu.memory_space<vmem>>, vector<1x1x24x32xbf16>
    %12 = vector.shape_cast %11 : vector<1x1x24x32xbf16> to vector<24x32xbf16>
    %c2_16 = arith.constant 2 : index
    %c0_17 = arith.constant 0 : index
    %c0_18 = arith.constant 0 : index
    %13 = vector.load %arg2[%c2_16, %c0_17, %c0_18] : memref<9x32x2xbf16, #tpu.memory_space<vmem>>, vector<1x32x2xbf16>
    %14 = vector.shape_cast %13 : vector<1x32x2xbf16> to vector<32x2xbf16>
    %cst_19 = arith.constant dense<0.000000e+00> : vector<24x2xf32>
    %15 = tpu.matmul %12, %14, %cst_19 {dimension_numbers = #tpu.dot_dimension_numbers<[1], [0], [0], [1], [0, 0, 1, 1], [], []>} : vector<24x32xbf16>, vector<32x2xbf16>, vector<24x2xf32> -> vector<24x2xf32>
    %16 = arith.addf %10, %15 : vector<24x2xf32>
    %c0_20 = arith.constant 0 : index
    %c0_21 = arith.constant 0 : index
    %c6 = arith.constant 6 : index
    %c0_22 = arith.constant 0 : index
    %17 = vector.load %arg1[%c0_20, %c0_21, %c6, %c0_22] : memref<1x1x48x32xbf16, #tpu.memory_space<vmem>>, vector<1x1x24x32xbf16>
    %18 = vector.shape_cast %17 : vector<1x1x24x32xbf16> to vector<24x32xbf16>
    %c3 = arith.constant 3 : index
    %c0_23 = arith.constant 0 : index
    %c0_24 = arith.constant 0 : index
    %19 = vector.load %arg2[%c3, %c0_23, %c0_24] : memref<9x32x2xbf16, #tpu.memory_space<vmem>>, vector<1x32x2xbf16>
    %20 = vector.shape_cast %19 : vector<1x32x2xbf16> to vector<32x2xbf16>
    %cst_25 = arith.constant dense<0.000000e+00> : vector<24x2xf32>
    %21 = tpu.matmul %18, %20, %cst_25 {dimension_numbers = #tpu.dot_dimension_numbers<[1], [0], [0], [1], [0, 0, 1, 1], [], []>} : vector<24x32xbf16>, vector<32x2xbf16>, vector<24x2xf32> -> vector<24x2xf32>
    %22 = arith.addf %16, %21 : vector<24x2xf32>
    %c0_26 = arith.constant 0 : index
    %c0_27 = arith.constant 0 : index
    %c7 = arith.constant 7 : index
    %c0_28 = arith.constant 0 : index
    %23 = vector.load %arg1[%c0_26, %c0_27, %c7, %c0_28] : memref<1x1x48x32xbf16, #tpu.memory_space<vmem>>, vector<1x1x24x32xbf16>
    %24 = vector.shape_cast %23 : vector<1x1x24x32xbf16> to vector<24x32xbf16>
    %c4 = arith.constant 4 : index
    %c0_29 = arith.constant 0 : index
    %c0_30 = arith.constant 0 : index
    %25 = vector.load %arg2[%c4, %c0_29, %c0_30] : memref<9x32x2xbf16, #tpu.memory_space<vmem>>, vector<1x32x2xbf16>
    %26 = vector.shape_cast %25 : vector<1x32x2xbf16> to vector<32x2xbf16>
    %cst_31 = arith.constant dense<0.000000e+00> : vector<24x2xf32>
    %27 = tpu.matmul %24, %26, %cst_31 {dimension_numbers = #tpu.dot_dimension_numbers<[1], [0], [0], [1], [0, 0, 1, 1], [], []>} : vector<24x32xbf16>, vector<32x2xbf16>, vector<24x2xf32> -> vector<24x2xf32>
    %28 = arith.addf %22, %27 : vector<24x2xf32>
    %c0_32 = arith.constant 0 : index
    %c0_33 = arith.constant 0 : index
    %c8 = arith.constant 8 : index
    %c0_34 = arith.constant 0 : index
    %29 = vector.load %arg1[%c0_32, %c0_33, %c8, %c0_34] : memref<1x1x48x32xbf16, #tpu.memory_space<vmem>>, vector<1x1x24x32xbf16>
    %30 = vector.shape_cast %29 : vector<1x1x24x32xbf16> to vector<24x32xbf16>
    %c5 = arith.constant 5 : index
    %c0_35 = arith.constant 0 : index
    %c0_36 = arith.constant 0 : index
    %31 = vector.load %arg2[%c5, %c0_35, %c0_36] : memref<9x32x2xbf16, #tpu.memory_space<vmem>>, vector<1x32x2xbf16>
    %32 = vector.shape_cast %31 : vector<1x32x2xbf16> to vector<32x2xbf16>
    %cst_37 = arith.constant dense<0.000000e+00> : vector<24x2xf32>
    %33 = tpu.matmul %30, %32, %cst_37 {dimension_numbers = #tpu.dot_dimension_numbers<[1], [0], [0], [1], [0, 0, 1, 1], [], []>} : vector<24x32xbf16>, vector<32x2xbf16>, vector<24x2xf32> -> vector<24x2xf32>
    %34 = arith.addf %28, %33 : vector<24x2xf32>
    %c0_38 = arith.constant 0 : index
    %c0_39 = arith.constant 0 : index
    %c12 = arith.constant 12 : index
    %c0_40 = arith.constant 0 : index
    %35 = vector.load %arg1[%c0_38, %c0_39, %c12, %c0_40] : memref<1x1x48x32xbf16, #tpu.memory_space<vmem>>, vector<1x1x24x32xbf16>
    %36 = vector.shape_cast %35 : vector<1x1x24x32xbf16> to vector<24x32xbf16>
    %c6_41 = arith.constant 6 : index
    %c0_42 = arith.constant 0 : index
    %c0_43 = arith.constant 0 : index
    %37 = vector.load %arg2[%c6_41, %c0_42, %c0_43] : memref<9x32x2xbf16, #tpu.memory_space<vmem>>, vector<1x32x2xbf16>
    %38 = vector.shape_cast %37 : vector<1x32x2xbf16> to vector<32x2xbf16>
    %cst_44 = arith.constant dense<0.000000e+00> : vector<24x2xf32>
    %39 = tpu.matmul %36, %38, %cst_44 {dimension_numbers = #tpu.dot_dimension_numbers<[1], [0], [0], [1], [0, 0, 1, 1], [], []>} : vector<24x32xbf16>, vector<32x2xbf16>, vector<24x2xf32> -> vector<24x2xf32>
    %40 = arith.addf %34, %39 : vector<24x2xf32>
    %c0_45 = arith.constant 0 : index
    %c0_46 = arith.constant 0 : index
    %c13 = arith.constant 13 : index
    %c0_47 = arith.constant 0 : index
    %41 = vector.load %arg1[%c0_45, %c0_46, %c13, %c0_47] : memref<1x1x48x32xbf16, #tpu.memory_space<vmem>>, vector<1x1x24x32xbf16>
    %42 = vector.shape_cast %41 : vector<1x1x24x32xbf16> to vector<24x32xbf16>
    %c7_48 = arith.constant 7 : index
    %c0_49 = arith.constant 0 : index
    %c0_50 = arith.constant 0 : index
    %43 = vector.load %arg2[%c7_48, %c0_49, %c0_50] : memref<9x32x2xbf16, #tpu.memory_space<vmem>>, vector<1x32x2xbf16>
    %44 = vector.shape_cast %43 : vector<1x32x2xbf16> to vector<32x2xbf16>
    %cst_51 = arith.constant dense<0.000000e+00> : vector<24x2xf32>
    %45 = tpu.matmul %42, %44, %cst_51 {dimension_numbers = #tpu.dot_dimension_numbers<[1], [0], [0], [1], [0, 0, 1, 1], [], []>} : vector<24x32xbf16>, vector<32x2xbf16>, vector<24x2xf32> -> vector<24x2xf32>
    %46 = arith.addf %40, %45 : vector<24x2xf32>
    %c0_52 = arith.constant 0 : index
    %c0_53 = arith.constant 0 : index
    %c14 = arith.constant 14 : index
    %c0_54 = arith.constant 0 : index
    %47 = vector.load %arg1[%c0_52, %c0_53, %c14, %c0_54] : memref<1x1x48x32xbf16, #tpu.memory_space<vmem>>, vector<1x1x24x32xbf16>
    %48 = vector.shape_cast %47 : vector<1x1x24x32xbf16> to vector<24x32xbf16>
    %c8_55 = arith.constant 8 : index
    %c0_56 = arith.constant 0 : index
    %c0_57 = arith.constant 0 : index
    %49 = vector.load %arg2[%c8_55, %c0_56, %c0_57] : memref<9x32x2xbf16, #tpu.memory_space<vmem>>, vector<1x32x2xbf16>
    %50 = vector.shape_cast %49 : vector<1x32x2xbf16> to vector<32x2xbf16>
    %cst_58 = arith.constant dense<0.000000e+00> : vector<24x2xf32>
    %51 = tpu.matmul %48, %50, %cst_58 {dimension_numbers = #tpu.dot_dimension_numbers<[1], [0], [0], [1], [0, 0, 1, 1], [], []>} : vector<24x32xbf16>, vector<32x2xbf16>, vector<24x2xf32> -> vector<24x2xf32>
    %52 = arith.addf %46, %51 : vector<24x2xf32>
    %c0_59 = arith.constant 0 : index
    %c0_60 = arith.constant 0 : index
    %53 = vector.load %arg3[%c0_59, %c0_60] : memref<1x2xf32, #tpu.memory_space<vmem>>, vector<1x2xf32>
    %54 = vector.broadcast %53 : vector<1x2xf32> to vector<24x2xf32>
    %55 = arith.addf %52, %54 : vector<24x2xf32>
    %56 = arith.truncf %55 : vector<24x2xf32> to vector<24x2xbf16>
    %c0_61 = arith.constant 0 : index
    %c0_62 = arith.constant 0 : index
    %c0_63 = arith.constant 0 : index
    %57 = vector.load %arg4[%c0_61, %c0_62, %c0_63] : memref<1x24x2xbf16, #tpu.memory_space<vmem>>, vector<1x24x2xbf16>
    %58 = vector.shape_cast %57 : vector<1x24x2xbf16> to vector<24x2xbf16>
    %59 = vector.shape_cast %56 : vector<24x2xbf16> to vector<1x24x2xbf16>
    tpu.vector_store %arg4[%c0_61, %c0_62, %c0_63], %59 {strides = array<i32>} : memref<1x24x2xbf16, #tpu.memory_space<vmem>>, vector<1x24x2xbf16>,
    return
  }
  func.func @transform_0(%arg0: i32) -> (i32, i32, i32, i32) {
    %c0_i32 = arith.constant 0 : i32
    %c0_i32_0 = arith.constant 0 : i32
    %c0_i32_1 = arith.constant 0 : i32
    %c0_i32_2 = arith.constant 0 : i32
    return %arg0, %c0_i32, %c0_i32_0, %c0_i32_1 : i32, i32, i32, i32
  }
  func.func @transform_1(%arg0: i32) -> (i32, i32, i32) {
    %c0_i32 = arith.constant 0 : i32
    %c0_i32_0 = arith.constant 0 : i32
    %c0_i32_1 = arith.constant 0 : i32
    %c0_i32_2 = arith.constant 0 : i32
    return %c0_i32, %c0_i32_0, %c0_i32_1 : i32, i32, i32
  }
  func.func @transform_2(%arg0: i32) -> (i32, i32) {
    %c0_i32 = arith.constant 0 : i32
    %c0_i32_0 = arith.constant 0 : i32
    %c0_i32_1 = arith.constant 0 : i32
    return %c0_i32, %c0_i32_0 : i32, i32
  }
  func.func @transform_3(%arg0: i32) -> (i32, i32, i32) {
    %c0_i32 = arith.constant 0 : i32
    %c0_i32_0 = arith.constant 0 : i32
    %c0_i32_1 = arith.constant 0 : i32
    return %arg0, %c0_i32, %c0_i32_0 : i32, i32, i32
  }
}

</mosaic_0001>

<bundles_post_ra>
// kernel: raft_forward.41
= control target key start
LH: loop header
LB: loop body
LE: loop exit
PB: predicated region body
PF: predicated region fallthrough
CT: control target
= control target key end

     0   :  { %s1668_s12 = smov 0   ;;  %s1909_s0 = inlined_call_operand.vmem [shape: bf16[2,4,90,16], index: 0, kind: input, shape index: {}]   ;;  %s1910_s1 = inlined_call_operand.vmem [shape: bf16[9,16,24], index: 1, kind: input, shape index: {}]   ;;  %s1911_s2 = inlined_call_operand.vmem [shape: f32[1,24], index: 2, kind: input, shape index: {}]   ;;  %s1912_s3 = inlined_call_operand.vmem [shape: bf16[2,72,24], index: 3, kind: output, shape index: {}]  }
   0x1 LB: > { %s1286_s13 = sadd.s32 4294967295, %s1646_s12   ;;  %p1290_p0 = scmp.ge.s32.totalorder %s1646_s12, 1  ;;  %s1646_s12 = sphi %s1668_s12, %s13_s12  }
   0x2   : > { %p137_p1 = scmp.lt.s32.totalorder %s1646_s12, 3 }
   0x4   : > { %p138_p2 = pnand %p1290_p0, %p137_p1 }
   0x5   : > { %p161_p3 = scmp.lt.s32.totalorder (!%p138_p2), %s1286_s13, 1 }
   0x6   : > { %141 = sbr.rel (%p138_p2) target bundleno = 339 (0x153), region = 32 }
   0xb   : > { %v1588_v0 = vld [vmem:[%s1910_s1 + $0x8] sm:$0xff]  ;;  %v1594_v1 = vld [vmem:[%s1910_s1 + $0x10] sm:$0xff]  ;;  %v1583_v2 = vld [vmem:[%s1910_s1] sm:$0xff]  ;;  %s1914_s13 = smov (!%p161_p3, %s1286_s13), 1  ;;  %vm225_vm0 = vcmask 130048   ;;  %vm1117_vm2 = vcmask 1046528  }
   0xc   : > { %v1599_v3 = vld [vmem:[%s1910_s1 + $0x18] sm:$0xff]  ;;  %v1604_v4 = vld [vmem:[%s1910_s1 + $0x20] sm:$0xff]  ;;  %1623 = vmatpush.bf16.msra.mxu1 %v1588_v0  ;;  %1624 = vmatpush.bf16.msra.mxu2 %v1588_v0  ;;  %s1626_s24 = smul.u32 192, %s1914_s13  ;;  %v1615_v11 = vld [vmem:[%s1910_s1 + $0x30] sm:$0xff]  ;;  %vm389_vm1 = vsmask.f32 7424 }
   0xd   : > { %1625 = vmatpush.bf16.msra.mxu3 %v1588_v0  ;;  %248 = vmatpush.bf16.msra.mxu0 %v1588_v0  ;;  %v1621_v12 = vld [vmem:[%s1910_s1 + $0x38] sm:$0xff]  ;;  %v1610_v13 = vld [vmem:[%s1910_s1 + $0x28] sm:$0xff]  ;;  %v1622_v14 = vld [vmem:[%s1910_s1 + $0x40] sm:$0xff]  ;;  %s1627_s11 = smul.u32 36, %s1914_s13  ;;  %vm1221_vm3 = vcmask 191488  }
   0xe   : > { %s1697_s27 = scalar_lea.vmem %s1909_s0, %s1626_s24 }
   0xf   : > { %v1585_v5 = vld [vmem:[%s1697_s27 + $0x38] sm:$0xff]  ;;  %v1586_v6 = vld [vmem:[%s1697_s27 + $0x40] sm:$0xff]  ;;  %v1301_v7 = vld [vmem:[%s1697_s27 + $0x50] sm:$0xf]  ;;  %s1871_s16 = scalar_lea.vmem %s1912_s3, %s1627_s11 }
  0x10   : > { %457 = vmatpush.bf16.msrb.mxu2 %v1594_v1  ;;  %325 = vmatpush.bf16.msrb.mxu1 %v1583_v2  ;;  %v213_v8 = vunpack.c.l.b16 %v1301_v7  ;;  %v1584_v9 = vld [vmem:[%s1697_s27 + $0x30] sm:$0xff]  ;;  %v1587_v15 = vld [vmem:[%s1697_s27 + $0x48] sm:$0xff]  ;;  %v1579_v16 = vld [vmem:[%s1697_s27] sm:$0xff] }
  0x11   : > { %556 = vmatpush.bf16.msrb.mxu3 %v1599_v3  ;;  %655 = vmatpush.bf16.msrb.mxu0 %v1604_v4  ;;  %v1589_v17 = vld [vmem:[%s1697_s27] sm:$0xff]  ;;  %v1600_v18 = vld [vmem:[%s1697_s27 + $0x90] sm:$0xff]  ;;  %v1590_v20 = vld [vmem:[%s1697_s27 + $0x8] sm:$0xff] }
  0x12   : > { %1325 = vmatmul.msk.bf16.vlgmr.msra.gmra.mxu1 %vm225_vm0, %v1585_v5  ;;  %1326 = vmatmul.msk.bf16.vlgmr.msra.gmra.mxu2 %vm225_vm0, %v1586_v6  ;;  %v218_v10 = vpack.c.b16 %v213_v8, %v213_v8  ;;  %v1595_v19 = vld [vmem:[%s1697_s27 + $0x60] sm:$0xff]  ;;  %v393_v21 = vshll.u32 %v1589_v17, 16  ;;  %v391_v22 = vshrl.u32 %v1589_v17, 16  ;;  %v398_v24 = vshll.u32 %v1590_v20, 16  ;;  %v1580_v27 = vld [vmem:[%s1697_s27 + $0x8] sm:$0xff]  ;;  %v1601_v29 = vld [vmem:[%s1697_s27 + $0x98] sm:$0xff] }
  0x13   : > { %1324 = vmatmul.msk.bf16.vlgmr.msra.gmra.mxu0 %vm225_vm0, %v1584_v9  ;;  %v1596_v30 = vld [vmem:[%s1697_s27 + $0x68] sm:$0xff]  ;;  %v1591_v31 = vld [vmem:[%s1697_s27 + $0x10] sm:$0xff]  ;;  %v402_v32 = vshrl.u32 %v1590_v20, 16  ;;  %v1602_v38 = vld [vmem:[%s1697_s27 + $0xa0] sm:$0xff] }
  0x14   : > { %1328 = vmatmul.msk.bf16.vlgmr.msra.gmra.mxu3 %vm225_vm0, %v218_v10  ;;  %935 = vmatpush.bf16.msra.mxu2 %v1615_v11  ;;  %v395_v23 = vrot.slane %v393_v21, 1  ;;  %v400_v26 = vrot.slane %v398_v24, 1  ;;  %v406_v33 = vshll.u32 %v1591_v31, 16  ;;  %v1581_v36 = vld [vmem:[%s1697_s27 + $0x10] sm:$0xff]  ;;  %v1592_v40 = vld [vmem:[%s1697_s27 + $0x18] sm:$0xff]  ;;  %v410_v41 = vshrl.u32 %v1591_v31, 16 }
  0x15   : > { %1075 = vmatpush.bf16.msra.mxu3 %v1621_v12  ;;  %795 = vmatpush.bf16.msra.mxu1 %v1610_v13  ;;  %v1597_v39 = vld [vmem:[%s1697_s27 + $0x70] sm:$0xff]  ;;  %v414_v42 = vshll.u32 %v1592_v40, 16  ;;  %v1582_v45 = vld [vmem:[%s1697_s27 + $0x18] sm:$0xff]  ;;  %v1603_v47 = vld [vmem:[%s1697_s27 + $0xa8] sm:$0xff]  ;;  %v418_v53 = vshrl.u32 %v1592_v40, 16 }
  0x16   : > { %1155 = vmatpush.bf16.msra.mxu0 %v1622_v14  ;;  %v396_v25 = vor.u32 %v395_v23, %v391_v22  ;;  %v404_v34 = vor.u32 %v402_v32, %v400_v26  ;;  %v408_v35 = vrot.slane %v406_v33, 1  ;;  %v1374_v48 = vld [vmem:[%s1697_s27 + $0x20] sm:$0xf]  ;;  %v1593_v49 = vld [vmem:[%s1697_s27 + $0x20] sm:$0x10]  ;;  %v1598_v50 = vld [vmem:[%s1697_s27 + $0x78] sm:$0xff] }
  0x17   : > { %v416_v44 = vrot.slane %v414_v42, 1  ;;  %v1375_v51 = vor.u32 %v1593_v49, %v1374_v48  ;;  %v180_v52 = vld [vmem:[%s1697_s27 + $0x20] sm:$0xf]  ;;  %v1429_v55 = vld [vmem:[%s1697_s27 + $0xb0] sm:$0xf]  ;;  %v1616_v4 = vld [vmem:[%s1697_s27 + $0x34] sm:$0xff] }
  0x18   : > { %v401_v28 = vsel %vm389_vm1, %v396_v25, %v400_v26  ;;  %v409_v37 = vsel %vm389_vm1, %v404_v34, %v408_v35  ;;  %v412_v43 = vor.u32 %v410_v41, %v408_v35  ;;  %v291_v56 = vunpack.c.l.b16 %v180_v52  ;;  %v1393_v57 = vld [vmem:[%s1697_s27 + $0x80] sm:$0xf]  ;;  %v1642_v3 = vld [vmem:[%s1697_s27 + $0x4] sm:$0xe]  ;;  %v1606_v5 = vld [vmem:[%s1697_s27 + $0x68] sm:$0xff] }
  0x19   : > { %v422_v54 = vshll.u32 %v1375_v51, 16  ;;  %v420_v58 = vor.u32 %v418_v53, %v416_v44  ;;  %v621_v60 = vunpack.c.l.b16 %v1429_v55  ;;  %v522_v61 = vunpack.c.l.b16 %v1393_v57  ;;  %v1605_v0 = vld [vmem:[%s1697_s27 + $0x60] sm:$0xff]  ;;  %v1641_v8 = vld [vmem:[%s1697_s27 + $0x4] sm:$0xf0]  ;;  %v1783_v40 = vld [vmem:[%s1697_s27 + $0x14] sm:$0xff] }
  0x1a   : > { %v417_v46 = vsel %vm389_vm1, %v412_v43, %v416_v44  ;;  %v296_v62 = vpack.c.b16 %v291_v56, %v291_v56  ;;  %v731_v6 = vshll.u32 %v1605_v0, 16  ;;  %v830_v7 = vld [vmem:[%s1697_s27 + $0x4] sm:$0xff]   ;;  %v1617_v9 = vld [vmem:[%s1697_s27 + $0x3c] sm:$0xff]  ;;  %v1011_v10 = vshll.u32 %v1616_v4, 16  ;;  %v1619_v53 = vld [vmem:[%s1697_s27 + $0x4c] sm:$0xff] }
  0x1b   : > { %v424_v59 = vrot.slane %v422_v54, 1  ;;  %v626_v1 = vpack.c.b16 %v621_v60, %v621_v60  ;;  %v527_v2 = vpack.c.b16 %v522_v61, %v522_v61  ;;  %v729_v11 = vshrl.u32 %v1605_v0, 16  ;;  %v1618_v33 = vld [vmem:[%s1697_s27 + $0x44] sm:$0xff]  ;;  %v1608_v52 = vld [vmem:[%s1697_s27 + $0x78] sm:$0xff] }
  0x1c   : > { %v733_v12 = vrot.slane %v731_v6, 1  ;;  %v736_v13 = vshll.u32 %v1606_v5, 16  ;;  %v1643_v14 = vor.u32 %v1642_v3, %v1641_v8  ;;  %v1013_v17 = vrot.slane %v1011_v10, 1  ;;  %v1798_v60 = vld [vmem:[%s1697_s27 + $0x1c] sm:$0xff]  ;;  %v1609_v8 = vld [vmem:[%s1697_s27 + $0x80] sm:$0x10] }
  0x1d   : > { %v425_v63 = vsel %vm389_vm1, %v420_v58, %v424_v59  ;;  %v871_v31 = vshll.u32 %v830_v7, 16  ;;  %v740_v32 = vshrl.u32 %v1606_v5, 16  ;;  %v869_v35 = vshrl.u32 %v830_v7, 16  ;;  %v1487_v7 = vld [vmem:[%s1697_s27 + $0x80] sm:$0xf] }
  0x1e   : > { %v734_v20 = vor.u32 %v733_v12, %v729_v11  ;;  %v738_v21 = vrot.slane %v736_v13, 1  ;;  %v1118_v22 = vrot.slane %v1643_v14, 1  ;;  %v752_v55 = vshll.u32 %v1608_v52, 16  ;;  %v1555_v13 = vld [vmem:[%s1697_s27 + $0x54] sm:$0xf] }
  0x1f   : > { %v884_v57 = vshll.u32 %v1783_v40, 16  ;;  %v1028_v58 = vshrl.u32 %v1618_v33, 16  ;;  %v1488_v12 = vor.u32 %v1609_v8, %v1487_v7  ;;  %v1620_v14 = vld [vmem:[%s1697_s27 + $0x54] sm:$0x10] }
  0x20   : > { %v742_v41 = vor.u32 %v740_v32, %v738_v21 }
  0x21   : > { %v886_v0 = vrot.slane %v884_v57, 1 }
  0x22   : > { %1327 = vmatmul.msk.bf16.gmra.mxu2 %vm225_vm0, %v1587_v15  ;;  %1349 = vmatmul.msk.bf16.vlgmr.msrb.gmra.mxu1 %vm225_vm0, %v1579_v16  ;;  %v426_v15 = vshrl.u32 %v1375_v51, 16  ;;  %v1009_v16 = vshrl.u32 %v1616_v4, 16 }
  0x23   : > { %1452 = vmatmul.msk.bf16.vlgmr.msrb.gmra.mxu0 %vm225_vm0, %v1600_v18  ;;  %v1016_v18 = vshll.u32 %v1617_v9, 16 }
  0x24   : > { %1416 = vmatmul.msk.bf16.vlgmr.msrb.gmra.mxu3 %vm225_vm0, %v1595_v19  ;;  %v1611_v19 = vld [vmem:[%s1697_s27 + $0xc] sm:$0xff]  ;;  %v428_v24 = vor.u32 %v426_v15, %v424_v59  ;;  %v1014_v25 = vor.u32 %v1013_v17, %v1009_v16  ;;  %v1032_v59 = vshll.u32 %v1619_v53, 16  ;;  %v756_v16 = vshrl.u32 %v1608_v52, 16 }
  0x25   : > { %v1119_v23 = vrot.slane %v1611_v19, 1  ;;  %v1018_v26 = vrot.slane %v1016_v18, 1  ;;  %v880_v56 = vshrl.u32 %v1611_v19, 16  ;;  %v760_v17 = vshll.u32 %v1488_v12, 16 }
  0x26   : > { %v1034_v3 = vrot.slane %v1032_v59, 1  ;;  %v1556_v18 = vor.u32 %v1620_v14, %v1555_v13  ;;  %v764_v52 = vshrl.u32 %v1488_v12, 16 }
  0x32   : > { %1350 = vmatmul.msk.bf16.gmra.mxu1 %vm225_vm0, %v1580_v27  ;;  %1380 = vmatmul.msk.bf16.vlgmr.msrb.gmra.mxu2 %vm225_vm0, %v401_v28  ;;  %v739_v27 = vsel %vm389_vm1, %v734_v20, %v738_v21  ;;  %v1120_v28 = vsel %vm1117_vm2, %v1118_v22, %v1119_v23  ;;  %v888_v20 = vshrl.u32 %v1783_v40, 16  ;;  %v892_v21 = vshll.u32 %v1798_v60, 16  ;;  %v1514_v22 = vld [vmem:[%s1697_s27 + $0x24] sm:$0xf] }
  0x33   : > { %1453 = vmatmul.msk.bf16.gmra.mxu0 %vm225_vm0, %v1601_v29  ;;  %v1019_v29 = vsel %vm389_vm1, %v1014_v25, %v1018_v26 }
  0x34   : > { %1417 = vmatmul.msk.bf16.gmra.mxu3 %vm225_vm0, %v1596_v30  ;;  %v1607_v30 = vld [vmem:[%s1697_s27 + $0x70] sm:$0xff]  ;;  %v894_v32 = vrot.slane %v892_v21, 1 }
  0x35   : > { %v744_v34 = vshll.u32 %v1607_v30, 16  ;;  %v748_v54 = vshrl.u32 %v1607_v30, 16  ;;  %v762_v30 = vrot.slane %v760_v17, 1 }
  0x37   : > { %v746_v42 = vrot.slane %v744_v34, 1  ;;  %v766_v57 = vor.u32 %v764_v52, %v762_v30 }
  0x39   : > { %v747_v48 = vsel %vm389_vm1, %v742_v41, %v746_v42  ;;  %v750_v61 = vor.u32 %v748_v54, %v746_v42 }
  0x42   : > { %1351 = vmatmul.msk.bf16.gmra.mxu1 %vm225_vm0, %v1581_v36  ;;  %1381 = vmatmul.msk.bf16.gmra.mxu2 %vm225_vm0, %v409_v37  ;;  %v873_v36 = vrot.slane %v871_v31, 1  ;;  %v876_v37 = vshll.u32 %v1611_v19, 16  ;;  %v890_v31 = vor.u32 %v888_v20, %v886_v0 }
  0x43   : > { %1454 = vmatmul.msk.bf16.gmra.mxu0 %vm225_vm0, %v1602_v38  ;;  %v1020_v38 = vshrl.u32 %v1617_v9, 16 }
  0x44   : > { %1418 = vmatmul.msk.bf16.gmra.mxu3 %vm225_vm0, %v1597_v39  ;;  %v1024_v39 = vshll.u32 %v1618_v33, 16  ;;  %v874_v43 = vor.u32 %v873_v36, %v869_v35  ;;  %v878_v44 = vrot.slane %v876_v37, 1 }
  0x46   : > { %v879_v49 = vsel %vm389_vm1, %v874_v43, %v878_v44 }
  0x52   : > { %1352 = vmatmul.msk.bf16.gmra.mxu1 %vm225_vm0, %v1582_v45  ;;  %1382 = vmatmul.msk.bf16.gmra.mxu2 %vm225_vm0, %v417_v46  ;;  %v1121_v45 = vrot.slane %v1783_v40, 1  ;;  %v1022_v46 = vor.u32 %v1020_v38, %v1018_v26  ;;  %v1036_v26 = vshrl.u32 %v1619_v53, 16 }
  0x53   : > { %1455 = vmatmul.msk.bf16.gmra.mxu0 %vm225_vm0, %v1603_v47  ;;  %v1026_v47 = vrot.slane %v1024_v39, 1  ;;  %v895_v39 = vsel %vm389_vm1, %v890_v31, %v894_v32 }
  0x54   : > { %1419 = vmatmul.msk.bf16.gmra.mxu3 %vm225_vm0, %v1598_v50  ;;  %v1122_v50 = vsel %vm1117_vm2, %v1119_v23, %v1121_v45  ;;  %v1614_v23 = vld [vmem:[%s1697_s27 + $0x24] sm:$0x10]  ;;  %v1038_v35 = vor.u32 %v1036_v26, %v1034_v3 }
  0x55   : > { %v1027_v51 = vsel %vm389_vm1, %v1022_v46, %v1026_v47 }
  0x62   : > { %1353 = vmatmul.msk.bf16.gmra.mxu1 %vm225_vm0, %v296_v62  ;;  %1383 = vmatmul.msk.bf16.gmra.mxu2 %vm225_vm0, %v425_v63  ;;  %v754_v62 = vrot.slane %v752_v55, 1  ;;  %v882_v63 = vor.u32 %v880_v56, %v878_v44  ;;  %v1044_v56 = vshrl.u32 %v1556_v18, 16 }
  0x63   : > { %1456 = vmatmul.msk.bf16.gmra.mxu0 %vm225_vm0, %v626_v1  ;;  %v1123_v1 = vrot.slane %v1798_v60, 1 }
  0x64   : > { %1420 = vmatmul.msk.bf16.gmra.mxu3 %vm225_vm0, %v527_v2  ;;  %v1030_v2 = vor.u32 %v1028_v58, %v1026_v47  ;;  %v755_v5 = vsel %vm389_vm1, %v750_v61, %v754_v62  ;;  %v887_v6 = vsel %vm389_vm1, %v882_v63, %v886_v0  ;;  %v896_v47 = vshrl.u32 %v1798_v60, 16 }
  0x65   : > { %v1124_v10 = vsel %vm1117_vm2, %v1121_v45, %v1123_v1 }
  0x66   : > { %v1035_v11 = vsel %vm389_vm1, %v1030_v2, %v1034_v3  ;;  %v898_v53 = vor.u32 %v896_v47, %v894_v32 }
  0x72   : > { %1384 = vmatmul.msk.bf16.gmra.mxu2 %vm225_vm0, %v428_v24  ;;  %1493 = vmatmul.msk.bf16.vlgmr.msra.gmra.mxu1 %vm225_vm0, %v739_v27  ;;  %v1040_v27 = vshll.u32 %v1556_v18, 16 }
  0x73   : > { %1572 = vmatmul.msk.bf16.vlgmr.msra.gmra.mxu0 %vm225_vm0, %v1120_v28  ;;  %v1515_v28 = vor.u32 %v1614_v23, %v1514_v22 }
  0x74   : > { %1561 = vmatmul.msk.bf16.vlgmr.msra.gmra.mxu3 %vm225_vm0, %v1019_v29  ;;  %v758_v29 = vor.u32 %v756_v16, %v754_v62  ;;  %v1042_v36 = vrot.slane %v1040_v27, 1 }
  0x75   : > { %v1125_v33 = vrot.slane %v1515_v28, 1  ;;  %v904_v8 = vshrl.u32 %v1515_v28, 16 }
  0x76   : > { %v763_v38 = vsel %vm389_vm1, %v758_v29, %v762_v30  ;;  %v1043_v44 = vsel %vm389_vm1, %v1038_v35, %v1042_v36  ;;  %v1046_v0 = vor.u32 %v1044_v56, %v1042_v36 }
  0x77   : > { %v1126_v43 = vsel %vm1117_vm2, %v1123_v1, %v1125_v33 }
  0x82   : > { %1494 = vmatmul.msk.bf16.gmra.mxu1 %vm225_vm0, %v747_v48  ;;  %1520 = vmatmul.msk.bf16.vlgmr.msra.gmra.mxu2 %vm225_vm0, %v879_v49  ;;  %v900_v48 = vshll.u32 %v1515_v28, 16 }
  0x83   : > { %1573 = vmatmul.msk.bf16.gmra.mxu0 %vm225_vm0, %v1122_v50 }
  0x84   : > { %1562 = vmatmul.msk.bf16.gmra.mxu3 %vm225_vm0, %v1027_v51  ;;  %v902_v54 = vrot.slane %v900_v48, 1 }
  0x86   : > { %v903_v59 = vsel %vm389_vm1, %v898_v53, %v902_v54 }
  0x8f   : > { %v1801_v4 = vpop.f32.mrf.mxu1 }
  0x90   : > { %v250_v9 = vpop.f32.mrf.mxu0 }
  0x92   : > { %1495 = vmatmul.msk.bf16.gmra.mxu1 %vm225_vm0, %v755_v5  ;;  %1521 = vmatmul.msk.bf16.gmra.mxu2 %vm225_vm0, %v887_v6 }
  0x93   : > { %1574 = vmatmul.msk.bf16.gmra.mxu0 %vm225_vm0, %v1124_v10 }
  0x94   : > { %1563 = vmatmul.msk.bf16.gmra.mxu3 %vm225_vm0, %v1035_v11  ;;  %v906_v11 = vor.u32 %v904_v8, %v902_v54 }
  0x95   : > { %v1814_v15 = vpop.f32.mrf.mxu2 }
  0x97   : > { %v257_v19 = vpop.f32.mrf.mxu1  ;;  %v1821_v24 = vpop.f32.mrf.mxu3 }
  0x98   : > { %v252_v25 = vpop.f32.mrf.mxu0 }
  0x9d   : > { %v262_v34 = vpop.f32.mrf.mxu2 }
  0x9f   : > { %v327_v37 = vpop.f32.mrf.mxu1  ;;  %v272_v41 = vpop.f32.mrf.mxu3 }
  0xa0   : > { %v328_v40 = vadd.f32 %v327_v37, %v250_v9  ;;  %v657_v42 = vpop.f32.mrf.mxu0 }
  0xa2   : > { %1496 = vmatmul.msk.bf16.gmra.mxu1 %vm225_vm0, %v763_v38  ;;  %1522 = vmatmul.msk.bf16.gmra.mxu2 %vm225_vm0, %v895_v39 }
  0xa3   : > { %1575 = vmatmul.msk.bf16.gmra.mxu0 %vm225_vm0, %v1126_v43 }
  0xa4   : > { %1564 = vmatmul.msk.bf16.gmra.mxu3 %vm225_vm0, %v1043_v44 }
  0xa5   : > { %v265_v45 = vpop.f32.mrf.mxu2 }
  0xa7   : > { %v329_v46 = vpop.f32.mrf.mxu1  ;;  %v558_v50 = vpop.f32.mrf.mxu3 }
  0xa8   : > { %v330_v49 = vadd.f32 %v329_v46, %v252_v25  ;;  %v659_v51 = vpop.f32.mrf.mxu0 }
  0xad   : > { %v267_v55 = vpop.f32.mrf.mxu2 }
  0xaf   : > { %v332_v58 = vpop.f32.mrf.mxu1  ;;  %v560_v62 = vpop.f32.mrf.mxu3 }
  0xb0   : > { %v333_v61 = vadd.f32 %v332_v58, %v1801_v4  ;;  %v662_v63 = vpop.f32.mrf.mxu0 }
  0xb2   : > { %1497 = vmatmul.msk.bf16.gmra.mxu1 %vm225_vm0, %v766_v57  ;;  %1523 = vmatmul.msk.bf16.gmra.mxu2 %vm225_vm0, %v903_v59 }
  0xb3   : > { %1576 = vmatmul.msk.bf16.gmra.mxu0 %vm225_vm0, %v1125_v33 }
  0xb4   : > { %1565 = vmatmul.msk.bf16.gmra.mxu3 %vm225_vm0, %v1046_v0 }
  0xb5   : > { %v459_v60 = vpop.f32.mrf.mxu2 }
  0xb6   : > { %v483_v1 = vadd.f32 %v459_v60, %v328_v40 }
  0xb7   : > { %v334_v2 = vpop.f32.mrf.mxu1  ;;  %v563_v6 = vpop.f32.mrf.mxu3 }
  0xb8   : > { %v582_v3 = vadd.f32 %v558_v50, %v483_v1  ;;  %v335_v5 = vadd.f32 %v334_v2, %v257_v19  ;;  %v664_v7 = vpop.f32.mrf.mxu0 }
  0xba   : > { %v1838_v4 = vadd.f32 %v657_v42, %v582_v3 }
  0xbd   : > { %v461_v9 = vpop.f32.mrf.mxu2 }
  0xbe   : > { %v484_v10 = vadd.f32 %v461_v9, %v330_v49 }
  0xbf   : > { %v337_v12 = vpop.f32.mrf.mxu1  ;;  %v565_v16 = vpop.f32.mrf.mxu3 }
  0xc0   : > { %v583_v13 = vadd.f32 %v560_v62, %v484_v10  ;;  %v338_v14 = vadd.f32 %v337_v12, %v1814_v15  ;;  %v667_v17 = vpop.f32.mrf.mxu0 }
  0xc2   : > { %1524 = vmatmul.msk.bf16.gmra.mxu2 %vm225_vm0, %v906_v11  ;;  %v1842_v18 = vadd.f32 %v659_v51, %v583_v13 }
  0xc5   : > { %v464_v20 = vpop.f32.mrf.mxu2 }
  0xc6   : > { %v485_v19 = vadd.f32 %v464_v20, %v333_v61  ;;  %v1863_v20 = vld [vmem:[%s1911_s2] ss:$0 sm:$0xff] }
  0xc7   : > { %v339_v21 = vpop.f32.mrf.mxu1  ;;  %v568_v25 = vpop.f32.mrf.mxu3 }
  0xc8   : > { %v584_v22 = vadd.f32 %v563_v6, %v485_v19  ;;  %v340_v23 = vadd.f32 %v339_v21, %v262_v34  ;;  %v669_v26 = vpop.f32.mrf.mxu0 }
  0xca   : > { %v1844_v27 = vadd.f32 %v662_v63, %v584_v22 }
  0xcd   : > { %v466_v28 = vpop.f32.mrf.mxu2 }
  0xce   : > { %v486_v29 = vadd.f32 %v466_v28, %v335_v5 }
  0xcf   : > { %v342_v30 = vpop.f32.mrf.mxu1  ;;  %v570_v32 = vpop.f32.mrf.mxu3 }
  0xd0   : > { %v585_v31 = vadd.f32 %v565_v16, %v486_v29  ;;  %v343_v15 = vadd.f32 %v342_v30, %v265_v45  ;;  %v672_v33 = vpop.f32.mrf.mxu0 }
  0xd2   : > { %v1846_v35 = vadd.f32 %v664_v7, %v585_v31 }
  0xd5   : > { %v469_v36 = vpop.f32.mrf.mxu2 }
  0xd6   : > { %v487_v37 = vadd.f32 %v469_v36, %v338_v14 }
  0xd7   : > { %v344_v38 = vpop.f32.mrf.mxu1  ;;  %v573_v41 = vpop.f32.mrf.mxu3 }
  0xd8   : > { %v586_v39 = vadd.f32 %v568_v25, %v487_v37  ;;  %v345_v40 = vadd.f32 %v344_v38, %v267_v55  ;;  %v674_v34 = vpop.f32.mrf.mxu0 }
  0xda   : > { %v1848_v42 = vadd.f32 %v667_v17, %v586_v39 }
  0xdd   : > { %v471_v43 = vpop.f32.mrf.mxu2 }
  0xde   : > { %v488_v44 = vadd.f32 %v471_v43, %v340_v23 }
  0xdf   : > { %v347_v46 = vpop.f32.mrf.mxu1  ;;  %v575_v45 = vpop.f32.mrf.mxu3 }
  0xe0   : > { %v587_v47 = vadd.f32 %v570_v32, %v488_v44  ;;  %v348_v48 = vadd.f32 %v347_v46, %v1821_v24  ;;  %v677_v49 = vpop.f32.mrf.mxu0 }
  0xe2   : > { %v1851_v50 = vadd.f32 %v669_v26, %v587_v47 }
  0xe5   : > { %v474_v51 = vpop.f32.mrf.mxu2 }
  0xe6   : > { %v489_v52 = vadd.f32 %v474_v51, %v343_v15 }
  0xe7   : > { %v349_v53 = vpop.f32.mrf.mxu1  ;;  %v578_v56 = vpop.f32.mrf.mxu3 }
  0xe8   : > { %v588_v54 = vadd.f32 %v573_v41, %v489_v52  ;;  %v679_v55 = vpop.f32.mrf.mxu0 }
  0xea   : > { %v1853_v57 = vadd.f32 %v672_v33, %v588_v54 }
  0xed   : > { %v476_v58 = vpop.f32.mrf.mxu2 }
  0xee   : > { %v490_v59 = vadd.f32 %v476_v58, %v345_v40 }
  0xef   : > { %v797_v61 = vpop.f32.mrf.mxu1  ;;  %v580_v63 = vpop.f32.mrf.mxu3 }
  0xf0   : > { %v589_v62 = vadd.f32 %v575_v45, %v490_v59  ;;  %v1157_v0 = vpop.f32.mrf.mxu0  ;;  %v821_v12 = vadd.f32 %v797_v61, %v1838_v4 }
  0xf2   : > { %v1855_v60 = vadd.f32 %v674_v34, %v589_v62 }
  0xf5   : > { %v479_v24 = vpop.f32.mrf.mxu2 }
  0xf6   : > { %v491_v1 = vadd.f32 %v479_v24, %v348_v48 }
  0xf7   : > { %v799_v2 = vpop.f32.mrf.mxu1  ;;  %v1077_v5 = vpop.f32.mrf.mxu3 }
  0xf8   : > { %v590_v3 = vadd.f32 %v578_v56, %v491_v1  ;;  %v1159_v6 = vpop.f32.mrf.mxu0  ;;  %v822_v23 = vadd.f32 %v799_v2, %v1842_v18 }
  0xfa   : > { %v1857_v7 = vadd.f32 %v677_v49, %v590_v3 }
  0xfd   : > { %v481_v8 = vpop.f32.mrf.mxu2 }
  0xff   : > { %v802_v9 = vpop.f32.mrf.mxu1  ;;  %v1079_v10 = vpop.f32.mrf.mxu3 }
 0x100   : > { %v1162_v11 = vpop.f32.mrf.mxu0  ;;  %v823_v33 = vadd.f32 %v802_v9, %v1844_v27 }
 0x105   : > { %v937_v13 = vpop.f32.mrf.mxu2 }
 0x106   : > { %v961_v14 = vadd.f32 %v937_v13, %v821_v12 }
 0x107   : > { %v804_v16 = vpop.f32.mrf.mxu1  ;;  %v1082_v19 = vpop.f32.mrf.mxu3 }
 0x108   : > { %v1101_v17 = vadd.f32 %v1077_v5, %v961_v14  ;;  %v1164_v21 = vpop.f32.mrf.mxu0  ;;  %v824_v47 = vadd.f32 %v804_v16, %v1846_v35 }
 0x10a   : > { %v1181_v22 = vadd.f32 %v1157_v0, %v1101_v17 }
 0x10c   : > { %v1194_v25 = vadd.f32 %v1863_v20, %v1181_v22 }
 0x10d   : > { %v939_v26 = vpop.f32.mrf.mxu2 }
 0x10e   : > { %v1203_v28 = vmax.f32 %v1194_v25, 0.0  ;;  %v962_v4 = vadd.f32 %v939_v26, %v822_v23 }
 0x10f   : > { %v807_v29 = vpop.f32.mrf.mxu1  ;;  %v1084_v15 = vpop.f32.mrf.mxu3 }
 0x110   : > { %v1212_v30 = vpack.c.bf16 %v1203_v28, %v1203_v28  ;;  %v1102_v31 = vadd.f32 %v1079_v10, %v962_v4  ;;  %v1167_v32 = vpop.f32.mrf.mxu0  ;;  %v825_v58 = vadd.f32 %v807_v29, %v1848_v42 }
 0x112   : > { %1222 = vst.msk [vmem:[%s1871_s16] sm:$0xf] %vm1221_vm3, %v1212_v30  ;;  %v1182_v18 = vadd.f32 %v1159_v6, %v1102_v31 }
 0x114   : > { %v1195_v36 = vadd.f32 %v1863_v20, %v1182_v18 }
 0x115   : > { %v942_v37 = vpop.f32.mrf.mxu2 }
 0x116   : > { %v1204_v38 = vmax.f32 %v1195_v36, 0.0  ;;  %v963_v39 = vadd.f32 %v942_v37, %v823_v33 }
 0x117   : > { %v809_v40 = vpop.f32.mrf.mxu1  ;;  %v1087_v43 = vpop.f32.mrf.mxu3 }
 0x118   : > { %v1213_v41 = vpack.c.bf16 %v1204_v38, %v1204_v38  ;;  %v1103_v34 = vadd.f32 %v1082_v19, %v963_v39  ;;  %v1169_v44 = vpop.f32.mrf.mxu0  ;;  %v826_v5 = vadd.f32 %v809_v40, %v1851_v50 }
 0x11a   : > { %1223 = vst.msk [vmem:[%s1871_s16 + $0x4] sm:$0xf] %vm1221_vm3, %v1213_v41  ;;  %v1183_v46 = vadd.f32 %v1162_v11, %v1103_v34 }
 0x11c   : > { %v1196_v48 = vadd.f32 %v1863_v20, %v1183_v46 }
 0x11d   : > { %v944_v45 = vpop.f32.mrf.mxu2 }
 0x11e   : > { %v1205_v27 = vmax.f32 %v1196_v48, 0.0  ;;  %v964_v49 = vadd.f32 %v944_v45, %v824_v47 }
 0x11f   : > { %v812_v51 = vpop.f32.mrf.mxu1  ;;  %v1089_v54 = vpop.f32.mrf.mxu3 }
 0x120   : > { %v1214_v52 = vpack.c.bf16 %v1205_v27, %v1205_v27  ;;  %v1104_v53 = vadd.f32 %v1084_v15, %v964_v49  ;;  %v1172_v56 = vpop.f32.mrf.mxu0  ;;  %v827_v17 = vadd.f32 %v812_v51, %v1853_v57 }
 0x122   : > { %1224 = vst.msk [vmem:[%s1871_s16 + $0x8] sm:$0xf] %vm1221_vm3, %v1214_v52  ;;  %v1184_v55 = vadd.f32 %v1164_v21, %v1104_v53 }
 0x124   : > { %v1197_v59 = vadd.f32 %v1863_v20, %v1184_v55 }
 0x125   : > { %v947_v61 = vpop.f32.mrf.mxu2 }
 0x126   : > { %v1206_v35 = vmax.f32 %v1197_v59, 0.0  ;;  %v965_v62 = vadd.f32 %v947_v61, %v825_v58 }
 0x127   : > { %v814_v63 = vpop.f32.mrf.mxu1  ;;  %v1092_v1 = vpop.f32.mrf.mxu3 }
 0x128   : > { %v1215_v0 = vpack.c.bf16 %v1206_v35, %v1206_v35  ;;  %v1105_v24 = vadd.f32 %v1087_v43, %v965_v62  ;;  %v1174_v2 = vpop.f32.mrf.mxu0  ;;  %v828_v30 = vadd.f32 %v814_v63, %v1855_v60 }
 0x12a   : > { %1225 = vst.msk [vmem:[%s1871_s16 + $0xc] sm:$0xf] %vm1221_vm3, %v1215_v0  ;;  %v1185_v3 = vadd.f32 %v1167_v32, %v1105_v24 }
 0x12c   : > { %v1198_v6 = vadd.f32 %v1863_v20, %v1185_v3 }
 0x12d   : > { %v949_v8 = vpop.f32.mrf.mxu2 }
 0x12e   : > { %v1207_v42 = vmax.f32 %v1198_v6, 0.0  ;;  %v966_v9 = vadd.f32 %v949_v8, %v826_v5 }
 0x12f   : > { %v817_v10 = vpop.f32.mrf.mxu1  ;;  %v1094_v13 = vpop.f32.mrf.mxu3 }
 0x130   : > { %v1216_v11 = vpack.c.bf16 %v1207_v42, %v1207_v42  ;;  %v1106_v12 = vadd.f32 %v1089_v54, %v966_v9  ;;  %v1177_v14 = vpop.f32.mrf.mxu0  ;;  %v829_v38 = vadd.f32 %v817_v10, %v1857_v7 }
 0x132   : > { %1226 = vst.msk [vmem:[%s1871_s16 + $0x10] sm:$0xf] %vm1221_vm3, %v1216_v11  ;;  %v1186_v16 = vadd.f32 %v1169_v44, %v1106_v12 }
 0x134   : > { %v1199_v19 = vadd.f32 %v1863_v20, %v1186_v16 }
 0x135   : > { %v952_v21 = vpop.f32.mrf.mxu2 }
 0x136   : > { %v1208_v50 = vmax.f32 %v1199_v19, 0.0  ;;  %v967_v22 = vadd.f32 %v952_v21, %v827_v17 }
 0x137   : > { %v819_v23 = vpop.f32.mrf.mxu1  ;;  %v1097_v28 = vpop.f32.mrf.mxu3 }
 0x138   : > { %v1217_v25 = vpack.c.bf16 %v1208_v50, %v1208_v50  ;;  %v1107_v26 = vadd.f32 %v1092_v1, %v967_v22  ;;  %v1179_v4 = vpop.f32.mrf.mxu0 }
 0x13a   : > { %1227 = vst.msk [vmem:[%s1871_s16 + $0x14] sm:$0xf] %vm1221_vm3, %v1217_v25  ;;  %v1187_v29 = vadd.f32 %v1172_v56, %v1107_v26 }
 0x13c   : > { %v1200_v31 = vadd.f32 %v1863_v20, %v1187_v29 }
 0x13d   : > { %v954_v57 = vpop.f32.mrf.mxu2 }
 0x13e   : > { %v1209_v15 = vmax.f32 %v1200_v31, 0.0  ;;  %v968_v32 = vadd.f32 %v954_v57, %v828_v30 }
 0x13f   : > { %v1099_v36 = vpop.f32.mrf.mxu3 }
 0x140   : > { %v1218_v18 = vpack.c.bf16 %v1209_v15, %v1209_v15  ;;  %v1108_v33 = vadd.f32 %v1094_v13, %v968_v32 }
 0x142   : > { %1228 = vst.msk [vmem:[%s1871_s16 + $0x18] sm:$0xf] %vm1221_vm3, %v1218_v18  ;;  %v1188_v37 = vadd.f32 %v1174_v2, %v1108_v33 }
 0x144   : > { %v1201_v39 = vadd.f32 %v1863_v20, %v1188_v37 }
 0x145   : > { %v957_v40 = vpop.f32.mrf.mxu2 }
 0x146   : > { %v1210_v41 = vmax.f32 %v1201_v39, 0.0  ;;  %v969_v60 = vadd.f32 %v957_v40, %v829_v38 }
 0x148   : > { %v1219_v34 = vpack.c.bf16 %v1210_v41, %v1210_v41  ;;  %v1109_v43 = vadd.f32 %v1097_v28, %v969_v60 }
 0x14a   : > { %1229 = vst.msk [vmem:[%s1871_s16 + $0x1c] sm:$0xf] %vm1221_vm3, %v1219_v34  ;;  %v1189_v44 = vadd.f32 %v1177_v14, %v1109_v43 }
 0x14c   : > { %v1202_v46 = vadd.f32 %v1863_v20, %v1189_v44 }
 0x14d   : > { %v959_v47 = vpop.f32.mrf.mxu2 }
 0x14e   : > { %v1211_v48 = vmax.f32 %v1202_v46, 0.0 }
 0x150   : > { %v1220_v45 = vpack.c.bf16 %v1211_v48, %v1211_v48 }
 0x152   : > { %1230 = vst.msk [vmem:[%s1871_s16 + $0x20] sm:$0xf] %vm1221_vm3, %v1220_v45 }
 0x153 PF: > { %s13_s12 = sadd.s32 1, %s1646_s12  }
 0x154   : > { %p10_p4 = scmp.ge.s32.totalorder %s13_s12, 4  }
 0x156   :  { %12 = sbr.rel (!%p10_p4) target bundleno = 1 (0x1), region = 73 }

// kernel: raft_forward.40
= control target key start
LH: loop header
LB: loop body
LE: loop exit
PB: predicated region body
PF: predicated region fallthrough
CT: control target
= control target key end

     0   :  { %s4602_s12 = smov 0   ;;  %s5643_s0 = inlined_call_operand.vmem [shape: bf16[2,4,306,3], index: 0, kind: input, shape index: {}]   ;;  %s5644_s1 = inlined_call_operand.vmem [shape: bf16[9,3,16], index: 1, kind: input, shape index: {}]   ;;  %s5645_s2 = inlined_call_operand.vmem [shape: f32[1,16], index: 2, kind: input, shape index: {}]   ;;  %s5646_s3 = inlined_call_operand.vmem [shape: bf16[2,272,16], index: 3, kind: output, shape index: {}]  }
   0x1 LB: > { %s3532_s13 = sadd.s32 4294967295, %s4579_s12   ;;  %p3536_p0 = scmp.ge.s32.totalorder %s4579_s12, 1  ;;  %s4579_s12 = sphi %s4602_s12, %s13_s12  }
   0x2   : > { %p137_p1 = scmp.lt.s32.totalorder %s4579_s12, 3 }
   0x4   : > { %p138_p2 = pnand %p3536_p0, %p137_p1 }
   0x6   : > { %141 = sbr.rel (%p138_p2) target bundleno = 780 (0x30c), region = 32 }
   0xb   : > { %v3573_v0 = vld [vmem:[%s5644_s1 + $0x2] sm:$0x3]  ;;  %vm381_vm0 = vcmask 1040384   ;;  %vm382_vm1 = vcmask 1041408   ;;  %p161_p3 = scmp.lt.s32.totalorder %s3532_s13, 1  ;;  %v4581_v1 = vmov 65535  }
   0xc   : > { %v383_v2 = vsel %vm381_vm0, 4294967295, %v4581_v1  ;;  %v3744_v3 = vld [vmem:[%s5644_s1 + $0x4] sm:$0x3]  ;;  %v206_v4 = vld [vmem:[%s5644_s1] sm:$0x3]  ;;  %vm329_vm2 = vcmask 23552  }
   0xd   : > { %v4619_v5 = vsel %vm382_vm1, %v383_v2, 0  ;;  %s5660_s13 = smov (!%p161_p3, %s3532_s13), 1  ;;  %v3984_v6 = vld [vmem:[%s5644_s1 + $0x8] sm:$0x3]  ;;  %v3864_v18 = vld [vmem:[%s5644_s1 + $0x6] sm:$0x3] }
   0xe   : > { %v386_v7 = vand.u32 %v3573_v0, %v4619_v5  ;;  %v1033_v8 = vand.u32 %v3744_v3, %v4619_v5  ;;  %v619_v9 = vand.u32 %v4619_v5, %v206_v4  ;;  %v1641_v10 = vand.u32 %v3984_v6, %v4619_v5  ;;  %s4560_s22 = smul.u32 624, %s5660_s13  ;;  %v4191_v28 = vld [vmem:[%s5644_s1 + $0xc] sm:$0x3]  ;;  %v4308_v30 = vld [vmem:[%s5644_s1 + $0xe] sm:$0x3] }
   0xf   : > { %v1337_v20 = vand.u32 %v3864_v18, %v4619_v5  ;;  %v2535_v29 = vand.u32 %v4191_v28, %v4619_v5  ;;  %v4105_v31 = vld [vmem:[%s5644_s1 + $0xa] sm:$0x3]  ;;  %v2982_v33 = vand.u32 %v4308_v30, %v4619_v5  ;;  %v4394_v35 = vld [vmem:[%s5644_s1 + $0x10] sm:$0x3]  ;;  %vm840_vm3 = vsmask.f32 7424 }
  0x10   : > { %4557 = vmatpush.bf16.msra.mxu1 %v386_v7  ;;  %4558 = vmatpush.bf16.msra.mxu2 %v386_v7  ;;  %s4634_s25 = scalar_lea.vmem %s5643_s0, %s4560_s22  ;;  %v2088_v34 = vand.u32 %v4105_v31, %v4619_v5  ;;  %v3206_v36 = vand.u32 %v4394_v35, %v4619_v5  ;;  %vm3118_vm4 = vcmask 1046528   ;;  %s4561_s11 = smul.u32 136, %s5660_s13  ;;  %vm3442_vm5 = vcmask 125952  }
  0x11   : > { %395 = vmatpush.bf16.msra.mxu0 %v386_v7  ;;  %v4436_v11 = vld [vmem:[%s4634_s25 + $0xc4] sm:$0xff]  ;;  %v4441_v12 = vld [vmem:[%s4634_s25 + $0xec] sm:$0xff]  ;;  %v4431_v13 = vld [vmem:[%s4634_s25 + $0x9c] sm:$0xff]  ;;  %4559 = vmatpush.bf16.msra.mxu3 %v386_v7 }
  0x12   : > { %v4446_v14 = vld [vmem:[%s4634_s25 + $0x114] sm:$0xff]  ;;  %v4437_v15 = vld [vmem:[%s4634_s25 + $0xcc] sm:$0xff]  ;;  %v4432_v17 = vld [vmem:[%s4634_s25 + $0xa4] sm:$0xff]  ;;  %s5313_s13 = scalar_lea.vmem %s5646_s3, %s4561_s11 }
  0x13   : > { %3647 = vmatmul.msk.bf16.vlgmr.msra.gmra.mxu1 %vm329_vm2, %v4436_v11  ;;  %3652 = vmatmul.msk.bf16.vlgmr.msra.gmra.mxu2 %vm329_vm2, %v4441_v12  ;;  %v4442_v16 = vld [vmem:[%s4634_s25 + $0xf4] sm:$0xff]  ;;  %v4447_v19 = vld [vmem:[%s4634_s25 + $0x11c] sm:$0xff]  ;;  %v4433_v23 = vld [vmem:[%s4634_s25 + $0xac] sm:$0xff] }
  0x14   : > { %1042 = vmatpush.bf16.msrb.mxu2 %v1033_v8  ;;  %628 = vmatpush.bf16.msrb.mxu1 %v619_v9  ;;  %v4438_v21 = vld [vmem:[%s4634_s25 + $0xd4] sm:$0xff]  ;;  %v4443_v22 = vld [vmem:[%s4634_s25 + $0xfc] sm:$0xff]  ;;  %v4444_v26 = vld [vmem:[%s4634_s25 + $0x104] sm:$0xff] }
  0x15   : > { %1650 = vmatpush.bf16.msrb.mxu0 %v1641_v10  ;;  %3657 = vmatmul.msk.bf16.vlgmr.msra.gmra.mxu3 %vm329_vm2, %v4446_v14  ;;  %v4465_v24 = vld [vmem:[%s4634_s25 + $0x138] sm:$0xff]  ;;  %v4466_v32 = vld [vmem:[%s4634_s25 + $0x140] sm:$0xff]  ;;  %v4445_v38 = vld [vmem:[%s4634_s25 + $0x10c] sm:$0xff] }
  0x16   : > { %3642 = vmatmul.msk.bf16.vlgmr.msra.gmra.mxu0 %vm329_vm2, %v4431_v13  ;;  %1346 = vmatpush.bf16.msrb.mxu3 %v1337_v20  ;;  %v4439_v25 = vld [vmem:[%s4634_s25 + $0xdc] sm:$0xff]  ;;  %v4434_v27 = vld [vmem:[%s4634_s25 + $0xb4] sm:$0xff]  ;;  %v4440_v37 = vld [vmem:[%s4634_s25 + $0xe4] sm:$0xff] }
  0x17   : > { %v4435_v39 = vld [vmem:[%s4634_s25 + $0xbc] sm:$0xff]  ;;  %v4449_v41 = vld [vmem:[%s4634_s25 + $0x8] sm:$0xff]  ;;  %v4482_v51 = vld [vmem:[%s4634_s25 + $0x1d4] sm:$0xff] }
  0x18   : > { %2544 = vmatpush.bf16.msra.mxu2 %v2535_v29  ;;  %2097 = vmatpush.bf16.msra.mxu1 %v2088_v34  ;;  %v4448_v40 = vld [vmem:[%s4634_s25] sm:$0xff]  ;;  %v4467_v43 = vld [vmem:[%s4634_s25 + $0x148] sm:$0xff]  ;;  %v849_v46 = vshll.u32 %v4449_v41, 16  ;;  %v4450_v52 = vld [vmem:[%s4634_s25 + $0x10] sm:$0xff]  ;;  %v853_v54 = vshrl.u32 %v4449_v41, 16 }
  0x19   : > { %3215 = vmatpush.bf16.msra.mxu0 %v3206_v36  ;;  %v844_v42 = vshll.u32 %v4448_v40, 16  ;;  %v842_v44 = vshrl.u32 %v4448_v40, 16  ;;  %v4414_v49 = vld [vmem:[%s4634_s25] sm:$0xff]  ;;  %v4468_v53 = vld [vmem:[%s4634_s25 + $0x150] sm:$0xff]  ;;  %v857_v55 = vshll.u32 %v4450_v52, 16  ;;  %v4415_v58 = vld [vmem:[%s4634_s25 + $0x8] sm:$0xff] }
  0x1a   : > { %2991 = vmatpush.bf16.msra.mxu3 %v2982_v33  ;;  %v851_v48 = vrot.slane %v849_v46, 1  ;;  %v4483_v60 = vld [vmem:[%s4634_s25 + $0x1dc] sm:$0xff]  ;;  %v861_v62 = vshrl.u32 %v4450_v52, 16  ;;  %v4416_v3 = vld [vmem:[%s4634_s25 + $0x10] sm:$0xff]  ;;  %v4484_v5 = vld [vmem:[%s4634_s25 + $0x1e4] sm:$0xff] }
  0x1b   : > { %v846_v45 = vrot.slane %v844_v42, 1  ;;  %v859_v57 = vrot.slane %v857_v55, 1  ;;  %v4451_v61 = vld [vmem:[%s4634_s25 + $0x18] sm:$0xff]  ;;  %v4452_v6 = vld [vmem:[%s4634_s25 + $0x20] sm:$0xff]  ;;  %v4454_v33 = vld [vmem:[%s4634_s25 + $0x30] sm:$0xff] }
  0x1c   : > { %v855_v56 = vor.u32 %v853_v54, %v851_v48  ;;  %v865_v63 = vshll.u32 %v4451_v61, 16  ;;  %v4469_v0 = vld [vmem:[%s4634_s25 + $0x158] sm:$0xff]  ;;  %v869_v7 = vshrl.u32 %v4451_v61, 16  ;;  %v873_v8 = vshll.u32 %v4452_v6, 16  ;;  %v4470_v9 = vld [vmem:[%s4634_s25 + $0x160] sm:$0xff]  ;;  %v4472_v40 = vld [vmem:[%s4634_s25 + $0x170] sm:$0xff] }
  0x1d   : > { %v847_v47 = vor.u32 %v846_v45, %v842_v44  ;;  %v863_v1 = vor.u32 %v861_v62, %v859_v57  ;;  %v4417_v12 = vld [vmem:[%s4634_s25 + $0x18] sm:$0xff]  ;;  %v877_v20 = vshrl.u32 %v4452_v6, 16  ;;  %v4419_v44 = vld [vmem:[%s4634_s25 + $0x28] sm:$0xff]  ;;  %v4420_v61 = vld [vmem:[%s4634_s25 + $0x30] sm:$0xff] }
  0x1e   : > { %v860_v59 = vsel %vm840_vm3, %v855_v56, %v859_v57  ;;  %v867_v2 = vrot.slane %v865_v63, 1  ;;  %v875_v11 = vrot.slane %v873_v8, 1  ;;  %v4486_v30 = vld [vmem:[%s4634_s25 + $0x1f4] sm:$0xff] }
  0x1f   : > { %v852_v50 = vsel %vm840_vm3, %v847_v47, %v851_v48  ;;  %v4487_v47 = vld [vmem:[%s4634_s25 + $0x1fc] sm:$0xff] }
  0x20   : > { %v868_v4 = vsel %vm840_vm3, %v863_v1, %v867_v2  ;;  %v871_v10 = vor.u32 %v869_v7, %v867_v2  ;;  %v4473_v57 = vld [vmem:[%s4634_s25 + $0x178] sm:$0xff] }
  0x22   : > { %v876_v14 = vsel %vm840_vm3, %v871_v10, %v875_v11  ;;  %v4474_v10 = vld [vmem:[%s4634_s25 + $0x180] sm:$0xff] }
  0x23   : > { %3648 = vmatmul.msk.bf16.gmra.mxu1 %vm329_vm2, %v4437_v15  ;;  %3653 = vmatmul.msk.bf16.gmra.mxu2 %vm329_vm2, %v4442_v16  ;;  %v4485_v15 = vld [vmem:[%s4634_s25 + $0x1ec] sm:$0xff] }
  0x25   : > { %3658 = vmatmul.msk.bf16.gmra.mxu3 %vm329_vm2, %v4447_v19 }
  0x26   : > { %3643 = vmatmul.msk.bf16.gmra.mxu0 %vm329_vm2, %v4432_v17  ;;  %v4453_v17 = vld [vmem:[%s4634_s25 + $0x28] sm:$0xff] }
  0x27   : > { %v885_v36 = vshrl.u32 %v4453_v17, 16 }
  0x33   : > { %3649 = vmatmul.msk.bf16.gmra.mxu1 %vm329_vm2, %v4438_v21  ;;  %3654 = vmatmul.msk.bf16.gmra.mxu2 %vm329_vm2, %v4443_v22  ;;  %v881_v21 = vshll.u32 %v4453_v17, 16 }
  0x35   : > { %3933 = vmatmul.msk.bf16.vlgmr.msrb.gmra.mxu3 %vm329_vm2, %v4465_v24  ;;  %v879_v24 = vor.u32 %v877_v20, %v875_v11 }
  0x36   : > { %3644 = vmatmul.msk.bf16.gmra.mxu0 %vm329_vm2, %v4433_v23  ;;  %v4471_v23 = vld [vmem:[%s4634_s25 + $0x168] sm:$0xff] }
  0x43   : > { %3650 = vmatmul.msk.bf16.gmra.mxu1 %vm329_vm2, %v4439_v25  ;;  %3655 = vmatmul.msk.bf16.gmra.mxu2 %vm329_vm2, %v4444_v26  ;;  %v883_v25 = vrot.slane %v881_v21, 1  ;;  %v4489_v21 = vld [vmem:[%s4634_s25 + $0x20c] sm:$0xff] }
  0x45   : > { %3934 = vmatmul.msk.bf16.gmra.mxu3 %vm329_vm2, %v4466_v32  ;;  %v884_v29 = vsel %vm840_vm3, %v879_v24, %v883_v25  ;;  %v887_v41 = vor.u32 %v885_v36, %v883_v25  ;;  %v4457_v25 = vld [vmem:[%s4634_s25 + $0x48] sm:$0xff] }
  0x46   : > { %3645 = vmatmul.msk.bf16.gmra.mxu0 %vm329_vm2, %v4434_v27  ;;  %v4418_v27 = vld [vmem:[%s4634_s25 + $0x20] sm:$0xff] }
  0x53   : > { %3651 = vmatmul.msk.bf16.gmra.mxu1 %vm329_vm2, %v4440_v37  ;;  %3656 = vmatmul.msk.bf16.gmra.mxu2 %vm329_vm2, %v4445_v38  ;;  %v889_v37 = vshll.u32 %v4454_v33, 16 }
  0x55   : > { %3935 = vmatmul.msk.bf16.gmra.mxu3 %vm329_vm2, %v4467_v43  ;;  %v891_v42 = vrot.slane %v889_v37, 1 }
  0x56   : > { %3646 = vmatmul.msk.bf16.gmra.mxu0 %vm329_vm2, %v4435_v39 }
  0x57   : > { %v892_v46 = vsel %vm840_vm3, %v887_v41, %v891_v42 }
  0x63   : > { %3727 = vmatmul.msk.bf16.vlgmr.msrb.gmra.mxu1 %vm329_vm2, %v4414_v49  ;;  %3813 = vmatmul.msk.bf16.vlgmr.msrb.gmra.mxu2 %vm329_vm2, %v852_v50  ;;  %v4455_v50 = vld [vmem:[%s4634_s25 + $0x38] sm:$0xff] }
  0x64   : > { %v897_v54 = vshll.u32 %v4455_v50, 16  ;;  %v901_v6 = vshrl.u32 %v4455_v50, 16 }
  0x65   : > { %3936 = vmatmul.msk.bf16.gmra.mxu3 %vm329_vm2, %v4468_v53  ;;  %v893_v53 = vshrl.u32 %v4454_v33, 16  ;;  %v913_v33 = vshll.u32 %v4457_v25, 16 }
  0x66   : > { %4053 = vmatmul.msk.bf16.vlgmr.msrb.gmra.mxu0 %vm329_vm2, %v4482_v51 }
  0x73   : > { %3728 = vmatmul.msk.bf16.gmra.mxu1 %vm329_vm2, %v4415_v58  ;;  %3814 = vmatmul.msk.bf16.gmra.mxu2 %vm329_vm2, %v860_v59  ;;  %v895_v58 = vor.u32 %v893_v53, %v891_v42  ;;  %v899_v59 = vrot.slane %v897_v54, 1  ;;  %v915_v42 = vrot.slane %v913_v33, 1  ;;  %v4490_v53 = vld [vmem:[%s4634_s25 + $0x214] sm:$0xff] }
  0x75   : > { %3937 = vmatmul.msk.bf16.gmra.mxu3 %vm329_vm2, %v4469_v0  ;;  %v900_v63 = vsel %vm840_vm3, %v895_v58, %v899_v59  ;;  %v4488_v0 = vld [vmem:[%s4634_s25 + $0x204] sm:$0xff]  ;;  %v903_v11 = vor.u32 %v901_v6, %v899_v59  ;;  %v4458_v58 = vld [vmem:[%s4634_s25 + $0x50] sm:$0xff] }
  0x76   : > { %4054 = vmatmul.msk.bf16.gmra.mxu0 %vm329_vm2, %v4483_v60  ;;  %v921_v6 = vshll.u32 %v4458_v58, 16 }
  0x83   : > { %3729 = vmatmul.msk.bf16.gmra.mxu1 %vm329_vm2, %v4416_v3  ;;  %3815 = vmatmul.msk.bf16.gmra.mxu2 %vm329_vm2, %v868_v4  ;;  %v4456_v3 = vld [vmem:[%s4634_s25 + $0x40] sm:$0xff] }
  0x84   : > { %v905_v7 = vshll.u32 %v4456_v3, 16 }
  0x85   : > { %3938 = vmatmul.msk.bf16.gmra.mxu3 %vm329_vm2, %v4470_v9 }
  0x86   : > { %4055 = vmatmul.msk.bf16.gmra.mxu0 %vm329_vm2, %v4484_v5 }
  0x90   : > { %v4726_v13 = vpop.f32.mrf.mxu1 }
  0x93   : > { %v4730_v16 = vpop.f32.mrf.mxu0  ;;  %3730 = vmatmul.msk.bf16.gmra.mxu1 %vm329_vm2, %v4417_v12  ;;  %3816 = vmatmul.msk.bf16.gmra.mxu2 %vm329_vm2, %v876_v14  ;;  %v907_v12 = vrot.slane %v905_v7, 1 }
  0x95   : > { %3939 = vmatmul.msk.bf16.gmra.mxu3 %vm329_vm2, %v4471_v23  ;;  %v908_v20 = vsel %vm840_vm3, %v903_v11, %v907_v12 }
  0x96   : > { %4056 = vmatmul.msk.bf16.gmra.mxu0 %vm329_vm2, %v4485_v15  ;;  %v4736_v18 = vpop.f32.mrf.mxu2  ;;  %v4421_v15 = vld [vmem:[%s4634_s25 + $0x38] sm:$0xff] }
  0x98   : > { %v4738_v19 = vpop.f32.mrf.mxu1  ;;  %v4751_v31 = vpop.f32.mrf.mxu3 }
  0x9b   : > { %v4740_v22 = vpop.f32.mrf.mxu0 }
  0x9e   : > { %v4744_v26 = vpop.f32.mrf.mxu2 }
  0xa0   : > { %v4747_v28 = vpop.f32.mrf.mxu1  ;;  %v4763_v38 = vpop.f32.mrf.mxu3 }
  0xa3   : > { %v4753_v32 = vpop.f32.mrf.mxu0  ;;  %3731 = vmatmul.msk.bf16.gmra.mxu1 %vm329_vm2, %v4418_v27  ;;  %3817 = vmatmul.msk.bf16.gmra.mxu2 %vm329_vm2, %v884_v29 }
  0xa5   : > { %3940 = vmatmul.msk.bf16.gmra.mxu3 %vm329_vm2, %v4472_v40  ;;  %v4475_v40 = vld [vmem:[%s4634_s25 + $0x188] sm:$0xff] }
  0xa6   : > { %4057 = vmatmul.msk.bf16.gmra.mxu0 %vm329_vm2, %v4486_v30  ;;  %v4759_v34 = vpop.f32.mrf.mxu2  ;;  %v909_v30 = vshrl.u32 %v4456_v3, 16  ;;  %v917_v3 = vshrl.u32 %v4457_v25, 16 }
  0xa8   : > { %v4761_v35 = vpop.f32.mrf.mxu1  ;;  %v4776_v48 = vpop.f32.mrf.mxu3  ;;  %v911_v41 = vor.u32 %v909_v30, %v907_v12  ;;  %v4476_v12 = vld [vmem:[%s4634_s25 + $0x190] sm:$0xff] }
  0xaa   : > { %v916_v50 = vsel %vm840_vm3, %v911_v41, %v915_v42 }
  0xab   : > { %v4765_v39 = vpop.f32.mrf.mxu0 }
  0xae   : > { %v4769_v43 = vpop.f32.mrf.mxu2 }
  0xb0   : > { %v4772_v45 = vpop.f32.mrf.mxu1  ;;  %v4788_v55 = vpop.f32.mrf.mxu3 }
  0xb3   : > { %v4778_v49 = vpop.f32.mrf.mxu0  ;;  %3732 = vmatmul.msk.bf16.gmra.mxu1 %vm329_vm2, %v4419_v44  ;;  %3818 = vmatmul.msk.bf16.gmra.mxu2 %vm329_vm2, %v892_v46  ;;  %v4422_v46 = vld [vmem:[%s4634_s25 + $0x40] sm:$0xff] }
  0xb5   : > { %3941 = vmatmul.msk.bf16.gmra.mxu3 %vm329_vm2, %v4473_v57 }
  0xb6   : > { %4058 = vmatmul.msk.bf16.gmra.mxu0 %vm329_vm2, %v4487_v47  ;;  %v4784_v51 = vpop.f32.mrf.mxu2 }
  0xb8   : > { %v4786_v52 = vpop.f32.mrf.mxu1  ;;  %v1348_v1 = vpop.f32.mrf.mxu3 }
  0xbb   : > { %v4790_v56 = vpop.f32.mrf.mxu0 }
  0xbe   : > { %v4794_v60 = vpop.f32.mrf.mxu2 }
  0xc0   : > { %v4797_v62 = vpop.f32.mrf.mxu1  ;;  %v1350_v8 = vpop.f32.mrf.mxu3 }
  0xc3   : > { %v4801_v2 = vpop.f32.mrf.mxu0  ;;  %3733 = vmatmul.msk.bf16.gmra.mxu1 %vm329_vm2, %v4420_v61  ;;  %3819 = vmatmul.msk.bf16.gmra.mxu2 %vm329_vm2, %v900_v63 }
  0xc5   : > { %3942 = vmatmul.msk.bf16.gmra.mxu3 %vm329_vm2, %v4474_v10 }
  0xc6   : > { %4059 = vmatmul.msk.bf16.gmra.mxu0 %vm329_vm2, %v4488_v0  ;;  %v4807_v4 = vpop.f32.mrf.mxu2 }
  0xc8   : > { %v4809_v5 = vpop.f32.mrf.mxu1  ;;  %v4822_v23 = vpop.f32.mrf.mxu3 }
  0xcb   : > { %v4811_v9 = vpop.f32.mrf.mxu0 }
  0xce   : > { %v4815_v14 = vpop.f32.mrf.mxu2 }
  0xd0   : > { %v4818_v17 = vpop.f32.mrf.mxu1  ;;  %v4834_v36 = vpop.f32.mrf.mxu3 }
  0xd3   : > { %v4824_v24 = vpop.f32.mrf.mxu0  ;;  %3734 = vmatmul.msk.bf16.gmra.mxu1 %vm329_vm2, %v4421_v15  ;;  %3820 = vmatmul.msk.bf16.gmra.mxu2 %vm329_vm2, %v908_v20  ;;  %v919_v20 = vor.u32 %v917_v3, %v915_v42 }
  0xd5   : > { %3943 = vmatmul.msk.bf16.gmra.mxu3 %vm329_vm2, %v4475_v40  ;;  %v4423_v40 = vld [vmem:[%s4634_s25 + $0x48] sm:$0xff] }
  0xd6   : > { %4060 = vmatmul.msk.bf16.gmra.mxu0 %vm329_vm2, %v4489_v21  ;;  %v4830_v27 = vpop.f32.mrf.mxu2  ;;  %v923_v21 = vrot.slane %v921_v6, 1 }
  0xd8   : > { %v4832_v29 = vpop.f32.mrf.mxu1  ;;  %v4845_v54 = vpop.f32.mrf.mxu3  ;;  %v924_v41 = vsel %vm840_vm3, %v919_v20, %v923_v21 }
  0xdb   : > { %v4836_v37 = vpop.f32.mrf.mxu0 }
  0xde   : > { %v4840_v44 = vpop.f32.mrf.mxu2 }
  0xe0   : > { %v630_v47 = vpop.f32.mrf.mxu1  ;;  %v4852_v7 = vpop.f32.mrf.mxu3 }
  0xe1   : > { %v631_v59 = vadd.f32 %v630_v47, %v4730_v16 }
  0xe3   : > { %v1652_v57 = vpop.f32.mrf.mxu0  ;;  %3735 = vmatmul.msk.bf16.gmra.mxu1 %vm329_vm2, %v4422_v46  ;;  %3821 = vmatmul.msk.bf16.gmra.mxu2 %vm329_vm2, %v916_v50  ;;  %v4491_v46 = vld [vmem:[%s4634_s25 + $0x21c] sm:$0xff] }
  0xe5   : > { %3944 = vmatmul.msk.bf16.gmra.mxu3 %vm329_vm2, %v4476_v12 }
  0xe6   : > { %4061 = vmatmul.msk.bf16.gmra.mxu0 %vm329_vm2, %v4490_v53  ;;  %v1044_v61 = vpop.f32.mrf.mxu2 }
  0xe7   : > { %v1129_v63 = vadd.f32 %v1044_v61, %v631_v59 }
  0xe8   : > { %v632_v0 = vpop.f32.mrf.mxu1  ;;  %v4862_v47 = vpop.f32.mrf.mxu3 }
  0xe9   : > { %v1433_v10 = vadd.f32 %v1348_v1, %v1129_v63  ;;  %v633_v16 = vadd.f32 %v632_v0, %v4740_v22  ;;  %v4459_v22 = vld [vmem:[%s4634_s25 + $0x58] sm:$0xff]  ;;  %v925_v63 = vshrl.u32 %v4458_v58, 16  ;;  %v4424_v58 = vld [vmem:[%s4634_s25 + $0x50] sm:$0xff] }
  0xeb   : > { %v1654_v11 = vpop.f32.mrf.mxu0  ;;  %v4856_v15 = vadd.f32 %v1652_v57, %v1433_v10  ;;  %v4477_v10 = vld [vmem:[%s4634_s25 + $0x198] sm:$0xff]  ;;  %v927_v12 = vor.u32 %v925_v63, %v923_v21 }
  0xee   : > { %v1046_v30 = vpop.f32.mrf.mxu2 }
  0xef   : > { %v1130_v33 = vadd.f32 %v1046_v30, %v633_v16 }
  0xf0   : > { %v635_v25 = vpop.f32.mrf.mxu1  ;;  %v4871_v0 = vpop.f32.mrf.mxu3 }
  0xf1   : > { %v1434_v1 = vadd.f32 %v1350_v8, %v1130_v33  ;;  %v636_v53 = vadd.f32 %v635_v25, %v4753_v32  ;;  %v929_v8 = vshll.u32 %v4459_v22, 16  ;;  %v4492_v25 = vld [vmem:[%s4634_s25 + $0x224] sm:$0xff] }
  0xf3   : > { %v1657_v50 = vpop.f32.mrf.mxu0  ;;  %3736 = vmatmul.msk.bf16.gmra.mxu1 %vm329_vm2, %v4423_v40  ;;  %3822 = vmatmul.msk.bf16.gmra.mxu2 %vm329_vm2, %v924_v41  ;;  %v4866_v42 = vadd.f32 %v1654_v11, %v1434_v1  ;;  %v931_v32 = vrot.slane %v929_v8, 1 }
  0xf5   : > { %3945 = vmatmul.msk.bf16.gmra.mxu3 %vm329_vm2, %v4477_v10  ;;  %v932_v40 = vsel %vm840_vm3, %v927_v12, %v931_v32 }
  0xf6   : > { %4062 = vmatmul.msk.bf16.gmra.mxu0 %vm329_vm2, %v4491_v46  ;;  %v1049_v57 = vpop.f32.mrf.mxu2 }
  0xf7   : > { %v1131_v59 = vadd.f32 %v1049_v57, %v636_v53 }
  0xf8   : > { %v637_v61 = vpop.f32.mrf.mxu1  ;;  %v4882_v41 = vpop.f32.mrf.mxu3 }
  0xf9   : > { %v1435_v3 = vadd.f32 %v4822_v23, %v1131_v59  ;;  %v638_v20 = vadd.f32 %v637_v61, %v4765_v39  ;;  %v4460_v39 = vld [vmem:[%s4634_s25 + $0x60] sm:$0xff]  ;;  %v933_v59 = vshrl.u32 %v4459_v22, 16  ;;  %v4425_v22 = vld [vmem:[%s4634_s25 + $0x58] sm:$0xff] }
  0xfb   : > { %v1659_v6 = vpop.f32.mrf.mxu0  ;;  %v4876_v11 = vadd.f32 %v1657_v50, %v1435_v3  ;;  %v4478_v3 = vld [vmem:[%s4634_s25 + $0x1a0] sm:$0xff]  ;;  %v935_v10 = vor.u32 %v933_v59, %v931_v32 }
  0xfe   : > { %v1051_v16 = vpop.f32.mrf.mxu2 }
  0xff   : > { %v1132_v30 = vadd.f32 %v1051_v16, %v638_v20 }
 0x100   : > { %v640_v33 = vpop.f32.mrf.mxu1  ;;  %v4892_v61 = vpop.f32.mrf.mxu3 }
 0x101   : > { %v1436_v23 = vadd.f32 %v4834_v36, %v1132_v30  ;;  %v641_v1 = vadd.f32 %v640_v33, %v4778_v49  ;;  %v937_v36 = vshll.u32 %v4460_v39, 16  ;;  %v4493_v33 = vld [vmem:[%s4634_s25 + $0x22c] sm:$0xff] }
 0x103   : > { %v1662_v46 = vpop.f32.mrf.mxu0  ;;  %3737 = vmatmul.msk.bf16.gmra.mxu1 %vm329_vm2, %v4424_v58  ;;  %3823 = vmatmul.msk.bf16.gmra.mxu2 %vm329_vm2, %v932_v40  ;;  %v4887_v21 = vadd.f32 %v1659_v6, %v1436_v23  ;;  %v939_v49 = vrot.slane %v937_v36, 1 }
 0x105   : > { %3946 = vmatmul.msk.bf16.gmra.mxu3 %vm329_vm2, %v4478_v3  ;;  %v940_v58 = vsel %vm840_vm3, %v935_v10, %v939_v49 }
 0x106   : > { %4063 = vmatmul.msk.bf16.gmra.mxu0 %vm329_vm2, %v4492_v25  ;;  %v1054_v50 = vpop.f32.mrf.mxu2 }
 0x107   : > { %v1133_v53 = vadd.f32 %v1054_v50, %v641_v1 }
 0x108   : > { %v642_v57 = vpop.f32.mrf.mxu1  ;;  %v4903_v40 = vpop.f32.mrf.mxu3 }
 0x109   : > { %v1437_v63 = vadd.f32 %v4845_v54, %v1133_v53  ;;  %v643_v12 = vadd.f32 %v642_v57, %v4790_v56  ;;  %v4461_v56 = vld [vmem:[%s4634_s25 + $0x68] sm:$0xff]  ;;  %v941_v53 = vshrl.u32 %v4460_v39, 16  ;;  %v4426_v39 = vld [vmem:[%s4634_s25 + $0x60] sm:$0xff] }
 0x10b   : > { %v1664_v8 = vpop.f32.mrf.mxu0  ;;  %v4897_v6 = vadd.f32 %v1662_v46, %v1437_v63  ;;  %v4479_v63 = vld [vmem:[%s4634_s25 + $0x1a8] sm:$0xff]  ;;  %v943_v3 = vor.u32 %v941_v53, %v939_v49 }
 0x10e   : > { %v1056_v20 = vpop.f32.mrf.mxu2 }
 0x10f   : > { %v1134_v16 = vadd.f32 %v1056_v20, %v643_v12 }
 0x110   : > { %v645_v30 = vpop.f32.mrf.mxu1  ;;  %v4913_v57 = vpop.f32.mrf.mxu3 }
 0x111   : > { %v1438_v54 = vadd.f32 %v4852_v7, %v1134_v16  ;;  %v646_v23 = vadd.f32 %v645_v30, %v4801_v2  ;;  %v945_v7 = vshll.u32 %v4461_v56, 16  ;;  %v4494_v30 = vld [vmem:[%s4634_s25 + $0x234] sm:$0xff] }
 0x113   : > { %v1667_v25 = vpop.f32.mrf.mxu0  ;;  %3738 = vmatmul.msk.bf16.gmra.mxu1 %vm329_vm2, %v4425_v22  ;;  %3824 = vmatmul.msk.bf16.gmra.mxu2 %vm329_vm2, %v940_v58  ;;  %v4908_v32 = vadd.f32 %v1664_v8, %v1438_v54  ;;  %v947_v2 = vrot.slane %v945_v7, 1 }
 0x115   : > { %3947 = vmatmul.msk.bf16.gmra.mxu3 %vm329_vm2, %v4479_v63  ;;  %v948_v22 = vsel %vm840_vm3, %v943_v3, %v947_v2 }
 0x116   : > { %4064 = vmatmul.msk.bf16.gmra.mxu0 %vm329_vm2, %v4493_v33  ;;  %v1059_v46 = vpop.f32.mrf.mxu2 }
 0x117   : > { %v1135_v1 = vadd.f32 %v1059_v46, %v646_v23 }
 0x118   : > { %v647_v50 = vpop.f32.mrf.mxu1  ;;  %v4924_v58 = vpop.f32.mrf.mxu3 }
 0x119   : > { %v1439_v59 = vadd.f32 %v4862_v47, %v1135_v1  ;;  %v648_v10 = vadd.f32 %v647_v50, %v4811_v9  ;;  %v4462_v9 = vld [vmem:[%s4634_s25 + $0x70] sm:$0xff]  ;;  %v949_v1 = vshrl.u32 %v4461_v56, 16  ;;  %v4427_v56 = vld [vmem:[%s4634_s25 + $0x68] sm:$0xff] }
 0x11b   : > { %v1669_v36 = vpop.f32.mrf.mxu0  ;;  %v4918_v8 = vadd.f32 %v1667_v25, %v1439_v59  ;;  %v4480_v59 = vld [vmem:[%s4634_s25 + $0x1b0] sm:$0xff]  ;;  %v951_v63 = vor.u32 %v949_v1, %v947_v2 }
 0x11e   : > { %v1061_v12 = vpop.f32.mrf.mxu2 }
 0x11f   : > { %v1136_v20 = vadd.f32 %v1061_v12, %v648_v10 }
 0x120   : > { %v650_v16 = vpop.f32.mrf.mxu1  ;;  %v4934_v50 = vpop.f32.mrf.mxu3 }
 0x121   : > { %v1440_v47 = vadd.f32 %v4871_v0, %v1136_v20  ;;  %v651_v54 = vadd.f32 %v650_v16, %v4824_v24  ;;  %v953_v0 = vshll.u32 %v4462_v9, 16  ;;  %v4495_v16 = vld [vmem:[%s4634_s25 + $0x23c] sm:$0xff] }
 0x123   : > { %v1672_v33 = vpop.f32.mrf.mxu0  ;;  %3739 = vmatmul.msk.bf16.gmra.mxu1 %vm329_vm2, %v4426_v39  ;;  %3825 = vmatmul.msk.bf16.gmra.mxu2 %vm329_vm2, %v948_v22  ;;  %v4929_v49 = vadd.f32 %v1669_v36, %v1440_v47  ;;  %v955_v24 = vrot.slane %v953_v0, 1 }
 0x125   : > { %3948 = vmatmul.msk.bf16.gmra.mxu3 %vm329_vm2, %v4480_v59  ;;  %v956_v39 = vsel %vm840_vm3, %v951_v63, %v955_v24 }
 0x126   : > { %4065 = vmatmul.msk.bf16.gmra.mxu0 %vm329_vm2, %v4494_v30  ;;  %v1064_v25 = vpop.f32.mrf.mxu2 }
 0x127   : > { %v1137_v23 = vadd.f32 %v1064_v25, %v651_v54 }
 0x128   : > { %v652_v46 = vpop.f32.mrf.mxu1  ;;  %v4945_v22 = vpop.f32.mrf.mxu3 }
 0x129   : > { %v1441_v53 = vadd.f32 %v4882_v41, %v1137_v23  ;;  %v653_v3 = vadd.f32 %v652_v46, %v4836_v37  ;;  %v4463_v37 = vld [vmem:[%s4634_s25 + $0x78] sm:$0xff]  ;;  %v957_v23 = vshrl.u32 %v4462_v9, 16 }
 0x12b   : > { %v1674_v7 = vpop.f32.mrf.mxu0  ;;  %v4939_v36 = vadd.f32 %v1672_v33, %v1441_v53  ;;  %v4481_v53 = vld [vmem:[%s4634_s25 + $0x1b8] sm:$0xff]  ;;  %v959_v59 = vor.u32 %v957_v23, %v955_v24  ;;  %v965_v23 = vshrl.u32 %v4463_v37, 16 }
 0x12e   : > { %v1066_v10 = vpop.f32.mrf.mxu2 }
 0x12f   : > { %v1138_v12 = vadd.f32 %v1066_v10, %v653_v3  ;;  %v4428_v10 = vld [vmem:[%s4634_s25 + $0x70] sm:$0xff] }
 0x130   : > { %v655_v20 = vpop.f32.mrf.mxu1  ;;  %v4955_v46 = vpop.f32.mrf.mxu3 }
 0x131   : > { %v1442_v41 = vadd.f32 %v4892_v61, %v1138_v12  ;;  %v656_v47 = vadd.f32 %v655_v20, %v4726_v13  ;;  %v961_v61 = vshll.u32 %v4463_v37, 16 }
 0x133   : > { %v1677_v30 = vpop.f32.mrf.mxu0  ;;  %3740 = vmatmul.msk.bf16.gmra.mxu1 %vm329_vm2, %v4427_v56  ;;  %3826 = vmatmul.msk.bf16.gmra.mxu2 %vm329_vm2, %v956_v39  ;;  %v4950_v2 = vadd.f32 %v1674_v7, %v1442_v41  ;;  %v963_v13 = vrot.slane %v961_v61, 1  ;;  %v4532_v41 = vld [vmem:[%s4634_s25 + $0xa4] sm:$0xff] }
 0x135   : > { %3949 = vmatmul.msk.bf16.gmra.mxu3 %vm329_vm2, %v4481_v53  ;;  %v964_v56 = vsel %vm840_vm3, %v959_v59, %v963_v13  ;;  %v2791_v53 = vshrl.u32 %v4532_v41, 16 }
 0x136   : > { %4066 = vmatmul.msk.bf16.gmra.mxu0 %vm329_vm2, %v4495_v16  ;;  %v1069_v33 = vpop.f32.mrf.mxu2 }
 0x137   : > { %v1139_v54 = vadd.f32 %v1069_v33, %v656_v47  ;;  %v4533_v33 = vld [vmem:[%s4634_s25 + $0xac] sm:$0xff] }
 0x138   : > { %v657_v25 = vpop.f32.mrf.mxu1  ;;  %v4966_v20 = vpop.f32.mrf.mxu3  ;;  %v2798_v59 = vshll.u32 %v4533_v33, 16 }
 0x139   : > { %v1443_v1 = vadd.f32 %v4903_v40, %v1139_v54  ;;  %v658_v63 = vadd.f32 %v657_v25, %v4738_v19  ;;  %v4496_v40 = vld [vmem:[%s4634_s25 + $0x244] sm:$0xff]  ;;  %v2793_v54 = vshll.u32 %v4532_v41, 16 }
 0x13a   : > { %v4464_v19 = vld [vmem:[%s4634_s25 + $0x80] sm:$0xff] }
 0x13b   : > { %v1679_v0 = vpop.f32.mrf.mxu0  ;;  %v4960_v7 = vadd.f32 %v1677_v30, %v1443_v1  ;;  %v969_v61 = vshll.u32 %v4464_v19, 16 }
 0x13d   : > { %5647 = vst [vmem:[#allocation2_spill] sm:$0xff] %v4960_v7 }
 0x13e   : > { %v1071_v3 = vpop.f32.mrf.mxu2 }
 0x13f   : > { %v1140_v9 = vadd.f32 %v1071_v3, %v658_v63 }
 0x140   : > { %v660_v12 = vpop.f32.mrf.mxu1  ;;  %v4978_v1 = vpop.f32.mrf.mxu3 }
 0x141   : > { %v1444_v39 = vadd.f32 %v4913_v57, %v1140_v9  ;;  %v661_v30 = vadd.f32 %v660_v12, %v4747_v28  ;;  %v2800_v28 = vrot.slane %v2798_v59, 1  ;;  %v967_v12 = vor.u32 %v965_v23, %v963_v13  ;;  %v4534_v59 = vld [vmem:[%s4634_s25 + $0xb4] sm:$0xff] }
 0x143   : > { %v1682_v16 = vpop.f32.mrf.mxu0  ;;  %3741 = vmatmul.msk.bf16.gmra.mxu1 %vm329_vm2, %v4428_v10  ;;  %3827 = vmatmul.msk.bf16.gmra.mxu2 %vm329_vm2, %v964_v56  ;;  %v4971_v24 = vadd.f32 %v1679_v0, %v1444_v39  ;;  %v2795_v0 = vrot.slane %v2793_v54, 1  ;;  %v971_v56 = vrot.slane %v969_v61, 1  ;;  %v749_v39 = vld [vmem:[%s4634_s25 + $0x88] sm:$0x1] }
 0x145   : > { %5648 = vst [vmem:[#allocation3_spill] sm:$0xff] %v4971_v24  ;;  %v2796_v9 = vor.u32 %v2795_v0, %v2791_v53  ;;  %v972_v54 = vsel %vm840_vm3, %v967_v12, %v971_v56  ;;  %v821_v53 = vunpack.c.l.b16 %v749_v39  ;;  %v973_v12 = vshrl.u32 %v4464_v19, 16 }
 0x146   : > { %4067 = vmatmul.msk.bf16.gmra.mxu0 %vm329_vm2, %v4496_v40  ;;  %v1074_v47 = vpop.f32.mrf.mxu2  ;;  %v2806_v39 = vshll.u32 %v4534_v59, 16 }
 0x147   : > { %v1141_v25 = vadd.f32 %v1074_v47, %v661_v30  ;;  %v2801_v37 = vsel %vm840_vm3, %v2796_v9, %v2800_v28  ;;  %v4429_v47 = vld [vmem:[%s4634_s25 + $0x78] sm:$0xff] }
 0x148   : > { %v662_v57 = vpop.f32.mrf.mxu1  ;;  %4377 = vmatmul.msk.bf16.vlgmr.msra.gmra.mxu3 %vm329_vm2, %v2801_v37 }
 0x149   : > { %v1445_v63 = vadd.f32 %v4924_v58, %v1141_v25  ;;  %v663_v40 = vadd.f32 %v662_v57, %v4761_v35  ;;  %v4497_v25 = vld [vmem:[%s4634_s25 + $0x24c] sm:$0xff]  ;;  %v839_v57 = vpack.c.b16 %v821_v53, %v821_v53 }
 0x14b   : > { %v1684_v3 = vpop.f32.mrf.mxu0  ;;  %v4981_v10 = vadd.f32 %v1682_v16, %v1445_v63  ;;  %v4990_v16 = vpop.f32.mrf.mxu3  ;;  %v977_v37 = vshll.u32 %v839_v57, 16 }
 0x14d   : > { %5649 = vst [vmem:[#allocation4_spill] sm:$0xff] %v4981_v10 }
 0x14e   : > { %v1076_v41 = vpop.f32.mrf.mxu2 }
 0x14f   : > { %v1142_v30 = vadd.f32 %v1076_v41, %v663_v40  ;;  %v2802_v40 = vshrl.u32 %v4533_v33, 16 }
 0x150   : > { %v665_v58 = vpop.f32.mrf.mxu1 }
 0x151   : > { %v1446_v13 = vadd.f32 %v4934_v50, %v1142_v30  ;;  %v666_v61 = vadd.f32 %v665_v58, %v4772_v45  ;;  %v2804_v30 = vor.u32 %v2802_v40, %v2800_v28  ;;  %v975_v45 = vor.u32 %v973_v12, %v971_v56 }
 0x152   : > { %v979_v58 = vrot.slane %v977_v37, 1  ;;  %v5025_v37 = vld [vmem:[%s4634_s25 + $0x10] sm:$0xff] }
 0x153   : > { %v1687_v23 = vpop.f32.mrf.mxu0  ;;  %3742 = vmatmul.msk.bf16.gmra.mxu1 %vm329_vm2, %v4429_v47  ;;  %3828 = vmatmul.msk.bf16.gmra.mxu2 %vm329_vm2, %v972_v54  ;;  %v4995_v35 = vadd.f32 %v1684_v3, %v1446_v13  ;;  %v5000_v50 = vpop.f32.mrf.mxu3  ;;  %v2808_v47 = vrot.slane %v2806_v39, 1  ;;  %v4499_v13 = vld [vmem:[%s4634_s25 + $0x138] sm:$0xff] }
 0x154   : > { %v980_v28 = vsel %vm840_vm3, %v975_v45, %v979_v58  ;;  %v4555_v45 = vld [vmem:[%s4634_s25 + $0x8] sm:$0xe]  ;;  %v4535_v58 = vld [vmem:[%s4634_s25 + $0xbc] sm:$0xff] }
 0x155   : > { %5650 = vst [vmem:[#allocation5_spill] sm:$0xff] %v4995_v35  ;;  %v2809_v19 = vsel %vm840_vm3, %v2804_v30, %v2808_v47  ;;  %v4554_v30 = vld [vmem:[%s4634_s25 + $0x8] sm:$0xf0] }
 0x156   : > { %4068 = vmatmul.msk.bf16.gmra.mxu0 %vm329_vm2, %v4497_v25  ;;  %v1079_v0 = vpop.f32.mrf.mxu2 }
 0x157   : > { %v1143_v63 = vadd.f32 %v1079_v0, %v666_v61 }
 0x158   : > { %v667_v9 = vpop.f32.mrf.mxu1  ;;  %4378 = vmatmul.msk.bf16.gmra.mxu3 %vm329_vm2, %v2809_v19 }
 0x159   : > { %v1447_v3 = vadd.f32 %v4945_v22, %v1143_v63  ;;  %v668_v25 = vadd.f32 %v667_v9, %v4786_v52  ;;  %v4430_v22 = vld [vmem:[%s4634_s25 + $0x80] sm:$0xff]  ;;  %v4553_v52 = vld [vmem:[%s4634_s25 + $0x8] sm:$0xff]   ;;  %v1899_v9 = vshll.u32 %v4499_v13, 16 }
 0x15a   : > { %v5019_v63 = vld [vmem:[%s4634_s25 + $0x140] sm:$0xff]  ;;  %v2346_v40 = vshll.u32 %v4553_v52, 16 }
 0x15b   : > { %v1689_v41 = vpop.f32.mrf.mxu0  ;;  %v5003_v54 = vadd.f32 %v1687_v23, %v1447_v3  ;;  %v4498_v23 = vld [vmem:[%s4634_s25 + $0x254] sm:$0xff]  ;;  %v5012_v61 = vpop.f32.mrf.mxu3  ;;  %v1897_v3 = vshrl.u32 %v4499_v13, 16  ;;  %v4556_v13 = vor.u32 %v4555_v45, %v4554_v30 }
 0x15d   : > { %5651 = vst [vmem:[#allocation6_spill] sm:$0xff] %v5003_v54  ;;  %v3119_v7 = vrot.slane %v4556_v13, 1 }
 0x15e   : > { %v1081_v33 = vpop.f32.mrf.mxu2 }
 0x15f   : > { %v1144_v53 = vadd.f32 %v1081_v33, %v668_v25  ;;  %v1901_v25 = vrot.slane %v1899_v9, 1  ;;  %v1904_v33 = vshll.u32 %v5019_v63, 16 }
 0x160   : > { %v670_v57 = vpop.f32.mrf.mxu1 }
 0x161   : > { %v1448_v56 = vadd.f32 %v4955_v46, %v1144_v53  ;;  %v671_v39 = vadd.f32 %v670_v57, %v4797_v62  ;;  %v2344_v53 = vshrl.u32 %v4553_v52, 16  ;;  %v1902_v10 = vor.u32 %v1901_v25, %v1897_v3 }
 0x162   : > { %v1906_v9 = vrot.slane %v1904_v33, 1 }
 0x163   : > { %v1692_v0 = vpop.f32.mrf.mxu0  ;;  %3743 = vmatmul.msk.bf16.gmra.mxu1 %vm329_vm2, %v4430_v22  ;;  %3829 = vmatmul.msk.bf16.gmra.mxu2 %vm329_vm2, %v980_v28  ;;  %v5021_v12 = vadd.f32 %v1689_v41, %v1448_v56  ;;  %v2348_v41 = vrot.slane %v2346_v40, 1  ;;  %v2351_v28 = vshll.u32 %v5025_v37, 16  ;;  %v2810_v56 = vshrl.u32 %v4534_v59, 16 }
 0x164   : > { %v3120_v59 = vrot.slane %v5025_v37, 1 }
 0x165   : > { %5652 = vst [vmem:[#allocation7_spill] sm:$0xff] %v5021_v12  ;;  %v2814_v12 = vshll.u32 %v4535_v58, 16  ;;  %v2812_v54 = vor.u32 %v2810_v56, %v2808_v47  ;;  %v2353_v52 = vrot.slane %v2351_v28, 1  ;;  %v2355_v28 = vshrl.u32 %v5025_v37, 16 }
 0x166   : > { %4069 = vmatmul.msk.bf16.gmra.mxu0 %vm329_vm2, %v4498_v23  ;;  %v1084_v46 = vpop.f32.mrf.mxu2  ;;  %v5033_v23 = vpop.f32.mrf.mxu3  ;;  %v3121_v45 = vsel %vm3118_vm4, %v3119_v7, %v3120_v59 }
 0x167   : > { %v1145_v19 = vadd.f32 %v1084_v46, %v671_v39  ;;  %v2816_v35 = vrot.slane %v2814_v12, 1  ;;  %v2349_v46 = vor.u32 %v2348_v41, %v2344_v53  ;;  %v1907_v12 = vsel %vm840_vm3, %v1902_v10, %v1906_v9  ;;  %v4536_v53 = vld [vmem:[%s4634_s25 + $0xc4] sm:$0xff] }
 0x168   : > { %v672_v22 = vpop.f32.mrf.mxu1  ;;  %v2822_v13 = vshll.u32 %v4536_v53, 16 }
 0x169   : > { %v1449_v62 = vadd.f32 %v4966_v20, %v1145_v19  ;;  %v2817_v40 = vsel %vm840_vm3, %v2812_v54, %v2816_v35  ;;  %v673_v24 = vadd.f32 %v672_v22, %v4809_v5  ;;  %v2354_v3 = vsel %vm840_vm3, %v2349_v46, %v2353_v52  ;;  %v4501_v19 = vld [vmem:[%s4634_s25 + $0x148] sm:$0xff] }
 0x16a   : > { %4379 = vmatmul.msk.bf16.gmra.mxu3 %vm329_vm2, %v2817_v40  ;;  %v1912_v41 = vshll.u32 %v4501_v19, 16 }
 0x16b   : > { %v1694_v57 = vpop.f32.mrf.mxu0  ;;  %v5036_v39 = vadd.f32 %v1692_v0, %v1449_v62 }
 0x16e   : > { %v1086_v20 = vpop.f32.mrf.mxu2  ;;  %v5044_v30 = vpop.f32.mrf.mxu3 }
 0x16f   : > { %v1146_v47 = vadd.f32 %v1086_v20, %v673_v24  ;;  %v5055_v24 = vld [vmem:[%s4634_s25 + $0x18] sm:$0xff] }
 0x170   : > { %v675_v0 = vpop.f32.mrf.mxu1  ;;  %v2359_v56 = vshll.u32 %v5055_v24, 16 }
 0x171   : > { %v1450_v5 = vadd.f32 %v4978_v1, %v1146_v47  ;;  %v676_v10 = vadd.f32 %v675_v0, %v4818_v17  ;;  %v1908_v1 = vshrl.u32 %v5019_v63, 16  ;;  %v2824_v17 = vrot.slane %v2822_v13, 1 }
 0x172   : > { %v2357_v63 = vor.u32 %v2355_v28, %v2353_v52 }
 0x173   : > { %v1697_v54 = vpop.f32.mrf.mxu0  ;;  %4174 = vmatmul.msk.bf16.vlgmr.msra.gmra.mxu1 %vm329_vm2, %v1907_v12  ;;  %4256 = vmatmul.msk.bf16.vlgmr.msra.gmra.mxu2 %vm329_vm2, %v2354_v3  ;;  %v5051_v25 = vadd.f32 %v1694_v57, %v1450_v5  ;;  %v2818_v57 = vshrl.u32 %v4535_v58, 16  ;;  %v1910_v47 = vor.u32 %v1908_v1, %v1906_v9  ;;  %v1914_v12 = vrot.slane %v1912_v41, 1  ;;  %v5084_v41 = vld [vmem:[%s4634_s25 + $0x20] sm:$0xff] }
 0x174   : > { %v2361_v3 = vrot.slane %v2359_v56, 1  ;;  %v4537_v56 = vld [vmem:[%s4634_s25 + $0xcc] sm:$0xff] }
 0x175   : > { %v2820_v20 = vor.u32 %v2818_v57, %v2816_v35  ;;  %v1915_v9 = vsel %vm840_vm3, %v1910_v47, %v1914_v12 }
 0x176   : > { %4395 = vmatmul.msk.bf16.vlgmr.msra.gmra.mxu0 %vm329_vm2, %v3121_v45  ;;  %v1089_v33 = vpop.f32.mrf.mxu2  ;;  %v5062_v62 = vpop.f32.mrf.mxu3  ;;  %v3122_v45 = vrot.slane %v5055_v24, 1 }
 0x177   : > { %v1147_v22 = vadd.f32 %v1089_v33, %v676_v10  ;;  %v2825_v37 = vsel %vm840_vm3, %v2820_v20, %v2824_v17  ;;  %v2367_v20 = vshll.u32 %v5084_v41, 16 }
 0x178   : > { %v677_v7 = vpop.f32.mrf.mxu1 }
 0x179   : > { %v1451_v46 = vadd.f32 %v4990_v16, %v1147_v22  ;;  %v678_v5 = vadd.f32 %v677_v7, %v4832_v29  ;;  %v3123_v29 = vsel %vm3118_vm4, %v3120_v59, %v3122_v45  ;;  %v4502_v22 = vld [vmem:[%s4634_s25 + $0x150] sm:$0xff]  ;;  %v2363_v59 = vshrl.u32 %v5055_v24, 16 }
 0x17a   : > { %4380 = vmatmul.msk.bf16.gmra.mxu3 %vm329_vm2, %v2825_v37  ;;  %v1920_v13 = vshll.u32 %v4502_v22, 16 }
 0x17b   : > { %v1699_v40 = vpop.f32.mrf.mxu0  ;;  %v5065_v0 = vadd.f32 %v1697_v54, %v1451_v46  ;;  %v2362_v54 = vsel %vm840_vm3, %v2357_v63, %v2361_v3  ;;  %v2830_v63 = vshll.u32 %v4537_v56, 16 }
 0x17e   : > { %v1091_v16 = vpop.f32.mrf.mxu2  ;;  %v5073_v52 = vpop.f32.mrf.mxu3 }
 0x17f   : > { %v1148_v58 = vadd.f32 %v1091_v16, %v678_v5 }
 0x180   : > { %v680_v35 = vpop.f32.mrf.mxu1 }
 0x181   : > { %v1452_v10 = vadd.f32 %v5000_v50, %v1148_v58  ;;  %v681_v7 = vadd.f32 %v680_v35, %v4736_v18  ;;  %v1916_v50 = vshrl.u32 %v4501_v19, 16  ;;  %v2832_v58 = vrot.slane %v2830_v63, 1 }
 0x182   : > { %v2365_v19 = vor.u32 %v2363_v59, %v2361_v3 }
 0x183   : > { %v1702_v33 = vpop.f32.mrf.mxu0  ;;  %4175 = vmatmul.msk.bf16.gmra.mxu1 %vm329_vm2, %v1915_v9  ;;  %4257 = vmatmul.msk.bf16.gmra.mxu2 %vm329_vm2, %v2362_v54  ;;  %v5080_v1 = vadd.f32 %v1699_v40, %v1452_v10  ;;  %v2826_v40 = vshrl.u32 %v4536_v53, 16  ;;  %v1918_v18 = vor.u32 %v1916_v50, %v1914_v12  ;;  %v1922_v9 = vrot.slane %v1920_v13, 1  ;;  %v5112_v13 = vld [vmem:[%s4634_s25 + $0x28] sm:$0xff] }
 0x184   : > { %v2369_v54 = vrot.slane %v2367_v20, 1  ;;  %v4538_v20 = vld [vmem:[%s4634_s25 + $0xd4] sm:$0xff] }
 0x185   : > { %v2828_v16 = vor.u32 %v2826_v40, %v2824_v17  ;;  %v1923_v12 = vsel %vm840_vm3, %v1918_v18, %v1922_v9 }
 0x186   : > { %4396 = vmatmul.msk.bf16.gmra.mxu0 %vm329_vm2, %v3123_v29  ;;  %v1094_v28 = vpop.f32.mrf.mxu2  ;;  %v5090_v47 = vpop.f32.mrf.mxu3  ;;  %v3124_v29 = vrot.slane %v5084_v41, 1 }
 0x187   : > { %v1149_v57 = vadd.f32 %v1094_v28, %v681_v7  ;;  %v2833_v24 = vsel %vm840_vm3, %v2828_v16, %v2832_v58  ;;  %v2375_v16 = vshll.u32 %v5112_v13, 16 }
 0x188   : > { %v682_v46 = vpop.f32.mrf.mxu1 }
 0x189   : > { %v1453_v37 = vadd.f32 %v5012_v61, %v1149_v57  ;;  %v683_v10 = vadd.f32 %v682_v46, %v4744_v26  ;;  %v3125_v26 = vsel %vm3118_vm4, %v3122_v45, %v3124_v29  ;;  %v4503_v57 = vld [vmem:[%s4634_s25 + $0x158] sm:$0xff]  ;;  %v2371_v45 = vshrl.u32 %v5084_v41, 16 }
 0x18a   : > { %4381 = vmatmul.msk.bf16.gmra.mxu3 %vm329_vm2, %v2833_v24  ;;  %v1928_v63 = vshll.u32 %v4503_v57, 16 }
 0x18b   : > { %v1704_v5 = vpop.f32.mrf.mxu0  ;;  %v5093_v35 = vadd.f32 %v1702_v33, %v1453_v37  ;;  %v2370_v33 = vsel %vm840_vm3, %v2365_v19, %v2369_v54  ;;  %v2838_v19 = vshll.u32 %v4538_v20, 16 }
 0x18e   : > { %v1096_v61 = vpop.f32.mrf.mxu2  ;;  %v5101_v3 = vpop.f32.mrf.mxu3 }
 0x18f   : > { %v1150_v53 = vadd.f32 %v1096_v61, %v683_v10 }
 0x190   : > { %v685_v17 = vpop.f32.mrf.mxu1 }
 0x191   : > { %v1454_v7 = vadd.f32 %v5033_v23, %v1150_v53  ;;  %v686_v46 = vadd.f32 %v685_v17, %v4759_v34  ;;  %v1924_v23 = vshrl.u32 %v4502_v22, 16  ;;  %v2840_v53 = vrot.slane %v2838_v19, 1 }
 0x192   : > { %v2373_v22 = vor.u32 %v2371_v45, %v2369_v54 }
 0x193   : > { %v1707_v28 = vpop.f32.mrf.mxu0  ;;  %4176 = vmatmul.msk.bf16.gmra.mxu1 %vm329_vm2, %v1923_v12  ;;  %4258 = vmatmul.msk.bf16.gmra.mxu2 %vm329_vm2, %v2370_v33  ;;  %v5108_v50 = vadd.f32 %v1704_v5, %v1454_v7  ;;  %v2834_v5 = vshrl.u32 %v4537_v56, 16  ;;  %v1926_v34 = vor.u32 %v1924_v23, %v1922_v9  ;;  %v1930_v12 = vrot.slane %v1928_v63, 1  ;;  %v5140_v63 = vld [vmem:[%s4634_s25 + $0x30] sm:$0xff] }
 0x194   : > { %v2377_v33 = vrot.slane %v2375_v16, 1  ;;  %v4539_v16 = vld [vmem:[%s4634_s25 + $0xdc] sm:$0xff] }
 0x195   : > { %v2836_v61 = vor.u32 %v2834_v5, %v2832_v58  ;;  %v1931_v9 = vsel %vm840_vm3, %v1926_v34, %v1930_v12 }
 0x196   : > { %4397 = vmatmul.msk.bf16.gmra.mxu0 %vm329_vm2, %v3125_v26  ;;  %v1099_v59 = vpop.f32.mrf.mxu2  ;;  %v5118_v18 = vpop.f32.mrf.mxu3  ;;  %v3126_v26 = vrot.slane %v5112_v13, 1 }
 0x197   : > { %v1151_v40 = vadd.f32 %v1099_v59, %v686_v46  ;;  %v2841_v41 = vsel %vm840_vm3, %v2836_v61, %v2840_v53  ;;  %v2383_v61 = vshll.u32 %v5140_v63, 16 }
 0x198   : > { %v687_v37 = vpop.f32.mrf.mxu1 }
 0x199   : > { %v1455_v24 = vadd.f32 %v5044_v30, %v1151_v40  ;;  %v688_v7 = vadd.f32 %v687_v37, %v4769_v43  ;;  %v3127_v43 = vsel %vm3118_vm4, %v3124_v29, %v3126_v26  ;;  %v4504_v40 = vld [vmem:[%s4634_s25 + $0x160] sm:$0xff]  ;;  %v2379_v29 = vshrl.u32 %v5112_v13, 16 }
 0x19a   : > { %4382 = vmatmul.msk.bf16.gmra.mxu3 %vm329_vm2, %v2841_v41  ;;  %v1936_v19 = vshll.u32 %v4504_v40, 16 }
 0x19b   : > { %v1709_v10 = vpop.f32.mrf.mxu0  ;;  %v5121_v17 = vadd.f32 %v1707_v28, %v1455_v24  ;;  %v2378_v28 = vsel %vm840_vm3, %v2373_v22, %v2377_v33  ;;  %v2846_v22 = vshll.u32 %v4539_v16, 16 }
 0x19e   : > { %v1101_v30 = vpop.f32.mrf.mxu2  ;;  %v5129_v54 = vpop.f32.mrf.mxu3 }
 0x19f   : > { %v1152_v56 = vadd.f32 %v1101_v30, %v688_v7 }
 0x1a0   : > { %v690_v58 = vpop.f32.mrf.mxu1 }
 0x1a1   : > { %v1456_v46 = vadd.f32 %v5062_v62, %v1152_v56  ;;  %v691_v37 = vadd.f32 %v690_v58, %v4784_v51  ;;  %v1932_v62 = vshrl.u32 %v4503_v57, 16  ;;  %v2848_v56 = vrot.slane %v2846_v22, 1 }
 0x1a2   : > { %v2381_v57 = vor.u32 %v2379_v29, %v2377_v33 }
 0x1a3   : > { %v1712_v59 = vpop.f32.mrf.mxu0  ;;  %4177 = vmatmul.msk.bf16.gmra.mxu1 %vm329_vm2, %v1931_v9  ;;  %4259 = vmatmul.msk.bf16.gmra.mxu2 %vm329_vm2, %v2378_v28  ;;  %v5136_v23 = vadd.f32 %v1709_v10, %v1456_v46  ;;  %v2842_v10 = vshrl.u32 %v4538_v20, 16  ;;  %v1934_v51 = vor.u32 %v1932_v62, %v1930_v12  ;;  %v1938_v9 = vrot.slane %v1936_v19, 1  ;;  %v5168_v19 = vld [vmem:[%s4634_s25 + $0x38] sm:$0xff] }
 0x1a4   : > { %v2385_v28 = vrot.slane %v2383_v61, 1  ;;  %v4540_v61 = vld [vmem:[%s4634_s25 + $0xe4] sm:$0xff] }
 0x1a5   : > { %v2844_v30 = vor.u32 %v2842_v10, %v2840_v53  ;;  %v1939_v12 = vsel %vm840_vm3, %v1934_v51, %v1938_v9 }
 0x1a6   : > { %4398 = vmatmul.msk.bf16.gmra.mxu0 %vm329_vm2, %v3127_v43  ;;  %v1104_v45 = vpop.f32.mrf.mxu2  ;;  %v5146_v34 = vpop.f32.mrf.mxu3  ;;  %v3128_v43 = vrot.slane %v5140_v63, 1 }
 0x1a7   : > { %v1153_v5 = vadd.f32 %v1104_v45, %v691_v37  ;;  %v2849_v13 = vsel %vm840_vm3, %v2844_v30, %v2848_v56  ;;  %v2391_v30 = vshll.u32 %v5168_v19, 16 }
 0x1a8   : > { %v692_v24 = vpop.f32.mrf.mxu1 }
 0x1a9   : > { %v1457_v41 = vadd.f32 %v5073_v52, %v1153_v5  ;;  %v693_v46 = vadd.f32 %v692_v24, %v4794_v60  ;;  %v3129_v60 = vsel %vm3118_vm4, %v3126_v26, %v3128_v43  ;;  %v4505_v5 = vld [vmem:[%s4634_s25 + $0x168] sm:$0xff]  ;;  %v2387_v26 = vshrl.u32 %v5140_v63, 16 }
 0x1aa   : > { %4383 = vmatmul.msk.bf16.gmra.mxu3 %vm329_vm2, %v2849_v13  ;;  %v1944_v22 = vshll.u32 %v4505_v5, 16 }
 0x1ab   : > { %v1714_v7 = vpop.f32.mrf.mxu0  ;;  %v5149_v58 = vadd.f32 %v1712_v59, %v1457_v41  ;;  %v2386_v59 = vsel %vm840_vm3, %v2381_v57, %v2385_v28  ;;  %v2854_v57 = vshll.u32 %v4540_v61, 16 }
 0x1ae   : > { %v1106_v52 = vpop.f32.mrf.mxu2  ;;  %v5157_v33 = vpop.f32.mrf.mxu3 }
 0x1af   : > { %v1154_v20 = vadd.f32 %v1106_v52, %v693_v46 }
 0x1b0   : > { %v695_v53 = vpop.f32.mrf.mxu1 }
 0x1b1   : > { %v1458_v37 = vadd.f32 %v5090_v47, %v1154_v20  ;;  %v696_v24 = vadd.f32 %v695_v53, %v4807_v4  ;;  %v1940_v47 = vshrl.u32 %v4504_v40, 16  ;;  %v2856_v20 = vrot.slane %v2854_v57, 1 }
 0x1b2   : > { %v2389_v40 = vor.u32 %v2387_v26, %v2385_v28 }
 0x1b3   : > { %v1717_v45 = vpop.f32.mrf.mxu0  ;;  %4178 = vmatmul.msk.bf16.gmra.mxu1 %vm329_vm2, %v1939_v12  ;;  %4260 = vmatmul.msk.bf16.gmra.mxu2 %vm329_vm2, %v2386_v59  ;;  %v5164_v62 = vadd.f32 %v1714_v7, %v1458_v37  ;;  %v2850_v7 = vshrl.u32 %v4539_v16, 16  ;;  %v1942_v4 = vor.u32 %v1940_v47, %v1938_v9  ;;  %v1946_v12 = vrot.slane %v1944_v22, 1  ;;  %v5196_v22 = vld [vmem:[%s4634_s25 + $0x40] sm:$0xff] }
 0x1b4   : > { %v2393_v59 = vrot.slane %v2391_v30, 1  ;;  %v4541_v30 = vld [vmem:[%s4634_s25 + $0xec] sm:$0xff] }
 0x1b5   : > { %v2852_v52 = vor.u32 %v2850_v7, %v2848_v56  ;;  %v1947_v9 = vsel %vm840_vm3, %v1942_v4, %v1946_v12 }
 0x1b6   : > { %4399 = vmatmul.msk.bf16.gmra.mxu0 %vm329_vm2, %v3129_v60  ;;  %v1109_v29 = vpop.f32.mrf.mxu2  ;;  %v5174_v51 = vpop.f32.mrf.mxu3  ;;  %v3130_v60 = vrot.slane %v5168_v19, 1 }
 0x1b7   : > { %v1155_v10 = vadd.f32 %v1109_v29, %v696_v24  ;;  %v2857_v63 = vsel %vm840_vm3, %v2852_v52, %v2856_v20  ;;  %v2399_v52 = vshll.u32 %v5196_v22, 16 }
 0x1b8   : > { %v697_v41 = vpop.f32.mrf.mxu1 }
 0x1b9   : > { %v1459_v13 = vadd.f32 %v5101_v3, %v1155_v10  ;;  %v698_v37 = vadd.f32 %v697_v41, %v4815_v14  ;;  %v3131_v14 = vsel %vm3118_vm4, %v3128_v43, %v3130_v60  ;;  %v4506_v10 = vld [vmem:[%s4634_s25 + $0x170] sm:$0xff]  ;;  %v2395_v43 = vshrl.u32 %v5168_v19, 16 }
 0x1ba   : > { %4384 = vmatmul.msk.bf16.gmra.mxu3 %vm329_vm2, %v2857_v63  ;;  %v1952_v57 = vshll.u32 %v4506_v10, 16 }
 0x1bb   : > { %v1719_v46 = vpop.f32.mrf.mxu0  ;;  %v5177_v53 = vadd.f32 %v1717_v45, %v1459_v13  ;;  %v2394_v45 = vsel %vm840_vm3, %v2389_v40, %v2393_v59  ;;  %v2862_v40 = vshll.u32 %v4541_v30, 16 }
 0x1be   : > { %v1111_v3 = vpop.f32.mrf.mxu2  ;;  %v5185_v28 = vpop.f32.mrf.mxu3 }
 0x1bf   : > { %v1156_v16 = vadd.f32 %v1111_v3, %v698_v37 }
 0x1c0   : > { %v700_v56 = vpop.f32.mrf.mxu1 }
 0x1c1   : > { %v1460_v24 = vadd.f32 %v5118_v18, %v1156_v16  ;;  %v701_v41 = vadd.f32 %v700_v56, %v4830_v27  ;;  %v1948_v18 = vshrl.u32 %v4505_v5, 16  ;;  %v2864_v16 = vrot.slane %v2862_v40, 1 }
 0x1c2   : > { %v2397_v5 = vor.u32 %v2395_v43, %v2393_v59 }
 0x1c3   : > { %v1722_v29 = vpop.f32.mrf.mxu0  ;;  %4179 = vmatmul.msk.bf16.gmra.mxu1 %vm329_vm2, %v1947_v9  ;;  %4261 = vmatmul.msk.bf16.gmra.mxu2 %vm329_vm2, %v2394_v45  ;;  %v5192_v47 = vadd.f32 %v1719_v46, %v1460_v24  ;;  %v2858_v46 = vshrl.u32 %v4540_v61, 16  ;;  %v1950_v27 = vor.u32 %v1948_v18, %v1946_v12  ;;  %v1954_v9 = vrot.slane %v1952_v57, 1  ;;  %v5224_v57 = vld [vmem:[%s4634_s25 + $0x48] sm:$0xff] }
 0x1c4   : > { %v2401_v45 = vrot.slane %v2399_v52, 1  ;;  %v4542_v52 = vld [vmem:[%s4634_s25 + $0xf4] sm:$0xff] }
 0x1c5   : > { %v2860_v3 = vor.u32 %v2858_v46, %v2856_v20  ;;  %v1955_v12 = vsel %vm840_vm3, %v1950_v27, %v1954_v9 }
 0x1c6   : > { %4400 = vmatmul.msk.bf16.gmra.mxu0 %vm329_vm2, %v3131_v14  ;;  %v1114_v26 = vpop.f32.mrf.mxu2  ;;  %v5202_v4 = vpop.f32.mrf.mxu3  ;;  %v3132_v14 = vrot.slane %v5196_v22, 1 }
 0x1c7   : > { %v1157_v7 = vadd.f32 %v1114_v26, %v701_v41  ;;  %v2865_v19 = vsel %vm840_vm3, %v2860_v3, %v2864_v16  ;;  %v2407_v3 = vshll.u32 %v5224_v57, 16 }
 0x1c8   : > { %v702_v13 = vpop.f32.mrf.mxu1 }
 0x1c9   : > { %v1461_v63 = vadd.f32 %v5129_v54, %v1157_v7  ;;  %v703_v24 = vadd.f32 %v702_v13, %v4840_v44  ;;  %v3133_v44 = vsel %vm3118_vm4, %v3130_v60, %v3132_v14  ;;  %v4507_v7 = vld [vmem:[%s4634_s25 + $0x178] sm:$0xff]  ;;  %v2403_v60 = vshrl.u32 %v5196_v22, 16 }
 0x1ca   : > { %4385 = vmatmul.msk.bf16.gmra.mxu3 %vm329_vm2, %v2865_v19  ;;  %v1960_v40 = vshll.u32 %v4507_v7, 16 }
 0x1cb   : > { %v1724_v37 = vpop.f32.mrf.mxu0  ;;  %v5205_v56 = vadd.f32 %v1722_v29, %v1461_v63  ;;  %v2402_v29 = vsel %vm840_vm3, %v2397_v5, %v2401_v45  ;;  %v2870_v5 = vshll.u32 %v4542_v52, 16 }
 0x1ce   : > { %v1116_v54 = vpop.f32.mrf.mxu2  ;;  %v5213_v59 = vpop.f32.mrf.mxu3 }
 0x1cf   : > { %v1158_v61 = vadd.f32 %v1116_v54, %v703_v24 }
 0x1d0   : > { %v705_v20 = vpop.f32.mrf.mxu1 }
 0x1d1   : > { %v1462_v41 = vadd.f32 %v5146_v34, %v1158_v61  ;;  %v706_v13 = vadd.f32 %v705_v20, %v4751_v31  ;;  %v1956_v34 = vshrl.u32 %v4506_v10, 16  ;;  %v2872_v61 = vrot.slane %v2870_v5, 1 }
 0x1d2   : > { %v2405_v10 = vor.u32 %v2403_v60, %v2401_v45 }
 0x1d3   : > { %v1727_v26 = vpop.f32.mrf.mxu0  ;;  %4180 = vmatmul.msk.bf16.gmra.mxu1 %vm329_vm2, %v1955_v12  ;;  %4262 = vmatmul.msk.bf16.gmra.mxu2 %vm329_vm2, %v2402_v29  ;;  %v5220_v18 = vadd.f32 %v1724_v37, %v1462_v41  ;;  %v2866_v37 = vshrl.u32 %v4541_v30, 16  ;;  %v1958_v31 = vor.u32 %v1956_v34, %v1954_v9  ;;  %v1962_v12 = vrot.slane %v1960_v40, 1  ;;  %v5254_v40 = vld [vmem:[%s4634_s25 + $0x50] sm:$0xff] }
 0x1d4   : > { %v2409_v29 = vrot.slane %v2407_v3, 1  ;;  %v4543_v3 = vld [vmem:[%s4634_s25 + $0xfc] sm:$0xff] }
 0x1d5   : > { %v2868_v54 = vor.u32 %v2866_v37, %v2864_v16  ;;  %v1963_v9 = vsel %vm840_vm3, %v1958_v31, %v1962_v12  ;;  %v1964_v37 = vshrl.u32 %v4507_v7, 16 }
 0x1d6   : > { %4401 = vmatmul.msk.bf16.gmra.mxu0 %vm329_vm2, %v3133_v44  ;;  %v1119_v43 = vpop.f32.mrf.mxu2  ;;  %v5230_v27 = vpop.f32.mrf.mxu3  ;;  %v3134_v44 = vrot.slane %v5224_v57, 1 }
 0x1d7   : > { %v1159_v46 = vadd.f32 %v1119_v43, %v706_v13  ;;  %v2873_v22 = vsel %vm840_vm3, %v2868_v54, %v2872_v61  ;;  %v2415_v54 = vshll.u32 %v5254_v40, 16 }
 0x1d8   : > { %v707_v63 = vpop.f32.mrf.mxu1 }
 0x1d9   : > { %v1463_v19 = vadd.f32 %v5157_v33, %v1159_v46  ;;  %v708_v41 = vadd.f32 %v707_v63, %v4763_v38  ;;  %v3135_v38 = vsel %vm3118_vm4, %v3132_v14, %v3134_v44  ;;  %v5248_v46 = vld [vmem:[%s4634_s25 + $0x180] sm:$0xff] }
 0x1da   : > { %4386 = vmatmul.msk.bf16.gmra.mxu3 %vm329_vm2, %v2873_v22  ;;  %v1968_v14 = vshll.u32 %v5248_v46, 16 }
 0x1db   : > { %v1729_v24 = vpop.f32.mrf.mxu0  ;;  %v5233_v20 = vadd.f32 %v1727_v26, %v1463_v19  ;;  %v2410_v26 = vsel %vm840_vm3, %v2405_v10, %v2409_v29  ;;  %v2411_v19 = vshrl.u32 %v5224_v57, 16  ;;  %v2878_v10 = vshll.u32 %v4543_v3, 16 }
 0x1dc   : > { %v1970_v7 = vrot.slane %v1968_v14, 1  ;;  %v5285_v14 = vld [vmem:[%s4634_s25 + $0x58] sm:$0xff] }
 0x1de   : > { %v1121_v33 = vpop.f32.mrf.mxu2  ;;  %v5241_v45 = vpop.f32.mrf.mxu3 }
 0x1df   : > { %v1160_v30 = vadd.f32 %v1121_v33, %v708_v41 }
 0x1e0   : > { %v710_v16 = vpop.f32.mrf.mxu1 }
 0x1e1   : > { %v1464_v13 = vadd.f32 %v5174_v51, %v1160_v30  ;;  %v711_v63 = vadd.f32 %v710_v16, %v4776_v48  ;;  %v2880_v48 = vrot.slane %v2878_v10, 1  ;;  %v1966_v30 = vor.u32 %v1964_v37, %v1962_v12 }
 0x1e3   : > { %v1732_v43 = vpop.f32.mrf.mxu0  ;;  %4181 = vmatmul.msk.bf16.gmra.mxu1 %vm329_vm2, %v1963_v9  ;;  %4263 = vmatmul.msk.bf16.gmra.mxu2 %vm329_vm2, %v2410_v26  ;;  %v5250_v34 = vadd.f32 %v1729_v24, %v1464_v13  ;;  %v2874_v24 = vshrl.u32 %v4542_v52, 16  ;;  %v2413_v9 = vor.u32 %v2411_v19, %v2409_v29  ;;  %v2417_v26 = vrot.slane %v2415_v54, 1  ;;  %v5289_v54 = vld [vmem:[%s4634_s25 + $0x104] sm:$0xff] }
 0x1e4   : > { %v1971_v12 = vsel %vm840_vm3, %v1966_v30, %v1970_v7  ;;  %v2882_v30 = vshrl.u32 %v4543_v3, 16 }
 0x1e5   : > { %v2876_v33 = vor.u32 %v2874_v24, %v2872_v61 }
 0x1e6   : > { %4402 = vmatmul.msk.bf16.gmra.mxu0 %vm329_vm2, %v3135_v38  ;;  %v1124_v60 = vpop.f32.mrf.mxu2  ;;  %v5261_v31 = vpop.f32.mrf.mxu3  ;;  %v3136_v38 = vrot.slane %v5254_v40, 1 }
 0x1e7   : > { %v1161_v51 = vadd.f32 %v1124_v60, %v711_v63  ;;  %v2881_v57 = vsel %vm840_vm3, %v2876_v33, %v2880_v48 }
 0x1e8   : > { %v712_v5 = vpop.f32.mrf.mxu1 }
 0x1e9   : > { %v1465_v22 = vadd.f32 %v5185_v28, %v1161_v51  ;;  %v713_v13 = vadd.f32 %v712_v5, %v4788_v55  ;;  %v3137_v55 = vsel %vm3118_vm4, %v3134_v44, %v3136_v38  ;;  %v5279_v51 = vld [vmem:[%s4634_s25 + $0x188] sm:$0xff]  ;;  %v1972_v44 = vshrl.u32 %v5248_v46, 16 }
 0x1ea   : > { %4387 = vmatmul.msk.bf16.gmra.mxu3 %vm329_vm2, %v2881_v57  ;;  %v1976_v24 = vshll.u32 %v5279_v51, 16  ;;  %v5302_v57 = vld [vmem:[%s5645_s2] ss:$0 sm:$0xff] }
 0x1eb   : > { %v1734_v41 = vpop.f32.mrf.mxu0  ;;  %v5264_v16 = vadd.f32 %v1732_v43, %v1465_v22  ;;  %v2418_v43 = vsel %vm840_vm3, %v2413_v9, %v2417_v26  ;;  %v2419_v22 = vshrl.u32 %v5254_v40, 16  ;;  %v2886_v9 = vshll.u32 %v5289_v54, 16 }
 0x1ec   : > { %v1978_v40 = vrot.slane %v1976_v24, 1 }
 0x1ee   : > { %v1126_v28 = vpop.f32.mrf.mxu2  ;;  %v5272_v29 = vpop.f32.mrf.mxu3 }
 0x1ef   : > { %v1162_v52 = vadd.f32 %v1126_v28, %v713_v13  ;;  %v2884_v13 = vor.u32 %v2882_v30, %v2880_v48  ;;  %v2888_v28 = vrot.slane %v2886_v9, 1  ;;  %v5332_v30 = vld [vmem:[%s4634_s25 + $0x60] sm:$0xff] }
 0x1f0   : > { %v2099_v61 = vpop.f32.mrf.mxu1 }
 0x1f1   : > { %v1466_v63 = vadd.f32 %v5202_v4, %v1162_v52  ;;  %v2184_v5 = vadd.f32 %v2099_v61, %v4856_v15  ;;  %v1974_v61 = vor.u32 %v1972_v44, %v1970_v7  ;;  %v2889_v3 = vsel %vm840_vm3, %v2884_v13, %v2888_v28  ;;  %v5337_v13 = vld [vmem:[%s4634_s25 + $0x10c] sm:$0xff] }
 0x1f3   : > { %v3217_v60 = vpop.f32.mrf.mxu0  ;;  %4182 = vmatmul.msk.bf16.gmra.mxu1 %vm329_vm2, %v1971_v12  ;;  %4264 = vmatmul.msk.bf16.gmra.mxu2 %vm329_vm2, %v2418_v43  ;;  %v5281_v37 = vadd.f32 %v1734_v41, %v1466_v63  ;;  %v2423_v41 = vshll.u32 %v5285_v14, 16  ;;  %v2421_v12 = vor.u32 %v2419_v22, %v2417_v26  ;;  %v1979_v26 = vsel %vm840_vm3, %v1974_v61, %v1978_v40 }
 0x1f5   : > { %v2425_v43 = vrot.slane %v2423_v41, 1  ;;  %v5328_v41 = vld [vmem:[%s4634_s25 + $0x190] sm:$0xff] }
 0x1f6   : > { %4403 = vmatmul.msk.bf16.gmra.mxu0 %vm329_vm2, %v3137_v55  ;;  %v2546_v19 = vpop.f32.mrf.mxu2  ;;  %v5295_v33 = vpop.f32.mrf.mxu3  ;;  %v3138_v55 = vrot.slane %v5285_v14, 1  ;;  %v1984_v61 = vshll.u32 %v5328_v41, 16 }
 0x1f7   : > { %v2631_v4 = vadd.f32 %v2546_v19, %v2184_v5 }
 0x1f8   : > { %v2101_v10 = vpop.f32.mrf.mxu1 }
 0x1f9   : > { %v3078_v15 = vadd.f32 %v5213_v59, %v2631_v4  ;;  %v2185_v59 = vadd.f32 %v2101_v10, %v4866_v42  ;;  %v2426_v42 = vsel %vm840_vm3, %v2421_v12, %v2425_v43  ;;  %v3139_v10 = vsel %vm3118_vm4, %v3136_v38, %v3138_v55 }
 0x1fa   : > { %4388 = vmatmul.msk.bf16.gmra.mxu3 %vm329_vm2, %v2889_v3  ;;  %v2427_v3 = vshrl.u32 %v5285_v14, 16 }
 0x1fb   : > { %v3219_v46 = vpop.f32.mrf.mxu0  ;;  %v3302_v52 = vadd.f32 %v3217_v60, %v3078_v15 }
 0x1fd   : > { %v3340_v63 = vadd.f32 %v5302_v57, %v3302_v52  ;;  %v1980_v52 = vshrl.u32 %v5279_v51, 16 }
 0x1fe   : > { %v2548_v5 = vpop.f32.mrf.mxu2  ;;  %v5317_v60 = vpop.f32.mrf.mxu3 }
 0x1ff   : > { %v3374_v19 = vmax.f32 %v3340_v63, 0.0  ;;  %v2632_v48 = vadd.f32 %v2548_v5, %v2185_v59  ;;  %v2431_v63 = vshll.u32 %v5332_v30, 16  ;;  %v2890_v5 = vshrl.u32 %v5289_v54, 16 }
 0x200   : > { %v2104_v7 = vpop.f32.mrf.mxu1 }
 0x201   : > { %v3408_v4 = vpack.c.bf16 %v3374_v19, %v3374_v19  ;;  %v3079_v44 = vadd.f32 %v5230_v27, %v2632_v48  ;;  %v2186_v9 = vadd.f32 %v2104_v7, %v4876_v11  ;;  %v2894_v11 = vshll.u32 %v5337_v13, 16 }
 0x203   : > { %v3222_v24 = vpop.f32.mrf.mxu0  ;;  %3443 = vst.msk [vmem:[%s5313_s13] sm:$0xf] %vm3442_vm5, %v3408_v4  ;;  %v3303_v22 = vadd.f32 %v3219_v46, %v3079_v44  ;;  %4183 = vmatmul.msk.bf16.gmra.mxu1 %vm329_vm2, %v1979_v26  ;;  %4265 = vmatmul.msk.bf16.gmra.mxu2 %vm329_vm2, %v2426_v42  ;;  %v2892_v26 = vor.u32 %v2890_v5, %v2888_v28  ;;  %v2896_v42 = vrot.slane %v2894_v11, 1  ;;  %v1986_v44 = vrot.slane %v1984_v61, 1  ;;  %v5372_v5 = vld [vmem:[%s4634_s25 + $0x68] sm:$0xff] }
 0x204   : > { %v1982_v4 = vor.u32 %v1980_v52, %v1978_v40 }
 0x205   : > { %v3341_v27 = vadd.f32 %v5302_v57, %v3303_v22  ;;  %v2433_v22 = vrot.slane %v2431_v63, 1  ;;  %v5368_v63 = vld [vmem:[%s4634_s25 + $0x198] sm:$0xff] }
 0x206   : > { %4404 = vmatmul.msk.bf16.gmra.mxu0 %vm329_vm2, %v3139_v10  ;;  %v2551_v15 = vpop.f32.mrf.mxu2  ;;  %v5343_v59 = vpop.f32.mrf.mxu3  ;;  %v2429_v10 = vor.u32 %v2427_v3, %v2425_v43  ;;  %v1987_v43 = vsel %vm840_vm3, %v1982_v4, %v1986_v44  ;;  %v2435_v4 = vshrl.u32 %v5332_v30, 16 }
 0x207   : > { %v3375_v38 = vmax.f32 %v3341_v27, 0.0  ;;  %v2633_v46 = vadd.f32 %v2551_v15, %v2186_v9  ;;  %v2897_v27 = vsel %vm840_vm3, %v2892_v26, %v2896_v42  ;;  %v3140_v15 = vrot.slane %v5332_v30, 1 }
 0x208   : > { %v2106_v12 = vpop.f32.mrf.mxu1  ;;  %v1992_v26 = vshll.u32 %v5368_v63, 16  ;;  %v2437_v30 = vor.u32 %v2435_v4, %v2433_v22 }
 0x209   : > { %v3409_v19 = vpack.c.bf16 %v3375_v38, %v3375_v38  ;;  %v3080_v48 = vadd.f32 %v5241_v45, %v2633_v46  ;;  %v2187_v9 = vadd.f32 %v2106_v12, %v4887_v21  ;;  %v2434_v38 = vsel %vm840_vm3, %v2429_v10, %v2433_v22 }
 0x20a   : > { %4389 = vmatmul.msk.bf16.gmra.mxu3 %vm329_vm2, %v2897_v27  ;;  %v3141_v12 = vsel %vm3118_vm4, %v3138_v55, %v3140_v15  ;;  %v2439_v10 = vshll.u32 %v5372_v5, 16 }
 0x20b   : > { %v3224_v7 = vpop.f32.mrf.mxu0  ;;  %3444 = vst.msk [vmem:[%s5313_s13 + $0x4] sm:$0xf] %vm3442_vm5, %v3409_v19  ;;  %v3304_v51 = vadd.f32 %v3222_v24, %v3080_v48  ;;  %v5377_v19 = vld [vmem:[%s4634_s25 + $0x114] sm:$0xff] }
 0x20d   : > { %v3342_v54 = vadd.f32 %v5302_v57, %v3304_v51 }
 0x20e   : > { %v2553_v45 = vpop.f32.mrf.mxu2  ;;  %v5357_v46 = vpop.f32.mrf.mxu3 }
 0x20f   : > { %v3376_v28 = vmax.f32 %v3342_v54, 0.0  ;;  %v2634_v24 = vadd.f32 %v2553_v45, %v2187_v9  ;;  %v2898_v54 = vshrl.u32 %v5337_v13, 16 }
 0x210   : > { %v2109_v40 = vpop.f32.mrf.mxu1 }
 0x211   : > { %v3410_v52 = vpack.c.bf16 %v3376_v28, %v3376_v28  ;;  %v3081_v21 = vadd.f32 %v5261_v31, %v2634_v24  ;;  %v2188_v11 = vadd.f32 %v2109_v40, %v4897_v6  ;;  %v2902_v6 = vshll.u32 %v5377_v19, 16 }
 0x212   : > { %v2900_v24 = vor.u32 %v2898_v54, %v2896_v42  ;;  %v5415_v54 = vld [vmem:[%s4634_s25 + $0x11c] sm:$0xff] }
 0x213   : > { %v3227_v61 = vpop.f32.mrf.mxu0  ;;  %3445 = vst.msk [vmem:[%s5313_s13 + $0x8] sm:$0xf] %vm3442_vm5, %v3410_v52  ;;  %v3305_v3 = vadd.f32 %v3224_v7, %v3081_v21  ;;  %4184 = vmatmul.msk.bf16.gmra.mxu1 %vm329_vm2, %v1987_v43  ;;  %4266 = vmatmul.msk.bf16.gmra.mxu2 %vm329_vm2, %v2434_v38  ;;  %v1988_v7 = vshrl.u32 %v5328_v41, 16  ;;  %v2904_v40 = vrot.slane %v2902_v6, 1  ;;  %v1994_v38 = vrot.slane %v1992_v26, 1  ;;  %v5406_v26 = vld [vmem:[%s4634_s25 + $0x1a0] sm:$0xff] }
 0x214   : > { %v2441_v52 = vrot.slane %v2439_v10, 1 }
 0x215   : > { %v3343_v31 = vadd.f32 %v5302_v57, %v3305_v3  ;;  %v1990_v43 = vor.u32 %v1988_v7, %v1986_v44  ;;  %v2905_v21 = vsel %vm840_vm3, %v2900_v24, %v2904_v40  ;;  %v3142_v3 = vrot.slane %v5372_v5, 1 }
 0x216   : > { %4405 = vmatmul.msk.bf16.gmra.mxu0 %vm329_vm2, %v3141_v12  ;;  %v2556_v14 = vpop.f32.mrf.mxu2  ;;  %v5383_v27 = vpop.f32.mrf.mxu3  ;;  %v2443_v24 = vshrl.u32 %v5372_v5, 16 }
 0x217   : > { %v3377_v55 = vmax.f32 %v3343_v31, 0.0  ;;  %v2635_v48 = vadd.f32 %v2556_v14, %v2188_v11  ;;  %v1995_v22 = vsel %vm840_vm3, %v1990_v43, %v1994_v38  ;;  %v2442_v31 = vsel %vm840_vm3, %v2437_v30, %v2441_v52 }
 0x218   : > { %v2111_v51 = vpop.f32.mrf.mxu1  ;;  %v2906_v30 = vshrl.u32 %v5377_v19, 16  ;;  %v2445_v5 = vor.u32 %v2443_v24, %v2441_v52  ;;  %v5453_v24 = vld [vmem:[%s4634_s25 + $0x124] sm:$0xff] }
 0x219   : > { %v3411_v9 = vpack.c.bf16 %v3377_v55, %v3377_v55  ;;  %v3082_v45 = vadd.f32 %v5272_v29, %v2635_v48  ;;  %v2189_v12 = vadd.f32 %v2111_v51, %v4908_v32  ;;  %v3143_v48 = vsel %vm3118_vm4, %v3140_v15, %v3142_v3  ;;  %v5410_v51 = vld [vmem:[%s4634_s25 + $0x70] sm:$0xff] }
 0x21a   : > { %4390 = vmatmul.msk.bf16.gmra.mxu3 %vm329_vm2, %v2905_v21 }
 0x21b   : > { %v3229_v28 = vpop.f32.mrf.mxu0  ;;  %3446 = vst.msk [vmem:[%s5313_s13 + $0xc] sm:$0xf] %vm3442_vm5, %v3411_v9  ;;  %v3306_v41 = vadd.f32 %v3227_v61, %v3082_v45  ;;  %v1996_v9 = vshrl.u32 %v5368_v63, 16  ;;  %v2000_v45 = vshll.u32 %v5406_v26, 16 }
 0x21d   : > { %v3344_v13 = vadd.f32 %v5302_v57, %v3306_v41  ;;  %v2447_v41 = vshll.u32 %v5410_v51, 16 }
 0x21e   : > { %v2558_v29 = vpop.f32.mrf.mxu2  ;;  %v5397_v11 = vpop.f32.mrf.mxu3 }
 0x21f   : > { %v3378_v42 = vmax.f32 %v3344_v13, 0.0  ;;  %v2636_v61 = vadd.f32 %v2558_v29, %v2189_v12  ;;  %v2908_v29 = vor.u32 %v2906_v30, %v2904_v40  ;;  %v2004_v30 = vshrl.u32 %v5406_v26, 16 }
 0x220   : > { %v2114_v44 = vpop.f32.mrf.mxu1 }
 0x221   : > { %v3412_v14 = vpack.c.bf16 %v3378_v42, %v3378_v42  ;;  %v3083_v32 = vadd.f32 %v5295_v33, %v2636_v61  ;;  %v2190_v33 = vadd.f32 %v2114_v44, %v4918_v8  ;;  %v2910_v8 = vshll.u32 %v5415_v54, 16 }
 0x222   : > { %v1998_v61 = vor.u32 %v1996_v9, %v1994_v38  ;;  %v2002_v44 = vrot.slane %v2000_v45, 1  ;;  %v5448_v9 = vld [vmem:[%s4634_s25 + $0x78] sm:$0xff] }
 0x223   : > { %v3232_v55 = vpop.f32.mrf.mxu0  ;;  %3447 = vst.msk [vmem:[%s5313_s13 + $0x10] sm:$0xf] %vm3442_vm5, %v3412_v14  ;;  %v3307_v7 = vadd.f32 %v3229_v28, %v3083_v32  ;;  %4185 = vmatmul.msk.bf16.gmra.mxu1 %vm329_vm2, %v1995_v22  ;;  %4267 = vmatmul.msk.bf16.gmra.mxu2 %vm329_vm2, %v2442_v31  ;;  %v2912_v42 = vrot.slane %v2910_v8, 1  ;;  %v2449_v22 = vrot.slane %v2447_v41, 1  ;;  %v3144_v32 = vrot.slane %v5410_v51, 1 }
 0x224   : > { %v2003_v52 = vsel %vm840_vm3, %v1998_v61, %v2002_v44 }
 0x225   : > { %v3345_v4 = vadd.f32 %v5302_v57, %v3307_v7  ;;  %v2913_v31 = vsel %vm840_vm3, %v2908_v29, %v2912_v42 }
 0x226   : > { %4406 = vmatmul.msk.bf16.gmra.mxu0 %vm329_vm2, %v3143_v48  ;;  %v2561_v10 = vpop.f32.mrf.mxu2  ;;  %v5421_v43 = vpop.f32.mrf.mxu3  ;;  %v2450_v48 = vsel %vm840_vm3, %v2445_v5, %v2449_v22 }
 0x227   : > { %v3379_v15 = vmax.f32 %v3345_v4, 0.0  ;;  %v2637_v6 = vadd.f32 %v2561_v10, %v2190_v33  ;;  %v3145_v10 = vsel %vm3118_vm4, %v3142_v3, %v3144_v32 }
 0x228   : > { %v2116_v28 = vpop.f32.mrf.mxu1 }
 0x229   : > { %v3413_v21 = vpack.c.bf16 %v3379_v15, %v3379_v15  ;;  %v3084_v13 = vadd.f32 %v5317_v60, %v2637_v6  ;;  %v2191_v14 = vadd.f32 %v2116_v28, %v4929_v49  ;;  %v5444_v6 = vld [vmem:[%s4634_s25 + $0x1a8] sm:$0xff] }
 0x22a   : > { %4391 = vmatmul.msk.bf16.gmra.mxu3 %vm329_vm2, %v2913_v31  ;;  %v2008_v8 = vshll.u32 %v5444_v6, 16 }
 0x22b   : > { %v3234_v12 = vpop.f32.mrf.mxu0  ;;  %3448 = vst.msk [vmem:[%s5313_s13 + $0x14] sm:$0xf] %vm3442_vm5, %v3413_v21  ;;  %v3308_v63 = vadd.f32 %v3232_v55, %v3084_v13  ;;  %v2451_v13 = vshrl.u32 %v5410_v51, 16 }
 0x22d   : > { %v3346_v19 = vadd.f32 %v5302_v57, %v3308_v63  ;;  %v2914_v63 = vshrl.u32 %v5415_v54, 16  ;;  %v2453_v51 = vor.u32 %v2451_v13, %v2449_v22 }
 0x22e   : > { %v2563_v60 = vpop.f32.mrf.mxu2  ;;  %v5435_v7 = vpop.f32.mrf.mxu3 }
 0x22f   : > { %v3380_v40 = vmax.f32 %v3346_v19, 0.0  ;;  %v2638_v55 = vadd.f32 %v2563_v60, %v2191_v14  ;;  %v2916_v19 = vor.u32 %v2914_v63, %v2912_v42  ;;  %v2006_v60 = vor.u32 %v2004_v30, %v2002_v44 }
 0x230   : > { %v2119_v38 = vpop.f32.mrf.mxu1 }
 0x231   : > { %v3414_v4 = vpack.c.bf16 %v3380_v40, %v3380_v40  ;;  %v3085_v49 = vadd.f32 %v5343_v59, %v2638_v55  ;;  %v2192_v59 = vadd.f32 %v2119_v38, %v4939_v36  ;;  %v2918_v36 = vshll.u32 %v5453_v24, 16 }
 0x232   : > { %v2010_v40 = vrot.slane %v2008_v8, 1 }
 0x233   : > { %v3237_v33 = vpop.f32.mrf.mxu0  ;;  %3449 = vst.msk [vmem:[%s5313_s13 + $0x18] sm:$0xf] %vm3442_vm5, %v3414_v4  ;;  %v3309_v15 = vadd.f32 %v3234_v12, %v3085_v49  ;;  %4186 = vmatmul.msk.bf16.gmra.mxu1 %vm329_vm2, %v2003_v52  ;;  %4268 = vmatmul.msk.bf16.gmra.mxu2 %vm329_vm2, %v2450_v48  ;;  %v2455_v12 = vshll.u32 %v5448_v9, 16  ;;  %v2920_v14 = vrot.slane %v2918_v36, 1  ;;  %v3146_v48 = vrot.slane %v5448_v9, 1 }
 0x234   : > { %v2011_v22 = vsel %vm840_vm3, %v2006_v60, %v2010_v40  ;;  %v2012_v36 = vshrl.u32 %v5444_v6, 16 }
 0x235   : > { %v3347_v45 = vadd.f32 %v5302_v57, %v3309_v15  ;;  %v2457_v55 = vrot.slane %v2455_v12, 1  ;;  %v2921_v38 = vsel %vm840_vm3, %v2916_v19, %v2920_v14 }
 0x236   : > { %4407 = vmatmul.msk.bf16.gmra.mxu0 %vm329_vm2, %v3145_v10  ;;  %v2566_v28 = vpop.f32.mrf.mxu2  ;;  %v5459_v29 = vpop.f32.mrf.mxu3  ;;  %v2014_v6 = vor.u32 %v2012_v36, %v2010_v40 }
 0x237   : > { %v3381_v3 = vmax.f32 %v3347_v45, 0.0  ;;  %v2639_v41 = vadd.f32 %v2566_v28, %v2192_v59  ;;  %v2458_v49 = vsel %vm840_vm3, %v2453_v51, %v2457_v55  ;;  %v5482_v28 = vld [vmem:[%s4634_s25 + $0x1b0] sm:$0xff] }
 0x238   : > { %v2121_v21 = vpop.f32.mrf.mxu1 }
 0x239   : > { %v3415_v61 = vpack.c.bf16 %v3381_v3, %v3381_v3  ;;  %v3086_v5 = vadd.f32 %v5357_v46, %v2639_v41  ;;  %v2193_v52 = vadd.f32 %v2121_v21, %v4950_v2  ;;  %v3147_v2 = vsel %vm3118_vm4, %v3144_v32, %v3146_v48  ;;  %v4307_v3 = vld [vmem:[%s4634_s25 + $0x12c] sm:$0x1]  ;;  %v5487_v41 = vld [vmem:[%s4634_s25 + $0x80] sm:$0xff] }
 0x23a   : > { %4392 = vmatmul.msk.bf16.gmra.mxu3 %vm329_vm2, %v2921_v38  ;;  %v5653_v32 = vld [vmem:[#allocation2_spill] sm:$0xff]  ;;  %v2463_v19 = vshll.u32 %v5487_v41, 16 }
 0x23b   : > { %v3239_v31 = vpop.f32.mrf.mxu0  ;;  %3450 = vst.msk [vmem:[%s5313_s13 + $0x1c] sm:$0xf] %vm3442_vm5, %v3415_v61  ;;  %v3310_v26 = vadd.f32 %v3237_v33, %v3086_v5  ;;  %v2016_v61 = vshll.u32 %v5482_v28, 16 }
 0x23d   : > { %v3348_v54 = vadd.f32 %v5302_v57, %v3310_v26  ;;  %v2922_v26 = vshrl.u32 %v5453_v24, 16 }
 0x23e   : > { %v2568_v46 = vpop.f32.mrf.mxu2  ;;  %v5475_v45 = vpop.f32.mrf.mxu3 }
 0x23f   : > { %v3382_v42 = vmax.f32 %v3348_v54, 0.0  ;;  %v2640_v4 = vadd.f32 %v2568_v46, %v2193_v52  ;;  %v2924_v52 = vor.u32 %v2922_v26, %v2920_v14 }
 0x240   : > { %v2124_v44 = vpop.f32.mrf.mxu1 }
 0x241   : > { %v3416_v33 = vpack.c.bf16 %v3382_v42, %v3382_v42  ;;  %v3087_v10 = vadd.f32 %v5383_v27, %v2640_v4  ;;  %v2771_v27 = vunpack.c.l.b16 %v4307_v3  ;;  %v2194_v8 = vadd.f32 %v2124_v44, %v5653_v32 }
 0x242   : > { %v2018_v4 = vrot.slane %v2016_v61, 1 }
 0x243   : > { %v3242_v15 = vpop.f32.mrf.mxu0  ;;  %3451 = vst.msk [vmem:[%s5313_s13 + $0x20] sm:$0xf] %vm3442_vm5, %v3416_v33  ;;  %v3311_v59 = vadd.f32 %v3239_v31, %v3087_v10  ;;  %4187 = vmatmul.msk.bf16.gmra.mxu1 %vm329_vm2, %v2011_v22  ;;  %4269 = vmatmul.msk.bf16.gmra.mxu2 %vm329_vm2, %v2458_v49  ;;  %v2789_v13 = vpack.c.b16 %v2771_v27, %v2771_v27  ;;  %v2459_v31 = vshrl.u32 %v5448_v9, 16  ;;  %v2465_v22 = vrot.slane %v2463_v19, 1  ;;  %v5654_v33 = vld [vmem:[#allocation3_spill] sm:$0xff] }
 0x244   : > { %v2020_v19 = vshrl.u32 %v5482_v28, 16 }
 0x245   : > { %v3349_v30 = vadd.f32 %v5302_v57, %v3311_v59  ;;  %v2926_v60 = vshll.u32 %v2789_v13, 16  ;;  %v2461_v44 = vor.u32 %v2459_v31, %v2457_v55  ;;  %v5519_v13 = vld [vmem:[%s4634_s25 + $0x88] sm:$0xff] }
 0x246   : > { %4408 = vmatmul.msk.bf16.gmra.mxu0 %vm329_vm2, %v3147_v2  ;;  %v2571_v21 = vpop.f32.mrf.mxu2  ;;  %v5499_v49 = vpop.f32.mrf.mxu3  ;;  %v2019_v2 = vsel %vm840_vm3, %v2014_v6, %v2018_v4 }
 0x247   : > { %v3383_v12 = vmax.f32 %v3349_v30, 0.0  ;;  %v2641_v63 = vadd.f32 %v2571_v21, %v2194_v8  ;;  %v2928_v46 = vrot.slane %v2926_v60, 1  ;;  %v2466_v59 = vsel %vm840_vm3, %v2461_v44, %v2465_v22  ;;  %v5516_v21 = vld [vmem:[%s4634_s25 + $0x1b8] sm:$0xff] }
 0x248   : > { %v2126_v5 = vpop.f32.mrf.mxu1  ;;  %v2024_v26 = vshll.u32 %v5516_v21, 16  ;;  %v2467_v60 = vshrl.u32 %v5487_v41, 16 }
 0x249   : > { %v3417_v51 = vpack.c.bf16 %v3383_v12, %v3383_v12  ;;  %v3088_v38 = vadd.f32 %v5397_v11, %v2641_v63  ;;  %v2929_v9 = vsel %vm840_vm3, %v2924_v52, %v2928_v46  ;;  %v2195_v10 = vadd.f32 %v2126_v5, %v5654_v33 }
 0x24a   : > { %v3148_v11 = vrot.slane %v5487_v41, 1  ;;  %4393 = vmatmul.msk.bf16.gmra.mxu3 %vm329_vm2, %v2929_v9  ;;  %v2026_v6 = vrot.slane %v2024_v26, 1  ;;  %v2469_v44 = vor.u32 %v2467_v60, %v2465_v22  ;;  %v4104_v41 = vld [vmem:[%s4634_s25 + $0x1c0] sm:$0x1]  ;;  %v2028_v26 = vshrl.u32 %v5516_v21, 16  ;;  %v5658_v21 = vld [vmem:[#allocation7_spill] sm:$0xff] }
 0x24b   : > { %v3244_v54 = vpop.f32.mrf.mxu0  ;;  %3452 = vst.msk [vmem:[%s5313_s13 + $0x24] sm:$0xf] %vm3442_vm5, %v3417_v51  ;;  %v3312_v42 = vadd.f32 %v3242_v15, %v3088_v38  ;;  %v2471_v51 = vshll.u32 %v5519_v13, 16 }
 0x24c   : > { %v3149_v32 = vsel %vm3118_vm4, %v3146_v48, %v3148_v11 }
 0x24d   : > { %v3350_v24 = vadd.f32 %v5302_v57, %v3312_v42  ;;  %v2022_v42 = vor.u32 %v2020_v19, %v2018_v4  ;;  %v2473_v9 = vrot.slane %v2471_v51, 1  ;;  %v2475_v51 = vshrl.u32 %v5519_v13, 16 }
 0x24e   : > { %v2573_v14 = vpop.f32.mrf.mxu2  ;;  %v5523_v48 = vpop.f32.mrf.mxu3 }
 0x24f   : > { %v3384_v40 = vmax.f32 %v3350_v24, 0.0  ;;  %v2642_v15 = vadd.f32 %v2573_v14, %v2195_v10  ;;  %v5656_v24 = vld [vmem:[#allocation5_spill] sm:$0xff]  ;;  %v3150_v10 = vrot.slane %v5519_v13, 1  ;;  %v2252_v14 = vld [vmem:[%s4634_s25 + $0x90] sm:$0x1]  ;;  %v2474_v4 = vsel %vm840_vm3, %v2469_v44, %v2473_v9 }
 0x250   : > { %v2129_v55 = vpop.f32.mrf.mxu1  ;;  %v2324_v22 = vunpack.c.l.b16 %v2252_v14 }
 0x251   : > { %v3418_v3 = vpack.c.bf16 %v3384_v40, %v3384_v40  ;;  %v3089_v27 = vadd.f32 %v5421_v43, %v2642_v15  ;;  %v5655_v43 = vld [vmem:[#allocation4_spill] sm:$0xff] }
 0x252   : > { %v2196_v63 = vadd.f32 %v2129_v55, %v5655_v43 }
 0x253   : > { %v3247_v30 = vpop.f32.mrf.mxu0  ;;  %3453 = vst.msk [vmem:[%s5313_s13 + $0x28] sm:$0xf] %vm3442_vm5, %v3418_v3  ;;  %v3313_v8 = vadd.f32 %v3244_v54, %v3089_v27  ;;  %4188 = vmatmul.msk.bf16.gmra.mxu1 %vm329_vm2, %v2019_v2  ;;  %4270 = vmatmul.msk.bf16.gmra.mxu2 %vm329_vm2, %v2466_v59  ;;  %v2027_v2 = vsel %vm840_vm3, %v2022_v42, %v2026_v6  ;;  %v1877_v59 = vunpack.c.l.b16 %v4104_v41 }
 0x255   : > { %v3351_v12 = vadd.f32 %v5302_v57, %v3313_v8  ;;  %v3151_v8 = vsel %vm3118_vm4, %v3148_v11, %v3150_v10  ;;  %v1895_v43 = vpack.c.b16 %v1877_v59, %v1877_v59 }
 0x256   : > { %4409 = vmatmul.msk.bf16.gmra.mxu0 %vm329_vm2, %v3149_v32  ;;  %v2576_v36 = vpop.f32.mrf.mxu2  ;;  %v5539_v3 = vpop.f32.mrf.mxu3 }
 0x257   : > { %v3385_v61 = vmax.f32 %v3351_v12, 0.0  ;;  %v2643_v5 = vadd.f32 %v2576_v36, %v2196_v63  ;;  %v2342_v63 = vpack.c.b16 %v2324_v22, %v2324_v22  ;;  %v2032_v60 = vshll.u32 %v1895_v43, 16 }
 0x258   : > { %v2131_v31 = vpop.f32.mrf.mxu1 }
 0x259   : > { %v3419_v38 = vpack.c.bf16 %v3385_v61, %v3385_v61  ;;  %v3090_v54 = vadd.f32 %v5435_v7, %v2643_v5  ;;  %v2197_v33 = vadd.f32 %v2131_v31, %v5656_v24  ;;  %v5657_v61 = vld [vmem:[#allocation6_spill] sm:$0xff]  ;;  %v2034_v24 = vrot.slane %v2032_v60, 1 }
 0x25b   : > { %v3249_v52 = vpop.f32.mrf.mxu0  ;;  %3454 = vst.msk [vmem:[%s5313_s13 + $0x2c] sm:$0xf] %vm3442_vm5, %v3419_v38  ;;  %v3314_v46 = vadd.f32 %v3247_v30, %v3090_v54  ;;  %v2479_v38 = vshll.u32 %v2342_v63, 16 }
 0x25d   : > { %v3352_v28 = vadd.f32 %v5302_v57, %v3314_v46  ;;  %v2481_v41 = vrot.slane %v2479_v38, 1 }
 0x25e   : > { %v2578_v40 = vpop.f32.mrf.mxu2  ;;  %v3038_v42 = vpop.f32.mrf.mxu3 }
 0x25f   : > { %v3386_v15 = vmax.f32 %v3352_v28, 0.0  ;;  %v2644_v7 = vadd.f32 %v2578_v40, %v2197_v33  ;;  %v2030_v28 = vor.u32 %v2028_v26, %v2026_v6  ;;  %v2477_v33 = vor.u32 %v2475_v51, %v2473_v9 }
 0x260   : > { %v2134_v55 = vpop.f32.mrf.mxu1 }
 0x261   : > { %v3420_v27 = vpack.c.bf16 %v3386_v15, %v3386_v15  ;;  %v3091_v30 = vadd.f32 %v5459_v29, %v2644_v7  ;;  %v2198_v5 = vadd.f32 %v2134_v55, %v5657_v61  ;;  %v3152_v15 = vrot.slane %v2342_v63, 1 }
 0x263   : > { %v3252_v32 = vpop.f32.mrf.mxu0  ;;  %3455 = vst.msk [vmem:[%s5313_s13 + $0x30] sm:$0xf] %vm3442_vm5, %v3420_v27  ;;  %v3315_v12 = vadd.f32 %v3249_v52, %v3091_v30  ;;  %4189 = vmatmul.msk.bf16.gmra.mxu1 %vm329_vm2, %v2027_v2  ;;  %4271 = vmatmul.msk.bf16.gmra.mxu2 %vm329_vm2, %v2474_v4  ;;  %v2482_v4 = vsel %vm840_vm3, %v2477_v33, %v2481_v41 }
 0x264   : > { %v3153_v9 = vsel %vm3118_vm4, %v3150_v10, %v3152_v15 }
 0x265   : > { %v3353_v36 = vadd.f32 %v5302_v57, %v3315_v12 }
 0x266   : > { %4410 = vmatmul.msk.bf16.gmra.mxu0 %vm329_vm2, %v3151_v8  ;;  %v2581_v29 = vpop.f32.mrf.mxu2  ;;  %v3040_v30 = vpop.f32.mrf.mxu3 }
 0x267   : > { %v3387_v31 = vmax.f32 %v3353_v36, 0.0  ;;  %v2645_v19 = vadd.f32 %v2581_v29, %v2198_v5 }
 0x268   : > { %v2136_v11 = vpop.f32.mrf.mxu1 }
 0x269   : > { %v3421_v54 = vpack.c.bf16 %v3387_v31, %v3387_v31  ;;  %v3092_v52 = vadd.f32 %v5475_v45, %v2645_v19  ;;  %v2199_v40 = vadd.f32 %v2136_v11, %v5658_v21  ;;  %v2035_v45 = vsel %vm840_vm3, %v2030_v28, %v2034_v24 }
 0x26b   : > { %v3254_v46 = vpop.f32.mrf.mxu0  ;;  %3456 = vst.msk [vmem:[%s5313_s13 + $0x34] sm:$0xf] %vm3442_vm5, %v3421_v54  ;;  %v3316_v44 = vadd.f32 %v3252_v32, %v3092_v52 }
 0x26d   : > { %v3354_v14 = vadd.f32 %v5302_v57, %v3316_v44 }
 0x26e   : > { %v2583_v13 = vpop.f32.mrf.mxu2  ;;  %v3043_v11 = vpop.f32.mrf.mxu3 }
 0x26f   : > { %v3388_v7 = vmax.f32 %v3354_v14, 0.0  ;;  %v2646_v55 = vadd.f32 %v2583_v13, %v2199_v40 }
 0x270   : > { %v2139_v2 = vpop.f32.mrf.mxu1 }
 0x271   : > { %v3422_v59 = vpack.c.bf16 %v3388_v7, %v3388_v7  ;;  %v3093_v6 = vadd.f32 %v5499_v49, %v2646_v55  ;;  %v2200_v8 = vadd.f32 %v2139_v2, %v5036_v39 }
 0x273   : > { %v3257_v22 = vpop.f32.mrf.mxu0  ;;  %3457 = vst.msk [vmem:[%s5313_s13 + $0x38] sm:$0xf] %vm3442_vm5, %v3422_v59  ;;  %v3317_v27 = vadd.f32 %v3254_v46, %v3093_v6  ;;  %4190 = vmatmul.msk.bf16.gmra.mxu1 %vm329_vm2, %v2035_v45  ;;  %4272 = vmatmul.msk.bf16.gmra.mxu2 %vm329_vm2, %v2482_v4 }
 0x275   : > { %v3355_v32 = vadd.f32 %v5302_v57, %v3317_v27 }
 0x276   : > { %4411 = vmatmul.msk.bf16.gmra.mxu0 %vm329_vm2, %v3153_v9  ;;  %v2586_v12 = vpop.f32.mrf.mxu2  ;;  %v3045_v33 = vpop.f32.mrf.mxu3 }
 0x277   : > { %v3389_v49 = vmax.f32 %v3355_v32, 0.0  ;;  %v2647_v43 = vadd.f32 %v2586_v12, %v2200_v8 }
 0x278   : > { %v2141_v63 = vpop.f32.mrf.mxu1 }
 0x279   : > { %v3423_v10 = vpack.c.bf16 %v3389_v49, %v3389_v49  ;;  %v3094_v36 = vadd.f32 %v5523_v48, %v2647_v43  ;;  %v2201_v31 = vadd.f32 %v2141_v63, %v5051_v25 }
 0x27b   : > { %v3259_v61 = vpop.f32.mrf.mxu0  ;;  %3458 = vst.msk [vmem:[%s5313_s13 + $0x3c] sm:$0xf] %vm3442_vm5, %v3423_v10  ;;  %v3318_v5 = vadd.f32 %v3257_v22, %v3094_v36 }
 0x27d   : > { %v3356_v29 = vadd.f32 %v5302_v57, %v3318_v5 }
 0x27e   : > { %v2588_v19 = vpop.f32.mrf.mxu2  ;;  %v3048_v59 = vpop.f32.mrf.mxu3 }
 0x27f   : > { %v3390_v26 = vmax.f32 %v3356_v29, 0.0  ;;  %v2648_v39 = vadd.f32 %v2588_v19, %v2201_v31 }
 0x280   : > { %v2144_v60 = vpop.f32.mrf.mxu1 }
 0x281   : > { %v3424_v51 = vpack.c.bf16 %v3390_v26, %v3390_v26  ;;  %v3095_v38 = vadd.f32 %v5539_v3, %v2648_v39  ;;  %v2202_v46 = vadd.f32 %v2144_v60, %v5065_v0 }
 0x283   : > { %v3262_v54 = vpop.f32.mrf.mxu0  ;;  %3459 = vst.msk [vmem:[%s5313_s13 + $0x40] sm:$0xf] %vm3442_vm5, %v3424_v51  ;;  %v3319_v48 = vadd.f32 %v3259_v61, %v3095_v38 }
 0x285   : > { %v3357_v52 = vadd.f32 %v5302_v57, %v3319_v48 }
 0x286   : > { %v2591_v44 = vpop.f32.mrf.mxu2  ;;  %v3050_v43 = vpop.f32.mrf.mxu3 }
 0x287   : > { %v3391_v28 = vmax.f32 %v3357_v52, 0.0  ;;  %v2649_v25 = vadd.f32 %v2591_v44, %v2202_v46 }
 0x288   : > { %v2146_v24 = vpop.f32.mrf.mxu1 }
 0x289   : > { %v3425_v41 = vpack.c.bf16 %v3391_v28, %v3391_v28  ;;  %v3096_v14 = vadd.f32 %v3038_v42, %v2649_v25  ;;  %v2203_v15 = vadd.f32 %v2146_v24, %v5080_v1 }
 0x28b   : > { %v3264_v21 = vpop.f32.mrf.mxu0  ;;  %3460 = vst.msk [vmem:[%s5313_s13 + $0x44] sm:$0xf] %vm3442_vm5, %v3425_v41  ;;  %v3320_v3 = vadd.f32 %v3262_v54, %v3096_v14 }
 0x28d   : > { %v3358_v40 = vadd.f32 %v5302_v57, %v3320_v3 }
 0x28e   : > { %v2593_v13 = vpop.f32.mrf.mxu2  ;;  %v3053_v51 = vpop.f32.mrf.mxu3 }
 0x28f   : > { %v3392_v7 = vmax.f32 %v3358_v40, 0.0  ;;  %v2650_v55 = vadd.f32 %v2593_v13, %v2203_v15 }
 0x290   : > { %v2149_v0 = vpop.f32.mrf.mxu1 }
 0x291   : > { %v3426_v2 = vpack.c.bf16 %v3392_v7, %v3392_v7  ;;  %v3097_v45 = vadd.f32 %v3040_v30, %v2650_v55  ;;  %v2204_v22 = vadd.f32 %v2149_v0, %v5093_v35 }
 0x293   : > { %v3267_v4 = vpop.f32.mrf.mxu0  ;;  %3461 = vst.msk [vmem:[%s5313_s13 + $0x48] sm:$0xf] %vm3442_vm5, %v3426_v2  ;;  %v3321_v42 = vadd.f32 %v3264_v21, %v3097_v45 }
 0x295   : > { %v3359_v6 = vadd.f32 %v5302_v57, %v3321_v42 }
 0x296   : > { %v2596_v9 = vpop.f32.mrf.mxu2  ;;  %v3055_v14 = vpop.f32.mrf.mxu3 }
 0x297   : > { %v3393_v27 = vmax.f32 %v3359_v6, 0.0  ;;  %v2651_v32 = vadd.f32 %v2596_v9, %v2204_v22 }
 0x298   : > { %v2151_v1 = vpop.f32.mrf.mxu1 }
 0x299   : > { %v3427_v8 = vpack.c.bf16 %v3393_v27, %v3393_v27  ;;  %v3098_v12 = vadd.f32 %v3043_v11, %v2651_v32  ;;  %v2205_v10 = vadd.f32 %v2151_v1, %v5108_v50 }
 0x29b   : > { %v3269_v49 = vpop.f32.mrf.mxu0  ;;  %3462 = vst.msk [vmem:[%s5313_s13 + $0x4c] sm:$0xf] %vm3442_vm5, %v3427_v8  ;;  %v3322_v30 = vadd.f32 %v3267_v4, %v3098_v12 }
 0x29d   : > { %v3360_v63 = vadd.f32 %v5302_v57, %v3322_v30 }
 0x29e   : > { %v2598_v36 = vpop.f32.mrf.mxu2  ;;  %v3058_v42 = vpop.f32.mrf.mxu3 }
 0x29f   : > { %v3394_v61 = vmax.f32 %v3360_v63, 0.0  ;;  %v2652_v5 = vadd.f32 %v2598_v36, %v2205_v10 }
 0x2a0   : > { %v2154_v35 = vpop.f32.mrf.mxu1 }
 0x2a1   : > { %v3428_v29 = vpack.c.bf16 %v3394_v61, %v3394_v61  ;;  %v3099_v31 = vadd.f32 %v3045_v33, %v2652_v5  ;;  %v2206_v39 = vadd.f32 %v2154_v35, %v5121_v17 }
 0x2a3   : > { %v3272_v19 = vpop.f32.mrf.mxu0  ;;  %3463 = vst.msk [vmem:[%s5313_s13 + $0x50] sm:$0xf] %vm3442_vm5, %v3428_v29  ;;  %v3323_v11 = vadd.f32 %v3269_v49, %v3099_v31 }
 0x2a5   : > { %v3361_v26 = vadd.f32 %v5302_v57, %v3323_v11 }
 0x2a6   : > { %v2601_v60 = vpop.f32.mrf.mxu2 }
 0x2a7   : > { %v3395_v38 = vmax.f32 %v3361_v26, 0.0  ;;  %v2653_v54 = vadd.f32 %v2601_v60, %v2206_v39 }
 0x2a8   : > { %v2156_v50 = vpop.f32.mrf.mxu1 }
 0x2a9   : > { %v3429_v48 = vpack.c.bf16 %v3395_v38, %v3395_v38  ;;  %v3100_v52 = vadd.f32 %v3048_v59, %v2653_v54  ;;  %v2207_v25 = vadd.f32 %v2156_v50, %v5136_v23 }
 0x2ab   : > { %v3274_v46 = vpop.f32.mrf.mxu0  ;;  %3464 = vst.msk [vmem:[%s5313_s13 + $0x54] sm:$0xf] %vm3442_vm5, %v3429_v48  ;;  %v3324_v44 = vadd.f32 %v3272_v19, %v3100_v52 }
 0x2ad   : > { %v3362_v28 = vadd.f32 %v5302_v57, %v3324_v44 }
 0x2ae   : > { %v2603_v24 = vpop.f32.mrf.mxu2 }
 0x2af   : > { %v3396_v33 = vmax.f32 %v3362_v28, 0.0  ;;  %v2654_v41 = vadd.f32 %v2603_v24, %v2207_v25 }
 0x2b0   : > { %v2159_v17 = vpop.f32.mrf.mxu1 }
 0x2b1   : > { %v3430_v21 = vpack.c.bf16 %v3396_v33, %v3396_v33  ;;  %v3101_v3 = vadd.f32 %v3050_v43, %v2654_v41  ;;  %v2208_v7 = vadd.f32 %v2159_v17, %v5149_v58  ;;  %v3060_v43 = vpop.f32.mrf.mxu3 }
 0x2b3   : > { %v3277_v40 = vpop.f32.mrf.mxu0  ;;  %3465 = vst.msk [vmem:[%s5313_s13 + $0x58] sm:$0xf] %vm3442_vm5, %v3430_v21  ;;  %v3325_v15 = vadd.f32 %v3274_v46, %v3101_v3  ;;  %v4572_v3 = vld [vmem:[%s5645_s2] ss:$0 sm:$0xff] }
 0x2b5   : > { %v3363_v13 = vadd.f32 %v5302_v57, %v3325_v15 }
 0x2b6   : > { %v2606_v55 = vpop.f32.mrf.mxu2 }
 0x2b7   : > { %v3397_v0 = vmax.f32 %v3363_v13, 0.0  ;;  %v2655_v2 = vadd.f32 %v2606_v55, %v2208_v7 }
 0x2b8   : > { %v2161_v23 = vpop.f32.mrf.mxu1 }
 0x2b9   : > { %v3431_v45 = vpack.c.bf16 %v3397_v0, %v3397_v0  ;;  %v3102_v4 = vadd.f32 %v3053_v51, %v2655_v2  ;;  %v2209_v9 = vadd.f32 %v2161_v23, %v5164_v62  ;;  %v3063_v60 = vpop.f32.mrf.mxu3 }
 0x2bb   : > { %v3279_v59 = vpop.f32.mrf.mxu0  ;;  %3466 = vst.msk [vmem:[%s5313_s13 + $0x5c] sm:$0xf] %vm3442_vm5, %v3431_v45  ;;  %v3326_v6 = vadd.f32 %v3277_v40, %v3102_v4 }
 0x2bd   : > { %v3364_v22 = vadd.f32 %v5302_v57, %v3326_v6 }
 0x2be   : > { %v2608_v27 = vpop.f32.mrf.mxu2 }
 0x2bf   : > { %v3398_v32 = vmax.f32 %v3364_v22, 0.0  ;;  %v2656_v1 = vadd.f32 %v2608_v27, %v2209_v9 }
 0x2c0   : > { %v2164_v58 = vpop.f32.mrf.mxu1 }
 0x2c1   : > { %v3432_v8 = vpack.c.bf16 %v3398_v32, %v3398_v32  ;;  %v3103_v12 = vadd.f32 %v3055_v14, %v2656_v1  ;;  %v2210_v10 = vadd.f32 %v2164_v58, %v5177_v53  ;;  %v3065_v33 = vpop.f32.mrf.mxu3 }
 0x2c3   : > { %v3282_v49 = vpop.f32.mrf.mxu0  ;;  %3467 = vst.msk [vmem:[%s5313_s13 + $0x60] sm:$0xf] %vm3442_vm5, %v3432_v8  ;;  %v3327_v30 = vadd.f32 %v3279_v59, %v3103_v12 }
 0x2c5   : > { %v3365_v63 = vadd.f32 %v5302_v57, %v3327_v30 }
 0x2c6   : > { %v2611_v36 = vpop.f32.mrf.mxu2 }
 0x2c7   : > { %v3399_v61 = vmax.f32 %v3365_v63, 0.0  ;;  %v2657_v5 = vadd.f32 %v2611_v36, %v2210_v10 }
 0x2c8   : > { %v2166_v62 = vpop.f32.mrf.mxu1 }
 0x2c9   : > { %v3433_v35 = vpack.c.bf16 %v3399_v61, %v3399_v61  ;;  %v3104_v29 = vadd.f32 %v3058_v42, %v2657_v5  ;;  %v2211_v26 = vadd.f32 %v2166_v62, %v5192_v47  ;;  %v3068_v2 = vpop.f32.mrf.mxu3 }
 0x2cb   : > { %v3284_v31 = vpop.f32.mrf.mxu0  ;;  %3468 = vst.msk [vmem:[%s5313_s13 + $0x64] sm:$0xf] %vm3442_vm5, %v3433_v35  ;;  %v3328_v19 = vadd.f32 %v3282_v49, %v3104_v29 }
 0x2cd   : > { %v3366_v11 = vadd.f32 %v5302_v57, %v3328_v19 }
 0x2ce   : > { %v2613_v39 = vpop.f32.mrf.mxu2 }
 0x2cf   : > { %v3400_v51 = vmax.f32 %v3366_v11, 0.0  ;;  %v2658_v38 = vadd.f32 %v2613_v39, %v2211_v26 }
 0x2d0   : > { %v2169_v53 = vpop.f32.mrf.mxu1 }
 0x2d1   : > { %v3434_v54 = vpack.c.bf16 %v3400_v51, %v3400_v51  ;;  %v3105_v50 = vadd.f32 %v3060_v43, %v2658_v38  ;;  %v2212_v44 = vadd.f32 %v2169_v53, %v5205_v56  ;;  %v3070_v1 = vpop.f32.mrf.mxu3 }
 0x2d3   : > { %v3287_v48 = vpop.f32.mrf.mxu0  ;;  %3469 = vst.msk [vmem:[%s5313_s13 + $0x68] sm:$0xf] %vm3442_vm5, %v3434_v54  ;;  %v3329_v52 = vadd.f32 %v3284_v31, %v3105_v50 }
 0x2d5   : > { %v3367_v46 = vadd.f32 %v5302_v57, %v3329_v52 }
 0x2d6   : > { %v2616_v28 = vpop.f32.mrf.mxu2 }
 0x2d7   : > { %v3401_v25 = vmax.f32 %v3367_v46, 0.0  ;;  %v2659_v24 = vadd.f32 %v2616_v28, %v2212_v44 }
 0x2d8   : > { %v2171_v47 = vpop.f32.mrf.mxu1 }
 0x2d9   : > { %v3435_v41 = vpack.c.bf16 %v3401_v25, %v3401_v25  ;;  %v3106_v17 = vadd.f32 %v3063_v60, %v2659_v24  ;;  %v2213_v57 = vadd.f32 %v2171_v47, %v5220_v18  ;;  %v3073_v62 = vpop.f32.mrf.mxu3 }
 0x2db   : > { %v3289_v14 = vpop.f32.mrf.mxu0  ;;  %3470 = vst.msk [vmem:[%s5313_s13 + $0x6c] sm:$0xf] %vm3442_vm5, %v3435_v41  ;;  %v3330_v21 = vadd.f32 %v3287_v48, %v3106_v17 }
 0x2dd   : > { %v3368_v40 = vadd.f32 %v4572_v3, %v3330_v21 }
 0x2de   : > { %v2618_v56 = vpop.f32.mrf.mxu2 }
 0x2df   : > { %v3402_v15 = vmax.f32 %v3368_v40, 0.0  ;;  %v2660_v13 = vadd.f32 %v2618_v56, %v2213_v57 }
 0x2e0   : > { %v2174_v7 = vpop.f32.mrf.mxu1 }
 0x2e1   : > { %v3436_v55 = vpack.c.bf16 %v3402_v15, %v3402_v15  ;;  %v3107_v0 = vadd.f32 %v3065_v33, %v2660_v13  ;;  %v2214_v59 = vadd.f32 %v2174_v7, %v5233_v20 }
 0x2e3   : > { %3471 = vst.msk [vmem:[%s5313_s13 + $0x70] sm:$0xf] %vm3442_vm5, %v3436_v55  ;;  %v3331_v23 = vadd.f32 %v3289_v14, %v3107_v0  ;;  %v3292_v45 = vpop.f32.mrf.mxu0 }
 0x2e5   : > { %v3369_v4 = vadd.f32 %v4572_v3, %v3331_v23 }
 0x2e6   : > { %v2621_v42 = vpop.f32.mrf.mxu2 }
 0x2e7   : > { %v3403_v6 = vmax.f32 %v3369_v4, 0.0  ;;  %v2661_v22 = vadd.f32 %v2621_v42, %v2214_v59 }
 0x2e8   : > { %v2176_v18 = vpop.f32.mrf.mxu1 }
 0x2e9   : > { %v3437_v9 = vpack.c.bf16 %v3403_v6, %v3403_v6  ;;  %v3108_v27 = vadd.f32 %v3068_v2, %v2661_v22  ;;  %v2215_v8 = vadd.f32 %v2176_v18, %v5250_v34 }
 0x2eb   : > { %3472 = vst.msk [vmem:[%s5313_s13 + $0x74] sm:$0xf] %vm3442_vm5, %v3437_v9  ;;  %v3332_v32 = vadd.f32 %v3292_v45, %v3108_v27  ;;  %v3294_v12 = vpop.f32.mrf.mxu0 }
 0x2ed   : > { %v3370_v58 = vadd.f32 %v4572_v3, %v3332_v32 }
 0x2ee   : > { %v2623_v49 = vpop.f32.mrf.mxu2 }
 0x2ef   : > { %v3404_v30 = vmax.f32 %v3370_v58, 0.0  ;;  %v2662_v43 = vadd.f32 %v2623_v49, %v2215_v8 }
 0x2f0   : > { %v2179_v20 = vpop.f32.mrf.mxu1 }
 0x2f1   : > { %v3438_v63 = vpack.c.bf16 %v3404_v30, %v3404_v30  ;;  %v3109_v10 = vadd.f32 %v3070_v1, %v2662_v43  ;;  %v2216_v5 = vadd.f32 %v2179_v20, %v5264_v16  ;;  %v3075_v16 = vpop.f32.mrf.mxu3 }
 0x2f3   : > { %3473 = vst.msk [vmem:[%s5313_s13 + $0x78] sm:$0xf] %vm3442_vm5, %v3438_v63  ;;  %v3333_v36 = vadd.f32 %v3294_v12, %v3109_v10  ;;  %v3297_v34 = vpop.f32.mrf.mxu0 }
 0x2f5   : > { %v3371_v61 = vadd.f32 %v4572_v3, %v3333_v36 }
 0x2f6   : > { %v2626_v35 = vpop.f32.mrf.mxu2 }
 0x2f7   : > { %v3405_v29 = vmax.f32 %v3371_v61, 0.0  ;;  %v2663_v31 = vadd.f32 %v2626_v35, %v2216_v5 }
 0x2f8   : > { %v2181_v26 = vpop.f32.mrf.mxu1 }
 0x2f9   : > { %v3439_v19 = vpack.c.bf16 %v3405_v29, %v3405_v29  ;;  %v3110_v11 = vadd.f32 %v3073_v62, %v2663_v31  ;;  %v2217_v51 = vadd.f32 %v2181_v26, %v5281_v37 }
 0x2fb   : > { %3474 = vst.msk [vmem:[%s5313_s13 + $0x7c] sm:$0xf] %vm3442_vm5, %v3439_v19  ;;  %v3334_v39 = vadd.f32 %v3297_v34, %v3110_v11  ;;  %v3299_v52 = vpop.f32.mrf.mxu0 }
 0x2fd   : > { %v3372_v60 = vadd.f32 %v4572_v3, %v3334_v39 }
 0x2fe   : > { %v2628_v38 = vpop.f32.mrf.mxu2 }
 0x2ff   : > { %v3406_v53 = vmax.f32 %v3372_v60, 0.0  ;;  %v2664_v54 = vadd.f32 %v2628_v38, %v2217_v51 }
 0x301   : > { %v3440_v50 = vpack.c.bf16 %v3406_v53, %v3406_v53  ;;  %v3111_v48 = vadd.f32 %v3075_v16, %v2664_v54 }
 0x303   : > { %3475 = vst.msk [vmem:[%s5313_s13 + $0x80] sm:$0xf] %vm3442_vm5, %v3440_v50  ;;  %v3335_v46 = vadd.f32 %v3299_v52, %v3111_v48 }
 0x305   : > { %v3373_v44 = vadd.f32 %v4572_v3, %v3335_v46 }
 0x307   : > { %v3407_v28 = vmax.f32 %v3373_v44, 0.0 }
 0x309   : > { %v3441_v25 = vpack.c.bf16 %v3407_v28, %v3407_v28 }
 0x30b   : > { %3476 = vst.msk [vmem:[%s5313_s13 + $0x84] sm:$0xf] %vm3442_vm5, %v3441_v25 }
 0x30c PF: > { %s13_s12 = sadd.s32 1, %s4579_s12  }
 0x30d   : > { %p10_p4 = scmp.ge.s32.totalorder %s13_s12, 4  }
 0x30f   :  { %12 = sbr.rel (!%p10_p4) target bundleno = 1 (0x1), region = 73 }

// kernel: raft_forward.44
= control target key start
LH: loop header
LB: loop body
LE: loop exit
PB: predicated region body
PF: predicated region fallthrough
CT: control target
= control target key end

     0   :  { %s732_s12 = smov 0   ;;  %s856_s0 = inlined_call_operand.vmem [shape: bf16[2,1,48,2], index: 0, kind: input, shape index: {}]   ;;  %s857_s1 = inlined_call_operand.vmem [shape: bf16[9,2,16], index: 1, kind: input, shape index: {}]   ;;  %s858_s2 = inlined_call_operand.vmem [shape: f32[1,16], index: 2, kind: input, shape index: {}]   ;;  %s859_s3 = inlined_call_operand.vmem [shape: bf16[2,24,16], index: 3, kind: output, shape index: {}]  }
   0x1 LB: > { %s648_s13 = sadd.s32 4294967295, %s710_s12   ;;  %p652_p0 = scmp.ge.s32.totalorder %s710_s12, 1  ;;  %s710_s12 = sphi %s732_s12, %s13_s12  }
   0x2   : > { %p137_p1 = scmp.lt.s32.totalorder %s710_s12, 3 }
   0x4   : > { %p138_p2 = pnand %p652_p0, %p137_p1 }
   0x5   : > { %p161_p3 = scmp.lt.s32.totalorder (!%p138_p2), %s648_s13, 1 }
   0x6   : > { %141 = sbr.rel (%p138_p2) target bundleno = 234 (0xea), region = 32 }
   0xb   : > { %v655_v0 = vld [vmem:[%s857_s1 + $0x1] sm:$0x1]  ;;  %vm212_vm0 = vcmask 1040384   ;;  %v175_v2 = vld [vmem:[%s857_s1] sm:$0x1]  ;;  %s861_s13 = smov (!%p161_p3, %s648_s13), 1 }
   0xc   : > { %v214_v1 = vsel %vm212_vm0, %v655_v0, 0  ;;  %v660_v3 = vld [vmem:[%s857_s1 + $0x2] sm:$0x1]  ;;  %v241_v4 = vsel %vm212_vm0, %v175_v2, 0  ;;  %v663_v6 = vld [vmem:[%s857_s1 + $0x3] sm:$0x1] }
   0xd   : > { %223 = vmatpush.bf16.msra.mxu0 %v214_v1  ;;  %692 = vmatpush.bf16.msra.mxu1 %v214_v1  ;;  %v278_v5 = vsel %vm212_vm0, %v660_v3, 0  ;;  %v322_v7 = vsel %vm212_vm0, %v663_v6, 0  ;;  %v666_v8 = vld [vmem:[%s857_s1 + $0x4] sm:$0x1]  ;;  %v672_v9 = vld [vmem:[%s857_s1 + $0x6] sm:$0x1] }
   0xe   : > { %287 = vmatpush.bf16.msra.mxu2 %v278_v5  ;;  %s693_s26 = smul.u32 24, %s861_s13  ;;  %331 = vmatpush.bf16.msra.mxu3 %v322_v7  ;;  %v376_v10 = vsel %vm212_vm0, %v666_v8, 0  ;;  %v460_v11 = vsel %vm212_vm0, %v672_v9, 0  ;;  %v675_v12 = vld [vmem:[%s857_s1 + $0x7] sm:$0x1]  ;;  %vm267_vm2 = vcmask 1046528  }
   0xf   : > { %v514_v13 = vsel %vm212_vm0, %v675_v12, 0  ;;  %vm189_vm1 = vsmask.f32 7424  ;;  %v669_v40 = vld [vmem:[%s857_s1 + $0x5] sm:$0x1]  ;;  %vm205_vm3 = vcmask 15360  }
  0x10   : > { %s774_s4 = scalar_lea.vmem %s856_s0, %s693_s26  ;;  %v678_v41 = vld [vmem:[%s857_s1 + $0x8] sm:$0x1]  ;;  %vm311_vm4 = vcmask 1044480   ;;  %v410_v47 = vsel %vm212_vm0, %v669_v40, 0  ;;  %vm351_vm5 = vsmask.f32 4352 }
  0x11   : > { %250 = vmatpush.bf16.msrb.mxu1 %v241_v4  ;;  %385 = vmatpush.bf16.msrb.mxu0 %v376_v10  ;;  %v777_v14 = vld [vmem:[%s774_s4] sm:$0xff]   ;;  %v780_v15 = vld [vmem:[%s774_s4 + $0x8] sm:$0xff]   ;;  %v553_v48 = vsel %vm212_vm0, %v678_v41, 0  ;;  %v483_v60 = vld [vmem:[%s774_s4 + $0x10] sm:$0x7]  ;;  %vm449_vm6 = vcmask 1045504  }
  0x12   : > { %469 = vmatpush.bf16.msrb.mxu2 %v460_v11  ;;  %523 = vmatpush.bf16.msrb.mxu3 %v514_v13  ;;  %v176_v16 = vld [vmem:[%s774_s4 + $0xc] sm:$0x1]  ;;  %v784_v17 = vunpack.c.l.b16 %v780_v15  ;;  %v191_v19 = vshrl.u32 %v777_v14, 16  ;;  %v193_v20 = vshll.u32 %v777_v14, 16  ;;  %v261_v21 = vld [vmem:[%s774_s4] sm:$0xe]  ;;  %v791_v23 = vunpack.c.h.b16 %v777_v14 }
  0x13   : > { %v186_v18 = vunpack.c.l.b16 %v176_v16  ;;  %v301_v22 = vld [vmem:[%s774_s4] sm:$0x8]  ;;  %v265_v24 = vunpack.c.l.b16 %v261_v21  ;;  %v302_v25 = vld [vmem:[%s774_s4 + $0xc] sm:$0x7]  ;;  %v349_v30 = vunpack.c.h.b16 %v780_v15  ;;  %v361_v52 = vshrl.u32 %v780_v15, 16  ;;  %s694_s11 = smul.u32 12, %s861_s13 }
  0x14   : > { %v307_v26 = vunpack.c.l.b16 %v301_v22  ;;  %v195_v28 = vrot.slane %v193_v20, 1  ;;  %v308_v29 = vunpack.c.l.b16 %v302_v25  ;;  %v364_v53 = vshll.u32 %v780_v15, 16  ;;  %v433_v58 = vld [vmem:[%s774_s4 + $0x4] sm:$0xc]  ;;  %v691_v59 = vld [vmem:[%s774_s4 + $0x8] sm:$0xff]  }
  0x15   : > { %v188_v27 = vpack.c.b16 %v186_v18, %v784_v17  ;;  %v266_v31 = vpack.c.b16 %v791_v23, %v265_v24  ;;  %v363_v56 = vrot.slane %v361_v52, 3  ;;  %v689_v63 = vunpack.c.l.b16 %v691_v59  ;;  %v436_v4 = vld [vmem:[%s774_s4 + $0x10] sm:$0x3]  ;;  %s170_s16 = scalar_lea.vmem %s859_s3, %s694_s11 }
  0x16   : > { %v309_v32 = vpack.c.b16 %v791_v23, %v307_v26  ;;  %v196_v33 = vor.u32 %v195_v28, %v191_v19  ;;  %v310_v38 = vpack.c.b16 %v308_v29, %v784_v17  ;;  %v366_v57 = vrot.slane %v364_v53, 4 }
  0x17   : > { %v198_v34 = vshll.u32 %v188_v27, 16  ;;  %v202_v35 = vshrl.u32 %v188_v27, 16  ;;  %v269_v36 = vrot.slane %v188_v27, 1  ;;  %v268_v37 = vrot.slane %v266_v31, 1  ;;  %v537_v27 = vld [vmem:[%s774_s4 + $0x4] sm:$0x8] }
  0x18   : > { %v312_v39 = vrot.slane %v309_v32, 3  ;;  %v313_v44 = vrot.slane %v310_v38, 3  ;;  %v353_v50 = vshrl.u32 %v309_v32, 16  ;;  %v356_v51 = vshll.u32 %v309_v32, 16 }
  0x19   : > { %v200_v42 = vrot.slane %v198_v34, 1  ;;  %v270_v43 = vsel %vm267_vm2, %v268_v37, %v269_v36  ;;  %v367_v62 = vor.u32 %v366_v57, %v363_v56  ;;  %v690_v0 = vunpack.c.h.b16 %v691_v59 }
  0x1a   : > { %661 = vmatmul.msk.bf16.vlgmr.msra.gmra.mxu2 %vm205_vm3, %v270_v43  ;;  %v314_v49 = vsel %vm311_vm4, %v312_v39, %v313_v44  ;;  %v355_v54 = vrot.slane %v353_v50, 3  ;;  %v358_v55 = vrot.slane %v356_v51, 4  ;;  %v443_v1 = vunpack.c.l.b16 %v433_v58 }
  0x1b   : > { %v201_v45 = vsel %vm189_vm1, %v196_v33, %v200_v42  ;;  %v204_v46 = vor.u32 %v202_v35, %v200_v42  ;;  %664 = vmatmul.msk.bf16.vlgmr.msra.gmra.mxu3 %vm205_vm3, %v314_v49  ;;  %v487_v2 = vunpack.c.l.b16 %v483_v60  ;;  %v446_v7 = vunpack.c.l.b16 %v436_v4 }
  0x1c   : > { %656 = vmatmul.msk.bf16.vlgmr.msra.gmra.mxu0 %vm205_vm3, %v201_v45  ;;  %v359_v61 = vor.u32 %v358_v55, %v355_v54  ;;  %v447_v5 = vpack.c.b16 %v689_v63, %v443_v1  ;;  %vm489_vm7 = vsmask.f32 5376  ;;  %v541_v28 = vunpack.c.l.b16 %v537_v27 }
  0x1d   : > { %657 = vmatmul.msk.bf16.vlgmr.msra.gmra.mxu1 %vm205_vm3, %v204_v46  ;;  %562 = vmatpush.bf16.msra.mxu0 %v553_v48  ;;  %v488_v6 = vpack.c.b16 %v487_v2, %v690_v0  ;;  %v448_v12 = vpack.c.b16 %v446_v7, %v690_v0  ;;  %v401_v34 = vpack.c.b16 %v784_v17, %v791_v23  ;;  %vm589_vm8 = vcmask 125952  }
  0x1e   : > { %419 = vmatpush.bf16.msra.mxu1 %v410_v47  ;;  %v368_v3 = vsel %vm351_vm5, %v359_v61, %v367_v62  ;;  %v491_v8 = vshrl.u32 %v447_v5, 16  ;;  %v494_v9 = vshll.u32 %v447_v5, 16  ;;  %v450_v20 = vrot.slane %v447_v5, 2 }
  0x1f   : > { %v499_v10 = vshrl.u32 %v488_v6, 16  ;;  %v502_v11 = vshll.u32 %v488_v6, 16  ;;  %v451_v21 = vrot.slane %v448_v12, 2  ;;  %v542_v29 = vpack.c.b16 %v689_v63, %v541_v28 }
  0x20   : > { %v493_v13 = vrot.slane %v491_v8, 2  ;;  %v496_v16 = vrot.slane %v494_v9, 3  ;;  %v544_v32 = vrot.slane %v488_v6, 3  ;;  %v402_v35 = vpack.c.b16 %v349_v30, %v349_v30  ;;  %v703_v6 = vld [vmem:[%s858_s2] ss:$0 sm:$0xff] }
  0x21   : > { %v501_v18 = vrot.slane %v499_v10, 2  ;;  %v504_v19 = vrot.slane %v502_v11, 3  ;;  %v452_v25 = vsel %vm449_vm6, %v450_v20, %v451_v21  ;;  %v543_v31 = vrot.slane %v542_v29, 3 }
  0x22   : > { %v497_v22 = vor.u32 %v496_v16, %v493_v13 }
  0x23   : > { %v505_v24 = vor.u32 %v504_v19, %v501_v18  ;;  %v545_v33 = vsel %vm311_vm4, %v543_v31, %v544_v32 }
  0x25   : > { %v506_v26 = vsel %vm489_vm7, %v497_v22, %v505_v24 }
  0x2a   : > { %662 = vmatmul.msk.bf16.gmra.mxu2 %vm205_vm3, %v269_v36 }
  0x2b   : > { %665 = vmatmul.msk.bf16.gmra.mxu3 %vm205_vm3, %v313_v44 }
  0x2c   : > { %667 = vmatmul.msk.bf16.vlgmr.msrb.gmra.mxu0 %vm205_vm3, %v368_v3 }
  0x2d   : > { %658 = vmatmul.msk.bf16.vlgmr.msrb.gmra.mxu1 %vm205_vm3, %v777_v14  ;;  %v234_v14 = vpack.c.b16 %v784_v17, %v784_v17 }
  0x3a   : > { %673 = vmatmul.msk.bf16.vlgmr.msrb.gmra.mxu2 %vm205_vm3, %v452_v25 }
  0x3b   : > { %676 = vmatmul.msk.bf16.vlgmr.msrb.gmra.mxu3 %vm205_vm3, %v506_v26 }
  0x3c   : > { %668 = vmatmul.msk.bf16.gmra.mxu0 %vm205_vm3, %v367_v62 }
  0x3d   : > { %659 = vmatmul.msk.bf16.gmra.mxu1 %vm205_vm3, %v234_v14 }
  0x4a   : > { %674 = vmatmul.msk.bf16.gmra.mxu2 %vm205_vm3, %v451_v21 }
  0x4b   : > { %677 = vmatmul.msk.bf16.gmra.mxu3 %vm205_vm3, %v505_v24 }
  0x4c   : > { %679 = vmatmul.msk.bf16.vlgmr.msra.gmra.mxu0 %vm205_vm3, %v545_v33 }
  0x4d   : > { %670 = vmatmul.msk.bf16.vlgmr.msra.gmra.mxu1 %vm205_vm3, %v401_v34 }
  0x5c   : > { %680 = vmatmul.msk.bf16.gmra.mxu0 %vm205_vm3, %v544_v32 }
  0x5d   : > { %671 = vmatmul.msk.bf16.gmra.mxu1 %vm205_vm3, %v402_v35 }
  0x99   : > { %v225_v36 = vpop.f32.mrf.mxu0 }
  0x9a   : > { %v230_v37 = vpop.f32.mrf.mxu1 }
  0x9d   : > { %v289_v38 = vpop.f32.mrf.mxu2 }
  0x9e   : > { %v333_v17 = vpop.f32.mrf.mxu3 }
  0xa1   : > { %v227_v23 = vpop.f32.mrf.mxu0 }
  0xa2   : > { %v232_v39 = vpop.f32.mrf.mxu1 }
  0xa5   : > { %v291_v40 = vpop.f32.mrf.mxu2 }
  0xa6   : > { %v335_v41 = vpop.f32.mrf.mxu3 }
  0xa9   : > { %v387_v42 = vpop.f32.mrf.mxu0 }
  0xaa   : > { %v252_v43 = vpop.f32.mrf.mxu1 }
  0xab   : > { %v253_v50 = vadd.f32 %v252_v43, %v225_v36 }
  0xad   : > { %v294_v44 = vpop.f32.mrf.mxu2  ;;  %v298_v53 = vadd.f32 %v289_v38, %v253_v50 }
  0xae   : > { %v338_v45 = vpop.f32.mrf.mxu3 }
  0xaf   : > { %v342_v57 = vadd.f32 %v333_v17, %v298_v53 }
  0xb1   : > { %v389_v46 = vpop.f32.mrf.mxu0  ;;  %v396_v62 = vadd.f32 %v387_v42, %v342_v57 }
  0xb2   : > { %v254_v15 = vpop.f32.mrf.mxu1 }
  0xb3   : > { %v255_v56 = vadd.f32 %v254_v15, %v227_v23 }
  0xb5   : > { %v296_v47 = vpop.f32.mrf.mxu2  ;;  %v299_v60 = vadd.f32 %v291_v40, %v255_v56 }
  0xb6   : > { %v340_v30 = vpop.f32.mrf.mxu3 }
  0xb7   : > { %v343_v3 = vadd.f32 %v335_v41, %v299_v60 }
  0xb9   : > { %v392_v48 = vpop.f32.mrf.mxu0  ;;  %v397_v11 = vadd.f32 %v389_v46, %v343_v3 }
  0xba   : > { %v257_v49 = vpop.f32.mrf.mxu1 }
  0xbb   : > { %v258_v1 = vadd.f32 %v257_v49, %v230_v37 }
  0xbd   : > { %v471_v51 = vpop.f32.mrf.mxu2  ;;  %v300_v8 = vadd.f32 %v294_v44, %v258_v1 }
  0xbe   : > { %v525_v52 = vpop.f32.mrf.mxu3 }
  0xbf   : > { %v344_v20 = vadd.f32 %v338_v45, %v300_v8 }
  0xc1   : > { %v394_v54 = vpop.f32.mrf.mxu0  ;;  %v398_v27 = vadd.f32 %v392_v48, %v344_v20 }
  0xc2   : > { %v259_v55 = vpop.f32.mrf.mxu1 }
  0xc5   : > { %v473_v58 = vpop.f32.mrf.mxu2 }
  0xc6   : > { %v527_v59 = vpop.f32.mrf.mxu3 }
  0xc9   : > { %v564_v61 = vpop.f32.mrf.mxu0 }
  0xca   : > { %v421_v63 = vpop.f32.mrf.mxu1 }
  0xcb   : > { %v430_v0 = vadd.f32 %v421_v63, %v396_v62 }
  0xcd   : > { %v480_v2 = vadd.f32 %v471_v51, %v430_v0  ;;  %v476_v4 = vpop.f32.mrf.mxu2 }
  0xce   : > { %v530_v7 = vpop.f32.mrf.mxu3 }
  0xcf   : > { %v534_v5 = vadd.f32 %v525_v52, %v480_v2 }
  0xd1   : > { %v573_v9 = vadd.f32 %v564_v61, %v534_v5  ;;  %v566_v10 = vpop.f32.mrf.mxu0 }
  0xd2   : > { %v423_v12 = vpop.f32.mrf.mxu1 }
  0xd3   : > { %v580_v13 = vadd.f32 %v703_v6, %v573_v9  ;;  %v431_v16 = vadd.f32 %v423_v12, %v397_v11 }
  0xd5   : > { %v583_v18 = vmax.f32 %v580_v13, 0.0  ;;  %v481_v19 = vadd.f32 %v473_v58, %v431_v16  ;;  %v478_v21 = vpop.f32.mrf.mxu2 }
  0xd6   : > { %v532_v25 = vpop.f32.mrf.mxu3 }
  0xd7   : > { %v586_v22 = vpack.c.bf16 %v583_v18, %v583_v18  ;;  %v535_v24 = vadd.f32 %v527_v59, %v481_v19 }
  0xd9   : > { %590 = vst.msk [vmem:[%s170_s16] sm:$0xf] %vm589_vm8, %v586_v22  ;;  %v574_v14 = vadd.f32 %v566_v10, %v535_v24  ;;  %v569_v26 = vpop.f32.mrf.mxu0 }
  0xda   : > { %v426_v28 = vpop.f32.mrf.mxu1 }
  0xdb   : > { %v581_v29 = vadd.f32 %v703_v6, %v574_v14  ;;  %v432_v31 = vadd.f32 %v426_v28, %v398_v27 }
  0xdd   : > { %v584_v32 = vmax.f32 %v581_v29, 0.0  ;;  %v482_v33 = vadd.f32 %v476_v4, %v432_v31 }
  0xdf   : > { %v587_v34 = vpack.c.bf16 %v584_v32, %v584_v32  ;;  %v536_v35 = vadd.f32 %v530_v7, %v482_v33 }
  0xe1   : > { %591 = vst.msk [vmem:[%s170_s16 + $0x4] sm:$0xf] %vm589_vm8, %v587_v34  ;;  %v575_v36 = vadd.f32 %v569_v26, %v536_v35  ;;  %v571_v37 = vpop.f32.mrf.mxu0 }
  0xe2   : > { %v428_v38 = vpop.f32.mrf.mxu1 }
  0xe3   : > { %v582_v17 = vadd.f32 %v703_v6, %v575_v36 }
  0xe5   : > { %v585_v23 = vmax.f32 %v582_v17, 0.0 }
  0xe7   : > { %v588_v39 = vpack.c.bf16 %v585_v23, %v585_v23 }
  0xe9   : > { %592 = vst.msk [vmem:[%s170_s16 + $0x8] sm:$0xf] %vm589_vm8, %v588_v39 }
  0xea PF: > { %s13_s12 = sadd.s32 1, %s710_s12  }
  0xeb   : > { %p10_p4 = scmp.ge.s32.totalorder %s13_s12, 4  }
  0xed   :  { %12 = sbr.rel (!%p10_p4) target bundleno = 1 (0x1), region = 70 }

// kernel: raft_forward.43
= control target key start
LH: loop header
LB: loop body
LE: loop exit
PB: predicated region body
PF: predicated region fallthrough
CT: control target
= control target key end

     0   :  { %s637_s15 = smov 0   ;;  %s639_s16 = smov 0   ;;  %s692_s0 = inlined_call_operand.vmem [shape: bf16[2,16,32], index: 0, kind: input, shape index: {}]   ;;  %s693_s1 = inlined_call_operand.vmem [shape: bf16[2,32,16], index: 1, kind: input, shape index: {}]   ;;  %s694_s2 = inlined_call_operand.vmem [shape: bf16[16,32], index: 2, kind: input, shape index: {}]   ;;  %s695_s3 = inlined_call_operand.vmem [shape: f32[1,32], index: 3, kind: input, shape index: {}]   ;;  %s696_s4 = inlined_call_operand.vmem [shape: bf16[2,16,32], index: 4, kind: output, shape index: {}]  }
   0x1   :  { %s641_s17 = smov 0  }
   0x2 LB: > { %s33_s18 = sadd.s32 1, %s605_s16  ;;  %p527_p0 = scmp.ge.s32.totalorder %s609_s17, 1  ;;  %s609_s17 = sphi %s641_s17, %s14_s17   ;;  %s605_s16 = sphi %s639_s16, %s698_s16   ;;  %s601_s15 = sphi %s637_s15, %s697_s15  }
   0x3   : > { %p35_p1 = scmp.ge.s32.totalorder %s33_s18, 2  ;;  %p216_p2 = scmp.lt.s32.totalorder %s609_s17, 3 }
   0x5   : > { %s700_s18 = smov (%p35_p1, %s33_s18), 0  ;;  %p217_p3 = pnand %p527_p0, %p216_p2 }
   0x6   : > { %p264_p4 = scmp.lt.s32.totalorder (!%p217_p3), %s601_s15, 1 }
   0x7   : > { %220 = sbr.rel (%p217_p3) target bundleno = 312 (0x138), region = 36 }
   0xc   : > { %s702_s15 = smov (!%p264_p4, %s601_s15), 1  ;;  %vm302_vm0 = vcmask 261120   ;;  %v560_v3 = vld [vmem:[%s694_s2] sm:$0xff]  ;;  %v611_v4 = vmov 0.0   ;;  %vm359_vm1 = vcmask 130048   ;;  %vm396_vm2 = vcmask 257024  }
   0xd   : > { %s555_s19 = sshll.u32 %s702_s15, 4  ;;  %s554_s23 = sshll.u32 %s702_s15, 3  ;;  %370 = vmatpush.bf16.msra.mxu1 %v560_v3  ;;  %303 = vst.msk [vmem:[#allocation2] sm:$0xff] %vm302_vm0, %v611_v4  ;;  %v586_v14 = vld [vmem:[%s695_s3] ss:$0 sm:$0xff] }
   0xe   : > { %s280_s22 = scalar_lea.vmem %s693_s1, %s555_s19  ;;  %s271_s26 = scalar_lea.vmem %s692_s0, %s554_s23  ;;  %304 = vst.msk [vmem:[#allocation2 + $0x8] sm:$0xff] %vm302_vm0, %v611_v4 }
   0xf   : > { %v559_v0 = vld [vmem:[%s280_s22 + $0x8] sm:$0xff]  ;;  %v558_v1 = vld [vmem:[%s280_s22] sm:$0xff]  ;;  %s295_s7 = scalar_lea.vmem %s696_s4, %s554_s23 }
  0x10   : > { %338 = vmatpush.bf16.msra.mxu0 %v559_v0  ;;  %v557_v2 = vld [vmem:[%s271_s26] sm:$0xff] }
  0x14   : > { %339 = vmatpush.bf16.msra.mxu0 %v558_v1  ;;  %v348_v10 = vld [vmem:[#allocation2] sm:$0xff] }
  0x15   : > { %v349_v13 = vld [vmem:[#allocation2 + $0x8] sm:$0xff] }
  0x17   : > { %546 = vmatmul.msk.bf16.vlgmr.msra.gmra.mxu0 %vm302_vm0, %v557_v2 }
  0x94   : > { %v341_v5 = vpop.f32.mrf.mxu0 }
  0x95   : > { %v346_v7 = vmul.f32 0.17677669, %v341_v5 }
  0x9c   : > { %v343_v6 = vpop.f32.mrf.mxu0 }
  0x9d   : > { %v347_v8 = vmul.f32 0.17677669, %v343_v6 }
  0x9f   : > { %v350_v9 = vpack.c.bf16 %v347_v8, %v346_v7 }
  0xa1   : > { %551 = vmatmul.msk.bf16.vlgmr.msra.gmra.mxu1 %vm359_vm1, %v350_v9 }
 0x11e   : > { %v372_v11 = vpop.f32.mrf.mxu1 }
 0x11f   : > { %v377_v12 = vadd.f32 %v372_v11, %v348_v10 }
 0x121   : > { %379 = vst.msk [vmem:[#allocation2] sm:$0xff] %vm302_vm0, %v377_v12 }
 0x126   : > { %v374_v15 = vpop.f32.mrf.mxu1 }
 0x127   : > { %v378_v16 = vadd.f32 %v374_v15, %v349_v13 }
 0x128   : > { %v384_v17 = vld [vmem:[#allocation2] sm:$0xff] }
 0x129   : > { %v390_v18 = vadd.f32 %v586_v14, %v384_v17  ;;  %380 = vst.msk [vmem:[#allocation2 + $0x8] sm:$0xff] %vm302_vm0, %v378_v16 }
 0x12b   : > { %v392_v19 = vmax.f32 %v390_v18, 0.0 }
 0x12d   : > { %v394_v20 = vpack.c.bf16 %v392_v19, %v392_v19 }
 0x12f   : > { %397 = vst.msk [vmem:[%s295_s7] sm:$0xf] %vm396_vm2, %v394_v20 }
 0x130   : > { %v385_v21 = vld [vmem:[#allocation2 + $0x8] sm:$0xff] }
 0x131   : > { %v391_v22 = vadd.f32 %v586_v14, %v385_v21 }
 0x133   : > { %v393_v23 = vmax.f32 %v391_v22, 0.0 }
 0x135   : > { %v395_v24 = vpack.c.bf16 %v393_v23, %v393_v23 }
 0x137   : > { %398 = vst.msk [vmem:[%s295_s7 + $0x4] sm:$0xf] %vm396_vm2, %v395_v24 }
 0x138 PF: > { %s14_s17 = sadd.s32 1, %s609_s17   ;;  %s697_s15 = smov %s605_s16 }
 0x139   : > { %p11_p5 = scmp.ge.s32.totalorder %s14_s17, 4   ;;  %s698_s16 = smov %s700_s18 }
 0x13b   :  { %13 = sbr.rel (!%p11_p5) target bundleno = 2 (0x2), region = 80 }

// kernel: raft_forward.42
= control target key start
LH: loop header
LB: loop body
LE: loop exit
PB: predicated region body
PF: predicated region fallthrough
CT: control target
= control target key end

     0   :  { %s984_s12 = smov 0   ;;  %s1130_s0 = inlined_call_operand.vmem [shape: bf16[2,4,30,24], index: 0, kind: input, shape index: {}]   ;;  %s1131_s1 = inlined_call_operand.vmem [shape: bf16[9,24,64], index: 1, kind: input, shape index: {}]   ;;  %s1132_s2 = inlined_call_operand.vmem [shape: f32[1,64], index: 2, kind: input, shape index: {}]   ;;  %s1133_s3 = inlined_call_operand.vmem [shape: bf16[2,20,64], index: 3, kind: output, shape index: {}]  }
   0x1 LB: > { %s791_s13 = sadd.s32 4294967295, %s962_s12   ;;  %p795_p0 = scmp.ge.s32.totalorder %s962_s12, 1  ;;  %s962_s12 = sphi %s984_s12, %s13_s12  }
   0x2   : > { %p137_p1 = scmp.lt.s32.totalorder %s962_s12, 3 }
   0x4   : > { %p138_p2 = pnand %p795_p0, %p137_p1 }
   0x5   : > { %p161_p3 = scmp.lt.s32.totalorder (!%p138_p2), %s791_s13, 1 }
   0x6   : > { %141 = sbr.rel (%p138_p2) target bundleno = 235 (0xeb), region = 32 }
   0xb   : > { %v804_v0 = vld [vmem:[%s1131_s1 + $0x14] sm:$0xf]  ;;  %v827_v1 = vld [vmem:[%s1131_s1 + $0x20] sm:$0xf]  ;;  %v839_v4 = vld [vmem:[%s1131_s1 + $0x2c] sm:$0xf] }
   0xc   : > { %v199_v2 = vunpack.c.l.b16 %v804_v0  ;;  %v304_v3 = vunpack.c.l.b16 %v827_v1  ;;  %v177_v5 = vld [vmem:[%s1131_s1 + $0x8] sm:$0xf]  ;;  %vm210_vm0 = vcmask 1043456   ;;  %v359_v6 = vunpack.c.l.b16 %v839_v4  ;;  %v855_v8 = vld [vmem:[%s1131_s1 + $0x38] sm:$0xf]  ;;  %s1135_s13 = smov (!%p161_p3, %s791_s13), 1 }
   0xd   : > { %v245_v7 = vunpack.c.l.b16 %v177_v5  ;;  %v414_v11 = vunpack.c.l.b16 %v855_v8  ;;  %v878_v12 = vld [vmem:[%s1131_s1 + $0x50] sm:$0xf]  ;;  %v895_v16 = vld [vmem:[%s1131_s1 + $0x5c] sm:$0xf]  ;;  %v869_v17 = vld [vmem:[%s1131_s1 + $0x44] sm:$0xf] }
   0xe   : > { %v201_v9 = vpack.c.b16 %v199_v2, %v199_v2  ;;  %v306_v10 = vpack.c.b16 %v304_v3, %v304_v3  ;;  %v361_v13 = vpack.c.b16 %v359_v6, %v359_v6  ;;  %v550_v15 = vunpack.c.l.b16 %v878_v12  ;;  %v912_v18 = vld [vmem:[%s1131_s1 + $0x68] sm:$0xf]  ;;  %s921_s5 = sshll.u32 %s1135_s13, 6  ;;  %v925_v23 = vld [vmem:[%s1131_s1 + $0xc] sm:$0xff]  ;;  %v926_v28 = vld [vmem:[%s1131_s1 + $0x18] sm:$0xff]  ;;  %s940_s4 = smul.u32 12, %s1135_s13 }
   0xf   : > { %v247_v14 = vpack.c.b16 %v245_v7, %v245_v7  ;;  %v416_v21 = vpack.c.b16 %v414_v11, %v414_v11  ;;  %v624_v22 = vunpack.c.l.b16 %v895_v16  ;;  %s1031_s10 = scalar_lea.vmem %s1130_s0, %s921_s5  ;;  %v475_v26 = vunpack.c.l.b16 %v869_v17  ;;  %v928_v34 = vld [vmem:[%s1131_s1 + $0x24] sm:$0xff]  ;;  %v930_v50 = vld [vmem:[%s1131_s1 + $0x30] sm:$0xff]  ;;  %v931_v58 = vld [vmem:[%s1131_s1 + $0x3c] sm:$0xff] }
  0x10   : > { %v212_v19 = vsel %vm210_vm0, %v201_v9, 0  ;;  %v315_v20 = vsel %vm210_vm0, %v306_v10, 0  ;;  %v370_v24 = vsel %vm210_vm0, %v361_v13, 0  ;;  %v552_v25 = vpack.c.b16 %v550_v15, %v550_v15  ;;  %v801_v27 = vld [vmem:[%s1031_s10 + $0x18] sm:$0x3]  ;;  %v1038_v29 = vld [vmem:[%s1031_s10] sm:$0xff]  ;;  %s170_s7 = scalar_lea.vmem %s1133_s3, %s940_s4 }
  0x11   : > { %220 = vmatpush.bf16.msra.mxu0 %v212_v19  ;;  %938 = vmatpush.bf16.msra.mxu1 %v212_v19  ;;  %v626_v30 = vpack.c.b16 %v624_v22, %v624_v22  ;;  %v675_v31 = vunpack.c.l.b16 %v912_v18  ;;  %v191_v32 = vunpack.c.l.b16 %v801_v27  ;;  %v256_v33 = vsel %vm210_vm0, %v247_v14, 0  ;;  %v276_v35 = vld [vmem:[%s1031_s10 + $0x8] sm:$0x7]  ;;  %v924_v37 = vld [vmem:[%s1031_s10 + $0x10] sm:$0xff]  ;;  %v1051_v46 = vld [vmem:[%s1031_s10 + $0x20] sm:$0xff] }
  0x12   : > { %323 = vmatpush.bf16.msra.mxu2 %v315_v20  ;;  %378 = vmatpush.bf16.msra.mxu3 %v370_v24  ;;  %v425_v36 = vsel %vm210_vm0, %v416_v21, 0  ;;  %v282_v38 = vunpack.c.l.b16 %v276_v35  ;;  %v285_v39 = vshrl.u32 %v1038_v29, 16  ;;  %v287_v40 = vshll.u32 %v1038_v29, 16  ;;  %v923_v47 = vld [vmem:[%s1131_s1] sm:$0xff]  ;;  %v936_v55 = vld [vmem:[%s1131_s1 + $0x54] sm:$0xff]  ;;  %v933_v57 = vld [vmem:[%s1131_s1 + $0x48] sm:$0xff] }
  0x13   : > { %v477_v41 = vpack.c.b16 %v475_v26, %v475_v26  ;;  %vm203_vm1 = vcmask 195584   ;;  %v193_v42 = vpack.c.b16 %v191_v32, %v191_v32  ;;  %v561_v43 = vsel %vm210_vm0, %v552_v25, 0  ;;  %v937_v60 = vld [vmem:[%s1131_s1 + $0x60] sm:$0xff]  ;;  %v836_v61 = vld [vmem:[%s1031_s10 + $0x28] sm:$0x3]  ;;  %v929_v62 = vld [vmem:[%s1031_s10 + $0x30] sm:$0xff] }
  0x14   : > { %v283_v44 = vpack.c.b16 %v282_v38, %v282_v38  ;;  %v289_v45 = vrot.slane %v287_v40, 1  ;;  %v635_v48 = vsel %vm210_vm0, %v626_v30, 0  ;;  %v677_v49 = vpack.c.b16 %v675_v31, %v675_v31  ;;  %v509_v0 = vld [vmem:[%s1031_s10] sm:$0xc]  ;;  %v1084_v1 = vld [vmem:[%s1031_s10 + $0x4] sm:$0xf] }
  0x15   : > { %221 = vmatpush.bf16.msra.mxu0 %v925_v23  ;;  %939 = vmatpush.bf16.msra.mxu1 %v925_v23  ;;  %v486_v53 = vsel %vm210_vm0, %v477_v41, 0  ;;  %vm284_vm2 = vsmask.f32 7424  ;;  %v351_v63 = vunpack.c.l.b16 %v836_v61  ;;  %v898_v2 = vld [vmem:[%s1031_s10 + $0x10] sm:$0xc]  ;;  %v521_v8 = vunpack.c.l.b16 %v509_v0 }
  0x16   : > { %324 = vmatpush.bf16.msra.mxu2 %v926_v28  ;;  %379 = vmatpush.bf16.msra.mxu3 %v928_v34  ;;  %v290_v51 = vor.u32 %v289_v45, %v285_v39  ;;  %v292_v52 = vshll.u32 %v283_v44, 16  ;;  %v686_v54 = vsel %vm210_vm0, %v677_v49, 0  ;;  %v934_v3 = vld [vmem:[%s1031_s10 + $0x10] sm:$0xf0]  ;;  %v902_v4 = vld [vmem:[%s1031_s10 + $0x18] sm:$0xf]  ;;  %v522_v9 = vunpack.c.l.b16 %v1084_v1 }
  0x17   : > { %v935_v5 = vld [vmem:[%s1031_s10 + $0x18] sm:$0x10]  ;;  %v296_v6 = vshrl.u32 %v283_v44, 16  ;;  %v353_v7 = vpack.c.b16 %v351_v63, %v351_v63  ;;  %v881_v10 = vld [vmem:[%s1031_s10 + $0x8] sm:$0xf]  ;;  %v899_v12 = vor.u32 %v934_v3, %v898_v2  ;;  %vm666_vm4 = vcmask 1044480  }
  0x18   : > { %813 = vmatmul.msk.bf16.vlgmr.msra.gmra.mxu0 %vm203_vm1, %v924_v37  ;;  %814 = vmatmul.msk.bf16.vlgmr.msra.gmra.mxu1 %vm203_vm1, %v193_v42  ;;  %v294_v56 = vrot.slane %v292_v52, 1  ;;  %v932_v11 = vld [vmem:[%s1031_s10 + $0x8] sm:$0x10]  ;;  %v903_v13 = vor.u32 %v935_v5, %v902_v4  ;;  %v525_v15 = vpack.c.b16 %v522_v9, %v521_v8  ;;  %v174_v21 = vld [vmem:[%s1031_s10 + $0x8] sm:$0x3]  ;;  %v456_v52 = vshrl.u32 %v1051_v46, 16 }
  0x19   : > { %264 = vmatpush.bf16.msrb.mxu1 %v256_v33  ;;  %433 = vmatpush.bf16.msrb.mxu0 %v425_v36  ;;  %v882_v16 = vor.u32 %v932_v11, %v881_v10  ;;  %v603_v17 = vshrl.u32 %v899_v12, 16  ;;  %v606_v18 = vshll.u32 %v899_v12, 16  ;;  %v852_v22 = vld [vmem:[%s1031_s10 + $0x38] sm:$0x3]  ;;  %v237_v31 = vunpack.c.l.b16 %v174_v21  ;;  %v866_v37 = vld [vmem:[%s1031_s10 + $0x28] sm:$0x7] }
  0x1a   : > { %569 = vmatpush.bf16.msrb.mxu2 %v561_v43  ;;  %643 = vmatpush.bf16.msrb.mxu3 %v635_v48  ;;  %v295_v59 = vsel %vm284_vm2, %v290_v51, %v294_v56  ;;  %v298_v14 = vor.u32 %v296_v6, %v294_v56  ;;  %v611_v19 = vshrl.u32 %v903_v13, 16  ;;  %v614_v20 = vshll.u32 %v903_v13, 16  ;;  %v658_v45 = vld [vmem:[%s1031_s10] sm:$0x8] }
  0x1b   : > { %848 = vmatmul.msk.bf16.vlgmr.msra.gmra.mxu3 %vm203_vm1, %v1051_v46  ;;  %832 = vmatmul.msk.bf16.vlgmr.msra.gmra.mxu2 %vm203_vm1, %v295_v59  ;;  %v529_v23 = vshrl.u32 %v525_v15, 16  ;;  %v532_v24 = vshll.u32 %v525_v15, 16  ;;  %v537_v25 = vshrl.u32 %v882_v16, 16  ;;  %v540_v26 = vshll.u32 %v882_v16, 16 }
  0x1c   : > { %v605_v27 = vrot.slane %v603_v17, 2  ;;  %v608_v28 = vrot.slane %v606_v18, 3  ;;  %v616_v30 = vrot.slane %v614_v20, 3  ;;  %v406_v32 = vunpack.c.l.b16 %v852_v22 }
  0x1d   : > { %265 = vmatpush.bf16.msrb.mxu1 %v923_v47  ;;  %434 = vmatpush.bf16.msrb.mxu0 %v930_v50  ;;  %v531_v33 = vrot.slane %v529_v23, 2  ;;  %v534_v34 = vrot.slane %v532_v24, 3  ;;  %v539_v35 = vrot.slane %v537_v25, 2  ;;  %v542_v36 = vrot.slane %v540_v26, 3 }
  0x1e   : > { %644 = vmatpush.bf16.msrb.mxu3 %v936_v55  ;;  %570 = vmatpush.bf16.msrb.mxu2 %v933_v57  ;;  %v609_v38 = vor.u32 %v608_v28, %v605_v27  ;;  %v239_v40 = vpack.c.b16 %v237_v31, %v237_v31  ;;  %v408_v41 = vpack.c.b16 %v406_v32, %v406_v32  ;;  %v454_v42 = vunpack.c.l.b16 %v866_v37 }
  0x1f   : > { %vm527_vm3 = vsmask.f32 5376  ;;  %v535_v43 = vor.u32 %v534_v34, %v531_v33  ;;  %v543_v44 = vor.u32 %v542_v36, %v539_v35  ;;  %v458_v48 = vshll.u32 %v1051_v46, 16  ;;  %v949_v36 = vld [vmem:[%s1132_s2] ss:$0 sm:$0xff] }
  0x20   : > { %v455_v49 = vpack.c.b16 %v454_v42, %v454_v42  ;;  %v664_v50 = vunpack.c.l.b16 %v658_v45  ;;  %v668_v59 = vrot.slane %v882_v16, 3  ;;  %vm731_vm6 = vcmask 519168  }
  0x21   : > { %494 = vmatpush.bf16.msra.mxu1 %v486_v53  ;;  %694 = vmatpush.bf16.msra.mxu0 %v686_v54  ;;  %v544_v51 = vsel %vm527_vm3, %v535_v43, %v543_v44  ;;  %v460_v53 = vrot.slane %v458_v48, 1  ;;  %vm734_vm7 = vcmask 517120  }
  0x22   : > { %v463_v54 = vshll.u32 %v455_v49, 16  ;;  %v665_v55 = vpack.c.b16 %v522_v9, %v664_v50  ;;  %v467_v46 = vshrl.u32 %v455_v49, 16 }
  0x23   : > { %v461_v56 = vor.u32 %v460_v53, %v456_v52 }
  0x24   : > { %v465_v57 = vrot.slane %v463_v54, 1 }
  0x25   : > { %495 = vmatpush.bf16.msra.mxu1 %v931_v58  ;;  %695 = vmatpush.bf16.msra.mxu0 %v937_v60  ;;  %v667_v58 = vrot.slane %v665_v55, 3 }
  0x26   : > { %v466_v60 = vsel %vm284_vm2, %v461_v56, %v465_v57 }
  0x27   : > { %v669_v61 = vsel %vm666_vm4, %v667_v58, %v668_v59 }
  0x28   : > { %823 = vmatmul.msk.bf16.vlgmr.msrb.gmra.mxu1 %vm203_vm1, %v1038_v29  ;;  %864 = vmatmul.msk.bf16.vlgmr.msrb.gmra.mxu0 %vm203_vm1, %v929_v62  ;;  %v613_v29 = vrot.slane %v611_v19, 2  ;;  %v469_v62 = vor.u32 %v467_v46, %v465_v57 }
  0x2a   : > { %v617_v39 = vor.u32 %v616_v30, %v613_v29 }
  0x2b   : > { %849 = vmatmul.msk.bf16.gmra.mxu3 %vm203_vm1, %v353_v7  ;;  %833 = vmatmul.msk.bf16.gmra.mxu2 %vm203_vm1, %v298_v14 }
  0x2c   : > { %v618_v47 = vsel %vm527_vm3, %v609_v38, %v617_v39 }
  0x38   : > { %824 = vmatmul.msk.bf16.gmra.mxu1 %vm203_vm1, %v239_v40  ;;  %865 = vmatmul.msk.bf16.gmra.mxu0 %vm203_vm1, %v408_v41  ;;  %v716_v40 = vlaneseq }
  0x3a   : > { %v717_v48 = vand.u32 127, %v716_v40 }
  0x3b   : > { %908 = vmatmul.msk.bf16.vlgmr.msrb.gmra.mxu3 %vm203_vm1, %v618_v47  ;;  %887 = vmatmul.msk.bf16.vlgmr.msrb.gmra.mxu2 %vm203_vm1, %v544_v51 }
  0x3c   : > { %vm718_vm5 = vcmp.lt.s32.totalorder %v717_v48, 32 }
  0x48   : > { %874 = vmatmul.msk.bf16.vlgmr.msra.gmra.mxu1 %vm203_vm1, %v466_v60  ;;  %917 = vmatmul.msk.bf16.vlgmr.msra.gmra.mxu0 %vm203_vm1, %v669_v61 }
  0x4b   : > { %909 = vmatmul.msk.bf16.gmra.mxu3 %vm203_vm1, %v617_v39  ;;  %888 = vmatmul.msk.bf16.gmra.mxu2 %vm203_vm1, %v543_v44 }
  0x58   : > { %875 = vmatmul.msk.bf16.gmra.mxu1 %vm203_vm1, %v469_v62  ;;  %918 = vmatmul.msk.bf16.gmra.mxu0 %vm203_vm1, %v668_v59 }
  0x95   : > { %v223_v63 = vpop.f32.mrf.mxu0  ;;  %v228_v0 = vpop.f32.mrf.mxu1 }
  0x9d   : > { %v225_v1 = vpop.f32.mrf.mxu0  ;;  %v230_v2 = vpop.f32.mrf.mxu1 }
  0x9e   : > { %v381_v3 = vpop.f32.mrf.mxu3  ;;  %v326_v4 = vpop.f32.mrf.mxu2 }
  0xa5   : > { %v267_v5 = vpop.f32.mrf.mxu1  ;;  %v436_v6 = vpop.f32.mrf.mxu0 }
  0xa6   : > { %v383_v7 = vpop.f32.mrf.mxu3  ;;  %v328_v8 = vpop.f32.mrf.mxu2  ;;  %v268_v16 = vadd.f32 %v267_v5, %v223_v63 }
  0xa8   : > { %v335_v18 = vadd.f32 %v326_v4, %v268_v16 }
  0xaa   : > { %v390_v22 = vadd.f32 %v381_v3, %v335_v18 }
  0xac   : > { %v445_v25 = vadd.f32 %v436_v6, %v390_v22 }
  0xad   : > { %v269_v9 = vpop.f32.mrf.mxu1  ;;  %v438_v10 = vpop.f32.mrf.mxu0 }
  0xae   : > { %v386_v11 = vpop.f32.mrf.mxu3  ;;  %v331_v12 = vpop.f32.mrf.mxu2  ;;  %v270_v23 = vadd.f32 %v269_v9, %v225_v1 }
  0xb0   : > { %v336_v26 = vadd.f32 %v328_v8, %v270_v23 }
  0xb2   : > { %v391_v31 = vadd.f32 %v383_v7, %v336_v26 }
  0xb4   : > { %v446_v37 = vadd.f32 %v438_v10, %v391_v31 }
  0xb5   : > { %v272_v13 = vpop.f32.mrf.mxu1  ;;  %v441_v14 = vpop.f32.mrf.mxu0 }
  0xb6   : > { %v388_v15 = vpop.f32.mrf.mxu3  ;;  %v333_v17 = vpop.f32.mrf.mxu2  ;;  %v273_v32 = vadd.f32 %v272_v13, %v228_v0 }
  0xb8   : > { %v337_v38 = vadd.f32 %v331_v12, %v273_v32 }
  0xba   : > { %v392_v47 = vadd.f32 %v386_v11, %v337_v38 }
  0xbc   : > { %v447_v52 = vadd.f32 %v441_v14, %v392_v47 }
  0xbd   : > { %v274_v19 = vpop.f32.mrf.mxu1  ;;  %v443_v20 = vpop.f32.mrf.mxu0 }
  0xbe   : > { %v646_v21 = vpop.f32.mrf.mxu3  ;;  %v572_v24 = vpop.f32.mrf.mxu2 }
  0xc5   : > { %v497_v27 = vpop.f32.mrf.mxu1  ;;  %v697_v28 = vpop.f32.mrf.mxu0 }
  0xc6   : > { %v506_v29 = vadd.f32 %v497_v27, %v445_v25  ;;  %v648_v30 = vpop.f32.mrf.mxu3  ;;  %v574_v34 = vpop.f32.mrf.mxu2 }
  0xc8   : > { %v581_v33 = vadd.f32 %v572_v24, %v506_v29 }
  0xca   : > { %v655_v35 = vadd.f32 %v646_v21, %v581_v33 }
  0xcc   : > { %v706_v39 = vadd.f32 %v697_v28, %v655_v35 }
  0xcd   : > { %v499_v41 = vpop.f32.mrf.mxu1  ;;  %v699_v42 = vpop.f32.mrf.mxu0 }
  0xce   : > { %v713_v43 = vadd.f32 %v949_v36, %v706_v39  ;;  %v507_v44 = vadd.f32 %v499_v41, %v446_v37  ;;  %v651_v45 = vpop.f32.mrf.mxu3  ;;  %v577_v50 = vpop.f32.mrf.mxu2 }
  0xd0   : > { %950 = vtanh.f32 %v713_v43  ;;  %v582_v49 = vadd.f32 %v574_v34, %v507_v44  ;;  %v722_v54 = vmax.f32 %v713_v43, 0.0 }
  0xd2   : > { %v656_v51 = vadd.f32 %v648_v30, %v582_v49 }
  0xd4   : > { %v707_v53 = vadd.f32 %v699_v42, %v656_v51 }
  0xd5   : > { %v502_v55 = vpop.f32.mrf.mxu1  ;;  %v702_v56 = vpop.f32.mrf.mxu0 }
  0xd6   : > { %v951_v57 = vpop.eup %950  ;;  %v714_v58 = vadd.f32 %v949_v36, %v707_v53  ;;  %v508_v59 = vadd.f32 %v502_v55, %v447_v52  ;;  %v653_v60 = vpop.f32.mrf.mxu3 }
  0xd7   : > { %v725_v61 = vsel %vm718_vm5, %v951_v57, %v722_v54  ;;  %v579_v63 = vpop.f32.mrf.mxu2 }
  0xd8   : > { %v728_v46 = vpack.c.bf16 %v725_v61, %v725_v61  ;;  %952 = vtanh.f32 %v714_v58  ;;  %v583_v62 = vadd.f32 %v577_v50, %v508_v59  ;;  %v723_v2 = vmax.f32 %v714_v58, 0.0 }
  0xda   : > { %732 = vst.msk [vmem:[%s170_s7] sm:$0xf] %vm731_vm6, %v728_v46  ;;  %v657_v0 = vadd.f32 %v651_v45, %v583_v62 }
  0xdc   : > { %v708_v1 = vadd.f32 %v702_v56, %v657_v0 }
  0xdd   : > { %v504_v3 = vpop.f32.mrf.mxu1  ;;  %v704_v4 = vpop.f32.mrf.mxu0 }
  0xde   : > { %v953_v5 = vpop.eup %952  ;;  %v715_v6 = vadd.f32 %v949_v36, %v708_v1 }
  0xdf   : > { %v726_v7 = vsel %vm718_vm5, %v953_v5, %v723_v2 }
  0xe0   : > { %v729_v8 = vpack.c.bf16 %v726_v7, %v726_v7  ;;  %954 = vtanh.f32 %v715_v6  ;;  %v724_v9 = vmax.f32 %v715_v6, 0.0 }
  0xe2   : > { %733 = vst.msk [vmem:[%s170_s7 + $0x4] sm:$0xf] %vm731_vm6, %v729_v8 }
  0xe6   : > { %v955_v10 = vpop.eup %954 }
  0xe7   : > { %v727_v11 = vsel %vm718_vm5, %v955_v10, %v724_v9 }
  0xe8   : > { %v730_v12 = vpack.c.bf16 %v727_v11, %v727_v11 }
  0xea   : > { %735 = vst.msk [vmem:[%s170_s7 + $0x8] sm:$0x3] %vm734_vm7, %v730_v12 }
  0xeb PF: > { %s13_s12 = sadd.s32 1, %s962_s12  }
  0xec   : > { %p10_p4 = scmp.ge.s32.totalorder %s13_s12, 4  }
  0xee   :  { %12 = sbr.rel (!%p10_p4) target bundleno = 1 (0x1), region = 73 }

// kernel: raft_forward.45
= control target key start
LH: loop header
LB: loop body
LE: loop exit
PB: predicated region body
PF: predicated region fallthrough
CT: control target
= control target key end

     0   :  { %s1088_s12 = smov 0   ;;  %s1269_s0 = inlined_call_operand.vmem [shape: bf16[2,1,48,48], index: 0, kind: input, shape index: {}]   ;;  %s1270_s1 = inlined_call_operand.vmem [shape: bf16[9,48,30], index: 1, kind: input, shape index: {}]   ;;  %s1271_s2 = inlined_call_operand.vmem [shape: f32[1,30], index: 2, kind: input, shape index: {}]   ;;  %s1272_s3 = inlined_call_operand.vmem [shape: bf16[2,24,30], index: 3, kind: output, shape index: {}]  }
   0x1 LB: > { %s827_s13 = sadd.s32 4294967295, %s1066_s12   ;;  %p831_p0 = scmp.ge.s32.totalorder %s1066_s12, 1  ;;  %s1066_s12 = sphi %s1088_s12, %s13_s12  }
   0x2   : > { %p137_p1 = scmp.lt.s32.totalorder %s1066_s12, 3 }
   0x4   : > { %p138_p2 = pnand %p831_p0, %p137_p1 }
   0x5   : > { %p161_p3 = scmp.lt.s32.totalorder (!%p138_p2), %s827_s13, 1 }
   0x6   : > { %141 = sbr.rel (%p138_p2) target bundleno = 232 (0xe8), region = 32 }
   0xb   : > { %v1015_v0 = vld [vmem:[%s1270_s1 + $0x28] sm:$0xff]  ;;  %v1018_v1 = vld [vmem:[%s1270_s1 + $0x40] sm:$0xff]  ;;  %v1021_v2 = vld [vmem:[%s1270_s1 + $0x58] sm:$0xff]  ;;  %s1274_s13 = smov (!%p161_p3, %s827_s13), 1  ;;  %vm311_vm0 = vcmask 1046528   ;;  %vm233_vm2 = vcmask 392192  }
   0xc   : > { %245 = vmatpush.bf16.msra.mxu0 %v1015_v0  ;;  %1046 = vmatpush.bf16.msra.mxu1 %v1015_v0  ;;  %v1014_v3 = vld [vmem:[%s1270_s1 + $0x20] sm:$0xff]  ;;  %v1017_v4 = vld [vmem:[%s1270_s1 + $0x38] sm:$0xff]  ;;  %v1020_v5 = vld [vmem:[%s1270_s1 + $0x50] sm:$0xff]  ;;  %s1049_s26 = smul.u32 24, %s1274_s13  ;;  %vm199_vm1 = vsmask.f32 7424 }
   0xd   : > { %344 = vmatpush.bf16.msra.mxu2 %v1018_v1  ;;  %408 = vmatpush.bf16.msra.mxu3 %v1021_v2  ;;  %v1013_v6 = vld [vmem:[%s1270_s1 + $0x18] sm:$0xff]  ;;  %v1012_v7 = vld [vmem:[%s1270_s1 + $0x10] sm:$0xff]  ;;  %v1019_v9 = vld [vmem:[%s1270_s1 + $0x48] sm:$0xff]  ;;  %vm375_vm3 = vcmask 1044480   ;;  %vm435_vm4 = vsmask.f32 4352 }
   0xe   : > { %s1126_s6 = scalar_lea.vmem %s1269_s0, %s1049_s26  ;;  %v1016_v8 = vld [vmem:[%s1270_s1 + $0x30] sm:$0xff]  ;;  %v1030_v14 = vld [vmem:[%s1270_s1 + $0xa0] sm:$0xff]  ;;  %v1033_v25 = vld [vmem:[%s1270_s1 + $0xb8] sm:$0xff]  ;;  %vm573_vm5 = vcmask 1045504   ;;  %vm633_vm6 = vsmask.f32 5376 }
   0xf   : > { %v1024_v10 = vld [vmem:[%s1270_s1 + $0x70] sm:$0xff]  ;;  %v1138_v11 = vld [vmem:[%s1126_s6] sm:$0xff]   ;;  %v1141_v12 = vld [vmem:[%s1126_s6 + $0x8] sm:$0xff]   ;;  %s1050_s24 = smul.u32 12, %s1274_s13  ;;  %vm768_vm7 = vcmask 240640  }
  0x10   : > { %246 = vmatpush.bf16.msra.mxu0 %v1014_v3  ;;  %1047 = vmatpush.bf16.msra.mxu1 %v1014_v3  ;;  %v181_v13 = vld [vmem:[%s1126_s6 + $0xc] sm:$0x1]  ;;  %v1148_v15 = vunpack.c.l.b16 %v1141_v12  ;;  %v201_v17 = vshrl.u32 %v1138_v11, 16  ;;  %v203_v18 = vshll.u32 %v1138_v11, 16  ;;  %v300_v19 = vld [vmem:[%s1126_s6] sm:$0xe]  ;;  %v1155_v21 = vunpack.c.h.b16 %v1138_v11 }
  0x11   : > { %345 = vmatpush.bf16.msra.mxu2 %v1017_v4  ;;  %409 = vmatpush.bf16.msra.mxu3 %v1020_v5  ;;  %v196_v16 = vunpack.c.l.b16 %v181_v13  ;;  %v360_v20 = vld [vmem:[%s1126_s6] sm:$0x8]  ;;  %v309_v22 = vunpack.c.l.b16 %v300_v19  ;;  %v361_v23 = vld [vmem:[%s1126_s6 + $0xc] sm:$0x7]  ;;  %v433_v29 = vunpack.c.h.b16 %v1141_v12  ;;  %v1029_v41 = vld [vmem:[%s1270_s1 + $0x98] sm:$0xff]  ;;  %v445_v56 = vshrl.u32 %v1141_v12, 16  ;;  %s170_s27 = scalar_lea.vmem %s1272_s3, %s1050_s24 }
  0x12   : > { %v371_v24 = vunpack.c.l.b16 %v360_v20  ;;  %v205_v27 = vrot.slane %v203_v18, 1  ;;  %v372_v28 = vunpack.c.l.b16 %v361_v23  ;;  %v1011_v31 = vld [vmem:[%s1270_s1 + $0x8] sm:$0xff]  ;;  %v1010_v45 = vld [vmem:[%s1270_s1] sm:$0xff]  ;;  %v1032_v46 = vld [vmem:[%s1270_s1 + $0xb0] sm:$0xff]  ;;  %v448_v57 = vshll.u32 %v1141_v12, 16 }
  0x13   : > { %v1162_v26 = vpack.c.b16 %v196_v16, %v1148_v15  ;;  %v310_v30 = vpack.c.b16 %v1155_v21, %v309_v22  ;;  %v1023_v37 = vld [vmem:[%s1270_s1 + $0x68] sm:$0xff]  ;;  %v1022_v49 = vld [vmem:[%s1270_s1 + $0x60] sm:$0xff]  ;;  %v1036_v52 = vld [vmem:[%s1270_s1 + $0xd0] sm:$0xff]  ;;  %v447_v63 = vrot.slane %v445_v56, 3 }
  0x14   : > { %247 = vmatpush.bf16.msra.mxu0 %v1013_v6  ;;  %1048 = vmatpush.bf16.msra.mxu1 %v1013_v6  ;;  %v373_v32 = vpack.c.b16 %v1155_v21, %v371_v24  ;;  %v206_v33 = vor.u32 %v205_v27, %v201_v17  ;;  %v1177_v39 = vpack.c.b16 %v372_v28, %v1148_v15  ;;  %v1027_v50 = vld [vmem:[%s1270_s1 + $0x88] sm:$0xff]  ;;  %v1028_v53 = vld [vmem:[%s1270_s1 + $0x90] sm:$0xff]  ;;  %v1026_v59 = vld [vmem:[%s1270_s1 + $0x80] sm:$0xff]  ;;  %v450_v0 = vrot.slane %v448_v57, 4 }
  0x15   : > { %346 = vmatpush.bf16.msra.mxu2 %v1016_v8  ;;  %v208_v34 = vshll.u32 %v1162_v26, 16  ;;  %v212_v35 = vshrl.u32 %v1162_v26, 16  ;;  %410 = vmatpush.bf16.msra.mxu3 %v1019_v9  ;;  %v313_v36 = vrot.slane %v1162_v26, 1  ;;  %v312_v38 = vrot.slane %v310_v30, 1  ;;  %v1031_v58 = vld [vmem:[%s1270_s1 + $0xa8] sm:$0xff]  ;;  %v1025_v4 = vld [vmem:[%s1270_s1 + $0x78] sm:$0xff] }
  0x16   : > { %v376_v40 = vrot.slane %v373_v32, 3  ;;  %v377_v44 = vrot.slane %v1177_v39, 3  ;;  %v437_v54 = vshrl.u32 %v373_v32, 16  ;;  %v440_v55 = vshll.u32 %v373_v32, 16  ;;  %v1035_v60 = vld [vmem:[%s1270_s1 + $0xc8] sm:$0xff]  ;;  %v1034_v5 = vld [vmem:[%s1270_s1 + $0xc0] sm:$0xff] }
  0x17   : > { %v210_v42 = vrot.slane %v208_v34, 1  ;;  %v314_v43 = vsel %vm311_vm0, %v312_v38, %v313_v36  ;;  %v552_v1 = vld [vmem:[%s1126_s6 + $0x4] sm:$0xc]  ;;  %v1045_v2 = vld [vmem:[%s1126_s6 + $0x8] sm:$0xff]   ;;  %v622_v3 = vld [vmem:[%s1126_s6 + $0x10] sm:$0x7] }
  0x18   : > { %287 = vmatpush.bf16.msrb.mxu1 %v1012_v7  ;;  %482 = vmatpush.bf16.msrb.mxu0 %v1024_v10  ;;  %v378_v51 = vsel %vm375_vm3, %v376_v40, %v377_v44  ;;  %v439_v61 = vrot.slane %v437_v54, 3  ;;  %v442_v62 = vrot.slane %v440_v55, 4  ;;  %v451_v7 = vor.u32 %v450_v0, %v447_v63  ;;  %v555_v16 = vld [vmem:[%s1126_s6 + $0x10] sm:$0x3] }
  0x19   : > { %606 = vmatpush.bf16.msrb.mxu2 %v1030_v14  ;;  %680 = vmatpush.bf16.msrb.mxu3 %v1033_v25  ;;  %v211_v47 = vsel %vm199_vm1, %v206_v33, %v210_v42  ;;  %v214_v48 = vor.u32 %v212_v35, %v210_v42  ;;  %v1043_v8 = vunpack.c.l.b16 %v1045_v2  ;;  %v1044_v9 = vunpack.c.h.b16 %v1045_v2 }
  0x1a   : > { %886 = vmatmul.msk.bf16.vlgmr.msra.gmra.mxu2 %vm233_vm2, %v314_v43  ;;  %852 = vmatmul.msk.bf16.vlgmr.msra.gmra.mxu0 %vm233_vm2, %v211_v47  ;;  %v443_v6 = vor.u32 %v442_v62, %v439_v61  ;;  %v567_v10 = vunpack.c.l.b16 %v552_v1  ;;  %v631_v13 = vunpack.c.l.b16 %v622_v3  ;;  %v570_v19 = vunpack.c.l.b16 %v555_v16 }
  0x1b   : > { %853 = vmatmul.msk.bf16.vlgmr.msra.gmra.mxu1 %vm233_vm2, %v214_v48  ;;  %906 = vmatmul.msk.bf16.vlgmr.msra.gmra.mxu3 %vm233_vm2, %v378_v51  ;;  %v505_v43 = vpack.c.b16 %v1148_v15, %v1155_v21 }
  0x1c   : > { %288 = vmatpush.bf16.msrb.mxu1 %v1011_v31  ;;  %483 = vmatpush.bf16.msrb.mxu0 %v1023_v37  ;;  %v452_v14 = vsel %vm435_vm4, %v443_v6, %v451_v7  ;;  %v571_v17 = vpack.c.b16 %v1043_v8, %v567_v10  ;;  %v632_v18 = vpack.c.b16 %v631_v13, %v1044_v9  ;;  %v696_v37 = vld [vmem:[%s1126_s6 + $0x4] sm:$0x8] }
  0x1d   : > { %607 = vmatpush.bf16.msrb.mxu2 %v1029_v41  ;;  %681 = vmatpush.bf16.msrb.mxu3 %v1032_v46  ;;  %v572_v25 = vpack.c.b16 %v570_v19, %v1044_v9  ;;  %v705_v38 = vunpack.c.l.b16 %v696_v37 }
  0x1e   : > { %v635_v20 = vshrl.u32 %v571_v17, 16  ;;  %v638_v22 = vshll.u32 %v571_v17, 16  ;;  %v643_v23 = vshrl.u32 %v632_v18, 16  ;;  %v646_v24 = vshll.u32 %v632_v18, 16 }
  0x1f   : > { %v574_v31 = vrot.slane %v571_v17, 2  ;;  %v575_v32 = vrot.slane %v572_v25, 2  ;;  %v706_v39 = vpack.c.b16 %v1043_v8, %v705_v38  ;;  %v708_v41 = vrot.slane %v632_v18, 3  ;;  %v1059_v18 = vld [vmem:[%s1271_s2] ss:$0 sm:$0xff] }
  0x20   : > { %289 = vmatpush.bf16.msrb.mxu1 %v1010_v45  ;;  %484 = vmatpush.bf16.msrb.mxu0 %v1022_v49  ;;  %v637_v27 = vrot.slane %v635_v20, 2  ;;  %v640_v28 = vrot.slane %v638_v22, 3  ;;  %v645_v30 = vrot.slane %v643_v23, 2  ;;  %v648_v26 = vrot.slane %v646_v24, 3 }
  0x21   : > { %608 = vmatpush.bf16.msrb.mxu2 %v1028_v53  ;;  %682 = vmatpush.bf16.msrb.mxu3 %v1031_v58  ;;  %v576_v35 = vsel %vm573_vm5, %v574_v31, %v575_v32  ;;  %v707_v40 = vrot.slane %v706_v39, 3 }
  0x22   : > { %v641_v33 = vor.u32 %v640_v28, %v637_v27  ;;  %v649_v34 = vor.u32 %v648_v26, %v645_v30 }
  0x23   : > { %v709_v42 = vsel %vm375_vm3, %v707_v40, %v708_v41 }
  0x24   : > { %536 = vmatpush.bf16.msra.mxu1 %v1027_v50  ;;  %739 = vmatpush.bf16.msra.mxu0 %v1036_v52 }
  0x28   : > { %537 = vmatpush.bf16.msra.mxu1 %v1026_v59  ;;  %740 = vmatpush.bf16.msra.mxu0 %v1035_v60 }
  0x2a   : > { %887 = vmatmul.msk.bf16.gmra.mxu2 %vm233_vm2, %v313_v36  ;;  %926 = vmatmul.msk.bf16.vlgmr.msrb.gmra.mxu0 %vm233_vm2, %v452_v14  ;;  %v650_v36 = vsel %vm633_vm6, %v641_v33, %v649_v34 }
  0x2b   : > { %866 = vmatmul.msk.bf16.vlgmr.msrb.gmra.mxu1 %vm233_vm2, %v1138_v11  ;;  %907 = vmatmul.msk.bf16.gmra.mxu3 %vm233_vm2, %v377_v44  ;;  %v258_v11 = vpack.c.b16 %v1148_v15, %v1148_v15  ;;  %v506_v44 = vpack.c.b16 %v433_v29, %v433_v29 }
  0x2c   : > { %538 = vmatpush.bf16.msra.mxu1 %v1025_v4  ;;  %741 = vmatpush.bf16.msra.mxu0 %v1034_v5 }
  0x3a   : > { %966 = vmatmul.msk.bf16.vlgmr.msrb.gmra.mxu2 %vm233_vm2, %v576_v35  ;;  %927 = vmatmul.msk.bf16.gmra.mxu0 %vm233_vm2, %v451_v7 }
  0x3b   : > { %867 = vmatmul.msk.bf16.gmra.mxu1 %vm233_vm2, %v258_v11  ;;  %986 = vmatmul.msk.bf16.vlgmr.msrb.gmra.mxu3 %vm233_vm2, %v650_v36 }
  0x4a   : > { %967 = vmatmul.msk.bf16.gmra.mxu2 %vm233_vm2, %v575_v32  ;;  %1006 = vmatmul.msk.bf16.vlgmr.msra.gmra.mxu0 %vm233_vm2, %v709_v42 }
  0x4b   : > { %946 = vmatmul.msk.bf16.vlgmr.msra.gmra.mxu1 %vm233_vm2, %v505_v43  ;;  %987 = vmatmul.msk.bf16.gmra.mxu3 %vm233_vm2, %v649_v34 }
  0x5a   : > { %1007 = vmatmul.msk.bf16.gmra.mxu0 %vm233_vm2, %v708_v41 }
  0x5b   : > { %947 = vmatmul.msk.bf16.gmra.mxu1 %vm233_vm2, %v506_v44 }
  0x97   : > { %v249_v45 = vpop.f32.mrf.mxu0 }
  0x98   : > { %v254_v46 = vpop.f32.mrf.mxu1 }
  0x9d   : > { %v348_v47 = vpop.f32.mrf.mxu2 }
  0x9e   : > { %v412_v15 = vpop.f32.mrf.mxu3 }
  0x9f   : > { %v251_v21 = vpop.f32.mrf.mxu0 }
  0xa0   : > { %v256_v48 = vpop.f32.mrf.mxu1 }
  0xa5   : > { %v350_v49 = vpop.f32.mrf.mxu2 }
  0xa6   : > { %v414_v50 = vpop.f32.mrf.mxu3 }
  0xa7   : > { %v486_v51 = vpop.f32.mrf.mxu0 }
  0xa8   : > { %v291_v52 = vpop.f32.mrf.mxu1 }
  0xa9   : > { %v292_v59 = vadd.f32 %v291_v52, %v249_v45 }
  0xab   : > { %v357_v62 = vadd.f32 %v348_v47, %v292_v59 }
  0xad   : > { %v353_v53 = vpop.f32.mrf.mxu2  ;;  %v421_v2 = vadd.f32 %v412_v15, %v357_v62 }
  0xae   : > { %v417_v54 = vpop.f32.mrf.mxu3 }
  0xaf   : > { %v488_v55 = vpop.f32.mrf.mxu0  ;;  %v495_v7 = vadd.f32 %v486_v51, %v421_v2 }
  0xb0   : > { %v293_v12 = vpop.f32.mrf.mxu1 }
  0xb1   : > { %v294_v1 = vadd.f32 %v293_v12, %v251_v21 }
  0xb3   : > { %v358_v5 = vadd.f32 %v350_v49, %v294_v1 }
  0xb5   : > { %v355_v56 = vpop.f32.mrf.mxu2  ;;  %v422_v14 = vadd.f32 %v414_v50, %v358_v5 }
  0xb6   : > { %v419_v29 = vpop.f32.mrf.mxu3 }
  0xb7   : > { %v491_v57 = vpop.f32.mrf.mxu0  ;;  %v496_v24 = vadd.f32 %v488_v55, %v422_v14 }
  0xb8   : > { %v296_v58 = vpop.f32.mrf.mxu1 }
  0xb9   : > { %v297_v10 = vadd.f32 %v296_v58, %v254_v46 }
  0xbb   : > { %v359_v20 = vadd.f32 %v353_v53, %v297_v10 }
  0xbd   : > { %v610_v60 = vpop.f32.mrf.mxu2  ;;  %v423_v31 = vadd.f32 %v417_v54, %v359_v20 }
  0xbe   : > { %v684_v61 = vpop.f32.mrf.mxu3 }
  0xbf   : > { %v493_v63 = vpop.f32.mrf.mxu0  ;;  %v497_v37 = vadd.f32 %v491_v57, %v423_v31 }
  0xc0   : > { %v298_v0 = vpop.f32.mrf.mxu1 }
  0xc5   : > { %v612_v3 = vpop.f32.mrf.mxu2 }
  0xc6   : > { %v686_v4 = vpop.f32.mrf.mxu3 }
  0xc7   : > { %v743_v6 = vpop.f32.mrf.mxu0 }
  0xc8   : > { %v540_v8 = vpop.f32.mrf.mxu1 }
  0xc9   : > { %v549_v9 = vadd.f32 %v540_v8, %v495_v7 }
  0xcb   : > { %v619_v13 = vadd.f32 %v610_v60, %v549_v9 }
  0xcd   : > { %v615_v16 = vpop.f32.mrf.mxu2  ;;  %v693_v17 = vadd.f32 %v684_v61, %v619_v13 }
  0xce   : > { %v689_v19 = vpop.f32.mrf.mxu3 }
  0xcf   : > { %v752_v22 = vadd.f32 %v743_v6, %v693_v17  ;;  %v745_v23 = vpop.f32.mrf.mxu0 }
  0xd0   : > { %v542_v25 = vpop.f32.mrf.mxu1 }
  0xd1   : > { %v759_v27 = vadd.f32 %v1059_v18, %v752_v22  ;;  %v550_v28 = vadd.f32 %v542_v25, %v496_v24 }
  0xd3   : > { %v762_v30 = vmax.f32 %v759_v27, 0.0  ;;  %v620_v26 = vadd.f32 %v612_v3, %v550_v28 }
  0xd5   : > { %v617_v32 = vpop.f32.mrf.mxu2  ;;  %v765_v33 = vpack.c.bf16 %v762_v30, %v762_v30  ;;  %v694_v34 = vadd.f32 %v686_v4, %v620_v26 }
  0xd6   : > { %v691_v35 = vpop.f32.mrf.mxu3 }
  0xd7   : > { %769 = vst.msk [vmem:[%s170_s27] sm:$0xf] %vm768_vm7, %v765_v33  ;;  %v753_v11 = vadd.f32 %v745_v23, %v694_v34  ;;  %v748_v36 = vpop.f32.mrf.mxu0 }
  0xd8   : > { %v545_v38 = vpop.f32.mrf.mxu1 }
  0xd9   : > { %v760_v39 = vadd.f32 %v1059_v18, %v753_v11  ;;  %v551_v40 = vadd.f32 %v545_v38, %v497_v37 }
  0xdb   : > { %v763_v41 = vmax.f32 %v760_v39, 0.0  ;;  %v621_v42 = vadd.f32 %v615_v16, %v551_v40 }
  0xdd   : > { %v766_v43 = vpack.c.bf16 %v763_v41, %v763_v41  ;;  %v695_v44 = vadd.f32 %v689_v19, %v621_v42 }
  0xdf   : > { %770 = vst.msk [vmem:[%s170_s27 + $0x4] sm:$0xf] %vm768_vm7, %v766_v43  ;;  %v754_v45 = vadd.f32 %v748_v36, %v695_v44  ;;  %v750_v46 = vpop.f32.mrf.mxu0 }
  0xe0   : > { %v547_v47 = vpop.f32.mrf.mxu1 }
  0xe1   : > { %v761_v15 = vadd.f32 %v1059_v18, %v754_v45 }
  0xe3   : > { %v764_v21 = vmax.f32 %v761_v15, 0.0 }
  0xe5   : > { %v767_v48 = vpack.c.bf16 %v764_v21, %v764_v21 }
  0xe7   : > { %771 = vst.msk [vmem:[%s170_s27 + $0x8] sm:$0xf] %vm768_vm7, %v767_v48 }
  0xe8 PF: > { %s13_s12 = sadd.s32 1, %s1066_s12  }
  0xe9   : > { %p10_p4 = scmp.ge.s32.totalorder %s13_s12, 4  }
  0xeb   :  { %12 = sbr.rel (!%p10_p4) target bundleno = 1 (0x1), region = 70 }

// kernel: raft_forward.36
= control target key start
LH: loop header
LB: loop body
LE: loop exit
PB: predicated region body
PF: predicated region fallthrough
CT: control target
= control target key end

     0   :  { %s969_s12 = smov 0   ;;  %s1112_s0 = inlined_call_operand.vmem [shape: bf16[2,4,30,24], index: 0, kind: input, shape index: {}]   ;;  %s1113_s1 = inlined_call_operand.vmem [shape: bf16[9,24,32], index: 1, kind: input, shape index: {}]   ;;  %s1114_s2 = inlined_call_operand.vmem [shape: f32[1,32], index: 2, kind: input, shape index: {}]   ;;  %s1115_s3 = inlined_call_operand.vmem [shape: bf16[2,20,32], index: 3, kind: output, shape index: {}]  }
   0x1 LB: > { %s782_s13 = sadd.s32 4294967295, %s947_s12   ;;  %p786_p0 = scmp.ge.s32.totalorder %s947_s12, 1  ;;  %s947_s12 = sphi %s969_s12, %s13_s12  }
   0x2   : > { %p137_p1 = scmp.lt.s32.totalorder %s947_s12, 3 }
   0x4   : > { %p138_p2 = pnand %p786_p0, %p137_p1 }
   0x5   : > { %p161_p3 = scmp.lt.s32.totalorder (!%p138_p2), %s782_s13, 1 }
   0x6   : > { %141 = sbr.rel (%p138_p2) target bundleno = 229 (0xe5), region = 32 }
   0xb   : > { %v795_v0 = vld [vmem:[%s1113_s1 + $0x14] sm:$0xf]  ;;  %v818_v1 = vld [vmem:[%s1113_s1 + $0x20] sm:$0xf]  ;;  %v830_v4 = vld [vmem:[%s1113_s1 + $0x2c] sm:$0xf] }
   0xc   : > { %v199_v2 = vunpack.c.l.b16 %v795_v0  ;;  %v304_v3 = vunpack.c.l.b16 %v818_v1  ;;  %v177_v5 = vld [vmem:[%s1113_s1 + $0x8] sm:$0xf]  ;;  %vm210_vm0 = vcmask 1043456   ;;  %v359_v6 = vunpack.c.l.b16 %v830_v4  ;;  %v846_v8 = vld [vmem:[%s1113_s1 + $0x38] sm:$0xf]  ;;  %s1117_s13 = smov (!%p161_p3, %s782_s13), 1 }
   0xd   : > { %v245_v7 = vunpack.c.l.b16 %v177_v5  ;;  %v414_v11 = vunpack.c.l.b16 %v846_v8  ;;  %v869_v12 = vld [vmem:[%s1113_s1 + $0x50] sm:$0xf]  ;;  %v886_v16 = vld [vmem:[%s1113_s1 + $0x5c] sm:$0xf]  ;;  %v860_v17 = vld [vmem:[%s1113_s1 + $0x44] sm:$0xf] }
   0xe   : > { %v201_v9 = vpack.c.b16 %v199_v2, %v199_v2  ;;  %v306_v10 = vpack.c.b16 %v304_v3, %v304_v3  ;;  %v361_v13 = vpack.c.b16 %v359_v6, %v359_v6  ;;  %v550_v15 = vunpack.c.l.b16 %v869_v12  ;;  %v903_v18 = vld [vmem:[%s1113_s1 + $0x68] sm:$0xf]  ;;  %s912_s5 = sshll.u32 %s1117_s13, 6  ;;  %v916_v23 = vld [vmem:[%s1113_s1 + $0xc] sm:$0xff]  ;;  %v917_v28 = vld [vmem:[%s1113_s1 + $0x18] sm:$0xff]  ;;  %s931_s4 = smul.u32 12, %s1117_s13 }
   0xf   : > { %v247_v14 = vpack.c.b16 %v245_v7, %v245_v7  ;;  %v416_v21 = vpack.c.b16 %v414_v11, %v414_v11  ;;  %v624_v22 = vunpack.c.l.b16 %v886_v16  ;;  %s1016_s10 = scalar_lea.vmem %s1112_s0, %s912_s5  ;;  %v475_v26 = vunpack.c.l.b16 %v860_v17  ;;  %v919_v34 = vld [vmem:[%s1113_s1 + $0x24] sm:$0xff]  ;;  %v921_v50 = vld [vmem:[%s1113_s1 + $0x30] sm:$0xff]  ;;  %v922_v58 = vld [vmem:[%s1113_s1 + $0x3c] sm:$0xff] }
  0x10   : > { %v212_v19 = vsel %vm210_vm0, %v201_v9, 0  ;;  %v315_v20 = vsel %vm210_vm0, %v306_v10, 0  ;;  %v370_v24 = vsel %vm210_vm0, %v361_v13, 0  ;;  %v552_v25 = vpack.c.b16 %v550_v15, %v550_v15  ;;  %v792_v27 = vld [vmem:[%s1016_s10 + $0x18] sm:$0x3]  ;;  %v1023_v29 = vld [vmem:[%s1016_s10] sm:$0xff]  ;;  %s170_s7 = scalar_lea.vmem %s1115_s3, %s931_s4 }
  0x11   : > { %220 = vmatpush.bf16.msra.mxu0 %v212_v19  ;;  %929 = vmatpush.bf16.msra.mxu1 %v212_v19  ;;  %v626_v30 = vpack.c.b16 %v624_v22, %v624_v22  ;;  %v675_v31 = vunpack.c.l.b16 %v903_v18  ;;  %v191_v32 = vunpack.c.l.b16 %v792_v27  ;;  %v256_v33 = vsel %vm210_vm0, %v247_v14, 0  ;;  %v276_v35 = vld [vmem:[%s1016_s10 + $0x8] sm:$0x7]  ;;  %v915_v37 = vld [vmem:[%s1016_s10 + $0x10] sm:$0xff]  ;;  %v1036_v46 = vld [vmem:[%s1016_s10 + $0x20] sm:$0xff] }
  0x12   : > { %323 = vmatpush.bf16.msra.mxu2 %v315_v20  ;;  %378 = vmatpush.bf16.msra.mxu3 %v370_v24  ;;  %v425_v36 = vsel %vm210_vm0, %v416_v21, 0  ;;  %v282_v38 = vunpack.c.l.b16 %v276_v35  ;;  %v285_v39 = vshrl.u32 %v1023_v29, 16  ;;  %v287_v40 = vshll.u32 %v1023_v29, 16  ;;  %v914_v47 = vld [vmem:[%s1113_s1] sm:$0xff]  ;;  %v927_v55 = vld [vmem:[%s1113_s1 + $0x54] sm:$0xff]  ;;  %v924_v57 = vld [vmem:[%s1113_s1 + $0x48] sm:$0xff] }
  0x13   : > { %v477_v41 = vpack.c.b16 %v475_v26, %v475_v26  ;;  %vm203_vm1 = vcmask 195584   ;;  %v193_v42 = vpack.c.b16 %v191_v32, %v191_v32  ;;  %v561_v43 = vsel %vm210_vm0, %v552_v25, 0  ;;  %v928_v60 = vld [vmem:[%s1113_s1 + $0x60] sm:$0xff]  ;;  %v827_v61 = vld [vmem:[%s1016_s10 + $0x28] sm:$0x3]  ;;  %v920_v62 = vld [vmem:[%s1016_s10 + $0x30] sm:$0xff] }
  0x14   : > { %v283_v44 = vpack.c.b16 %v282_v38, %v282_v38  ;;  %v289_v45 = vrot.slane %v287_v40, 1  ;;  %v635_v48 = vsel %vm210_vm0, %v626_v30, 0  ;;  %v677_v49 = vpack.c.b16 %v675_v31, %v675_v31  ;;  %v509_v0 = vld [vmem:[%s1016_s10] sm:$0xc]  ;;  %v1069_v1 = vld [vmem:[%s1016_s10 + $0x4] sm:$0xf] }
  0x15   : > { %221 = vmatpush.bf16.msra.mxu0 %v916_v23  ;;  %930 = vmatpush.bf16.msra.mxu1 %v916_v23  ;;  %v486_v53 = vsel %vm210_vm0, %v477_v41, 0  ;;  %vm284_vm2 = vsmask.f32 7424  ;;  %v351_v63 = vunpack.c.l.b16 %v827_v61  ;;  %v889_v2 = vld [vmem:[%s1016_s10 + $0x10] sm:$0xc]  ;;  %v521_v8 = vunpack.c.l.b16 %v509_v0 }
  0x16   : > { %324 = vmatpush.bf16.msra.mxu2 %v917_v28  ;;  %379 = vmatpush.bf16.msra.mxu3 %v919_v34  ;;  %v290_v51 = vor.u32 %v289_v45, %v285_v39  ;;  %v292_v52 = vshll.u32 %v283_v44, 16  ;;  %v686_v54 = vsel %vm210_vm0, %v677_v49, 0  ;;  %v925_v3 = vld [vmem:[%s1016_s10 + $0x10] sm:$0xf0]  ;;  %v893_v4 = vld [vmem:[%s1016_s10 + $0x18] sm:$0xf]  ;;  %v522_v9 = vunpack.c.l.b16 %v1069_v1 }
  0x17   : > { %v926_v5 = vld [vmem:[%s1016_s10 + $0x18] sm:$0x10]  ;;  %v296_v6 = vshrl.u32 %v283_v44, 16  ;;  %v353_v7 = vpack.c.b16 %v351_v63, %v351_v63  ;;  %v872_v10 = vld [vmem:[%s1016_s10 + $0x8] sm:$0xf]  ;;  %v890_v12 = vor.u32 %v925_v3, %v889_v2  ;;  %vm666_vm4 = vcmask 1044480  }
  0x18   : > { %804 = vmatmul.msk.bf16.vlgmr.msra.gmra.mxu0 %vm203_vm1, %v915_v37  ;;  %805 = vmatmul.msk.bf16.vlgmr.msra.gmra.mxu1 %vm203_vm1, %v193_v42  ;;  %v294_v56 = vrot.slane %v292_v52, 1  ;;  %v923_v11 = vld [vmem:[%s1016_s10 + $0x8] sm:$0x10]  ;;  %v894_v13 = vor.u32 %v926_v5, %v893_v4  ;;  %v525_v15 = vpack.c.b16 %v522_v9, %v521_v8  ;;  %v174_v21 = vld [vmem:[%s1016_s10 + $0x8] sm:$0x3]  ;;  %v456_v52 = vshrl.u32 %v1036_v46, 16 }
  0x19   : > { %264 = vmatpush.bf16.msrb.mxu1 %v256_v33  ;;  %433 = vmatpush.bf16.msrb.mxu0 %v425_v36  ;;  %v873_v16 = vor.u32 %v923_v11, %v872_v10  ;;  %v603_v17 = vshrl.u32 %v890_v12, 16  ;;  %v606_v18 = vshll.u32 %v890_v12, 16  ;;  %v843_v22 = vld [vmem:[%s1016_s10 + $0x38] sm:$0x3]  ;;  %v237_v31 = vunpack.c.l.b16 %v174_v21  ;;  %v857_v37 = vld [vmem:[%s1016_s10 + $0x28] sm:$0x7] }
  0x1a   : > { %569 = vmatpush.bf16.msrb.mxu2 %v561_v43  ;;  %643 = vmatpush.bf16.msrb.mxu3 %v635_v48  ;;  %v295_v59 = vsel %vm284_vm2, %v290_v51, %v294_v56  ;;  %v298_v14 = vor.u32 %v296_v6, %v294_v56  ;;  %v611_v19 = vshrl.u32 %v894_v13, 16  ;;  %v614_v20 = vshll.u32 %v894_v13, 16  ;;  %v658_v45 = vld [vmem:[%s1016_s10] sm:$0x8] }
  0x1b   : > { %839 = vmatmul.msk.bf16.vlgmr.msra.gmra.mxu3 %vm203_vm1, %v1036_v46  ;;  %823 = vmatmul.msk.bf16.vlgmr.msra.gmra.mxu2 %vm203_vm1, %v295_v59  ;;  %v529_v23 = vshrl.u32 %v525_v15, 16  ;;  %v532_v24 = vshll.u32 %v525_v15, 16  ;;  %v537_v25 = vshrl.u32 %v873_v16, 16  ;;  %v540_v26 = vshll.u32 %v873_v16, 16 }
  0x1c   : > { %v605_v27 = vrot.slane %v603_v17, 2  ;;  %v608_v28 = vrot.slane %v606_v18, 3  ;;  %v616_v30 = vrot.slane %v614_v20, 3  ;;  %v406_v32 = vunpack.c.l.b16 %v843_v22 }
  0x1d   : > { %265 = vmatpush.bf16.msrb.mxu1 %v914_v47  ;;  %434 = vmatpush.bf16.msrb.mxu0 %v921_v50  ;;  %v531_v33 = vrot.slane %v529_v23, 2  ;;  %v534_v34 = vrot.slane %v532_v24, 3  ;;  %v539_v35 = vrot.slane %v537_v25, 2  ;;  %v542_v36 = vrot.slane %v540_v26, 3 }
  0x1e   : > { %644 = vmatpush.bf16.msrb.mxu3 %v927_v55  ;;  %570 = vmatpush.bf16.msrb.mxu2 %v924_v57  ;;  %v609_v38 = vor.u32 %v608_v28, %v605_v27  ;;  %v239_v40 = vpack.c.b16 %v237_v31, %v237_v31  ;;  %v408_v41 = vpack.c.b16 %v406_v32, %v406_v32  ;;  %v454_v42 = vunpack.c.l.b16 %v857_v37 }
  0x1f   : > { %vm527_vm3 = vsmask.f32 5376  ;;  %v535_v43 = vor.u32 %v534_v34, %v531_v33  ;;  %v543_v44 = vor.u32 %v542_v36, %v539_v35  ;;  %v458_v48 = vshll.u32 %v1036_v46, 16  ;;  %v940_v36 = vld [vmem:[%s1114_s2] ss:$0 sm:$0xff] }
  0x20   : > { %v455_v49 = vpack.c.b16 %v454_v42, %v454_v42  ;;  %v664_v50 = vunpack.c.l.b16 %v658_v45  ;;  %v668_v59 = vrot.slane %v873_v16, 3  ;;  %vm722_vm5 = vcmask 257024  }
  0x21   : > { %494 = vmatpush.bf16.msra.mxu1 %v486_v53  ;;  %694 = vmatpush.bf16.msra.mxu0 %v686_v54  ;;  %v544_v51 = vsel %vm527_vm3, %v535_v43, %v543_v44  ;;  %v460_v53 = vrot.slane %v458_v48, 1  ;;  %vm725_vm6 = vcmask 254976  }
  0x22   : > { %v463_v54 = vshll.u32 %v455_v49, 16  ;;  %v665_v55 = vpack.c.b16 %v522_v9, %v664_v50  ;;  %v467_v46 = vshrl.u32 %v455_v49, 16 }
  0x23   : > { %v461_v56 = vor.u32 %v460_v53, %v456_v52 }
  0x24   : > { %v465_v57 = vrot.slane %v463_v54, 1 }
  0x25   : > { %495 = vmatpush.bf16.msra.mxu1 %v922_v58  ;;  %695 = vmatpush.bf16.msra.mxu0 %v928_v60  ;;  %v667_v58 = vrot.slane %v665_v55, 3 }
  0x26   : > { %v466_v60 = vsel %vm284_vm2, %v461_v56, %v465_v57 }
  0x27   : > { %v669_v61 = vsel %vm666_vm4, %v667_v58, %v668_v59 }
  0x28   : > { %814 = vmatmul.msk.bf16.vlgmr.msrb.gmra.mxu1 %vm203_vm1, %v1023_v29  ;;  %855 = vmatmul.msk.bf16.vlgmr.msrb.gmra.mxu0 %vm203_vm1, %v920_v62  ;;  %v613_v29 = vrot.slane %v611_v19, 2  ;;  %v469_v62 = vor.u32 %v467_v46, %v465_v57 }
  0x2a   : > { %v617_v39 = vor.u32 %v616_v30, %v613_v29 }
  0x2b   : > { %840 = vmatmul.msk.bf16.gmra.mxu3 %vm203_vm1, %v353_v7  ;;  %824 = vmatmul.msk.bf16.gmra.mxu2 %vm203_vm1, %v298_v14 }
  0x2c   : > { %v618_v47 = vsel %vm527_vm3, %v609_v38, %v617_v39 }
  0x38   : > { %815 = vmatmul.msk.bf16.gmra.mxu1 %vm203_vm1, %v239_v40  ;;  %856 = vmatmul.msk.bf16.gmra.mxu0 %vm203_vm1, %v408_v41 }
  0x3b   : > { %899 = vmatmul.msk.bf16.vlgmr.msrb.gmra.mxu3 %vm203_vm1, %v618_v47  ;;  %878 = vmatmul.msk.bf16.vlgmr.msrb.gmra.mxu2 %vm203_vm1, %v544_v51 }
  0x48   : > { %865 = vmatmul.msk.bf16.vlgmr.msra.gmra.mxu1 %vm203_vm1, %v466_v60  ;;  %908 = vmatmul.msk.bf16.vlgmr.msra.gmra.mxu0 %vm203_vm1, %v669_v61 }
  0x4b   : > { %900 = vmatmul.msk.bf16.gmra.mxu3 %vm203_vm1, %v617_v39  ;;  %879 = vmatmul.msk.bf16.gmra.mxu2 %vm203_vm1, %v543_v44 }
  0x58   : > { %866 = vmatmul.msk.bf16.gmra.mxu1 %vm203_vm1, %v469_v62  ;;  %909 = vmatmul.msk.bf16.gmra.mxu0 %vm203_vm1, %v668_v59 }
  0x95   : > { %v223_v63 = vpop.f32.mrf.mxu0  ;;  %v228_v0 = vpop.f32.mrf.mxu1 }
  0x9d   : > { %v225_v1 = vpop.f32.mrf.mxu0  ;;  %v230_v2 = vpop.f32.mrf.mxu1 }
  0x9e   : > { %v381_v3 = vpop.f32.mrf.mxu3  ;;  %v326_v4 = vpop.f32.mrf.mxu2 }
  0xa5   : > { %v267_v5 = vpop.f32.mrf.mxu1  ;;  %v436_v6 = vpop.f32.mrf.mxu0 }
  0xa6   : > { %v383_v7 = vpop.f32.mrf.mxu3  ;;  %v328_v8 = vpop.f32.mrf.mxu2  ;;  %v268_v16 = vadd.f32 %v267_v5, %v223_v63 }
  0xa8   : > { %v335_v18 = vadd.f32 %v326_v4, %v268_v16 }
  0xaa   : > { %v390_v22 = vadd.f32 %v381_v3, %v335_v18 }
  0xac   : > { %v445_v25 = vadd.f32 %v436_v6, %v390_v22 }
  0xad   : > { %v269_v9 = vpop.f32.mrf.mxu1  ;;  %v438_v10 = vpop.f32.mrf.mxu0 }
  0xae   : > { %v386_v11 = vpop.f32.mrf.mxu3  ;;  %v331_v12 = vpop.f32.mrf.mxu2  ;;  %v270_v23 = vadd.f32 %v269_v9, %v225_v1 }
  0xb0   : > { %v336_v26 = vadd.f32 %v328_v8, %v270_v23 }
  0xb2   : > { %v391_v31 = vadd.f32 %v383_v7, %v336_v26 }
  0xb4   : > { %v446_v37 = vadd.f32 %v438_v10, %v391_v31 }
  0xb5   : > { %v272_v13 = vpop.f32.mrf.mxu1  ;;  %v441_v14 = vpop.f32.mrf.mxu0 }
  0xb6   : > { %v388_v15 = vpop.f32.mrf.mxu3  ;;  %v333_v17 = vpop.f32.mrf.mxu2  ;;  %v273_v32 = vadd.f32 %v272_v13, %v228_v0 }
  0xb8   : > { %v337_v38 = vadd.f32 %v331_v12, %v273_v32 }
  0xba   : > { %v392_v45 = vadd.f32 %v386_v11, %v337_v38 }
  0xbc   : > { %v447_v52 = vadd.f32 %v441_v14, %v392_v45 }
  0xbd   : > { %v274_v19 = vpop.f32.mrf.mxu1  ;;  %v443_v20 = vpop.f32.mrf.mxu0 }
  0xbe   : > { %v646_v21 = vpop.f32.mrf.mxu3  ;;  %v572_v24 = vpop.f32.mrf.mxu2 }
  0xc5   : > { %v497_v27 = vpop.f32.mrf.mxu1  ;;  %v697_v28 = vpop.f32.mrf.mxu0 }
  0xc6   : > { %v506_v29 = vadd.f32 %v497_v27, %v445_v25  ;;  %v648_v30 = vpop.f32.mrf.mxu3  ;;  %v574_v34 = vpop.f32.mrf.mxu2 }
  0xc8   : > { %v581_v33 = vadd.f32 %v572_v24, %v506_v29 }
  0xca   : > { %v655_v35 = vadd.f32 %v646_v21, %v581_v33 }
  0xcc   : > { %v706_v39 = vadd.f32 %v697_v28, %v655_v35 }
  0xcd   : > { %v499_v40 = vpop.f32.mrf.mxu1  ;;  %v699_v41 = vpop.f32.mrf.mxu0 }
  0xce   : > { %v713_v42 = vadd.f32 %v940_v36, %v706_v39  ;;  %v507_v43 = vadd.f32 %v499_v40, %v446_v37  ;;  %v651_v44 = vpop.f32.mrf.mxu3  ;;  %v577_v49 = vpop.f32.mrf.mxu2 }
  0xd0   : > { %v716_v47 = vmax.f32 %v713_v42, 0.0  ;;  %v582_v48 = vadd.f32 %v574_v34, %v507_v43 }
  0xd2   : > { %v719_v50 = vpack.c.bf16 %v716_v47, %v716_v47  ;;  %v656_v51 = vadd.f32 %v648_v30, %v582_v48 }
  0xd4   : > { %723 = vst.msk [vmem:[%s170_s7] sm:$0xf] %vm722_vm5, %v719_v50  ;;  %v707_v53 = vadd.f32 %v699_v41, %v656_v51 }
  0xd5   : > { %v502_v54 = vpop.f32.mrf.mxu1  ;;  %v702_v55 = vpop.f32.mrf.mxu0 }
  0xd6   : > { %v714_v56 = vadd.f32 %v940_v36, %v707_v53  ;;  %v508_v57 = vadd.f32 %v502_v54, %v447_v52  ;;  %v653_v58 = vpop.f32.mrf.mxu3  ;;  %v579_v61 = vpop.f32.mrf.mxu2 }
  0xd8   : > { %v717_v59 = vmax.f32 %v714_v56, 0.0  ;;  %v583_v60 = vadd.f32 %v577_v49, %v508_v57 }
  0xda   : > { %v720_v46 = vpack.c.bf16 %v717_v59, %v717_v59  ;;  %v657_v62 = vadd.f32 %v651_v44, %v583_v60 }
  0xdc   : > { %724 = vst.msk [vmem:[%s170_s7 + $0x4] sm:$0xf] %vm722_vm5, %v720_v46  ;;  %v708_v63 = vadd.f32 %v702_v55, %v657_v62 }
  0xdd   : > { %v504_v0 = vpop.f32.mrf.mxu1  ;;  %v704_v1 = vpop.f32.mrf.mxu0 }
  0xde   : > { %v715_v2 = vadd.f32 %v940_v36, %v708_v63 }
  0xe0   : > { %v718_v3 = vmax.f32 %v715_v2, 0.0 }
  0xe2   : > { %v721_v4 = vpack.c.bf16 %v718_v3, %v718_v3 }
  0xe4   : > { %726 = vst.msk [vmem:[%s170_s7 + $0x8] sm:$0x3] %vm725_vm6, %v721_v4 }
  0xe5 PF: > { %s13_s12 = sadd.s32 1, %s947_s12  }
  0xe6   : > { %p10_p4 = scmp.ge.s32.totalorder %s13_s12, 4  }
  0xe8   :  { %12 = sbr.rel (!%p10_p4) target bundleno = 1 (0x1), region = 73 }

// kernel: raft_forward.46
= control target key start
LH: loop header
LB: loop body
LE: loop exit
PB: predicated region body
PF: predicated region fallthrough
CT: control target
= control target key end

     0   :  { %s1556_s12 = smov 0   ;;  %s1839_s0 = inlined_call_operand.vmem [shape: bf16[2,1,48,96], index: 0, kind: input, shape index: {}]   ;;  %s1840_s1 = inlined_call_operand.vmem [shape: bf16[9,96,64], index: 1, kind: input, shape index: {}]   ;;  %s1841_s2 = inlined_call_operand.vmem [shape: f32[1,64], index: 2, kind: input, shape index: {}]   ;;  %s1842_s3 = inlined_call_operand.vmem [shape: bf16[2,24,64], index: 3, kind: output, shape index: {}]  }
   0x1 LB: > { %s1097_s13 = sadd.s32 4294967295, %s1534_s12   ;;  %p1101_p0 = scmp.ge.s32.totalorder %s1534_s12, 1  ;;  %s1534_s12 = sphi %s1556_s12, %s13_s12  }
   0x2   : > { %p137_p1 = scmp.lt.s32.totalorder %s1534_s12, 3 }
   0x4   : > { %p138_p2 = pnand %p1101_p0, %p137_p1 }
   0x5   : > { %p161_p3 = scmp.lt.s32.totalorder (!%p138_p2), %s1097_s13, 1 }
   0x6   : > { %141 = sbr.rel (%p138_p2) target bundleno = 271 (0x10f), region = 32 }
   0xb   : > { %v1447_v0 = vld [vmem:[%s1840_s1 + $0x58] sm:$0xff]  ;;  %v1441_v1 = vld [vmem:[%s1840_s1 + $0x28] sm:$0xff]  ;;  %v1446_v4 = vld [vmem:[%s1840_s1 + $0x50] sm:$0xff]  ;;  %s1844_s13 = smov (!%p161_p3, %s1097_s13), 1  ;;  %vm211_vm0 = vsmask.f32 7424 }
   0xc   : > { %v1453_v2 = vld [vmem:[%s1840_s1 + $0x88] sm:$0xff]  ;;  %v1459_v3 = vld [vmem:[%s1840_s1 + $0xb8] sm:$0xff]  ;;  %272 = vmatpush.bf16.msra.mxu0 %v1447_v0  ;;  %332 = vmatpush.bf16.msra.mxu1 %v1441_v1  ;;  %v1440_v5 = vld [vmem:[%s1840_s1 + $0x20] sm:$0xff]  ;;  %s1505_s30 = smul.u32 24, %s1844_s13  ;;  %vm365_vm1 = vcmask 1046528   ;;  %vm453_vm2 = vcmask 1044480  }
   0xd   : > { %413 = vmatpush.bf16.msra.mxu2 %v1453_v2  ;;  %501 = vmatpush.bf16.msra.mxu3 %v1459_v3  ;;  %v1452_v6 = vld [vmem:[%s1840_s1 + $0x80] sm:$0xff]  ;;  %v1458_v7 = vld [vmem:[%s1840_s1 + $0xb0] sm:$0xff]  ;;  %v1445_v8 = vld [vmem:[%s1840_s1 + $0x48] sm:$0xff]  ;;  %vm263_vm3 = vcmask 785408   ;;  %vm537_vm4 = vsmask.f32 4352 }
   0xe   : > { %v1439_v9 = vld [vmem:[%s1840_s1 + $0x18] sm:$0xff]  ;;  %s1600_s10 = scalar_lea.vmem %s1839_s0, %s1505_s30  ;;  %v1457_v11 = vld [vmem:[%s1840_s1 + $0xa8] sm:$0xff]  ;;  %v1444_v15 = vld [vmem:[%s1840_s1 + $0x40] sm:$0xff]  ;;  %vm723_vm5 = vcmask 1045504   ;;  %vm807_vm6 = vsmask.f32 5376 }
   0xf   : > { %v1451_v10 = vld [vmem:[%s1840_s1 + $0x78] sm:$0xff]  ;;  %v1609_v12 = vld [vmem:[%s1600_s10] sm:$0xff]   ;;  %v1612_v13 = vld [vmem:[%s1600_s10 + $0x8] sm:$0xff]   ;;  %s1506_s30 = smul.u32 12, %s1844_s13  ;;  %vm1038_vm14 = vcmask 519168  }
  0x10   : > { %273 = vmatpush.bf16.msra.mxu0 %v1446_v4  ;;  %333 = vmatpush.bf16.msra.mxu1 %v1440_v5  ;;  %v187_v14 = vld [vmem:[%s1600_s10 + $0xc] sm:$0x1]  ;;  %v1619_v16 = vunpack.c.l.b16 %v1612_v13  ;;  %v348_v18 = vld [vmem:[%s1600_s10] sm:$0xe]  ;;  %v1438_v19 = vld [vmem:[%s1840_s1 + $0x10] sm:$0xff]  ;;  %v215_v20 = vshll.u32 %v1609_v12, 16  ;;  %v1627_v21 = vunpack.c.h.b16 %v1609_v12 }
  0x11   : > { %414 = vmatpush.bf16.msra.mxu2 %v1452_v6  ;;  %502 = vmatpush.bf16.msra.mxu3 %v1458_v7  ;;  %v208_v17 = vunpack.c.l.b16 %v187_v14  ;;  %v432_v22 = vld [vmem:[%s1600_s10] sm:$0x8]  ;;  %v433_v23 = vld [vmem:[%s1600_s10 + $0xc] sm:$0x7]  ;;  %v1450_v24 = vld [vmem:[%s1840_s1 + $0x70] sm:$0xff]  ;;  %v363_v27 = vunpack.c.l.b16 %v348_v18  ;;  %v213_v32 = vshrl.u32 %v1609_v12, 16  ;;  %v535_v7 = vunpack.c.h.b16 %v1612_v13  ;;  %s170_s6 = scalar_lea.vmem %s1842_s3, %s1506_s30 }
  0x12   : > { %v1456_v25 = vld [vmem:[%s1840_s1 + $0xa0] sm:$0xff]  ;;  %v449_v28 = vunpack.c.l.b16 %v432_v22  ;;  %v450_v29 = vunpack.c.l.b16 %v433_v23  ;;  %v1443_v30 = vld [vmem:[%s1840_s1 + $0x38] sm:$0xff]  ;;  %v1437_v31 = vld [vmem:[%s1840_s1 + $0x8] sm:$0xff]  ;;  %v217_v33 = vrot.slane %v215_v20, 1 }
  0x13   : > { %v1638_v26 = vpack.c.b16 %v208_v17, %v1619_v16  ;;  %v1449_v35 = vld [vmem:[%s1840_s1 + $0x68] sm:$0xff]  ;;  %v1455_v36 = vld [vmem:[%s1840_s1 + $0x98] sm:$0xff]  ;;  %v364_v37 = vpack.c.b16 %v1627_v21, %v363_v27  ;;  %v1442_v40 = vld [vmem:[%s1840_s1 + $0x30] sm:$0xff] }
  0x14   : > { %274 = vmatpush.bf16.msra.mxu0 %v1445_v8  ;;  %334 = vmatpush.bf16.msra.mxu1 %v1439_v9  ;;  %v1656_v38 = vpack.c.b16 %v1627_v21, %v449_v28  ;;  %v1659_v39 = vpack.c.b16 %v450_v29, %v1619_v16  ;;  %v1436_v41 = vld [vmem:[%s1840_s1] sm:$0xff]  ;;  %v1454_v43 = vld [vmem:[%s1840_s1 + $0x90] sm:$0xff]  ;;  %v218_v44 = vor.u32 %v217_v33, %v213_v32  ;;  %v1465_v50 = vld [vmem:[%s1840_s1 + $0xe8] sm:$0xff]  ;;  %v547_v32 = vshrl.u32 %v1612_v13, 16 }
  0x15   : > { %415 = vmatpush.bf16.msra.mxu2 %v1451_v10  ;;  %503 = vmatpush.bf16.msra.mxu3 %v1457_v11  ;;  %v220_v34 = vshll.u32 %v1638_v26, 16  ;;  %v1448_v42 = vld [vmem:[%s1840_s1 + $0x60] sm:$0xff]  ;;  %v366_v46 = vrot.slane %v364_v37, 1  ;;  %v367_v47 = vrot.slane %v1638_v26, 1  ;;  %v1471_v51 = vld [vmem:[%s1840_s1 + $0x118] sm:$0xff]  ;;  %v1477_v55 = vld [vmem:[%s1840_s1 + $0x148] sm:$0xff] }
  0x16   : > { %v454_v48 = vrot.slane %v1656_v38, 3  ;;  %v455_v49 = vrot.slane %v1659_v39, 3  ;;  %v1483_v56 = vld [vmem:[%s1840_s1 + $0x178] sm:$0xff]  ;;  %v1464_v57 = vld [vmem:[%s1840_s1 + $0xe0] sm:$0xff]  ;;  %v1470_v58 = vld [vmem:[%s1840_s1 + $0x110] sm:$0xff]  ;;  %v224_v6 = vshrl.u32 %v1638_v26, 16 }
  0x17   : > { %v222_v45 = vrot.slane %v220_v34, 1  ;;  %v368_v53 = vsel %vm365_vm1, %v366_v46, %v367_v47  ;;  %v1476_v59 = vld [vmem:[%s1840_s1 + $0x140] sm:$0xff]  ;;  %v1482_v60 = vld [vmem:[%s1840_s1 + $0x170] sm:$0xff]  ;;  %v1463_v61 = vld [vmem:[%s1840_s1 + $0xd8] sm:$0xff]  ;;  %v539_v29 = vshrl.u32 %v1656_v38, 16  ;;  %v550_v33 = vshll.u32 %v1612_v13, 16 }
  0x18   : > { %275 = vmatpush.bf16.msra.mxu0 %v1444_v15  ;;  %335 = vmatpush.bf16.msra.mxu1 %v1438_v19  ;;  %v456_v54 = vsel %vm453_vm2, %v454_v48, %v455_v49  ;;  %v1469_v62 = vld [vmem:[%s1840_s1 + $0x108] sm:$0xff]  ;;  %v1462_v63 = vld [vmem:[%s1840_s1 + $0xd0] sm:$0xff]  ;;  %v1475_v0 = vld [vmem:[%s1840_s1 + $0x138] sm:$0xff]  ;;  %v288_v19 = vpack.c.b16 %v1619_v16, %v1619_v16 }
  0x19   : > { %416 = vmatpush.bf16.msra.mxu2 %v1450_v24  ;;  %504 = vmatpush.bf16.msra.mxu3 %v1456_v25  ;;  %v223_v52 = vsel %vm211_vm0, %v218_v44, %v222_v45  ;;  %v1481_v1 = vld [vmem:[%s1840_s1 + $0x168] sm:$0xff]  ;;  %v1468_v2 = vld [vmem:[%s1840_s1 + $0x100] sm:$0xff]  ;;  %v790_v5 = vld [vmem:[%s1600_s10 + $0x10] sm:$0x7]  ;;  %v226_v18 = vor.u32 %v224_v6, %v222_v45  ;;  %v552_v44 = vrot.slane %v550_v33, 4 }
  0x1a   : > { %v696_v3 = vld [vmem:[%s1600_s10 + $0x4] sm:$0xc]  ;;  %v1730_v4 = vld [vmem:[%s1600_s10 + $0x8] sm:$0xff]   ;;  %v1474_v8 = vld [vmem:[%s1840_s1 + $0x130] sm:$0xff]  ;;  %v805_v14 = vunpack.c.l.b16 %v790_v5 }
  0x1b   : > { %v1480_v9 = vld [vmem:[%s1840_s1 + $0x160] sm:$0xff]  ;;  %v1496_v10 = vunpack.c.l.b16 %v1730_v4  ;;  %v1497_v11 = vunpack.c.h.b16 %v1730_v4  ;;  %v1461_v15 = vld [vmem:[%s1840_s1 + $0xc8] sm:$0xff]  ;;  %v1467_v17 = vld [vmem:[%s1840_s1 + $0xf8] sm:$0xff] }
  0x1c   : > { %276 = vmatpush.bf16.msra.mxu0 %v1443_v30  ;;  %336 = vmatpush.bf16.msra.mxu1 %v1437_v31  ;;  %v1473_v20 = vld [vmem:[%s1840_s1 + $0x128] sm:$0xff]  ;;  %v1479_v22 = vld [vmem:[%s1840_s1 + $0x158] sm:$0xff]  ;;  %v699_v23 = vld [vmem:[%s1600_s10 + $0x10] sm:$0x3]  ;;  %v542_v31 = vshll.u32 %v1656_v38, 16 }
  0x1d   : > { %417 = vmatpush.bf16.msra.mxu2 %v1449_v35  ;;  %505 = vmatpush.bf16.msra.mxu3 %v1455_v36  ;;  %v1760_v25 = vpack.c.b16 %v805_v14, %v1497_v11  ;;  %v1460_v27 = vld [vmem:[%s1840_s1 + $0xc0] sm:$0xff]  ;;  %v1466_v28 = vld [vmem:[%s1840_s1 + $0xf0] sm:$0xff]  ;;  %v1489_v30 = vld [vmem:[%s1840_s1 + $0x1a8] sm:$0xff]  ;;  %v720_v34 = vunpack.c.l.b16 %v699_v23 }
  0x1e   : > { %v1472_v35 = vld [vmem:[%s1840_s1 + $0x120] sm:$0xff]  ;;  %v1478_v26 = vld [vmem:[%s1840_s1 + $0x150] sm:$0xff] }
  0x1f   : > { %v817_v39 = vshrl.u32 %v1760_v25, 16  ;;  %v820_v38 = vshll.u32 %v1760_v25, 16  ;;  %v722_v45 = vpack.c.b16 %v720_v34, %v1497_v11 }
  0x20   : > { %277 = vmatpush.bf16.msra.mxu0 %v1442_v40  ;;  %337 = vmatpush.bf16.msra.mxu1 %v1436_v41  ;;  %v541_v40 = vrot.slane %v539_v29, 3  ;;  %v1488_v41 = vld [vmem:[%s1840_s1 + $0x1a0] sm:$0xff] }
  0x21   : > { %418 = vmatpush.bf16.msra.mxu2 %v1448_v42  ;;  %506 = vmatpush.bf16.msra.mxu3 %v1454_v43  ;;  %v544_v42 = vrot.slane %v542_v31, 4  ;;  %v549_v43 = vrot.slane %v547_v32, 3  ;;  %v819_v48 = vrot.slane %v817_v39, 2 }
  0x23   : > { %1140 = vmatmul.msk.bf16.vlgmr.msra.gmra.mxu0 %vm263_vm3, %v223_v52  ;;  %1166 = vmatmul.msk.bf16.vlgmr.msra.gmra.mxu1 %vm263_vm3, %v1609_v12  ;;  %v717_v12 = vunpack.c.l.b16 %v696_v3  ;;  %v553_v52 = vor.u32 %v552_v44, %v549_v43  ;;  %v906_v3 = vrot.slane %v1760_v25, 3 }
  0x24   : > { %599 = vmatpush.bf16.msrb.mxu0 %v1465_v50  ;;  %677 = vmatpush.bf16.msrb.mxu1 %v1471_v51  ;;  %v1487_v50 = vld [vmem:[%s1840_s1 + $0x198] sm:$0xff]  ;;  %v545_v51 = vor.u32 %v544_v42, %v541_v40 }
  0x25   : > { %1204 = vmatmul.msk.bf16.vlgmr.msra.gmra.mxu2 %vm263_vm3, %v368_v53  ;;  %1242 = vmatmul.msk.bf16.vlgmr.msra.gmra.mxu3 %vm263_vm3, %v456_v54  ;;  %v721_v24 = vpack.c.b16 %v1496_v10, %v717_v12  ;;  %v725_v54 = vrot.slane %v722_v45, 2 }
  0x26   : > { %771 = vmatpush.bf16.msrb.mxu2 %v1477_v55  ;;  %869 = vmatpush.bf16.msrb.mxu3 %v1483_v56 }
  0x27   : > { %v809_v36 = vshrl.u32 %v721_v24, 16  ;;  %v812_v37 = vshll.u32 %v721_v24, 16  ;;  %v724_v53 = vrot.slane %v721_v24, 2 }
  0x28   : > { %600 = vmatpush.bf16.msrb.mxu0 %v1464_v57  ;;  %678 = vmatpush.bf16.msrb.mxu1 %v1470_v58  ;;  %v631_v57 = vpack.c.b16 %v1619_v16, %v1627_v21  ;;  %v554_v58 = vsel %vm537_vm4, %v545_v51, %v553_v52  ;;  %v1485_v16 = vld [vmem:[%s1840_s1 + $0x188] sm:$0xff]  ;;  %v1484_v21 = vld [vmem:[%s1840_s1 + $0x180] sm:$0xff] }
  0x29   : > { %v811_v46 = vrot.slane %v809_v36, 2 }
  0x2a   : > { %772 = vmatpush.bf16.msrb.mxu2 %v1476_v59  ;;  %870 = vmatpush.bf16.msrb.mxu3 %v1482_v60  ;;  %v726_v59 = vsel %vm723_vm5, %v724_v53, %v725_v54 }
  0x2c   : > { %601 = vmatpush.bf16.msrb.mxu0 %v1463_v61  ;;  %679 = vmatpush.bf16.msrb.mxu1 %v1469_v62  ;;  %v1486_v61 = vld [vmem:[%s1840_s1 + $0x190] sm:$0xff]  ;;  %v632_v62 = vpack.c.b16 %v535_v7, %v535_v7 }
  0x2e   : > { %773 = vmatpush.bf16.msrb.mxu2 %v1475_v0  ;;  %871 = vmatpush.bf16.msrb.mxu3 %v1481_v1 }
  0x30   : > { %602 = vmatpush.bf16.msrb.mxu0 %v1462_v63  ;;  %680 = vmatpush.bf16.msrb.mxu1 %v1468_v2  ;;  %v888_v63 = vld [vmem:[%s1600_s10 + $0x4] sm:$0x8] }
  0x31   : > { %v903_v0 = vunpack.c.l.b16 %v888_v63 }
  0x32   : > { %774 = vmatpush.bf16.msrb.mxu2 %v1474_v8  ;;  %872 = vmatpush.bf16.msrb.mxu3 %v1480_v9 }
  0x33   : > { %1141 = vmatmul.msk.bf16.gmra.mxu0 %vm263_vm3, %v226_v18  ;;  %1167 = vmatmul.msk.bf16.gmra.mxu1 %vm263_vm3, %v288_v19  ;;  %v904_v1 = vpack.c.b16 %v1496_v10, %v903_v0 }
  0x34   : > { %603 = vmatpush.bf16.msrb.mxu0 %v1461_v15  ;;  %681 = vmatpush.bf16.msrb.mxu1 %v1467_v17 }
  0x35   : > { %1205 = vmatmul.msk.bf16.gmra.mxu2 %vm263_vm3, %v367_v47  ;;  %1243 = vmatmul.msk.bf16.gmra.mxu3 %vm263_vm3, %v455_v49  ;;  %v814_v47 = vrot.slane %v812_v37, 3  ;;  %v822_v49 = vrot.slane %v820_v38, 3  ;;  %v905_v2 = vrot.slane %v904_v1, 3 }
  0x36   : > { %775 = vmatpush.bf16.msrb.mxu2 %v1473_v20  ;;  %873 = vmatpush.bf16.msrb.mxu3 %v1479_v22 }
  0x37   : > { %v815_v55 = vor.u32 %v814_v47, %v811_v46  ;;  %v823_v56 = vor.u32 %v822_v49, %v819_v48  ;;  %v907_v13 = vsel %vm453_vm2, %v905_v2, %v906_v3 }
  0x38   : > { %604 = vmatpush.bf16.msrb.mxu0 %v1460_v27  ;;  %682 = vmatpush.bf16.msrb.mxu1 %v1466_v28 }
  0x39   : > { %v824_v60 = vsel %vm807_vm6, %v815_v55, %v823_v56  ;;  %v1515_v55 = vld [vmem:[%s1841_s2] ss:$0 sm:$0xff] }
  0x3a   : > { %776 = vmatpush.bf16.msrb.mxu2 %v1472_v35  ;;  %874 = vmatpush.bf16.msrb.mxu3 %v1478_v26 }
  0x3c   : > { %952 = vmatpush.bf16.msra.mxu0 %v1489_v30  ;;  %1499 = vmatpush.bf16.msra.mxu1 %v1489_v30 }
  0x40   : > { %953 = vmatpush.bf16.msra.mxu0 %v1488_v41  ;;  %1500 = vmatpush.bf16.msra.mxu1 %v1488_v41 }
  0x43   : > { %1280 = vmatmul.msk.bf16.vlgmr.msrb.gmra.mxu0 %vm263_vm3, %v554_v58  ;;  %1318 = vmatmul.msk.bf16.vlgmr.msrb.gmra.mxu1 %vm263_vm3, %v631_v57 }
  0x44   : > { %954 = vmatpush.bf16.msra.mxu0 %v1487_v50  ;;  %1501 = vmatpush.bf16.msra.mxu1 %v1487_v50 }
  0x45   : > { %1356 = vmatmul.msk.bf16.vlgmr.msrb.gmra.mxu2 %vm263_vm3, %v726_v59  ;;  %1394 = vmatmul.msk.bf16.vlgmr.msrb.gmra.mxu3 %vm263_vm3, %v824_v60 }
  0x48   : > { %955 = vmatpush.bf16.msra.mxu0 %v1486_v61  ;;  %1502 = vmatpush.bf16.msra.mxu1 %v1486_v61 }
  0x4c   : > { %956 = vmatpush.bf16.msra.mxu0 %v1485_v16  ;;  %1503 = vmatpush.bf16.msra.mxu1 %v1485_v16 }
  0x50   : > { %957 = vmatpush.bf16.msra.mxu0 %v1484_v21  ;;  %1504 = vmatpush.bf16.msra.mxu1 %v1484_v21 }
  0x53   : > { %1281 = vmatmul.msk.bf16.gmra.mxu0 %vm263_vm3, %v553_v52  ;;  %1319 = vmatmul.msk.bf16.gmra.mxu1 %vm263_vm3, %v632_v62 }
  0x55   : > { %1357 = vmatmul.msk.bf16.gmra.mxu2 %vm263_vm3, %v725_v54  ;;  %1395 = vmatmul.msk.bf16.gmra.mxu3 %vm263_vm3, %v823_v56 }
  0x63   : > { %1432 = vmatmul.msk.bf16.vlgmr.msra.gmra.mxu0 %vm263_vm3, %v907_v13  ;;  %1433 = vmatmul.msk.bf16.vlgmr.msra.gmra.mxu1 %vm263_vm3, %v906_v3 }
  0xa0   : > { %v279_v5 = vpop.f32.mrf.mxu0  ;;  %v339_v6 = vpop.f32.mrf.mxu1 }
  0xa1   : > { %v340_v30 = vadd.f32 %v339_v6, %v279_v5 }
  0xa8   : > { %v420_v7 = vpop.f32.mrf.mxu2  ;;  %v508_v8 = vpop.f32.mrf.mxu3 }
  0xa9   : > { %v281_v9 = vpop.f32.mrf.mxu0  ;;  %v341_v11 = vpop.f32.mrf.mxu1  ;;  %v429_v32 = vadd.f32 %v420_v7, %v340_v30 }
  0xaa   : > { %v342_v38 = vadd.f32 %v341_v11, %v281_v9 }
  0xab   : > { %v517_v37 = vadd.f32 %v508_v8, %v429_v32 }
  0xb0   : > { %v422_v12 = vpop.f32.mrf.mxu2  ;;  %v510_v14 = vpop.f32.mrf.mxu3 }
  0xb1   : > { %v284_v15 = vpop.f32.mrf.mxu0  ;;  %v344_v4 = vpop.f32.mrf.mxu1  ;;  %v430_v42 = vadd.f32 %v422_v12, %v342_v38 }
  0xb2   : > { %v345_v31 = vadd.f32 %v344_v4, %v284_v15 }
  0xb3   : > { %v518_v49 = vadd.f32 %v510_v14, %v430_v42 }
  0xb8   : > { %v425_v10 = vpop.f32.mrf.mxu2  ;;  %v513_v17 = vpop.f32.mrf.mxu3 }
  0xb9   : > { %v286_v18 = vpop.f32.mrf.mxu0  ;;  %v346_v19 = vpop.f32.mrf.mxu1  ;;  %v431_v33 = vadd.f32 %v425_v10, %v345_v31 }
  0xbb   : > { %v519_v39 = vadd.f32 %v513_v17, %v431_v33 }
  0xc0   : > { %v427_v20 = vpop.f32.mrf.mxu2  ;;  %v515_v22 = vpop.f32.mrf.mxu3 }
  0xc1   : > { %v606_v23 = vpop.f32.mrf.mxu0  ;;  %v684_v24 = vpop.f32.mrf.mxu1 }
  0xc2   : > { %v615_v40 = vadd.f32 %v606_v23, %v517_v37 }
  0xc4   : > { %v693_v47 = vadd.f32 %v684_v24, %v615_v40 }
  0xc8   : > { %v778_v25 = vpop.f32.mrf.mxu2  ;;  %v876_v27 = vpop.f32.mrf.mxu3 }
  0xc9   : > { %v608_v28 = vpop.f32.mrf.mxu0  ;;  %v686_v29 = vpop.f32.mrf.mxu1  ;;  %v787_v50 = vadd.f32 %v778_v25, %v693_v47 }
  0xca   : > { %v616_v52 = vadd.f32 %v608_v28, %v518_v49 }
  0xcb   : > { %v885_v53 = vadd.f32 %v876_v27, %v787_v50 }
  0xcc   : > { %v694_v60 = vadd.f32 %v686_v29, %v616_v52 }
  0xd0   : > { %v780_v34 = vpop.f32.mrf.mxu2  ;;  %v878_v35 = vpop.f32.mrf.mxu3 }
  0xd1   : > { %v611_v26 = vpop.f32.mrf.mxu0  ;;  %v689_v36 = vpop.f32.mrf.mxu1  ;;  %v788_v21 = vadd.f32 %v780_v34, %v694_v60 }
  0xd2   : > { %v617_v41 = vadd.f32 %v611_v26, %v519_v39 }
  0xd3   : > { %v886_v2 = vadd.f32 %v878_v35, %v788_v21 }
  0xd4   : > { %v695_v48 = vadd.f32 %v689_v36, %v617_v41 }
  0xd8   : > { %v783_v43 = vpop.f32.mrf.mxu2  ;;  %v881_v44 = vpop.f32.mrf.mxu3 }
  0xd9   : > { %v613_v45 = vpop.f32.mrf.mxu0  ;;  %v691_v46 = vpop.f32.mrf.mxu1  ;;  %v789_v51 = vadd.f32 %v783_v43, %v695_v48 }
  0xdb   : > { %v887_v54 = vadd.f32 %v881_v44, %v789_v51 }
  0xe0   : > { %v785_v56 = vpop.f32.mrf.mxu2  ;;  %v883_v57 = vpop.f32.mrf.mxu3 }
  0xe1   : > { %v959_v58 = vpop.f32.mrf.mxu0  ;;  %v964_v59 = vpop.f32.mrf.mxu1 }
  0xe2   : > { %v968_v61 = vadd.f32 %v959_v58, %v885_v53  ;;  %v970_v16 = vadd.f32 %v964_v59, %v887_v54 }
  0xe4   : > { %v975_v62 = vadd.f32 %v1515_v55, %v968_v61  ;;  %v977_v63 = vadd.f32 %v1515_v55, %v970_v16 }
  0xe6   : > { %v978_v0 = vsub.f32 0.0, %v975_v62  ;;  %v980_v1 = vsub.f32 0.0, %v977_v63 }
  0xe8   : > { %v981_v3 = vmul.f32 1.442695, %v978_v0  ;;  %v985_v13 = vmul.f32 1.442695, %v980_v1 }
  0xe9   : > { %v961_v5 = vpop.f32.mrf.mxu0  ;;  %v966_v6 = vpop.f32.mrf.mxu1 }
  0xea   : > { %1516 = vpow2.f32 %v981_v3  ;;  %v969_v7 = vadd.f32 %v961_v5, %v886_v2 }
  0xeb   : > { %1518 = vpow2.f32 %v985_v13 }
  0xec   : > { %v976_v8 = vadd.f32 %v1515_v55, %v969_v7 }
  0xee   : > { %v979_v9 = vsub.f32 0.0, %v976_v8 }
  0xf0   : > { %v1517_v11 = vpop.eup %1516  ;;  %v983_v12 = vmul.f32 1.442695, %v979_v9 }
  0xf1   : > { %v1519_v14 = vpop.eup %1518  ;;  %v987_v15 = vadd.f32 1.0, %v1517_v11 }
  0xf2   : > { %v989_v4 = vadd.f32 1.0, %v1519_v14  ;;  %1520 = vpow2.f32 %v983_v12 }
  0xf3   : > { %1522 = vrcp.f32 %v987_v15  ;;  %v1001_v24 = vand.u32 2147483648, %v987_v15  ;;  %v999_v28 = vand.u32 2147483647, %v987_v15  ;;  %vm995_vm9 = vweird.f32 %v987_v15 }
  0xf4   : > { %1524 = vrcp.f32 %v989_v4  ;;  %v1031_v29 = vand.u32 2147483648, %v989_v4  ;;  %v1029_v31 = vand.u32 2147483647, %v989_v4  ;;  %vm1025_vm11 = vweird.f32 %v989_v4 }
  0xf5   : > { %v1002_v34 = vor.u32 1.1754944e-38, %v1001_v24  ;;  %vm1000_vm12 = vcmp.eq.f32.partialorder %v999_v28, 8.507059e+37 }
  0xf6   : > { %v1032_v36 = vor.u32 1.1754944e-38, %v1031_v29  ;;  %vm1030_vm15 = vcmp.eq.f32.partialorder %v1029_v31, 8.507059e+37 }
  0xf8   : > { %v1521_v10 = vpop.eup %1520 }
  0xf9   : > { %v1523_v17 = vpop.eup %1522  ;;  %v988_v18 = vadd.f32 1.0, %v1521_v10 }
  0xfa   : > { %v1525_v19 = vpop.eup %1524  ;;  %v991_v20 = vmul.f32 %v1523_v17, %v987_v15  ;;  %vm996_vm7 = vweird.f32 %v1523_v17 }
  0xfb   : > { %v1021_v22 = vmul.f32 %v1525_v19, %v989_v4  ;;  %1526 = vrcp.f32 %v988_v18  ;;  %vm1026_vm8 = vweird.f32 %v1525_v19  ;;  %vm997_vm10 = vmor %vm995_vm9, %vm996_vm7  ;;  %v1016_v44 = vand.u32 2147483648, %v988_v18 }
  0xfc   : > { %v992_v23 = vsub.f32 1.0, %v991_v20  ;;  %vm1027_vm13 = vmor %vm1025_vm11, %vm1026_vm8  ;;  %v1014_v46 = vand.u32 2147483647, %v988_v18  ;;  %vm1010_vm1 = vweird.f32 %v988_v18 }
  0xfd   : > { %v1022_v25 = vsub.f32 1.0, %v1021_v22  ;;  %v1017_v48 = vor.u32 1.1754944e-38, %v1016_v44 }
  0xfe   : > { %v993_v27 = vmul.f32 %v1523_v17, %v992_v23  ;;  %vm1015_vm3 = vcmp.eq.f32.partialorder %v1014_v46, 8.507059e+37 }
  0xff   : > { %v1023_v30 = vmul.f32 %v1525_v19, %v1022_v25 }
 0x100   : > { %v994_v32 = vadd.f32 %v1523_v17, %v993_v27 }
 0x101   : > { %v1527_v33 = vpop.eup %1526  ;;  %v1024_v35 = vadd.f32 %v1525_v19, %v1023_v30 }
 0x102   : > { %v998_v26 = vsel %vm997_vm10, %v1523_v17, %v994_v32  ;;  %v1006_v37 = vmul.f32 %v1527_v33, %v988_v18  ;;  %vm1011_vm0 = vweird.f32 %v1527_v33 }
 0x103   : > { %v1003_v39 = vsel %vm1000_vm12, %v1002_v34, %v998_v26  ;;  %v1028_v38 = vsel %vm1027_vm13, %v1525_v19, %v1024_v35  ;;  %vm1012_vm2 = vmor %vm1010_vm1, %vm1011_vm0 }
 0x104   : > { %v1035_v40 = vpack.c.bf16 %v1003_v39, %v1003_v39  ;;  %v1033_v41 = vsel %vm1030_vm15, %v1032_v36, %v1028_v38  ;;  %v1007_v42 = vsub.f32 1.0, %v1006_v37 }
 0x105   : > { %v1037_v43 = vpack.c.bf16 %v1033_v41, %v1033_v41 }
 0x106   : > { %1039 = vst.msk [vmem:[%s170_s6] sm:$0xf] %vm1038_vm14, %v1035_v40  ;;  %v1008_v45 = vmul.f32 %v1527_v33, %v1007_v42 }
 0x107   : > { %1041 = vst.msk [vmem:[%s170_s6 + $0x8] sm:$0xf] %vm1038_vm14, %v1037_v43 }
 0x108   : > { %v1009_v47 = vadd.f32 %v1527_v33, %v1008_v45 }
 0x10a   : > { %v1013_v49 = vsel %vm1012_vm2, %v1527_v33, %v1009_v47 }
 0x10b   : > { %v1018_v50 = vsel %vm1015_vm3, %v1017_v48, %v1013_v49 }
 0x10c   : > { %v1036_v51 = vpack.c.bf16 %v1018_v50, %v1018_v50 }
 0x10e   : > { %1040 = vst.msk [vmem:[%s170_s6 + $0x4] sm:$0xf] %vm1038_vm14, %v1036_v51 }
 0x10f PF: > { %s13_s12 = sadd.s32 1, %s1534_s12  }
 0x110   : > { %p10_p4 = scmp.ge.s32.totalorder %s13_s12, 4  }
 0x112   :  { %12 = sbr.rel (!%p10_p4) target bundleno = 1 (0x1), region = 70 }

// kernel: raft_forward.47
= control target key start
LH: loop header
LB: loop body
LE: loop exit
PB: predicated region body
PF: predicated region fallthrough
CT: control target
= control target key end

     0   :  { %s1658_s18 = smov 0   ;;  %s1949_s0 = inlined_call_operand.vmem [shape: bf16[2,1,48,96], index: 0, kind: input, shape index: {}]   ;;  %s1950_s1 = inlined_call_operand.vmem [shape: bf16[9,96,32], index: 1, kind: input, shape index: {}]   ;;  %s1951_s2 = inlined_call_operand.vmem [shape: f32[1,32], index: 2, kind: input, shape index: {}]   ;;  %s1952_s3 = inlined_call_operand.vmem [shape: bf16[2,24,32], index: 3, kind: input, shape index: {}]   ;;  %s1953_s4 = inlined_call_operand.vmem [shape: bf16[2,24,32], index: 4, kind: input, shape index: {}]   ;;  %s1954_s5 = inlined_call_operand.vmem [shape: bf16[2,24,32], index: 5, kind: output, shape index: {}]  }
   0x1 LB: > { %s1185_s19 = sadd.s32 4294967295, %s1626_s18   ;;  %p1189_p0 = scmp.ge.s32.totalorder %s1626_s18, 1  ;;  %s1626_s18 = sphi %s1658_s18, %s15_s18  }
   0x2   : > { %p207_p1 = scmp.lt.s32.totalorder %s1626_s18, 3 }
   0x4   : > { %p208_p2 = pnand %p1189_p0, %p207_p1 }
   0x5   : > { %p245_p3 = scmp.lt.s32.totalorder (!%p208_p2), %s1185_s19, 1 }
   0x6   : > { %211 = sbr.rel (%p208_p2) target bundleno = 252 (0xfc), region = 40 }
   0xb   : > { %v1537_v0 = vld [vmem:[%s1950_s1 + $0x58] sm:$0xff]  ;;  %v1531_v1 = vld [vmem:[%s1950_s1 + $0x28] sm:$0xff]  ;;  %v1536_v4 = vld [vmem:[%s1950_s1 + $0x50] sm:$0xff]  ;;  %s1956_s19 = smov (!%p245_p3, %s1185_s19), 1  ;;  %vm305_vm0 = vsmask.f32 7424 }
   0xc   : > { %v1543_v2 = vld [vmem:[%s1950_s1 + $0x88] sm:$0xff]  ;;  %v1549_v3 = vld [vmem:[%s1950_s1 + $0xb8] sm:$0xff]  ;;  %366 = vmatpush.bf16.msra.mxu0 %v1537_v0  ;;  %426 = vmatpush.bf16.msra.mxu1 %v1531_v1  ;;  %v1530_v5 = vld [vmem:[%s1950_s1 + $0x20] sm:$0xff]  ;;  %s1603_s11 = smul.u32 24, %s1956_s19  ;;  %vm459_vm1 = vcmask 1046528   ;;  %vm547_vm2 = vcmask 1044480  }
   0xd   : > { %507 = vmatpush.bf16.msra.mxu2 %v1543_v2  ;;  %595 = vmatpush.bf16.msra.mxu3 %v1549_v3  ;;  %v1542_v6 = vld [vmem:[%s1950_s1 + $0x80] sm:$0xff]  ;;  %v1548_v7 = vld [vmem:[%s1950_s1 + $0xb0] sm:$0xff]  ;;  %v1535_v8 = vld [vmem:[%s1950_s1 + $0x48] sm:$0xff]  ;;  %vm357_vm3 = vcmask 785408   ;;  %vm631_vm4 = vsmask.f32 4352 }
   0xe   : > { %v1529_v9 = vld [vmem:[%s1950_s1 + $0x18] sm:$0xff]  ;;  %s1702_s20 = scalar_lea.vmem %s1949_s0, %s1603_s11  ;;  %v1547_v11 = vld [vmem:[%s1950_s1 + $0xa8] sm:$0xff]  ;;  %v1534_v15 = vld [vmem:[%s1950_s1 + $0x40] sm:$0xff]  ;;  %vm817_vm5 = vcmask 1045504   ;;  %vm901_vm6 = vsmask.f32 5376 }
   0xf   : > { %v1541_v10 = vld [vmem:[%s1950_s1 + $0x78] sm:$0xff]  ;;  %v1711_v12 = vld [vmem:[%s1702_s20] sm:$0xff]   ;;  %v1714_v13 = vld [vmem:[%s1702_s20 + $0x8] sm:$0xff]   ;;  %vm1102_vm7 = vcmask 257024  }
  0x10   : > { %367 = vmatpush.bf16.msra.mxu0 %v1536_v4  ;;  %427 = vmatpush.bf16.msra.mxu1 %v1530_v5  ;;  %v281_v14 = vld [vmem:[%s1702_s20 + $0xc] sm:$0x1]  ;;  %v1721_v16 = vunpack.c.l.b16 %v1714_v13  ;;  %v442_v18 = vld [vmem:[%s1702_s20] sm:$0xe]  ;;  %v1528_v19 = vld [vmem:[%s1950_s1 + $0x10] sm:$0xff]  ;;  %v309_v20 = vshll.u32 %v1711_v12, 16  ;;  %v1729_v21 = vunpack.c.h.b16 %v1711_v12 }
  0x11   : > { %508 = vmatpush.bf16.msra.mxu2 %v1542_v6  ;;  %596 = vmatpush.bf16.msra.mxu3 %v1548_v7  ;;  %v302_v17 = vunpack.c.l.b16 %v281_v14  ;;  %v526_v22 = vld [vmem:[%s1702_s20] sm:$0x8]  ;;  %v527_v23 = vld [vmem:[%s1702_s20 + $0xc] sm:$0x7]  ;;  %v1540_v24 = vld [vmem:[%s1950_s1 + $0x70] sm:$0xff]  ;;  %v457_v27 = vunpack.c.l.b16 %v442_v18  ;;  %v307_v32 = vshrl.u32 %v1711_v12, 16  ;;  %v629_v7 = vunpack.c.h.b16 %v1714_v13 }
  0x12   : > { %v1546_v25 = vld [vmem:[%s1950_s1 + $0xa0] sm:$0xff]  ;;  %v543_v28 = vunpack.c.l.b16 %v526_v22  ;;  %v544_v29 = vunpack.c.l.b16 %v527_v23  ;;  %v1533_v30 = vld [vmem:[%s1950_s1 + $0x38] sm:$0xff]  ;;  %v1527_v31 = vld [vmem:[%s1950_s1 + $0x8] sm:$0xff]  ;;  %v311_v33 = vrot.slane %v309_v20, 1 }
  0x13   : > { %v1740_v26 = vpack.c.b16 %v302_v17, %v1721_v16  ;;  %v1539_v35 = vld [vmem:[%s1950_s1 + $0x68] sm:$0xff]  ;;  %v1545_v36 = vld [vmem:[%s1950_s1 + $0x98] sm:$0xff]  ;;  %v458_v37 = vpack.c.b16 %v1729_v21, %v457_v27  ;;  %v1532_v40 = vld [vmem:[%s1950_s1 + $0x30] sm:$0xff] }
  0x14   : > { %368 = vmatpush.bf16.msra.mxu0 %v1535_v8  ;;  %428 = vmatpush.bf16.msra.mxu1 %v1529_v9  ;;  %v1758_v38 = vpack.c.b16 %v1729_v21, %v543_v28  ;;  %v1761_v39 = vpack.c.b16 %v544_v29, %v1721_v16  ;;  %v1526_v41 = vld [vmem:[%s1950_s1] sm:$0xff]  ;;  %v1544_v43 = vld [vmem:[%s1950_s1 + $0x90] sm:$0xff]  ;;  %v312_v44 = vor.u32 %v311_v33, %v307_v32  ;;  %v1555_v50 = vld [vmem:[%s1950_s1 + $0xe8] sm:$0xff]  ;;  %v641_v32 = vshrl.u32 %v1714_v13, 16 }
  0x15   : > { %509 = vmatpush.bf16.msra.mxu2 %v1541_v10  ;;  %597 = vmatpush.bf16.msra.mxu3 %v1547_v11  ;;  %v314_v34 = vshll.u32 %v1740_v26, 16  ;;  %v1538_v42 = vld [vmem:[%s1950_s1 + $0x60] sm:$0xff]  ;;  %v460_v46 = vrot.slane %v458_v37, 1  ;;  %v461_v47 = vrot.slane %v1740_v26, 1  ;;  %v1561_v51 = vld [vmem:[%s1950_s1 + $0x118] sm:$0xff]  ;;  %v1567_v55 = vld [vmem:[%s1950_s1 + $0x148] sm:$0xff] }
  0x16   : > { %v548_v48 = vrot.slane %v1758_v38, 3  ;;  %v549_v49 = vrot.slane %v1761_v39, 3  ;;  %v1573_v56 = vld [vmem:[%s1950_s1 + $0x178] sm:$0xff]  ;;  %v1554_v57 = vld [vmem:[%s1950_s1 + $0xe0] sm:$0xff]  ;;  %v1560_v58 = vld [vmem:[%s1950_s1 + $0x110] sm:$0xff]  ;;  %v318_v6 = vshrl.u32 %v1740_v26, 16 }
  0x17   : > { %v316_v45 = vrot.slane %v314_v34, 1  ;;  %v462_v53 = vsel %vm459_vm1, %v460_v46, %v461_v47  ;;  %v1566_v59 = vld [vmem:[%s1950_s1 + $0x140] sm:$0xff]  ;;  %v1572_v60 = vld [vmem:[%s1950_s1 + $0x170] sm:$0xff]  ;;  %v1553_v61 = vld [vmem:[%s1950_s1 + $0xd8] sm:$0xff]  ;;  %v633_v29 = vshrl.u32 %v1758_v38, 16  ;;  %v644_v33 = vshll.u32 %v1714_v13, 16 }
  0x18   : > { %369 = vmatpush.bf16.msra.mxu0 %v1534_v15  ;;  %429 = vmatpush.bf16.msra.mxu1 %v1528_v19  ;;  %v550_v54 = vsel %vm547_vm2, %v548_v48, %v549_v49  ;;  %v1559_v62 = vld [vmem:[%s1950_s1 + $0x108] sm:$0xff]  ;;  %v1552_v63 = vld [vmem:[%s1950_s1 + $0xd0] sm:$0xff]  ;;  %v1565_v0 = vld [vmem:[%s1950_s1 + $0x138] sm:$0xff]  ;;  %v382_v19 = vpack.c.b16 %v1721_v16, %v1721_v16 }
  0x19   : > { %510 = vmatpush.bf16.msra.mxu2 %v1540_v24  ;;  %598 = vmatpush.bf16.msra.mxu3 %v1546_v25  ;;  %v317_v52 = vsel %vm305_vm0, %v312_v44, %v316_v45  ;;  %v1571_v1 = vld [vmem:[%s1950_s1 + $0x168] sm:$0xff]  ;;  %v1558_v2 = vld [vmem:[%s1950_s1 + $0x100] sm:$0xff]  ;;  %v884_v5 = vld [vmem:[%s1702_s20 + $0x10] sm:$0x7]  ;;  %v320_v18 = vor.u32 %v318_v6, %v316_v45  ;;  %v646_v44 = vrot.slane %v644_v33, 4 }
  0x1a   : > { %v790_v3 = vld [vmem:[%s1702_s20 + $0x4] sm:$0xc]  ;;  %v1832_v4 = vld [vmem:[%s1702_s20 + $0x8] sm:$0xff]   ;;  %v1564_v8 = vld [vmem:[%s1950_s1 + $0x130] sm:$0xff]  ;;  %v899_v14 = vunpack.c.l.b16 %v884_v5 }
  0x1b   : > { %v1570_v9 = vld [vmem:[%s1950_s1 + $0x160] sm:$0xff]  ;;  %v1586_v10 = vunpack.c.l.b16 %v1832_v4  ;;  %v1587_v11 = vunpack.c.h.b16 %v1832_v4  ;;  %v1551_v15 = vld [vmem:[%s1950_s1 + $0xc8] sm:$0xff]  ;;  %v1557_v17 = vld [vmem:[%s1950_s1 + $0xf8] sm:$0xff] }
  0x1c   : > { %370 = vmatpush.bf16.msra.mxu0 %v1533_v30  ;;  %430 = vmatpush.bf16.msra.mxu1 %v1527_v31  ;;  %v1563_v20 = vld [vmem:[%s1950_s1 + $0x128] sm:$0xff]  ;;  %v1569_v22 = vld [vmem:[%s1950_s1 + $0x158] sm:$0xff]  ;;  %v793_v23 = vld [vmem:[%s1702_s20 + $0x10] sm:$0x3]  ;;  %v636_v31 = vshll.u32 %v1758_v38, 16 }
  0x1d   : > { %511 = vmatpush.bf16.msra.mxu2 %v1539_v35  ;;  %599 = vmatpush.bf16.msra.mxu3 %v1545_v36  ;;  %v1862_v25 = vpack.c.b16 %v899_v14, %v1587_v11  ;;  %v1550_v27 = vld [vmem:[%s1950_s1 + $0xc0] sm:$0xff]  ;;  %v1556_v28 = vld [vmem:[%s1950_s1 + $0xf0] sm:$0xff]  ;;  %v1579_v30 = vld [vmem:[%s1950_s1 + $0x1a8] sm:$0xff]  ;;  %v814_v34 = vunpack.c.l.b16 %v793_v23 }
  0x1e   : > { %v1562_v35 = vld [vmem:[%s1950_s1 + $0x120] sm:$0xff]  ;;  %v1568_v26 = vld [vmem:[%s1950_s1 + $0x150] sm:$0xff] }
  0x1f   : > { %v911_v39 = vshrl.u32 %v1862_v25, 16  ;;  %v914_v38 = vshll.u32 %v1862_v25, 16  ;;  %v816_v45 = vpack.c.b16 %v814_v34, %v1587_v11 }
  0x20   : > { %371 = vmatpush.bf16.msra.mxu0 %v1532_v40  ;;  %431 = vmatpush.bf16.msra.mxu1 %v1526_v41  ;;  %v635_v40 = vrot.slane %v633_v29, 3  ;;  %v1578_v41 = vld [vmem:[%s1950_s1 + $0x1a0] sm:$0xff] }
  0x21   : > { %512 = vmatpush.bf16.msra.mxu2 %v1538_v42  ;;  %600 = vmatpush.bf16.msra.mxu3 %v1544_v43  ;;  %v638_v42 = vrot.slane %v636_v31, 4  ;;  %v643_v43 = vrot.slane %v641_v32, 3  ;;  %v913_v48 = vrot.slane %v911_v39, 2 }
  0x23   : > { %1230 = vmatmul.msk.bf16.vlgmr.msra.gmra.mxu0 %vm357_vm3, %v317_v52  ;;  %1256 = vmatmul.msk.bf16.vlgmr.msra.gmra.mxu1 %vm357_vm3, %v1711_v12  ;;  %v811_v12 = vunpack.c.l.b16 %v790_v3  ;;  %v647_v52 = vor.u32 %v646_v44, %v643_v43  ;;  %v1000_v3 = vrot.slane %v1862_v25, 3 }
  0x24   : > { %693 = vmatpush.bf16.msrb.mxu0 %v1555_v50  ;;  %771 = vmatpush.bf16.msrb.mxu1 %v1561_v51  ;;  %v1577_v50 = vld [vmem:[%s1950_s1 + $0x198] sm:$0xff]  ;;  %v639_v51 = vor.u32 %v638_v42, %v635_v40 }
  0x25   : > { %1294 = vmatmul.msk.bf16.vlgmr.msra.gmra.mxu2 %vm357_vm3, %v462_v53  ;;  %1332 = vmatmul.msk.bf16.vlgmr.msra.gmra.mxu3 %vm357_vm3, %v550_v54  ;;  %v815_v24 = vpack.c.b16 %v1586_v10, %v811_v12  ;;  %v819_v54 = vrot.slane %v816_v45, 2 }
  0x26   : > { %865 = vmatpush.bf16.msrb.mxu2 %v1567_v55  ;;  %963 = vmatpush.bf16.msrb.mxu3 %v1573_v56 }
  0x27   : > { %v903_v36 = vshrl.u32 %v815_v24, 16  ;;  %v906_v37 = vshll.u32 %v815_v24, 16  ;;  %v818_v53 = vrot.slane %v815_v24, 2 }
  0x28   : > { %694 = vmatpush.bf16.msrb.mxu0 %v1554_v57  ;;  %772 = vmatpush.bf16.msrb.mxu1 %v1560_v58  ;;  %v725_v57 = vpack.c.b16 %v1721_v16, %v1729_v21  ;;  %v648_v58 = vsel %vm631_vm4, %v639_v51, %v647_v52  ;;  %v1575_v16 = vld [vmem:[%s1950_s1 + $0x188] sm:$0xff]  ;;  %v1574_v21 = vld [vmem:[%s1950_s1 + $0x180] sm:$0xff] }
  0x29   : > { %v905_v46 = vrot.slane %v903_v36, 2 }
  0x2a   : > { %866 = vmatpush.bf16.msrb.mxu2 %v1566_v59  ;;  %964 = vmatpush.bf16.msrb.mxu3 %v1572_v60  ;;  %v820_v59 = vsel %vm817_vm5, %v818_v53, %v819_v54 }
  0x2c   : > { %695 = vmatpush.bf16.msrb.mxu0 %v1553_v61  ;;  %773 = vmatpush.bf16.msrb.mxu1 %v1559_v62  ;;  %v1576_v61 = vld [vmem:[%s1950_s1 + $0x190] sm:$0xff]  ;;  %v726_v62 = vpack.c.b16 %v629_v7, %v629_v7 }
  0x2e   : > { %867 = vmatpush.bf16.msrb.mxu2 %v1565_v0  ;;  %965 = vmatpush.bf16.msrb.mxu3 %v1571_v1 }
  0x30   : > { %696 = vmatpush.bf16.msrb.mxu0 %v1552_v63  ;;  %774 = vmatpush.bf16.msrb.mxu1 %v1558_v2  ;;  %v982_v63 = vld [vmem:[%s1702_s20 + $0x4] sm:$0x8]  ;;  %s1929_s20 = smul.u32 12, %s1956_s19 }
  0x31   : > { %v997_v0 = vunpack.c.l.b16 %v982_v63 }
  0x32   : > { %868 = vmatpush.bf16.msrb.mxu2 %v1564_v8  ;;  %966 = vmatpush.bf16.msrb.mxu3 %v1570_v9  ;;  %s254_s23 = scalar_lea.vmem %s1952_s3, %s1929_s20  ;;  %s259_s27 = scalar_lea.vmem %s1953_s4, %s1929_s20 }
  0x33   : > { %1231 = vmatmul.msk.bf16.gmra.mxu0 %vm357_vm3, %v320_v18  ;;  %1257 = vmatmul.msk.bf16.gmra.mxu1 %vm357_vm3, %v382_v19  ;;  %v998_v1 = vpack.c.b16 %v1586_v10, %v997_v0  ;;  %s264_s30 = scalar_lea.vmem %s1954_s5, %s1929_s20 }
  0x34   : > { %697 = vmatpush.bf16.msrb.mxu0 %v1551_v15  ;;  %775 = vmatpush.bf16.msrb.mxu1 %v1557_v17 }
  0x35   : > { %1295 = vmatmul.msk.bf16.gmra.mxu2 %vm357_vm3, %v461_v47  ;;  %1333 = vmatmul.msk.bf16.gmra.mxu3 %vm357_vm3, %v549_v49  ;;  %v908_v47 = vrot.slane %v906_v37, 3  ;;  %v916_v49 = vrot.slane %v914_v38, 3  ;;  %v999_v2 = vrot.slane %v998_v1, 3 }
  0x36   : > { %869 = vmatpush.bf16.msrb.mxu2 %v1563_v20  ;;  %967 = vmatpush.bf16.msrb.mxu3 %v1569_v22 }
  0x37   : > { %v909_v55 = vor.u32 %v908_v47, %v905_v46  ;;  %v917_v56 = vor.u32 %v916_v49, %v913_v48  ;;  %v1001_v13 = vsel %vm547_vm2, %v999_v2, %v1000_v3  ;;  %v1593_v2 = vld [vmem:[%s259_s27] sm:$0xff]  }
  0x38   : > { %698 = vmatpush.bf16.msrb.mxu0 %v1550_v27  ;;  %776 = vmatpush.bf16.msrb.mxu1 %v1556_v28 }
  0x39   : > { %v918_v60 = vsel %vm901_vm6, %v909_v55, %v917_v56  ;;  %v1613_v55 = vld [vmem:[%s1951_s2] ss:$0 sm:$0xff] }
  0x3a   : > { %870 = vmatpush.bf16.msrb.mxu2 %v1562_v35  ;;  %968 = vmatpush.bf16.msrb.mxu3 %v1568_v26 }
  0x3c   : > { %1046 = vmatpush.bf16.msra.mxu0 %v1579_v30  ;;  %1597 = vmatpush.bf16.msra.mxu1 %v1579_v30 }
  0x40   : > { %1047 = vmatpush.bf16.msra.mxu0 %v1578_v41  ;;  %1598 = vmatpush.bf16.msra.mxu1 %v1578_v41 }
  0x43   : > { %1370 = vmatmul.msk.bf16.vlgmr.msrb.gmra.mxu0 %vm357_vm3, %v648_v58  ;;  %1408 = vmatmul.msk.bf16.vlgmr.msrb.gmra.mxu1 %vm357_vm3, %v725_v57 }
  0x44   : > { %1048 = vmatpush.bf16.msra.mxu0 %v1577_v50  ;;  %1599 = vmatpush.bf16.msra.mxu1 %v1577_v50 }
  0x45   : > { %1446 = vmatmul.msk.bf16.vlgmr.msrb.gmra.mxu2 %vm357_vm3, %v820_v59  ;;  %1484 = vmatmul.msk.bf16.vlgmr.msrb.gmra.mxu3 %vm357_vm3, %v918_v60 }
  0x48   : > { %1049 = vmatpush.bf16.msra.mxu0 %v1576_v61  ;;  %1600 = vmatpush.bf16.msra.mxu1 %v1576_v61  ;;  %v1077_v61 = vld [vmem:[%s254_s23 + $0x8] sm:$0xf] }
  0x4c   : > { %1050 = vmatpush.bf16.msra.mxu0 %v1575_v16  ;;  %1601 = vmatpush.bf16.msra.mxu1 %v1575_v16 }
  0x50   : > { %1051 = vmatpush.bf16.msra.mxu0 %v1574_v21  ;;  %1602 = vmatpush.bf16.msra.mxu1 %v1574_v21 }
  0x53   : > { %1371 = vmatmul.msk.bf16.gmra.mxu0 %vm357_vm3, %v647_v52  ;;  %1409 = vmatmul.msk.bf16.gmra.mxu1 %vm357_vm3, %v726_v62 }
  0x55   : > { %1447 = vmatmul.msk.bf16.gmra.mxu2 %vm357_vm3, %v819_v54  ;;  %1485 = vmatmul.msk.bf16.gmra.mxu3 %vm357_vm3, %v917_v56  ;;  %v1589_v56 = vld [vmem:[%s254_s23] sm:$0xff]  }
  0x56   : > { %v1590_v63 = vunpack.c.l.bf16 %v1589_v56 }
  0x63   : > { %1522 = vmatmul.msk.bf16.vlgmr.msra.gmra.mxu0 %vm357_vm3, %v1001_v13  ;;  %1523 = vmatmul.msk.bf16.vlgmr.msra.gmra.mxu1 %vm357_vm3, %v1000_v3  ;;  %v1080_v13 = vunpack.c.l.bf16 %v1077_v61 }
  0xa0   : > { %v373_v5 = vpop.f32.mrf.mxu0  ;;  %v433_v6 = vpop.f32.mrf.mxu1 }
  0xa1   : > { %v434_v30 = vadd.f32 %v433_v6, %v373_v5  ;;  %v1083_v5 = vld [vmem:[%s259_s27 + $0x8] sm:$0xf]  ;;  %v1594_v6 = vunpack.c.l.bf16 %v1593_v2 }
  0xa8   : > { %v514_v7 = vpop.f32.mrf.mxu2  ;;  %v602_v8 = vpop.f32.mrf.mxu3 }
  0xa9   : > { %v375_v9 = vpop.f32.mrf.mxu0  ;;  %v435_v11 = vpop.f32.mrf.mxu1  ;;  %v523_v32 = vadd.f32 %v514_v7, %v434_v30  ;;  %v1087_v7 = vsub.f32 1.0, %v1590_v63 }
  0xaa   : > { %v436_v38 = vadd.f32 %v435_v11, %v375_v9  ;;  %v1086_v9 = vunpack.c.l.bf16 %v1083_v5  ;;  %v1089_v11 = vsub.f32 1.0, %v1080_v13 }
  0xab   : > { %v611_v37 = vadd.f32 %v602_v8, %v523_v32 }
  0xb0   : > { %v516_v12 = vpop.f32.mrf.mxu2  ;;  %v604_v14 = vpop.f32.mrf.mxu3 }
  0xb1   : > { %v378_v15 = vpop.f32.mrf.mxu0  ;;  %v438_v4 = vpop.f32.mrf.mxu1  ;;  %v524_v42 = vadd.f32 %v516_v12, %v436_v38 }
  0xb2   : > { %v439_v31 = vadd.f32 %v438_v4, %v378_v15  ;;  %v1090_v4 = vmul.f32 %v1594_v6, %v1087_v7 }
  0xb3   : > { %v612_v49 = vadd.f32 %v604_v14, %v524_v42 }
  0xb8   : > { %v519_v10 = vpop.f32.mrf.mxu2  ;;  %v607_v17 = vpop.f32.mrf.mxu3 }
  0xb9   : > { %v380_v18 = vpop.f32.mrf.mxu0  ;;  %v440_v19 = vpop.f32.mrf.mxu1  ;;  %v525_v33 = vadd.f32 %v519_v10, %v439_v31  ;;  %v1591_v10 = vunpack.c.h.bf16 %v1589_v56 }
  0xba   : > { %v1092_v18 = vmul.f32 %v1089_v11, %v1086_v9 }
  0xbb   : > { %v613_v39 = vadd.f32 %v607_v17, %v525_v33 }
  0xc0   : > { %v521_v20 = vpop.f32.mrf.mxu2  ;;  %v609_v22 = vpop.f32.mrf.mxu3 }
  0xc1   : > { %v700_v23 = vpop.f32.mrf.mxu0  ;;  %v778_v24 = vpop.f32.mrf.mxu1 }
  0xc2   : > { %v709_v40 = vadd.f32 %v700_v23, %v611_v37 }
  0xc4   : > { %v787_v47 = vadd.f32 %v778_v24, %v709_v40 }
  0xc8   : > { %v872_v25 = vpop.f32.mrf.mxu2  ;;  %v970_v27 = vpop.f32.mrf.mxu3 }
  0xc9   : > { %v702_v28 = vpop.f32.mrf.mxu0  ;;  %v780_v29 = vpop.f32.mrf.mxu1  ;;  %v881_v50 = vadd.f32 %v872_v25, %v787_v47  ;;  %v1595_v25 = vunpack.c.h.bf16 %v1593_v2 }
  0xca   : > { %v710_v52 = vadd.f32 %v702_v28, %v612_v49 }
  0xcb   : > { %v979_v53 = vadd.f32 %v970_v27, %v881_v50  ;;  %v1088_v27 = vsub.f32 1.0, %v1591_v10 }
  0xcc   : > { %v788_v16 = vadd.f32 %v780_v29, %v710_v52 }
  0xcd   : > { %v1091_v31 = vmul.f32 %v1595_v25, %v1088_v27 }
  0xd0   : > { %v874_v34 = vpop.f32.mrf.mxu2  ;;  %v972_v35 = vpop.f32.mrf.mxu3 }
  0xd1   : > { %v705_v26 = vpop.f32.mrf.mxu0  ;;  %v783_v36 = vpop.f32.mrf.mxu1  ;;  %v882_v0 = vadd.f32 %v874_v34, %v788_v16 }
  0xd2   : > { %v711_v41 = vadd.f32 %v705_v26, %v613_v39 }
  0xd3   : > { %v980_v8 = vadd.f32 %v972_v35, %v882_v0 }
  0xd4   : > { %v789_v48 = vadd.f32 %v783_v36, %v711_v41 }
  0xd8   : > { %v877_v43 = vpop.f32.mrf.mxu2  ;;  %v975_v44 = vpop.f32.mrf.mxu3 }
  0xd9   : > { %v707_v45 = vpop.f32.mrf.mxu0  ;;  %v785_v46 = vpop.f32.mrf.mxu1  ;;  %v883_v51 = vadd.f32 %v877_v43, %v789_v48 }
  0xdb   : > { %v981_v54 = vadd.f32 %v975_v44, %v883_v51 }
  0xe0   : > { %v879_v57 = vpop.f32.mrf.mxu2  ;;  %v977_v58 = vpop.f32.mrf.mxu3 }
  0xe1   : > { %v1053_v59 = vpop.f32.mrf.mxu0  ;;  %v1058_v60 = vpop.f32.mrf.mxu1 }
  0xe2   : > { %v1062_v21 = vadd.f32 %v1053_v59, %v979_v53  ;;  %v1064_v62 = vadd.f32 %v1058_v60, %v981_v54 }
  0xe4   : > { %v1069_v1 = vadd.f32 %v1613_v55, %v1062_v21  ;;  %v1071_v3 = vadd.f32 %v1613_v55, %v1064_v62 }
  0xe6   : > { %1614 = vtanh.f32 %v1069_v1 }
  0xe7   : > { %1616 = vtanh.f32 %v1071_v3 }
  0xe9   : > { %v1055_v12 = vpop.f32.mrf.mxu0  ;;  %v1060_v14 = vpop.f32.mrf.mxu1 }
  0xea   : > { %v1063_v15 = vadd.f32 %v1055_v12, %v980_v8 }
  0xec   : > { %v1615_v17 = vpop.eup %1614  ;;  %v1070_v19 = vadd.f32 %v1613_v55, %v1063_v15 }
  0xed   : > { %v1617_v20 = vpop.eup %1616  ;;  %v1093_v22 = vmul.f32 %v1615_v17, %v1590_v63 }
  0xee   : > { %v1095_v23 = vmul.f32 %v1617_v20, %v1080_v13  ;;  %1618 = vtanh.f32 %v1070_v19 }
  0xef   : > { %v1096_v24 = vadd.f32 %v1093_v22, %v1090_v4 }
  0xf0   : > { %v1098_v28 = vadd.f32 %v1095_v23, %v1092_v18 }
  0xf1   : > { %v1099_v29 = vpack.c.bf16 %v1096_v24, %v1096_v24 }
  0xf2   : > { %v1101_v30 = vpack.c.bf16 %v1098_v28, %v1098_v28 }
  0xf3   : > { %1103 = vst.msk [vmem:[%s264_s30] sm:$0xf] %vm1102_vm7, %v1099_v29 }
  0xf4   : > { %v1619_v32 = vpop.eup %1618  ;;  %1105 = vst.msk [vmem:[%s264_s30 + $0x8] sm:$0xf] %vm1102_vm7, %v1101_v30 }
  0xf5   : > { %v1094_v33 = vmul.f32 %v1619_v32, %v1591_v10 }
  0xf7   : > { %v1097_v34 = vadd.f32 %v1094_v33, %v1091_v31 }
  0xf9   : > { %v1100_v35 = vpack.c.bf16 %v1097_v34, %v1097_v34 }
  0xfb   : > { %1104 = vst.msk [vmem:[%s264_s30 + $0x4] sm:$0xf] %vm1102_vm7, %v1100_v35 }
  0xfc PF: > { %s15_s18 = sadd.s32 1, %s1626_s18  }
  0xfd   : > { %p12_p4 = scmp.ge.s32.totalorder %s15_s18, 4  }
  0xff   :  { %14 = sbr.rel (!%p12_p4) target bundleno = 1 (0x1), region = 84 }

// kernel: raft_forward.48
= control target key start
LH: loop header
LB: loop body
LE: loop exit
PB: predicated region body
PF: predicated region fallthrough
CT: control target
= control target key end

     0   :  { %s954_s12 = smov 0   ;;  %s1096_s0 = inlined_call_operand.vmem [shape: bf16[2,1,48,32], index: 0, kind: input, shape index: {}]   ;;  %s1097_s1 = inlined_call_operand.vmem [shape: bf16[9,32,32], index: 1, kind: input, shape index: {}]   ;;  %s1098_s2 = inlined_call_operand.vmem [shape: f32[1,32], index: 2, kind: input, shape index: {}]   ;;  %s1099_s3 = inlined_call_operand.vmem [shape: bf16[2,24,32], index: 3, kind: output, shape index: {}]  }
   0x1 LB: > { %s755_s13 = sadd.s32 4294967295, %s932_s12   ;;  %p759_p0 = scmp.ge.s32.totalorder %s932_s12, 1  ;;  %s932_s12 = sphi %s954_s12, %s13_s12  }
   0x2   : > { %p137_p1 = scmp.lt.s32.totalorder %s932_s12, 3 }
   0x4   : > { %p138_p2 = pnand %p759_p0, %p137_p1 }
   0x5   : > { %p161_p3 = scmp.lt.s32.totalorder (!%p138_p2), %s755_s13, 1 }
   0x6   : > { %141 = sbr.rel (%p138_p2) target bundleno = 232 (0xe8), region = 32 }
   0xb   : > { %v889_v0 = vld [vmem:[%s1097_s1 + $0x18] sm:$0xff]  ;;  %v891_v1 = vld [vmem:[%s1097_s1 + $0x28] sm:$0xff]  ;;  %v888_v3 = vld [vmem:[%s1097_s1 + $0x10] sm:$0xff]  ;;  %s1101_s13 = smov (!%p161_p3, %s755_s13), 1  ;;  %vm293_vm0 = vcmask 1046528   ;;  %vm223_vm2 = vcmask 261120  }
   0xc   : > { %v893_v2 = vld [vmem:[%s1097_s1 + $0x38] sm:$0xff]  ;;  %236 = vmatpush.bf16.msra.mxu0 %v889_v0  ;;  %913 = vmatpush.bf16.msra.mxu1 %v889_v0  ;;  %v887_v4 = vld [vmem:[%s1097_s1 + $0x8] sm:$0xff]  ;;  %v890_v5 = vld [vmem:[%s1097_s1 + $0x20] sm:$0xff]  ;;  %s915_s26 = smul.u32 24, %s1101_s13  ;;  %vm195_vm1 = vsmask.f32 7424 }
   0xd   : > { %321 = vmatpush.bf16.msra.mxu2 %v891_v1  ;;  %377 = vmatpush.bf16.msra.mxu3 %v893_v2  ;;  %v892_v6 = vld [vmem:[%s1097_s1 + $0x30] sm:$0xff]  ;;  %v895_v7 = vld [vmem:[%s1097_s1 + $0x48] sm:$0xff]  ;;  %v901_v9 = vld [vmem:[%s1097_s1 + $0x78] sm:$0xff]  ;;  %vm349_vm3 = vcmask 1044480   ;;  %vm401_vm4 = vsmask.f32 4352 }
   0xe   : > { %v899_v8 = vld [vmem:[%s1097_s1 + $0x68] sm:$0xff]  ;;  %s998_s10 = scalar_lea.vmem %s1096_s0, %s915_s26  ;;  %v886_v10 = vld [vmem:[%s1097_s1] sm:$0xff]  ;;  %v900_v26 = vld [vmem:[%s1097_s1 + $0x70] sm:$0xff]  ;;  %vm523_vm5 = vcmask 1045504   ;;  %vm575_vm6 = vsmask.f32 5376 }
   0xf   : > { %v894_v11 = vld [vmem:[%s1097_s1 + $0x40] sm:$0xff]  ;;  %v1010_v13 = vld [vmem:[%s998_s10 + $0x8] sm:$0xff]   ;;  %v897_v43 = vld [vmem:[%s1097_s1 + $0x58] sm:$0xff]  ;;  %s916_s4 = smul.u32 12, %s1101_s13  ;;  %vm696_vm7 = vcmask 257024  }
  0x10   : > { %237 = vmatpush.bf16.msra.mxu0 %v888_v3  ;;  %914 = vmatpush.bf16.msra.mxu1 %v888_v3  ;;  %v1007_v12 = vld [vmem:[%s998_s10] sm:$0xff]   ;;  %v179_v14 = vld [vmem:[%s998_s10 + $0xc] sm:$0x1]  ;;  %v1014_v15 = vunpack.c.l.b16 %v1010_v13  ;;  %v399_v30 = vunpack.c.h.b16 %v1010_v13  ;;  %v411_v50 = vshrl.u32 %v1010_v13, 16  ;;  %v414_v51 = vshll.u32 %v1010_v13, 16  ;;  %v896_v52 = vld [vmem:[%s1097_s1 + $0x50] sm:$0xff] }
  0x11   : > { %322 = vmatpush.bf16.msra.mxu2 %v890_v5  ;;  %v192_v16 = vunpack.c.l.b16 %v179_v14  ;;  %v197_v17 = vshrl.u32 %v1007_v12, 16  ;;  %v199_v18 = vshll.u32 %v1007_v12, 16  ;;  %378 = vmatpush.bf16.msra.mxu3 %v892_v6  ;;  %v284_v19 = vld [vmem:[%s998_s10] sm:$0xe]  ;;  %v1021_v21 = vunpack.c.h.b16 %v1007_v12  ;;  %v337_v23 = vld [vmem:[%s998_s10 + $0xc] sm:$0x7]  ;;  %s170_s7 = scalar_lea.vmem %s1099_s3, %s916_s4 }
  0x12   : > { %v336_v20 = vld [vmem:[%s998_s10] sm:$0x8]  ;;  %v291_v22 = vunpack.c.l.b16 %v284_v19  ;;  %v346_v29 = vunpack.c.l.b16 %v337_v23  ;;  %v903_v44 = vld [vmem:[%s1097_s1 + $0x88] sm:$0xff]  ;;  %v413_v56 = vrot.slane %v411_v50, 3  ;;  %v416_v57 = vrot.slane %v414_v51, 4 }
  0x13   : > { %v345_v24 = vunpack.c.l.b16 %v336_v20  ;;  %v898_v25 = vld [vmem:[%s1097_s1 + $0x60] sm:$0xff]  ;;  %v194_v27 = vpack.c.b16 %v192_v16, %v1014_v15  ;;  %v201_v28 = vrot.slane %v199_v18, 1  ;;  %v912_v59 = vld [vmem:[%s998_s10 + $0x8] sm:$0xff]   ;;  %v566_v60 = vld [vmem:[%s998_s10 + $0x10] sm:$0x7] }
  0x14   : > { %272 = vmatpush.bf16.msrb.mxu1 %v887_v4  ;;  %443 = vmatpush.bf16.msrb.mxu0 %v895_v7  ;;  %v292_v31 = vpack.c.b16 %v1021_v21, %v291_v22  ;;  %v348_v38 = vpack.c.b16 %v346_v29, %v1014_v15  ;;  %v902_v53 = vld [vmem:[%s1097_s1 + $0x80] sm:$0xff]  ;;  %v417_v62 = vor.u32 %v416_v57, %v413_v56  ;;  %v910_v63 = vunpack.c.l.b16 %v912_v59  ;;  %v507_v4 = vld [vmem:[%s998_s10 + $0x10] sm:$0x3] }
  0x15   : > { %551 = vmatpush.bf16.msrb.mxu2 %v899_v8  ;;  %617 = vmatpush.bf16.msrb.mxu3 %v901_v9  ;;  %v347_v32 = vpack.c.b16 %v1021_v21, %v345_v24  ;;  %v202_v33 = vor.u32 %v201_v28, %v197_v17  ;;  %v204_v34 = vshll.u32 %v194_v27, 16  ;;  %v208_v35 = vshrl.u32 %v194_v27, 16  ;;  %v504_v58 = vld [vmem:[%s998_s10 + $0x4] sm:$0xc] }
  0x16   : > { %v295_v36 = vrot.slane %v194_v27, 1  ;;  %v294_v37 = vrot.slane %v292_v31, 1  ;;  %v351_v42 = vrot.slane %v348_v38, 3  ;;  %v911_v0 = vunpack.c.h.b16 %v912_v59  ;;  %v632_v27 = vld [vmem:[%s998_s10 + $0x4] sm:$0x8] }
  0x17   : > { %v350_v39 = vrot.slane %v347_v32, 3  ;;  %v206_v40 = vrot.slane %v204_v34, 1  ;;  %v403_v48 = vshrl.u32 %v347_v32, 16  ;;  %v406_v49 = vshll.u32 %v347_v32, 16 }
  0x18   : > { %273 = vmatpush.bf16.msrb.mxu1 %v886_v10  ;;  %444 = vmatpush.bf16.msrb.mxu0 %v894_v11  ;;  %v296_v41 = vsel %vm293_vm0, %v294_v37, %v295_v36  ;;  %v517_v1 = vunpack.c.l.b16 %v504_v58  ;;  %v573_v2 = vunpack.c.l.b16 %v566_v60  ;;  %v520_v7 = vunpack.c.l.b16 %v507_v4 }
  0x19   : > { %552 = vmatpush.bf16.msrb.mxu2 %v898_v25  ;;  %618 = vmatpush.bf16.msrb.mxu3 %v900_v26  ;;  %v207_v45 = vsel %vm195_vm1, %v202_v33, %v206_v40  ;;  %v210_v46 = vor.u32 %v208_v35, %v206_v40  ;;  %v352_v47 = vsel %vm349_vm3, %v350_v39, %v351_v42  ;;  %v405_v54 = vrot.slane %v403_v48, 3 }
  0x1a   : > { %798 = vmatmul.msk.bf16.vlgmr.msra.gmra.mxu2 %vm223_vm2, %v296_v41  ;;  %774 = vmatmul.msk.bf16.vlgmr.msra.gmra.mxu0 %vm223_vm2, %v207_v45  ;;  %v408_v55 = vrot.slane %v406_v49, 4  ;;  %v521_v5 = vpack.c.b16 %v910_v63, %v517_v1  ;;  %v574_v6 = vpack.c.b16 %v573_v2, %v911_v0  ;;  %v522_v14 = vpack.c.b16 %v520_v7, %v911_v0 }
  0x1b   : > { %775 = vmatmul.msk.bf16.vlgmr.msra.gmra.mxu1 %vm223_vm2, %v210_v46  ;;  %812 = vmatmul.msk.bf16.vlgmr.msra.gmra.mxu3 %vm223_vm2, %v352_v47  ;;  %v639_v28 = vunpack.c.l.b16 %v632_v27  ;;  %v463_v34 = vpack.c.b16 %v1014_v15, %v1021_v21  ;;  %v464_v35 = vpack.c.b16 %v399_v30, %v399_v30 }
  0x1c   : > { %489 = vmatpush.bf16.msra.mxu1 %v897_v43  ;;  %668 = vmatpush.bf16.msra.mxu0 %v903_v44  ;;  %v409_v61 = vor.u32 %v408_v55, %v405_v54  ;;  %v577_v8 = vshrl.u32 %v521_v5, 16  ;;  %v580_v9 = vshll.u32 %v521_v5, 16  ;;  %v585_v10 = vshrl.u32 %v574_v6, 16 }
  0x1d   : > { %v588_v11 = vshll.u32 %v574_v6, 16  ;;  %v524_v20 = vrot.slane %v521_v5, 2  ;;  %v525_v22 = vrot.slane %v522_v14, 2  ;;  %v640_v29 = vpack.c.b16 %v910_v63, %v639_v28 }
  0x1e   : > { %v418_v3 = vsel %vm401_vm4, %v409_v61, %v417_v62  ;;  %v579_v16 = vrot.slane %v577_v8, 2  ;;  %v582_v17 = vrot.slane %v580_v9, 3  ;;  %v587_v18 = vrot.slane %v585_v10, 2 }
  0x1f   : > { %v590_v19 = vrot.slane %v588_v11, 3  ;;  %v526_v25 = vsel %vm523_vm5, %v524_v20, %v525_v22  ;;  %v641_v31 = vrot.slane %v640_v29, 3  ;;  %v642_v32 = vrot.slane %v574_v6, 3  ;;  %v925_v6 = vld [vmem:[%s1098_s2] ss:$0 sm:$0xff] }
  0x20   : > { %490 = vmatpush.bf16.msra.mxu1 %v896_v52  ;;  %669 = vmatpush.bf16.msra.mxu0 %v902_v53  ;;  %v583_v23 = vor.u32 %v582_v17, %v579_v16 }
  0x21   : > { %v591_v24 = vor.u32 %v590_v19, %v587_v18  ;;  %v643_v33 = vsel %vm349_vm3, %v641_v31, %v642_v32 }
  0x23   : > { %v592_v26 = vsel %vm575_vm6, %v583_v23, %v591_v24 }
  0x2a   : > { %799 = vmatmul.msk.bf16.gmra.mxu2 %vm223_vm2, %v295_v36  ;;  %826 = vmatmul.msk.bf16.vlgmr.msrb.gmra.mxu0 %vm223_vm2, %v418_v3 }
  0x2b   : > { %784 = vmatmul.msk.bf16.vlgmr.msrb.gmra.mxu1 %vm223_vm2, %v1007_v12  ;;  %813 = vmatmul.msk.bf16.gmra.mxu3 %vm223_vm2, %v351_v42  ;;  %v248_v12 = vpack.c.b16 %v1014_v15, %v1014_v15 }
  0x3a   : > { %854 = vmatmul.msk.bf16.vlgmr.msrb.gmra.mxu2 %vm223_vm2, %v526_v25  ;;  %827 = vmatmul.msk.bf16.gmra.mxu0 %vm223_vm2, %v417_v62 }
  0x3b   : > { %785 = vmatmul.msk.bf16.gmra.mxu1 %vm223_vm2, %v248_v12  ;;  %868 = vmatmul.msk.bf16.vlgmr.msrb.gmra.mxu3 %vm223_vm2, %v592_v26 }
  0x4a   : > { %855 = vmatmul.msk.bf16.gmra.mxu2 %vm223_vm2, %v525_v22  ;;  %882 = vmatmul.msk.bf16.vlgmr.msra.gmra.mxu0 %vm223_vm2, %v643_v33 }
  0x4b   : > { %840 = vmatmul.msk.bf16.vlgmr.msra.gmra.mxu1 %vm223_vm2, %v463_v34  ;;  %869 = vmatmul.msk.bf16.gmra.mxu3 %vm223_vm2, %v591_v24 }
  0x5a   : > { %883 = vmatmul.msk.bf16.gmra.mxu0 %vm223_vm2, %v642_v32 }
  0x5b   : > { %841 = vmatmul.msk.bf16.gmra.mxu1 %vm223_vm2, %v464_v35 }
  0x97   : > { %v239_v36 = vpop.f32.mrf.mxu0 }
  0x98   : > { %v244_v37 = vpop.f32.mrf.mxu1 }
  0x9d   : > { %v324_v38 = vpop.f32.mrf.mxu2 }
  0x9e   : > { %v380_v15 = vpop.f32.mrf.mxu3 }
  0x9f   : > { %v241_v21 = vpop.f32.mrf.mxu0 }
  0xa0   : > { %v246_v39 = vpop.f32.mrf.mxu1 }
  0xa5   : > { %v326_v40 = vpop.f32.mrf.mxu2 }
  0xa6   : > { %v382_v41 = vpop.f32.mrf.mxu3 }
  0xa7   : > { %v446_v42 = vpop.f32.mrf.mxu0 }
  0xa8   : > { %v275_v43 = vpop.f32.mrf.mxu1 }
  0xa9   : > { %v276_v50 = vadd.f32 %v275_v43, %v239_v36 }
  0xab   : > { %v333_v53 = vadd.f32 %v324_v38, %v276_v50 }
  0xad   : > { %v329_v44 = vpop.f32.mrf.mxu2  ;;  %v389_v57 = vadd.f32 %v380_v15, %v333_v53 }
  0xae   : > { %v385_v45 = vpop.f32.mrf.mxu3 }
  0xaf   : > { %v448_v46 = vpop.f32.mrf.mxu0  ;;  %v455_v62 = vadd.f32 %v446_v42, %v389_v57 }
  0xb0   : > { %v277_v13 = vpop.f32.mrf.mxu1 }
  0xb1   : > { %v278_v56 = vadd.f32 %v277_v13, %v241_v21 }
  0xb3   : > { %v334_v60 = vadd.f32 %v326_v40, %v278_v56 }
  0xb5   : > { %v331_v47 = vpop.f32.mrf.mxu2  ;;  %v390_v3 = vadd.f32 %v382_v41, %v334_v60 }
  0xb6   : > { %v387_v30 = vpop.f32.mrf.mxu3 }
  0xb7   : > { %v451_v48 = vpop.f32.mrf.mxu0  ;;  %v456_v11 = vadd.f32 %v448_v46, %v390_v3 }
  0xb8   : > { %v280_v49 = vpop.f32.mrf.mxu1 }
  0xb9   : > { %v281_v1 = vadd.f32 %v280_v49, %v244_v37 }
  0xbb   : > { %v335_v8 = vadd.f32 %v329_v44, %v281_v1 }
  0xbd   : > { %v554_v51 = vpop.f32.mrf.mxu2  ;;  %v391_v20 = vadd.f32 %v385_v45, %v335_v8 }
  0xbe   : > { %v620_v52 = vpop.f32.mrf.mxu3 }
  0xbf   : > { %v453_v54 = vpop.f32.mrf.mxu0  ;;  %v457_v27 = vadd.f32 %v451_v48, %v391_v20 }
  0xc0   : > { %v282_v55 = vpop.f32.mrf.mxu1 }
  0xc5   : > { %v556_v58 = vpop.f32.mrf.mxu2 }
  0xc6   : > { %v622_v59 = vpop.f32.mrf.mxu3 }
  0xc7   : > { %v671_v61 = vpop.f32.mrf.mxu0 }
  0xc8   : > { %v492_v63 = vpop.f32.mrf.mxu1 }
  0xc9   : > { %v501_v0 = vadd.f32 %v492_v63, %v455_v62 }
  0xcb   : > { %v563_v2 = vadd.f32 %v554_v51, %v501_v0 }
  0xcd   : > { %v559_v4 = vpop.f32.mrf.mxu2  ;;  %v629_v5 = vadd.f32 %v620_v52, %v563_v2 }
  0xce   : > { %v625_v7 = vpop.f32.mrf.mxu3 }
  0xcf   : > { %v680_v9 = vadd.f32 %v671_v61, %v629_v5  ;;  %v673_v10 = vpop.f32.mrf.mxu0 }
  0xd0   : > { %v494_v14 = vpop.f32.mrf.mxu1 }
  0xd1   : > { %v687_v16 = vadd.f32 %v925_v6, %v680_v9  ;;  %v502_v17 = vadd.f32 %v494_v14, %v456_v11 }
  0xd3   : > { %v690_v18 = vmax.f32 %v687_v16, 0.0  ;;  %v564_v19 = vadd.f32 %v556_v58, %v502_v17 }
  0xd5   : > { %v561_v22 = vpop.f32.mrf.mxu2  ;;  %v693_v23 = vpack.c.bf16 %v690_v18, %v690_v18  ;;  %v630_v24 = vadd.f32 %v622_v59, %v564_v19 }
  0xd6   : > { %v627_v25 = vpop.f32.mrf.mxu3 }
  0xd7   : > { %697 = vst.msk [vmem:[%s170_s7] sm:$0xf] %vm696_vm7, %v693_v23  ;;  %v681_v12 = vadd.f32 %v673_v10, %v630_v24  ;;  %v676_v26 = vpop.f32.mrf.mxu0 }
  0xd8   : > { %v497_v28 = vpop.f32.mrf.mxu1 }
  0xd9   : > { %v688_v29 = vadd.f32 %v925_v6, %v681_v12  ;;  %v503_v31 = vadd.f32 %v497_v28, %v457_v27 }
  0xdb   : > { %v691_v32 = vmax.f32 %v688_v29, 0.0  ;;  %v565_v33 = vadd.f32 %v559_v4, %v503_v31 }
  0xdd   : > { %v694_v34 = vpack.c.bf16 %v691_v32, %v691_v32  ;;  %v631_v35 = vadd.f32 %v625_v7, %v565_v33 }
  0xdf   : > { %698 = vst.msk [vmem:[%s170_s7 + $0x4] sm:$0xf] %vm696_vm7, %v694_v34  ;;  %v682_v36 = vadd.f32 %v676_v26, %v631_v35  ;;  %v678_v37 = vpop.f32.mrf.mxu0 }
  0xe0   : > { %v499_v38 = vpop.f32.mrf.mxu1 }
  0xe1   : > { %v689_v15 = vadd.f32 %v925_v6, %v682_v36 }
  0xe3   : > { %v692_v21 = vmax.f32 %v689_v15, 0.0 }
  0xe5   : > { %v695_v39 = vpack.c.bf16 %v692_v21, %v692_v21 }
  0xe7   : > { %699 = vst.msk [vmem:[%s170_s7 + $0x8] sm:$0xf] %vm696_vm7, %v695_v39 }
  0xe8 PF: > { %s13_s12 = sadd.s32 1, %s932_s12  }
  0xe9   : > { %p10_p4 = scmp.ge.s32.totalorder %s13_s12, 4  }
  0xeb   :  { %12 = sbr.rel (!%p10_p4) target bundleno = 1 (0x1), region = 70 }

// kernel: raft_forward.49
= control target key start
LH: loop header
LB: loop body
LE: loop exit
PB: predicated region body
PF: predicated region fallthrough
CT: control target
= control target key end

     0   :  { %s951_s12 = smov 0   ;;  %s1093_s0 = inlined_call_operand.vmem [shape: bf16[2,1,48,32], index: 0, kind: input, shape index: {}]   ;;  %s1094_s1 = inlined_call_operand.vmem [shape: bf16[9,32,2], index: 1, kind: input, shape index: {}]   ;;  %s1095_s2 = inlined_call_operand.vmem [shape: f32[1,2], index: 2, kind: input, shape index: {}]   ;;  %s1096_s3 = inlined_call_operand.vmem [shape: bf16[2,24,2], index: 3, kind: output, shape index: {}]  }
   0x1 LB: > { %s752_s13 = sadd.s32 4294967295, %s929_s12   ;;  %p756_p0 = scmp.ge.s32.totalorder %s929_s12, 1  ;;  %s929_s12 = sphi %s951_s12, %s13_s12  }
   0x2   : > { %p137_p1 = scmp.lt.s32.totalorder %s929_s12, 3 }
   0x4   : > { %p138_p2 = pnand %p756_p0, %p137_p1 }
   0x5   : > { %p161_p3 = scmp.lt.s32.totalorder (!%p138_p2), %s752_s13, 1 }
   0x6   : > { %141 = sbr.rel (%p138_p2) target bundleno = 230 (0xe6), region = 32 }
   0xb   : > { %v886_v0 = vld [vmem:[%s1094_s1 + $0x18] sm:$0xff]  ;;  %v888_v1 = vld [vmem:[%s1094_s1 + $0x28] sm:$0xff]  ;;  %v885_v3 = vld [vmem:[%s1094_s1 + $0x10] sm:$0xff]  ;;  %s1098_s13 = smov (!%p161_p3, %s752_s13), 1  ;;  %vm293_vm0 = vcmask 1046528   ;;  %vm223_vm2 = vcmask 261120  }
   0xc   : > { %v890_v2 = vld [vmem:[%s1094_s1 + $0x38] sm:$0xff]  ;;  %236 = vmatpush.bf16.msra.mxu0 %v886_v0  ;;  %910 = vmatpush.bf16.msra.mxu1 %v886_v0  ;;  %v884_v4 = vld [vmem:[%s1094_s1 + $0x8] sm:$0xff]  ;;  %v887_v5 = vld [vmem:[%s1094_s1 + $0x20] sm:$0xff]  ;;  %s912_s26 = smul.u32 24, %s1098_s13  ;;  %vm195_vm1 = vsmask.f32 7424 }
   0xd   : > { %321 = vmatpush.bf16.msra.mxu2 %v888_v1  ;;  %377 = vmatpush.bf16.msra.mxu3 %v890_v2  ;;  %v889_v6 = vld [vmem:[%s1094_s1 + $0x30] sm:$0xff]  ;;  %v892_v7 = vld [vmem:[%s1094_s1 + $0x48] sm:$0xff]  ;;  %v898_v9 = vld [vmem:[%s1094_s1 + $0x78] sm:$0xff]  ;;  %vm349_vm3 = vcmask 1044480   ;;  %vm401_vm4 = vsmask.f32 4352 }
   0xe   : > { %v896_v8 = vld [vmem:[%s1094_s1 + $0x68] sm:$0xff]  ;;  %s995_s10 = scalar_lea.vmem %s1093_s0, %s912_s26  ;;  %v883_v10 = vld [vmem:[%s1094_s1] sm:$0xff]  ;;  %v897_v26 = vld [vmem:[%s1094_s1 + $0x70] sm:$0xff]  ;;  %vm523_vm5 = vcmask 1045504   ;;  %vm575_vm6 = vsmask.f32 5376 }
   0xf   : > { %v891_v11 = vld [vmem:[%s1094_s1 + $0x40] sm:$0xff]  ;;  %v1007_v13 = vld [vmem:[%s995_s10 + $0x8] sm:$0xff]   ;;  %v894_v43 = vld [vmem:[%s1094_s1 + $0x58] sm:$0xff]  ;;  %s913_s4 = smul.u32 12, %s1098_s13  ;;  %vm693_vm7 = vcmask 11264  }
  0x10   : > { %237 = vmatpush.bf16.msra.mxu0 %v885_v3  ;;  %911 = vmatpush.bf16.msra.mxu1 %v885_v3  ;;  %v1004_v12 = vld [vmem:[%s995_s10] sm:$0xff]   ;;  %v179_v14 = vld [vmem:[%s995_s10 + $0xc] sm:$0x1]  ;;  %v1011_v15 = vunpack.c.l.b16 %v1007_v13  ;;  %v399_v30 = vunpack.c.h.b16 %v1007_v13  ;;  %v411_v50 = vshrl.u32 %v1007_v13, 16  ;;  %v414_v51 = vshll.u32 %v1007_v13, 16  ;;  %v893_v52 = vld [vmem:[%s1094_s1 + $0x50] sm:$0xff] }
  0x11   : > { %322 = vmatpush.bf16.msra.mxu2 %v887_v5  ;;  %v192_v16 = vunpack.c.l.b16 %v179_v14  ;;  %v197_v17 = vshrl.u32 %v1004_v12, 16  ;;  %v199_v18 = vshll.u32 %v1004_v12, 16  ;;  %378 = vmatpush.bf16.msra.mxu3 %v889_v6  ;;  %v284_v19 = vld [vmem:[%s995_s10] sm:$0xe]  ;;  %v1018_v21 = vunpack.c.h.b16 %v1004_v12  ;;  %v337_v23 = vld [vmem:[%s995_s10 + $0xc] sm:$0x7]  ;;  %s170_s7 = scalar_lea.vmem %s1096_s3, %s913_s4 }
  0x12   : > { %v336_v20 = vld [vmem:[%s995_s10] sm:$0x8]  ;;  %v291_v22 = vunpack.c.l.b16 %v284_v19  ;;  %v346_v29 = vunpack.c.l.b16 %v337_v23  ;;  %v900_v44 = vld [vmem:[%s1094_s1 + $0x88] sm:$0xff]  ;;  %v413_v56 = vrot.slane %v411_v50, 3  ;;  %v416_v57 = vrot.slane %v414_v51, 4 }
  0x13   : > { %v345_v24 = vunpack.c.l.b16 %v336_v20  ;;  %v895_v25 = vld [vmem:[%s1094_s1 + $0x60] sm:$0xff]  ;;  %v194_v27 = vpack.c.b16 %v192_v16, %v1011_v15  ;;  %v201_v28 = vrot.slane %v199_v18, 1  ;;  %v909_v59 = vld [vmem:[%s995_s10 + $0x8] sm:$0xff]   ;;  %v566_v60 = vld [vmem:[%s995_s10 + $0x10] sm:$0x7] }
  0x14   : > { %272 = vmatpush.bf16.msrb.mxu1 %v884_v4  ;;  %443 = vmatpush.bf16.msrb.mxu0 %v892_v7  ;;  %v292_v31 = vpack.c.b16 %v1018_v21, %v291_v22  ;;  %v348_v38 = vpack.c.b16 %v346_v29, %v1011_v15  ;;  %v899_v53 = vld [vmem:[%s1094_s1 + $0x80] sm:$0xff]  ;;  %v417_v62 = vor.u32 %v416_v57, %v413_v56  ;;  %v907_v63 = vunpack.c.l.b16 %v909_v59  ;;  %v507_v4 = vld [vmem:[%s995_s10 + $0x10] sm:$0x3] }
  0x15   : > { %551 = vmatpush.bf16.msrb.mxu2 %v896_v8  ;;  %617 = vmatpush.bf16.msrb.mxu3 %v898_v9  ;;  %v347_v32 = vpack.c.b16 %v1018_v21, %v345_v24  ;;  %v202_v33 = vor.u32 %v201_v28, %v197_v17  ;;  %v204_v34 = vshll.u32 %v194_v27, 16  ;;  %v208_v35 = vshrl.u32 %v194_v27, 16  ;;  %v504_v58 = vld [vmem:[%s995_s10 + $0x4] sm:$0xc] }
  0x16   : > { %v295_v36 = vrot.slane %v194_v27, 1  ;;  %v294_v37 = vrot.slane %v292_v31, 1  ;;  %v351_v42 = vrot.slane %v348_v38, 3  ;;  %v908_v0 = vunpack.c.h.b16 %v909_v59  ;;  %v632_v27 = vld [vmem:[%s995_s10 + $0x4] sm:$0x8] }
  0x17   : > { %v350_v39 = vrot.slane %v347_v32, 3  ;;  %v206_v40 = vrot.slane %v204_v34, 1  ;;  %v403_v48 = vshrl.u32 %v347_v32, 16  ;;  %v406_v49 = vshll.u32 %v347_v32, 16 }
  0x18   : > { %273 = vmatpush.bf16.msrb.mxu1 %v883_v10  ;;  %444 = vmatpush.bf16.msrb.mxu0 %v891_v11  ;;  %v296_v41 = vsel %vm293_vm0, %v294_v37, %v295_v36  ;;  %v517_v1 = vunpack.c.l.b16 %v504_v58  ;;  %v573_v2 = vunpack.c.l.b16 %v566_v60  ;;  %v520_v7 = vunpack.c.l.b16 %v507_v4 }
  0x19   : > { %552 = vmatpush.bf16.msrb.mxu2 %v895_v25  ;;  %618 = vmatpush.bf16.msrb.mxu3 %v897_v26  ;;  %v207_v45 = vsel %vm195_vm1, %v202_v33, %v206_v40  ;;  %v210_v46 = vor.u32 %v208_v35, %v206_v40  ;;  %v352_v47 = vsel %vm349_vm3, %v350_v39, %v351_v42  ;;  %v405_v54 = vrot.slane %v403_v48, 3 }
  0x1a   : > { %795 = vmatmul.msk.bf16.vlgmr.msra.gmra.mxu2 %vm223_vm2, %v296_v41  ;;  %771 = vmatmul.msk.bf16.vlgmr.msra.gmra.mxu0 %vm223_vm2, %v207_v45  ;;  %v408_v55 = vrot.slane %v406_v49, 4  ;;  %v521_v5 = vpack.c.b16 %v907_v63, %v517_v1  ;;  %v574_v6 = vpack.c.b16 %v573_v2, %v908_v0  ;;  %v522_v14 = vpack.c.b16 %v520_v7, %v908_v0 }
  0x1b   : > { %772 = vmatmul.msk.bf16.vlgmr.msra.gmra.mxu1 %vm223_vm2, %v210_v46  ;;  %809 = vmatmul.msk.bf16.vlgmr.msra.gmra.mxu3 %vm223_vm2, %v352_v47  ;;  %v639_v28 = vunpack.c.l.b16 %v632_v27  ;;  %v463_v34 = vpack.c.b16 %v1011_v15, %v1018_v21  ;;  %v464_v35 = vpack.c.b16 %v399_v30, %v399_v30 }
  0x1c   : > { %489 = vmatpush.bf16.msra.mxu1 %v894_v43  ;;  %668 = vmatpush.bf16.msra.mxu0 %v900_v44  ;;  %v409_v61 = vor.u32 %v408_v55, %v405_v54  ;;  %v577_v8 = vshrl.u32 %v521_v5, 16  ;;  %v580_v9 = vshll.u32 %v521_v5, 16  ;;  %v585_v10 = vshrl.u32 %v574_v6, 16 }
  0x1d   : > { %v588_v11 = vshll.u32 %v574_v6, 16  ;;  %v524_v20 = vrot.slane %v521_v5, 2  ;;  %v525_v22 = vrot.slane %v522_v14, 2  ;;  %v640_v29 = vpack.c.b16 %v907_v63, %v639_v28 }
  0x1e   : > { %v418_v3 = vsel %vm401_vm4, %v409_v61, %v417_v62  ;;  %v579_v16 = vrot.slane %v577_v8, 2  ;;  %v582_v17 = vrot.slane %v580_v9, 3  ;;  %v587_v18 = vrot.slane %v585_v10, 2 }
  0x1f   : > { %v590_v19 = vrot.slane %v588_v11, 3  ;;  %v526_v25 = vsel %vm523_vm5, %v524_v20, %v525_v22  ;;  %v641_v31 = vrot.slane %v640_v29, 3  ;;  %v642_v32 = vrot.slane %v574_v6, 3  ;;  %v922_v6 = vld [vmem:[%s1095_s2] ss:$0 sm:$0xff] }
  0x20   : > { %490 = vmatpush.bf16.msra.mxu1 %v893_v52  ;;  %669 = vmatpush.bf16.msra.mxu0 %v899_v53  ;;  %v583_v23 = vor.u32 %v582_v17, %v579_v16 }
  0x21   : > { %v591_v24 = vor.u32 %v590_v19, %v587_v18  ;;  %v643_v33 = vsel %vm349_vm3, %v641_v31, %v642_v32 }
  0x23   : > { %v592_v26 = vsel %vm575_vm6, %v583_v23, %v591_v24 }
  0x2a   : > { %796 = vmatmul.msk.bf16.gmra.mxu2 %vm223_vm2, %v295_v36  ;;  %823 = vmatmul.msk.bf16.vlgmr.msrb.gmra.mxu0 %vm223_vm2, %v418_v3 }
  0x2b   : > { %781 = vmatmul.msk.bf16.vlgmr.msrb.gmra.mxu1 %vm223_vm2, %v1004_v12  ;;  %810 = vmatmul.msk.bf16.gmra.mxu3 %vm223_vm2, %v351_v42  ;;  %v248_v12 = vpack.c.b16 %v1011_v15, %v1011_v15 }
  0x3a   : > { %851 = vmatmul.msk.bf16.vlgmr.msrb.gmra.mxu2 %vm223_vm2, %v526_v25  ;;  %824 = vmatmul.msk.bf16.gmra.mxu0 %vm223_vm2, %v417_v62 }
  0x3b   : > { %782 = vmatmul.msk.bf16.gmra.mxu1 %vm223_vm2, %v248_v12  ;;  %865 = vmatmul.msk.bf16.vlgmr.msrb.gmra.mxu3 %vm223_vm2, %v592_v26 }
  0x4a   : > { %852 = vmatmul.msk.bf16.gmra.mxu2 %vm223_vm2, %v525_v22  ;;  %879 = vmatmul.msk.bf16.vlgmr.msra.gmra.mxu0 %vm223_vm2, %v643_v33 }
  0x4b   : > { %837 = vmatmul.msk.bf16.vlgmr.msra.gmra.mxu1 %vm223_vm2, %v463_v34  ;;  %866 = vmatmul.msk.bf16.gmra.mxu3 %vm223_vm2, %v591_v24 }
  0x5a   : > { %880 = vmatmul.msk.bf16.gmra.mxu0 %vm223_vm2, %v642_v32 }
  0x5b   : > { %838 = vmatmul.msk.bf16.gmra.mxu1 %vm223_vm2, %v464_v35 }
  0x97   : > { %v239_v36 = vpop.f32.mrf.mxu0 }
  0x98   : > { %v244_v37 = vpop.f32.mrf.mxu1 }
  0x9d   : > { %v324_v38 = vpop.f32.mrf.mxu2 }
  0x9e   : > { %v380_v15 = vpop.f32.mrf.mxu3 }
  0x9f   : > { %v241_v21 = vpop.f32.mrf.mxu0 }
  0xa0   : > { %v246_v39 = vpop.f32.mrf.mxu1 }
  0xa5   : > { %v326_v40 = vpop.f32.mrf.mxu2 }
  0xa6   : > { %v382_v41 = vpop.f32.mrf.mxu3 }
  0xa7   : > { %v446_v42 = vpop.f32.mrf.mxu0 }
  0xa8   : > { %v275_v43 = vpop.f32.mrf.mxu1 }
  0xa9   : > { %v276_v50 = vadd.f32 %v275_v43, %v239_v36 }
  0xab   : > { %v333_v53 = vadd.f32 %v324_v38, %v276_v50 }
  0xad   : > { %v329_v44 = vpop.f32.mrf.mxu2  ;;  %v389_v57 = vadd.f32 %v380_v15, %v333_v53 }
  0xae   : > { %v385_v45 = vpop.f32.mrf.mxu3 }
  0xaf   : > { %v448_v46 = vpop.f32.mrf.mxu0  ;;  %v455_v62 = vadd.f32 %v446_v42, %v389_v57 }
  0xb0   : > { %v277_v13 = vpop.f32.mrf.mxu1 }
  0xb1   : > { %v278_v56 = vadd.f32 %v277_v13, %v241_v21 }
  0xb3   : > { %v334_v60 = vadd.f32 %v326_v40, %v278_v56 }
  0xb5   : > { %v331_v47 = vpop.f32.mrf.mxu2  ;;  %v390_v3 = vadd.f32 %v382_v41, %v334_v60 }
  0xb6   : > { %v387_v30 = vpop.f32.mrf.mxu3 }
  0xb7   : > { %v451_v48 = vpop.f32.mrf.mxu0  ;;  %v456_v11 = vadd.f32 %v448_v46, %v390_v3 }
  0xb8   : > { %v280_v49 = vpop.f32.mrf.mxu1 }
  0xb9   : > { %v281_v1 = vadd.f32 %v280_v49, %v244_v37 }
  0xbb   : > { %v335_v8 = vadd.f32 %v329_v44, %v281_v1 }
  0xbd   : > { %v554_v51 = vpop.f32.mrf.mxu2  ;;  %v391_v20 = vadd.f32 %v385_v45, %v335_v8 }
  0xbe   : > { %v620_v52 = vpop.f32.mrf.mxu3 }
  0xbf   : > { %v453_v54 = vpop.f32.mrf.mxu0  ;;  %v457_v26 = vadd.f32 %v451_v48, %v391_v20 }
  0xc0   : > { %v282_v55 = vpop.f32.mrf.mxu1 }
  0xc5   : > { %v556_v58 = vpop.f32.mrf.mxu2 }
  0xc6   : > { %v622_v59 = vpop.f32.mrf.mxu3 }
  0xc7   : > { %v671_v61 = vpop.f32.mrf.mxu0 }
  0xc8   : > { %v492_v63 = vpop.f32.mrf.mxu1 }
  0xc9   : > { %v501_v0 = vadd.f32 %v492_v63, %v455_v62 }
  0xcb   : > { %v563_v2 = vadd.f32 %v554_v51, %v501_v0 }
  0xcd   : > { %v559_v4 = vpop.f32.mrf.mxu2  ;;  %v629_v5 = vadd.f32 %v620_v52, %v563_v2 }
  0xce   : > { %v625_v7 = vpop.f32.mrf.mxu3 }
  0xcf   : > { %v680_v9 = vadd.f32 %v671_v61, %v629_v5  ;;  %v673_v10 = vpop.f32.mrf.mxu0 }
  0xd0   : > { %v494_v14 = vpop.f32.mrf.mxu1 }
  0xd1   : > { %v687_v16 = vadd.f32 %v922_v6, %v680_v9  ;;  %v502_v17 = vadd.f32 %v494_v14, %v456_v11 }
  0xd3   : > { %v690_v18 = vpack.c.bf16 %v687_v16, %v687_v16  ;;  %v564_v19 = vadd.f32 %v556_v58, %v502_v17 }
  0xd5   : > { %v561_v22 = vpop.f32.mrf.mxu2  ;;  %694 = vst.msk [vmem:[%s170_s7] sm:$0xf] %vm693_vm7, %v690_v18  ;;  %v630_v23 = vadd.f32 %v622_v59, %v564_v19 }
  0xd6   : > { %v627_v24 = vpop.f32.mrf.mxu3 }
  0xd7   : > { %v681_v25 = vadd.f32 %v673_v10, %v630_v23  ;;  %v676_v12 = vpop.f32.mrf.mxu0 }
  0xd8   : > { %v497_v27 = vpop.f32.mrf.mxu1 }
  0xd9   : > { %v688_v28 = vadd.f32 %v922_v6, %v681_v25  ;;  %v503_v29 = vadd.f32 %v497_v27, %v457_v26 }
  0xdb   : > { %v691_v31 = vpack.c.bf16 %v688_v28, %v688_v28  ;;  %v565_v32 = vadd.f32 %v559_v4, %v503_v29 }
  0xdd   : > { %695 = vst.msk [vmem:[%s170_s7 + $0x4] sm:$0xf] %vm693_vm7, %v691_v31  ;;  %v631_v33 = vadd.f32 %v625_v7, %v565_v32 }
  0xdf   : > { %v682_v34 = vadd.f32 %v676_v12, %v631_v33  ;;  %v678_v35 = vpop.f32.mrf.mxu0 }
  0xe0   : > { %v499_v36 = vpop.f32.mrf.mxu1 }
  0xe1   : > { %v689_v37 = vadd.f32 %v922_v6, %v682_v34 }
  0xe3   : > { %v692_v38 = vpack.c.bf16 %v689_v37, %v689_v37 }
  0xe5   : > { %696 = vst.msk [vmem:[%s170_s7 + $0x8] sm:$0xf] %vm693_vm7, %v692_v38 }
  0xe6 PF: > { %s13_s12 = sadd.s32 1, %s929_s12  }
  0xe7   : > { %p10_p4 = scmp.ge.s32.totalorder %s13_s12, 4  }
  0xe9   :  { %12 = sbr.rel (!%p10_p4) target bundleno = 1 (0x1), region = 70 }

</bundles_post_ra>
